<compile_context>
chip_gen: v5e
topology: v5e:2x2
jax: 0.10.0
libtpu: 0.0.40
codegen_flags: <defaults>
</compile_context>

<pallas_src>
import functools

import jax
import jax.numpy as jnp
from jax.experimental import pallas as pl
from jax.experimental.pallas import tpu as pltpu


# ----------------------------------------------------------------------------
# Pallas kernels
# ----------------------------------------------------------------------------
def _matmul_bias_kernel(x_ref, w_ref, b_ref, o_ref, *, apply_relu):
    """o = relu?(x @ w + b) for one (TM, K) x (K, N) tile. bf16 in, f32 acc."""
    acc = jnp.dot(x_ref[...], w_ref[...], preferred_element_type=jnp.float32)
    acc = acc + b_ref[...]
    if apply_relu:
        acc = jnp.maximum(acc, 0.0)
    o_ref[...] = acc


def _head_kernel(x_ref, w_ref, b_ref, cx_ref, cy_ref, o_ref):
    """Fused 1x1 conv (32->1) + soft-argmax.

    x_ref : (B, C, HW) f32   conv4 activation, HW in the lane dim
    w_ref : (C, 1)     f32   conv5 weight vector
    b_ref : (1, 1)     f32   conv5 bias
    cx/cy : (1, HW)    f32   normalized x / y coordinate per flat pixel
    o_ref : (B, 2)     f32   soft-argmax output
    """
    x = x_ref[...]
    w = w_ref[...]
    heat = jnp.sum(x * w[None, :, :], axis=1) + b_ref[...]        # (B, HW)
    m = jnp.max(heat, axis=-1, keepdims=True)
    e = jnp.exp(heat - m)                                         # EUP
    wts = e / jnp.sum(e, axis=-1, keepdims=True)
    ox = jnp.sum(wts * cx_ref[...], axis=-1, keepdims=True)       # (B, 1)
    oy = jnp.sum(wts * cy_ref[...], axis=-1, keepdims=True)       # (B, 1)
    o_ref[...] = jnp.concatenate([ox, oy], axis=-1)               # (B, 2)


# ----------------------------------------------------------------------------
# Pallas wrappers
# ----------------------------------------------------------------------------
def _choose_tm(M):
    """Tile the M axis: single tile when small, >=2 tiles (v7x megacore) when big."""
    Ms = ((M + 7) // 8) * 8
    if Ms <= 512:
        return Ms
    return min(2048, ((Ms // 2 + 7) // 8) * 8)


def matmul_bias(x, w_kn, b_1n, *, apply_relu):
    """x: (M, K) -> bf16, w_kn: (K, N) bf16, b_1n: (1, N) f32 -> (M, N) f32."""
    M, K = x.shape
    N = w_kn.shape[1]
    TM = _choose_tm(M)
    Mp = ((M + TM - 1) // TM) * TM

    xb = x.astype(jnp.bfloat16)
    if Mp != M:
        xb = jnp.pad(xb, ((0, Mp - M), (0, 0)))

    out = pl.pallas_call(
        functools.partial(_matmul_bias_kernel, apply_relu=apply_relu),
        out_shape=jax.ShapeDtypeStruct((Mp, N), jnp.float32),
        grid_spec=pltpu.PrefetchScalarGridSpec(
            num_scalar_prefetch=0,
            grid=(Mp // TM,),
            in_specs=[
                pl.BlockSpec((TM, K), lambda i: (i, 0)),
                pl.BlockSpec((K, N), lambda i: (0, 0)),
                pl.BlockSpec((1, N), lambda i: (0, 0)),
            ],
            out_specs=pl.BlockSpec((TM, N), lambda i: (i, 0)),
        ),
        compiler_params=pltpu.CompilerParams(
            dimension_semantics=("parallel",)),
    )(xb, w_kn, b_1n)
    return out[:M]


def im2col(x_nhwc, k, stride, pad):
    """Extract conv patches. Returns (B*Ho*Wo, k*k*C) ordered (di, dj, c)."""
    B, H, W, C = x_nhwc.shape
    xp = jnp.pad(x_nhwc, ((0, 0), (pad, pad), (pad, pad), (0, 0)))
    Ho = (H + 2 * pad - k) // stride + 1
    Wo = (W + 2 * pad - k) // stride + 1
    cols = []
    for di in range(k):
        for dj in range(k):
            cols.append(
                xp[:, di:di + stride * Ho:stride, dj:dj + stride * Wo:stride, :])
    patches = jnp.concatenate(cols, axis=-1)           # (B, Ho, Wo, k*k*C)
    return patches.reshape(B * Ho * Wo, k * k * C), Ho, Wo


def conv2d(x_nhwc, w_kn, b_1n, k, stride, pad, apply_relu):
    """Conv2d with pre-reordered (K, Cout) weights, as im2col + Pallas GEMM."""
    B = x_nhwc.shape[0]
    patches, Ho, Wo = im2col(x_nhwc, k, stride, pad)
    y = matmul_bias(patches, w_kn, b_1n, apply_relu=apply_relu)
    return y.reshape(B, Ho, Wo, -1)


def batchnorm_train(x_nhwc, eps=1e-5):
    """BatchNorm2d training-mode forward (gamma=1, beta=0, biased variance).

    Stays in XLA: under jit it fuses with the following pad/slice im2col chain,
    so the normalized tensor is never a separate HBM round trip.
    """
    mean = jnp.mean(x_nhwc, axis=(0, 1, 2), keepdims=True)
    var = jnp.mean(jnp.square(x_nhwc - mean), axis=(0, 1, 2), keepdims=True)
    return (x_nhwc - mean) / jnp.sqrt(var + eps)


def head(x_nhwc, w5, b5):
    """Fused conv5 (1x1, 32->1) + spatial soft-argmax -> (B, 2)."""
    B, H, W, C = x_nhwc.shape
    HW = H * W
    xt = jnp.transpose(x_nhwc.reshape(B, HW, C), (0, 2, 1))   # (B, C, HW) f32
    lin_w = jnp.linspace(-1.0, 1.0, W, dtype=jnp.float32)
    lin_h = jnp.linspace(-1.0, 1.0, H, dtype=jnp.float32)
    cx = jnp.tile(lin_w, H).reshape(1, HW)                    # x coord per (h, w)
    cy = jnp.repeat(lin_h, W).reshape(1, HW)                  # y coord per (h, w)
    return pl.pallas_call(
        _head_kernel,
        out_shape=jax.ShapeDtypeStruct((B, 2), jnp.float32),
    )(xt.astype(jnp.float32), w5, b5, cx, cy)


# ----------------------------------------------------------------------------
# Planner forward
# ----------------------------------------------------------------------------
def prepare_params(params):
    """One-time weight prep: OIHW -> (k*k*Cin, Cout) bf16, bias -> (1, Cout) f32."""
    prep = {}
    for i in (1, 2, 3, 4):
        w = params[f"w{i}"]                                    # (Cout, Cin, k, k)
        cout = w.shape[0]
        w_kn = jnp.transpose(w, (2, 3, 1, 0)).reshape(-1, cout)
        prep[f"w{i}"] = w_kn.astype(jnp.bfloat16)
        prep[f"b{i}"] = params[f"b{i}"].reshape(1, cout).astype(jnp.float32)
    prep["w5"] = params["w5"].reshape(1, -1).T.astype(jnp.float32)   # (Cin, 1)
    prep["b5"] = params["b5"].reshape(1, 1).astype(jnp.float32)
    return prep


@jax.jit
def planner_forward(img_nchw, prep):
    """img_nchw: (B, 3, H, W) float32 -> (B, 2) aim point."""
    x = jnp.transpose(img_nchw, (0, 2, 3, 1))                  # NCHW -> NHWC
    x = batchnorm_train(x)
    x = conv2d(x, prep["w1"], prep["b1"], 5, 2, 2, apply_relu=True)
    x = batchnorm_train(x)
    x = conv2d(x, prep["w2"], prep["b2"], 5, 2, 2, apply_relu=True)
    x = batchnorm_train(x)
    x = conv2d(x, prep["w3"], prep["b3"], 5, 2, 2, apply_relu=True)
    x = batchnorm_train(x)
    x = conv2d(x, prep["w4"], prep["b4"], 5, 2, 2, apply_relu=True)
    return head(x, prep["w5"], prep["b5"])                     # conv5 + soft-argmax


def init_params(key):
    """Deterministic PyTorch-style (kaiming-uniform-ish) conv initialization."""
    def conv_init(k, cout, cin, ksz):
        fan_in = cin * ksz * ksz
        bound = 1.0 / (fan_in ** 0.5)
        kw, kb = jax.random.split(k)
        w = jax.random.uniform(kw, (cout, cin, ksz, ksz), jnp.float32, -bound, bound)
        b = jax.random.uniform(kb, (cout,), jnp.float32, -bound, bound)
        return w, b

    ks = jax.random.split(key, 5)
    p = {}
    p["w1"], p["b1"] = conv_init(ks[0], 16, 3, 5)
    p["w2"], p["b2"] = conv_init(ks[1], 32, 16, 5)
    p["w3"], p["b3"] = conv_init(ks[2], 32, 32, 5)
    p["w4"], p["b4"] = conv_init(ks[3], 32, 32, 5)
    p["w5"], p["b5"] = conv_init(ks[4], 1, 32, 1)
    return p


if __name__ == "__main__":
    key = jax.random.PRNGKey(0)
    pkey, xkey = jax.random.split(key)
    params = init_params(pkey)
    prep = prepare_params(params)                              # one-time weight prep
    img = jax.random.uniform(xkey, (2, 3, 96, 128), jnp.float32)  # (BS, 3, 96, 128)

    out = planner_forward(img, prep)
    out = jax.block_until_ready(out)

    assert out.shape == (2, 2), out.shape
    assert bool(jnp.all(jnp.isfinite(out)))
    # soft-argmax output must lie in normalized coordinate range
    assert bool(jnp.all(jnp.abs(out) <= 1.0 + 1e-5))
    print("KERNEL_OK")
</pallas_src>

<mosaic_0001>
module attributes {stable_mosaic.version = 11 : i64} {
  func.func @_matmul_bias_kernel(%arg0: i32, %arg1: memref<2048x75xbf16, #tpu.memory_space<vmem>>, %arg2: memref<75x16xbf16, #tpu.memory_space<vmem>>, %arg3: memref<1x16xf32, #tpu.memory_space<vmem>>, %arg4: memref<2048x16xf32, #tpu.memory_space<vmem>>) attributes {dimension_semantics = [#tpu.dimension_semantics<parallel>], iteration_bounds = array<i64: 3>, scalar_prefetch = 0 : i64, scratch_operands = 0 : i64, tpu.core_type = #tpu.core_type<tc>, window_params = [{transform_indices = @transform_0, window_bounds = array<i64: 2048, 75>}, {pipeline_mode = #tpu.pipeline_mode<synchronous>, transform_indices = @transform_1, window_bounds = array<i64: 75, 16>}, {pipeline_mode = #tpu.pipeline_mode<synchronous>, transform_indices = @transform_2, window_bounds = array<i64: 1, 16>}, {transform_indices = @transform_3, window_bounds = array<i64: 2048, 16>}]} {
    %c0 = arith.constant 0 : index
    %c0_0 = arith.constant 0 : index
    %0 = vector.load %arg1[%c0, %c0_0] : memref<2048x75xbf16, #tpu.memory_space<vmem>>, vector<2048x75xbf16>
    %c0_1 = arith.constant 0 : index
    %c0_2 = arith.constant 0 : index
    %1 = vector.load %arg2[%c0_1, %c0_2] : memref<75x16xbf16, #tpu.memory_space<vmem>>, vector<75x16xbf16>
    %cst = arith.constant dense<0.000000e+00> : vector<2048x16xf32>
    %2 = tpu.matmul %0, %1, %cst {dimension_numbers = #tpu.dot_dimension_numbers<[1], [0], [0], [1], [0, 0, 1, 1], [], []>} : vector<2048x75xbf16>, vector<75x16xbf16>, vector<2048x16xf32> -> vector<2048x16xf32>
    %c0_3 = arith.constant 0 : index
    %c0_4 = arith.constant 0 : index
    %3 = vector.load %arg3[%c0_3, %c0_4] : memref<1x16xf32, #tpu.memory_space<vmem>>, vector<1x16xf32>
    %4 = vector.broadcast %3 : vector<1x16xf32> to vector<2048x16xf32>
    %5 = arith.addf %2, %4 : vector<2048x16xf32>
    %cst_5 = arith.constant 0.000000e+00 : f32
    %6 = vector.broadcast %cst_5 : f32 to vector<2048x16xf32>
    %7 = arith.maximumf %5, %6 : vector<2048x16xf32>
    %c0_6 = arith.constant 0 : index
    %c0_7 = arith.constant 0 : index
    %8 = vector.load %arg4[%c0_6, %c0_7] : memref<2048x16xf32, #tpu.memory_space<vmem>>, vector<2048x16xf32>
    tpu.vector_store %arg4[%c0_6, %c0_7], %7 {strides = array<i32>} : memref<2048x16xf32, #tpu.memory_space<vmem>>, vector<2048x16xf32>,
    return
  }
  func.func @transform_0(%arg0: i32) -> (i32, i32) {
    %c0_i32 = arith.constant 0 : i32
    %c0_i32_0 = arith.constant 0 : i32
    return %arg0, %c0_i32 : i32, i32
  }
  func.func @transform_1(%arg0: i32) -> (i32, i32) {
    %c0_i32 = arith.constant 0 : i32
    %c0_i32_0 = arith.constant 0 : i32
    %c0_i32_1 = arith.constant 0 : i32
    return %c0_i32, %c0_i32_0 : i32, i32
  }
  func.func @transform_2(%arg0: i32) -> (i32, i32) {
    %c0_i32 = arith.constant 0 : i32
    %c0_i32_0 = arith.constant 0 : i32
    %c0_i32_1 = arith.constant 0 : i32
    return %c0_i32, %c0_i32_0 : i32, i32
  }
  func.func @transform_3(%arg0: i32) -> (i32, i32) {
    %c0_i32 = arith.constant 0 : i32
    %c0_i32_0 = arith.constant 0 : i32
    return %arg0, %c0_i32 : i32, i32
  }
}

module attributes {stable_mosaic.version = 11 : i64} {
  func.func @_matmul_bias_kernel(%arg0: i32, %arg1: memref<768x400xbf16, #tpu.memory_space<vmem>>, %arg2: memref<400x32xbf16, #tpu.memory_space<vmem>>, %arg3: memref<1x32xf32, #tpu.memory_space<vmem>>, %arg4: memref<768x32xf32, #tpu.memory_space<vmem>>) attributes {dimension_semantics = [#tpu.dimension_semantics<parallel>], iteration_bounds = array<i64: 2>, scalar_prefetch = 0 : i64, scratch_operands = 0 : i64, tpu.core_type = #tpu.core_type<tc>, window_params = [{transform_indices = @transform_0, window_bounds = array<i64: 768, 400>}, {pipeline_mode = #tpu.pipeline_mode<synchronous>, transform_indices = @transform_1, window_bounds = array<i64: 400, 32>}, {pipeline_mode = #tpu.pipeline_mode<synchronous>, transform_indices = @transform_2, window_bounds = array<i64: 1, 32>}, {transform_indices = @transform_3, window_bounds = array<i64: 768, 32>}]} {
    %c0 = arith.constant 0 : index
    %c0_0 = arith.constant 0 : index
    %0 = vector.load %arg1[%c0, %c0_0] : memref<768x400xbf16, #tpu.memory_space<vmem>>, vector<768x400xbf16>
    %c0_1 = arith.constant 0 : index
    %c0_2 = arith.constant 0 : index
    %1 = vector.load %arg2[%c0_1, %c0_2] : memref<400x32xbf16, #tpu.memory_space<vmem>>, vector<400x32xbf16>
    %cst = arith.constant dense<0.000000e+00> : vector<768x32xf32>
    %2 = tpu.matmul %0, %1, %cst {dimension_numbers = #tpu.dot_dimension_numbers<[1], [0], [0], [1], [0, 0, 1, 1], [], []>} : vector<768x400xbf16>, vector<400x32xbf16>, vector<768x32xf32> -> vector<768x32xf32>
    %c0_3 = arith.constant 0 : index
    %c0_4 = arith.constant 0 : index
    %3 = vector.load %arg3[%c0_3, %c0_4] : memref<1x32xf32, #tpu.memory_space<vmem>>, vector<1x32xf32>
    %4 = vector.broadcast %3 : vector<1x32xf32> to vector<768x32xf32>
    %5 = arith.addf %2, %4 : vector<768x32xf32>
    %cst_5 = arith.constant 0.000000e+00 : f32
    %6 = vector.broadcast %cst_5 : f32 to vector<768x32xf32>
    %7 = arith.maximumf %5, %6 : vector<768x32xf32>
    %c0_6 = arith.constant 0 : index
    %c0_7 = arith.constant 0 : index
    %8 = vector.load %arg4[%c0_6, %c0_7] : memref<768x32xf32, #tpu.memory_space<vmem>>, vector<768x32xf32>
    tpu.vector_store %arg4[%c0_6, %c0_7], %7 {strides = array<i32>} : memref<768x32xf32, #tpu.memory_space<vmem>>, vector<768x32xf32>,
    return
  }
  func.func @transform_0(%arg0: i32) -> (i32, i32) {
    %c0_i32 = arith.constant 0 : i32
    %c0_i32_0 = arith.constant 0 : i32
    return %arg0, %c0_i32 : i32, i32
  }
  func.func @transform_1(%arg0: i32) -> (i32, i32) {
    %c0_i32 = arith.constant 0 : i32
    %c0_i32_0 = arith.constant 0 : i32
    %c0_i32_1 = arith.constant 0 : i32
    return %c0_i32, %c0_i32_0 : i32, i32
  }
  func.func @transform_2(%arg0: i32) -> (i32, i32) {
    %c0_i32 = arith.constant 0 : i32
    %c0_i32_0 = arith.constant 0 : i32
    %c0_i32_1 = arith.constant 0 : i32
    return %c0_i32, %c0_i32_0 : i32, i32
  }
  func.func @transform_3(%arg0: i32) -> (i32, i32) {
    %c0_i32 = arith.constant 0 : i32
    %c0_i32_0 = arith.constant 0 : i32
    return %arg0, %c0_i32 : i32, i32
  }
}

module attributes {stable_mosaic.version = 11 : i64} {
  func.func @_matmul_bias_kernel(%arg0: i32, %arg1: memref<384x800xbf16, #tpu.memory_space<vmem>>, %arg2: memref<800x32xbf16, #tpu.memory_space<vmem>>, %arg3: memref<1x32xf32, #tpu.memory_space<vmem>>, %arg4: memref<384x32xf32, #tpu.memory_space<vmem>>) attributes {dimension_semantics = [#tpu.dimension_semantics<parallel>], iteration_bounds = array<i64: 1>, scalar_prefetch = 0 : i64, scratch_operands = 0 : i64, tpu.core_type = #tpu.core_type<tc>, window_params = [{transform_indices = @transform_0, window_bounds = array<i64: 384, 800>}, {pipeline_mode = #tpu.pipeline_mode<synchronous>, transform_indices = @transform_1, window_bounds = array<i64: 800, 32>}, {pipeline_mode = #tpu.pipeline_mode<synchronous>, transform_indices = @transform_2, window_bounds = array<i64: 1, 32>}, {transform_indices = @transform_3, window_bounds = array<i64: 384, 32>}]} {
    %c0 = arith.constant 0 : index
    %c0_0 = arith.constant 0 : index
    %0 = vector.load %arg1[%c0, %c0_0] : memref<384x800xbf16, #tpu.memory_space<vmem>>, vector<384x800xbf16>
    %c0_1 = arith.constant 0 : index
    %c0_2 = arith.constant 0 : index
    %1 = vector.load %arg2[%c0_1, %c0_2] : memref<800x32xbf16, #tpu.memory_space<vmem>>, vector<800x32xbf16>
    %cst = arith.constant dense<0.000000e+00> : vector<384x32xf32>
    %2 = tpu.matmul %0, %1, %cst {dimension_numbers = #tpu.dot_dimension_numbers<[1], [0], [0], [1], [0, 0, 1, 1], [], []>} : vector<384x800xbf16>, vector<800x32xbf16>, vector<384x32xf32> -> vector<384x32xf32>
    %c0_3 = arith.constant 0 : index
    %c0_4 = arith.constant 0 : index
    %3 = vector.load %arg3[%c0_3, %c0_4] : memref<1x32xf32, #tpu.memory_space<vmem>>, vector<1x32xf32>
    %4 = vector.broadcast %3 : vector<1x32xf32> to vector<384x32xf32>
    %5 = arith.addf %2, %4 : vector<384x32xf32>
    %cst_5 = arith.constant 0.000000e+00 : f32
    %6 = vector.broadcast %cst_5 : f32 to vector<384x32xf32>
    %7 = arith.maximumf %5, %6 : vector<384x32xf32>
    %c0_6 = arith.constant 0 : index
    %c0_7 = arith.constant 0 : index
    %8 = vector.load %arg4[%c0_6, %c0_7] : memref<384x32xf32, #tpu.memory_space<vmem>>, vector<384x32xf32>
    tpu.vector_store %arg4[%c0_6, %c0_7], %7 {strides = array<i32>} : memref<384x32xf32, #tpu.memory_space<vmem>>, vector<384x32xf32>,
    return
  }
  func.func @transform_0(%arg0: i32) -> (i32, i32) {
    %c0_i32 = arith.constant 0 : i32
    %c0_i32_0 = arith.constant 0 : i32
    return %arg0, %c0_i32 : i32, i32
  }
  func.func @transform_1(%arg0: i32) -> (i32, i32) {
    %c0_i32 = arith.constant 0 : i32
    %c0_i32_0 = arith.constant 0 : i32
    %c0_i32_1 = arith.constant 0 : i32
    return %c0_i32, %c0_i32_0 : i32, i32
  }
  func.func @transform_2(%arg0: i32) -> (i32, i32) {
    %c0_i32 = arith.constant 0 : i32
    %c0_i32_0 = arith.constant 0 : i32
    %c0_i32_1 = arith.constant 0 : i32
    return %c0_i32, %c0_i32_0 : i32, i32
  }
  func.func @transform_3(%arg0: i32) -> (i32, i32) {
    %c0_i32 = arith.constant 0 : i32
    %c0_i32_0 = arith.constant 0 : i32
    return %arg0, %c0_i32 : i32, i32
  }
}

module attributes {stable_mosaic.version = 11 : i64} {
  func.func @_matmul_bias_kernel(%arg0: i32, %arg1: memref<96x800xbf16, #tpu.memory_space<vmem>>, %arg2: memref<800x32xbf16, #tpu.memory_space<vmem>>, %arg3: memref<1x32xf32, #tpu.memory_space<vmem>>, %arg4: memref<96x32xf32, #tpu.memory_space<vmem>>) attributes {dimension_semantics = [#tpu.dimension_semantics<parallel>], iteration_bounds = array<i64: 1>, scalar_prefetch = 0 : i64, scratch_operands = 0 : i64, tpu.core_type = #tpu.core_type<tc>, window_params = [{transform_indices = @transform_0, window_bounds = array<i64: 96, 800>}, {pipeline_mode = #tpu.pipeline_mode<synchronous>, transform_indices = @transform_1, window_bounds = array<i64: 800, 32>}, {pipeline_mode = #tpu.pipeline_mode<synchronous>, transform_indices = @transform_2, window_bounds = array<i64: 1, 32>}, {transform_indices = @transform_3, window_bounds = array<i64: 96, 32>}]} {
    %c0 = arith.constant 0 : index
    %c0_0 = arith.constant 0 : index
    %0 = vector.load %arg1[%c0, %c0_0] : memref<96x800xbf16, #tpu.memory_space<vmem>>, vector<96x800xbf16>
    %c0_1 = arith.constant 0 : index
    %c0_2 = arith.constant 0 : index
    %1 = vector.load %arg2[%c0_1, %c0_2] : memref<800x32xbf16, #tpu.memory_space<vmem>>, vector<800x32xbf16>
    %cst = arith.constant dense<0.000000e+00> : vector<96x32xf32>
    %2 = tpu.matmul %0, %1, %cst {dimension_numbers = #tpu.dot_dimension_numbers<[1], [0], [0], [1], [0, 0, 1, 1], [], []>} : vector<96x800xbf16>, vector<800x32xbf16>, vector<96x32xf32> -> vector<96x32xf32>
    %c0_3 = arith.constant 0 : index
    %c0_4 = arith.constant 0 : index
    %3 = vector.load %arg3[%c0_3, %c0_4] : memref<1x32xf32, #tpu.memory_space<vmem>>, vector<1x32xf32>
    %4 = vector.broadcast %3 : vector<1x32xf32> to vector<96x32xf32>
    %5 = arith.addf %2, %4 : vector<96x32xf32>
    %cst_5 = arith.constant 0.000000e+00 : f32
    %6 = vector.broadcast %cst_5 : f32 to vector<96x32xf32>
    %7 = arith.maximumf %5, %6 : vector<96x32xf32>
    %c0_6 = arith.constant 0 : index
    %c0_7 = arith.constant 0 : index
    %8 = vector.load %arg4[%c0_6, %c0_7] : memref<96x32xf32, #tpu.memory_space<vmem>>, vector<96x32xf32>
    tpu.vector_store %arg4[%c0_6, %c0_7], %7 {strides = array<i32>} : memref<96x32xf32, #tpu.memory_space<vmem>>, vector<96x32xf32>,
    return
  }
  func.func @transform_0(%arg0: i32) -> (i32, i32) {
    %c0_i32 = arith.constant 0 : i32
    %c0_i32_0 = arith.constant 0 : i32
    return %arg0, %c0_i32 : i32, i32
  }
  func.func @transform_1(%arg0: i32) -> (i32, i32) {
    %c0_i32 = arith.constant 0 : i32
    %c0_i32_0 = arith.constant 0 : i32
    %c0_i32_1 = arith.constant 0 : i32
    return %c0_i32, %c0_i32_0 : i32, i32
  }
  func.func @transform_2(%arg0: i32) -> (i32, i32) {
    %c0_i32 = arith.constant 0 : i32
    %c0_i32_0 = arith.constant 0 : i32
    %c0_i32_1 = arith.constant 0 : i32
    return %c0_i32, %c0_i32_0 : i32, i32
  }
  func.func @transform_3(%arg0: i32) -> (i32, i32) {
    %c0_i32 = arith.constant 0 : i32
    %c0_i32_0 = arith.constant 0 : i32
    return %arg0, %c0_i32 : i32, i32
  }
}

module attributes {stable_mosaic.version = 11 : i64} {
  func.func @_head_kernel(%arg0: memref<2x32x48xf32, #tpu.memory_space<vmem>>, %arg1: memref<32x1xf32, #tpu.memory_space<vmem>>, %arg2: memref<1x1xf32, #tpu.memory_space<vmem>>, %arg3: memref<1x48xf32, #tpu.memory_space<vmem>>, %arg4: memref<1x48xf32, #tpu.memory_space<vmem>>, %arg5: memref<2x2xf32, #tpu.memory_space<vmem>>) attributes {dimension_semantics = [], scalar_prefetch = 0 : i64, scratch_operands = 0 : i64, tpu.core_type = #tpu.core_type<tc>} {
    %c0 = arith.constant 0 : index
    %c0_0 = arith.constant 0 : index
    %c0_1 = arith.constant 0 : index
    %0 = vector.load %arg0[%c0, %c0_0, %c0_1] : memref<2x32x48xf32, #tpu.memory_space<vmem>>, vector<2x32x48xf32>
    %c0_2 = arith.constant 0 : index
    %c0_3 = arith.constant 0 : index
    %1 = vector.load %arg1[%c0_2, %c0_3] : memref<32x1xf32, #tpu.memory_space<vmem>>, vector<32x1xf32>
    %2 = vector.shape_cast %1 : vector<32x1xf32> to vector<1x32x1xf32>
    %3 = vector.broadcast %2 : vector<1x32x1xf32> to vector<2x32x48xf32>
    %4 = arith.mulf %0, %3 : vector<2x32x48xf32>
    %cst = arith.constant dense<0.000000e+00> : vector<2x48xf32>
    %5 = vector.multi_reduction <add>, %4, %cst [1] : vector<2x32x48xf32> to vector<2x48xf32>
    %c0_4 = arith.constant 0 : index
    %c0_5 = arith.constant 0 : index
    %6 = vector.load %arg2[%c0_4, %c0_5] : memref<1x1xf32, #tpu.memory_space<vmem>>, vector<1x1xf32>
    %7 = vector.broadcast %6 : vector<1x1xf32> to vector<2x48xf32>
    %8 = arith.addf %5, %7 : vector<2x48xf32>
    %cst_6 = arith.constant dense<0xFF800000> : vector<2xf32>
    %9 = vector.multi_reduction <maximumf>, %8, %cst_6 [1] : vector<2x48xf32> to vector<2xf32>
    %10 = vector.shape_cast %9 : vector<2xf32> to vector<2x1xf32>
    %11 = vector.broadcast %10 : vector<2x1xf32> to vector<2x48xf32>
    %12 = arith.subf %8, %11 : vector<2x48xf32>
    %13 = math.exp %12 : vector<2x48xf32>
    %cst_7 = arith.constant dense<0.000000e+00> : vector<2xf32>
    %14 = vector.multi_reduction <add>, %13, %cst_7 [1] : vector<2x48xf32> to vector<2xf32>
    %15 = vector.shape_cast %14 : vector<2xf32> to vector<2x1xf32>
    %16 = vector.broadcast %15 : vector<2x1xf32> to vector<2x48xf32>
    %17 = arith.divf %13, %16 : vector<2x48xf32>
    %c0_8 = arith.constant 0 : index
    %c0_9 = arith.constant 0 : index
    %18 = vector.load %arg3[%c0_8, %c0_9] : memref<1x48xf32, #tpu.memory_space<vmem>>, vector<1x48xf32>
    %19 = vector.broadcast %18 : vector<1x48xf32> to vector<2x48xf32>
    %20 = arith.mulf %17, %19 : vector<2x48xf32>
    %cst_10 = arith.constant dense<0.000000e+00> : vector<2xf32>
    %21 = vector.multi_reduction <add>, %20, %cst_10 [1] : vector<2x48xf32> to vector<2xf32>
    %22 = vector.shape_cast %21 : vector<2xf32> to vector<2x1xf32>
    %c0_11 = arith.constant 0 : index
    %c0_12 = arith.constant 0 : index
    %23 = vector.load %arg4[%c0_11, %c0_12] : memref<1x48xf32, #tpu.memory_space<vmem>>, vector<1x48xf32>
    %24 = vector.broadcast %23 : vector<1x48xf32> to vector<2x48xf32>
    %25 = arith.mulf %17, %24 : vector<2x48xf32>
    %cst_13 = arith.constant dense<0.000000e+00> : vector<2xf32>
    %26 = vector.multi_reduction <add>, %25, %cst_13 [1] : vector<2x48xf32> to vector<2xf32>
    %27 = vector.shape_cast %26 : vector<2xf32> to vector<2x1xf32>
    %28 = tpu.concatenate %22, %27 in 1 : vector<2x1xf32>, vector<2x1xf32> -> vector<2x2xf32>
    %c0_14 = arith.constant 0 : index
    %c0_15 = arith.constant 0 : index
    %29 = vector.load %arg5[%c0_14, %c0_15] : memref<2x2xf32, #tpu.memory_space<vmem>>, vector<2x2xf32>
    tpu.vector_store %arg5[%c0_14, %c0_15], %28 {strides = array<i32>} : memref<2x2xf32, #tpu.memory_space<vmem>>, vector<2x2xf32>,
    return
  }
}

</mosaic_0001>

<bundles_post_ra>
// kernel: planner_forward.5
= control target key start
LH: loop header
LB: loop body
LE: loop exit
PB: predicated region body
PF: predicated region fallthrough
CT: control target
= control target key end

     0   :  { %s3584_s12 = smov 0   ;;  %s4666_s0 = inlined_call_operand.vmem [shape: bf16[6144,75], index: 0, kind: input, shape index: {}]   ;;  %s4667_s1 = inlined_call_operand.vmem [shape: bf16[75,16], index: 1, kind: input, shape index: {}]   ;;  %s4668_s2 = inlined_call_operand.vmem [shape: f32[1,16], index: 2, kind: input, shape index: {}]   ;;  %s4669_s3 = inlined_call_operand.vmem [shape: f32[6144,16], index: 3, kind: output, shape index: {}]  }
   0x1 LB: > { %s2724_s13 = sadd.s32 4294967295, %s3561_s12   ;;  %p2728_p0 = scmp.ge.s32.totalorder %s3561_s12, 1  ;;  %s3561_s12 = sphi %s3584_s12, %s13_s12  }
   0x2   : > { %p138_p1 = scmp.lt.s32.totalorder %s3561_s12, 4 }
   0x4   : > { %p139_p2 = pnand %p2728_p0, %p138_p1 }
   0x5   : > { %s2729_s18 = sshll.u32 (!%p139_p2), %s2724_s13, 8 }
   0x6   : > { %142 = sbr.rel (%p139_p2) target bundleno = 679 (0x2a7), region = 32  ;;  %p163_p3 = scmp.lt.s32.totalorder (!%p139_p2), %s2729_s18, 767 }
   0xb   : > { %v3263_v0 = vld [vmem:[%s4667_s1 + $0x20] sm:$0xf]  ;;  %v3527_v1 = vld [vmem:[%s4667_s1 + $0x20] sm:$0x30]  ;;  %vm1499_vm0 = vcmask 1044480   ;;  %vm1500_vm1 = vcmask 1045504  }
   0xc   : > { %v3264_v2 = vor.u32 %v3527_v1, %v3263_v0  ;;  %v3563_v3 = vmov 65535   ;;  %v3526_v7 = vld [vmem:[%s4667_s1 + $0x18] sm:$0xff]  ;;  %v3525_v8 = vld [vmem:[%s4667_s1 + $0x10] sm:$0xff]  ;;  %s4671_s18 = smov (!%p163_p3, %s2729_s18), 767  ;;  %v3524_v9 = vld [vmem:[%s4667_s1 + $0x8] sm:$0xff]  ;;  %vm1114_vm2 = vcmask 613376  }
   0xd   : > { %v1501_v4 = vsel %vm1499_vm0, 4294967295, %v3563_v3  ;;  %s2730_s25 = sshll.u32 %s4671_s18, 2  ;;  %v3523_v10 = vld [vmem:[%s4667_s1] sm:$0xff]  ;;  %s2732_s6 = sshll.u32 %s4671_s18, 3  ;;  %vm2411_vm3 = vcmask 130048  }
   0xe   : > { %v1502_v5 = vsel %vm1500_vm1, %v1501_v4, 0  ;;  %s3616_s30 = scalar_lea.vmem %s4666_s0, %s2730_s25  ;;  %v3685_v43 = vld [vmem:[%s4668_s2] ss:$0 sm:$0xff]  ;;  %s3697_s9 = scalar_lea.vmem %s4669_s3, %s2732_s6 }
   0xf   : > { %v1504_v6 = vand.u32 %v3264_v2, %v1502_v5  ;;  %v3395_v11 = vld [vmem:[%s3616_s30] sm:$0xff]  ;;  %v3396_v15 = vld [vmem:[%s3616_s30 + $0x8] sm:$0xff]  ;;  %v3397_v19 = vld [vmem:[%s3616_s30 + $0x10] sm:$0xff] }
  0x10   : > { %v3427_v12 = vld [vmem:[%s3616_s30 + $0x100] sm:$0xff]  ;;  %v3428_v16 = vld [vmem:[%s3616_s30 + $0x108] sm:$0xff]  ;;  %v3429_v20 = vld [vmem:[%s3616_s30 + $0x110] sm:$0xff] }
  0x11   : > { %1509 = vmatpush.bf16.msra.mxu0 %v1504_v6  ;;  %3528 = vmatpush.bf16.msra.mxu1 %v1504_v6  ;;  %v3459_v13 = vld [vmem:[%s3616_s30 + $0x200] sm:$0xff]  ;;  %v3460_v17 = vld [vmem:[%s3616_s30 + $0x208] sm:$0xff]  ;;  %v3461_v21 = vld [vmem:[%s3616_s30 + $0x210] sm:$0xff] }
  0x12   : > { %3529 = vmatpush.bf16.msra.mxu2 %v1504_v6  ;;  %3530 = vmatpush.bf16.msra.mxu3 %v1504_v6  ;;  %v3491_v14 = vld [vmem:[%s3616_s30 + $0x300] sm:$0xff]  ;;  %v3492_v18 = vld [vmem:[%s3616_s30 + $0x308] sm:$0xff]  ;;  %v3493_v22 = vld [vmem:[%s3616_s30 + $0x310] sm:$0xff] }
  0x13   : > { %v3398_v23 = vld [vmem:[%s3616_s30 + $0x18] sm:$0xff]  ;;  %v3399_v27 = vld [vmem:[%s3616_s30 + $0x20] sm:$0xff]  ;;  %v3400_v31 = vld [vmem:[%s3616_s30 + $0x28] sm:$0xff] }
  0x14   : > { %v3430_v24 = vld [vmem:[%s3616_s30 + $0x118] sm:$0xff]  ;;  %v3431_v28 = vld [vmem:[%s3616_s30 + $0x120] sm:$0xff]  ;;  %v3432_v32 = vld [vmem:[%s3616_s30 + $0x128] sm:$0xff] }
  0x15   : > { %1510 = vmatpush.bf16.msra.mxu0 %v3526_v7  ;;  %3531 = vmatpush.bf16.msra.mxu1 %v3526_v7  ;;  %v3462_v25 = vld [vmem:[%s3616_s30 + $0x218] sm:$0xff]  ;;  %v3463_v29 = vld [vmem:[%s3616_s30 + $0x220] sm:$0xff]  ;;  %v3464_v33 = vld [vmem:[%s3616_s30 + $0x228] sm:$0xff] }
  0x16   : > { %3532 = vmatpush.bf16.msra.mxu2 %v3526_v7  ;;  %3533 = vmatpush.bf16.msra.mxu3 %v3526_v7  ;;  %v3494_v26 = vld [vmem:[%s3616_s30 + $0x318] sm:$0xff]  ;;  %v3495_v30 = vld [vmem:[%s3616_s30 + $0x320] sm:$0xff]  ;;  %v3496_v34 = vld [vmem:[%s3616_s30 + $0x328] sm:$0xff] }
  0x17   : > { %v3401_v35 = vld [vmem:[%s3616_s30 + $0x30] sm:$0xff]  ;;  %v3402_v39 = vld [vmem:[%s3616_s30 + $0x38] sm:$0xff]  ;;  %v3403_v44 = vld [vmem:[%s3616_s30 + $0x40] sm:$0xff] }
  0x18   : > { %v3433_v36 = vld [vmem:[%s3616_s30 + $0x130] sm:$0xff]  ;;  %v3434_v40 = vld [vmem:[%s3616_s30 + $0x138] sm:$0xff]  ;;  %v3435_v45 = vld [vmem:[%s3616_s30 + $0x140] sm:$0xff] }
  0x19   : > { %1511 = vmatpush.bf16.msra.mxu0 %v3525_v8  ;;  %3534 = vmatpush.bf16.msra.mxu1 %v3525_v8  ;;  %v3465_v37 = vld [vmem:[%s3616_s30 + $0x230] sm:$0xff]  ;;  %v3466_v41 = vld [vmem:[%s3616_s30 + $0x238] sm:$0xff]  ;;  %v3467_v48 = vld [vmem:[%s3616_s30 + $0x240] sm:$0xff] }
  0x1a   : > { %3535 = vmatpush.bf16.msra.mxu2 %v3525_v8  ;;  %3536 = vmatpush.bf16.msra.mxu3 %v3525_v8  ;;  %v3497_v38 = vld [vmem:[%s3616_s30 + $0x330] sm:$0xff]  ;;  %v3498_v42 = vld [vmem:[%s3616_s30 + $0x338] sm:$0xff]  ;;  %v3499_v49 = vld [vmem:[%s3616_s30 + $0x340] sm:$0xff] }
  0x1b   : > { %v3404_v4 = vld [vmem:[%s3616_s30 + $0x48] sm:$0xff] }
  0x1c   : > { %v3436_v5 = vld [vmem:[%s3616_s30 + $0x148] sm:$0xff] }
  0x1d   : > { %1512 = vmatpush.bf16.msra.mxu0 %v3524_v9  ;;  %3537 = vmatpush.bf16.msra.mxu1 %v3524_v9 }
  0x1e   : > { %3538 = vmatpush.bf16.msra.mxu2 %v3524_v9  ;;  %3539 = vmatpush.bf16.msra.mxu3 %v3524_v9 }
  0x21   : > { %1513 = vmatpush.bf16.msra.mxu0 %v3523_v10  ;;  %3540 = vmatpush.bf16.msra.mxu1 %v3523_v10 }
  0x22   : > { %3541 = vmatpush.bf16.msra.mxu2 %v3523_v10  ;;  %3542 = vmatpush.bf16.msra.mxu3 %v3523_v10  ;;  %v3468_v10 = vld [vmem:[%s3616_s30 + $0x248] sm:$0xff] }
  0x24   : > { %3265 = vmatmul.msk.bf16.vlgmr.msra.gmra.mxu0 %vm1114_vm2, %v3395_v11  ;;  %3297 = vmatmul.msk.bf16.vlgmr.msra.gmra.mxu1 %vm1114_vm2, %v3427_v12  ;;  %v3500_v11 = vld [vmem:[%s3616_s30 + $0x348] sm:$0xff] }
  0x25   : > { %3329 = vmatmul.msk.bf16.vlgmr.msra.gmra.mxu2 %vm1114_vm2, %v3459_v13  ;;  %3361 = vmatmul.msk.bf16.vlgmr.msra.gmra.mxu3 %vm1114_vm2, %v3491_v14 }
  0x34   : > { %3266 = vmatmul.msk.bf16.gmra.mxu0 %vm1114_vm2, %v3396_v15  ;;  %3298 = vmatmul.msk.bf16.gmra.mxu1 %vm1114_vm2, %v3428_v16 }
  0x35   : > { %3330 = vmatmul.msk.bf16.gmra.mxu2 %vm1114_vm2, %v3460_v17  ;;  %3362 = vmatmul.msk.bf16.gmra.mxu3 %vm1114_vm2, %v3492_v18 }
  0x44   : > { %3267 = vmatmul.msk.bf16.gmra.mxu0 %vm1114_vm2, %v3397_v19  ;;  %3299 = vmatmul.msk.bf16.gmra.mxu1 %vm1114_vm2, %v3429_v20 }
  0x45   : > { %3331 = vmatmul.msk.bf16.gmra.mxu2 %vm1114_vm2, %v3461_v21  ;;  %3363 = vmatmul.msk.bf16.gmra.mxu3 %vm1114_vm2, %v3493_v22 }
  0x54   : > { %3268 = vmatmul.msk.bf16.gmra.mxu0 %vm1114_vm2, %v3398_v23  ;;  %3300 = vmatmul.msk.bf16.gmra.mxu1 %vm1114_vm2, %v3430_v24 }
  0x55   : > { %3332 = vmatmul.msk.bf16.gmra.mxu2 %vm1114_vm2, %v3462_v25  ;;  %3364 = vmatmul.msk.bf16.gmra.mxu3 %vm1114_vm2, %v3494_v26 }
  0x64   : > { %3269 = vmatmul.msk.bf16.gmra.mxu0 %vm1114_vm2, %v3399_v27  ;;  %3301 = vmatmul.msk.bf16.gmra.mxu1 %vm1114_vm2, %v3431_v28 }
  0x65   : > { %3333 = vmatmul.msk.bf16.gmra.mxu2 %vm1114_vm2, %v3463_v29  ;;  %3365 = vmatmul.msk.bf16.gmra.mxu3 %vm1114_vm2, %v3495_v30 }
  0x74   : > { %3270 = vmatmul.msk.bf16.gmra.mxu0 %vm1114_vm2, %v3400_v31  ;;  %3302 = vmatmul.msk.bf16.gmra.mxu1 %vm1114_vm2, %v3432_v32  ;;  %v3405_v32 = vld [vmem:[%s3616_s30 + $0x50] sm:$0xff] }
  0x75   : > { %3334 = vmatmul.msk.bf16.gmra.mxu2 %vm1114_vm2, %v3464_v33  ;;  %3366 = vmatmul.msk.bf16.gmra.mxu3 %vm1114_vm2, %v3496_v34  ;;  %v3437_v33 = vld [vmem:[%s3616_s30 + $0x150] sm:$0xff] }
  0x84   : > { %3271 = vmatmul.msk.bf16.gmra.mxu0 %vm1114_vm2, %v3401_v35  ;;  %3303 = vmatmul.msk.bf16.gmra.mxu1 %vm1114_vm2, %v3433_v36 }
  0x85   : > { %3335 = vmatmul.msk.bf16.gmra.mxu2 %vm1114_vm2, %v3465_v37  ;;  %3367 = vmatmul.msk.bf16.gmra.mxu3 %vm1114_vm2, %v3497_v38  ;;  %v3469_v38 = vld [vmem:[%s3616_s30 + $0x250] sm:$0xff] }
  0x94   : > { %3272 = vmatmul.msk.bf16.gmra.mxu0 %vm1114_vm2, %v3402_v39  ;;  %3304 = vmatmul.msk.bf16.gmra.mxu1 %vm1114_vm2, %v3434_v40  ;;  %v3501_v39 = vld [vmem:[%s3616_s30 + $0x350] sm:$0xff] }
  0x95   : > { %3336 = vmatmul.msk.bf16.gmra.mxu2 %vm1114_vm2, %v3466_v41  ;;  %3368 = vmatmul.msk.bf16.gmra.mxu3 %vm1114_vm2, %v3498_v42 }
  0xa1   : > { %v1515_v46 = vpop.f32.mrf.mxu0  ;;  %v1675_v47 = vpop.f32.mrf.mxu1 }
  0xa2   : > { %v1516_v50 = vadd.f32 %v3685_v43, %v1515_v46  ;;  %v1676_v51 = vadd.f32 %v3685_v43, %v1675_v47 }
  0xa4   : > { %v2155_v52 = vmax.f32 %v1516_v50, 0.0  ;;  %v2219_v53 = vmax.f32 %v1676_v51, 0.0  ;;  %3273 = vmatmul.msk.bf16.gmra.mxu0 %vm1114_vm2, %v3403_v44  ;;  %3305 = vmatmul.msk.bf16.gmra.mxu1 %vm1114_vm2, %v3435_v45 }
  0xa5   : > { %3337 = vmatmul.msk.bf16.gmra.mxu2 %vm1114_vm2, %v3467_v48  ;;  %3369 = vmatmul.msk.bf16.gmra.mxu3 %vm1114_vm2, %v3499_v49 }
  0xa6   : > { %2412 = vst.msk [vmem:[%s3697_s9] sm:$0xff] %vm2411_vm3, %v2155_v52 }
  0xa7   : > { %2476 = vst.msk [vmem:[%s3697_s9 + $0x200] sm:$0xff] %vm2411_vm3, %v2219_v53 }
  0xa8   : > { %v1835_v54 = vpop.f32.mrf.mxu2  ;;  %v1995_v55 = vpop.f32.mrf.mxu3 }
  0xa9   : > { %v1836_v56 = vadd.f32 %v3685_v43, %v1835_v54  ;;  %v1996_v57 = vadd.f32 %v3685_v43, %v1995_v55  ;;  %v1517_v58 = vpop.f32.mrf.mxu0  ;;  %v1677_v59 = vpop.f32.mrf.mxu1 }
  0xaa   : > { %v1518_v60 = vadd.f32 %v3685_v43, %v1517_v58  ;;  %v1678_v61 = vadd.f32 %v3685_v43, %v1677_v59 }
  0xab   : > { %v2283_v62 = vmax.f32 %v1836_v56, 0.0  ;;  %v2347_v63 = vmax.f32 %v1996_v57, 0.0 }
  0xac   : > { %v2156_v0 = vmax.f32 %v1518_v60, 0.0  ;;  %v2220_v1 = vmax.f32 %v1678_v61, 0.0  ;;  %v3406_v61 = vld [vmem:[%s3616_s30 + $0x58] sm:$0xff] }
  0xad   : > { %2540 = vst.msk [vmem:[%s3697_s9 + $0x400] sm:$0xff] %vm2411_vm3, %v2283_v62  ;;  %v3438_v62 = vld [vmem:[%s3616_s30 + $0x158] sm:$0xff] }
  0xae   : > { %2604 = vst.msk [vmem:[%s3697_s9 + $0x600] sm:$0xff] %vm2411_vm3, %v2347_v63 }
  0xaf   : > { %2413 = vst.msk [vmem:[%s3697_s9 + $0x8] sm:$0xff] %vm2411_vm3, %v2156_v0 }
  0xb0   : > { %2477 = vst.msk [vmem:[%s3697_s9 + $0x208] sm:$0xff] %vm2411_vm3, %v2220_v1  ;;  %v1837_v2 = vpop.f32.mrf.mxu2  ;;  %v1997_v3 = vpop.f32.mrf.mxu3 }
  0xb1   : > { %v1838_v6 = vadd.f32 %v3685_v43, %v1837_v2  ;;  %v1998_v7 = vadd.f32 %v3685_v43, %v1997_v3  ;;  %v1520_v8 = vpop.f32.mrf.mxu0  ;;  %v1680_v9 = vpop.f32.mrf.mxu1  ;;  %v3470_v3 = vld [vmem:[%s3616_s30 + $0x258] sm:$0xff] }
  0xb2   : > { %v1521_v12 = vadd.f32 %v3685_v43, %v1520_v8  ;;  %v1681_v13 = vadd.f32 %v3685_v43, %v1680_v9 }
  0xb3   : > { %v2284_v14 = vmax.f32 %v1838_v6, 0.0  ;;  %v2348_v15 = vmax.f32 %v1998_v7, 0.0 }
  0xb4   : > { %v2157_v16 = vmax.f32 %v1521_v12, 0.0  ;;  %v2221_v17 = vmax.f32 %v1681_v13, 0.0  ;;  %3274 = vmatmul.msk.bf16.gmra.mxu0 %vm1114_vm2, %v3404_v4  ;;  %3306 = vmatmul.msk.bf16.gmra.mxu1 %vm1114_vm2, %v3436_v5  ;;  %v3502_v4 = vld [vmem:[%s3616_s30 + $0x358] sm:$0xff] }
  0xb5   : > { %2541 = vst.msk [vmem:[%s3697_s9 + $0x408] sm:$0xff] %vm2411_vm3, %v2284_v14  ;;  %3338 = vmatmul.msk.bf16.gmra.mxu2 %vm1114_vm2, %v3468_v10  ;;  %3370 = vmatmul.msk.bf16.gmra.mxu3 %vm1114_vm2, %v3500_v11 }
  0xb6   : > { %2605 = vst.msk [vmem:[%s3697_s9 + $0x608] sm:$0xff] %vm2411_vm3, %v2348_v15 }
  0xb7   : > { %2414 = vst.msk [vmem:[%s3697_s9 + $0x10] sm:$0xff] %vm2411_vm3, %v2157_v16 }
  0xb8   : > { %2478 = vst.msk [vmem:[%s3697_s9 + $0x210] sm:$0xff] %vm2411_vm3, %v2221_v17  ;;  %v1840_v18 = vpop.f32.mrf.mxu2  ;;  %v2000_v19 = vpop.f32.mrf.mxu3 }
  0xb9   : > { %v1841_v20 = vadd.f32 %v3685_v43, %v1840_v18  ;;  %v2001_v21 = vadd.f32 %v3685_v43, %v2000_v19  ;;  %v1522_v22 = vpop.f32.mrf.mxu0  ;;  %v1682_v23 = vpop.f32.mrf.mxu1 }
  0xba   : > { %v1523_v24 = vadd.f32 %v3685_v43, %v1522_v22  ;;  %v1683_v25 = vadd.f32 %v3685_v43, %v1682_v23 }
  0xbb   : > { %v2285_v26 = vmax.f32 %v1841_v20, 0.0  ;;  %v2349_v27 = vmax.f32 %v2001_v21, 0.0 }
  0xbc   : > { %v2158_v28 = vmax.f32 %v1523_v24, 0.0  ;;  %v2222_v29 = vmax.f32 %v1683_v25, 0.0  ;;  %v3407_v25 = vld [vmem:[%s3616_s30 + $0x60] sm:$0xff] }
  0xbd   : > { %2542 = vst.msk [vmem:[%s3697_s9 + $0x410] sm:$0xff] %vm2411_vm3, %v2285_v26  ;;  %v3439_v26 = vld [vmem:[%s3616_s30 + $0x160] sm:$0xff] }
  0xbe   : > { %2606 = vst.msk [vmem:[%s3697_s9 + $0x610] sm:$0xff] %vm2411_vm3, %v2349_v27 }
  0xbf   : > { %2415 = vst.msk [vmem:[%s3697_s9 + $0x18] sm:$0xff] %vm2411_vm3, %v2158_v28 }
  0xc0   : > { %2479 = vst.msk [vmem:[%s3697_s9 + $0x218] sm:$0xff] %vm2411_vm3, %v2222_v29  ;;  %v1842_v30 = vpop.f32.mrf.mxu2  ;;  %v2002_v31 = vpop.f32.mrf.mxu3 }
  0xc1   : > { %v1843_v34 = vadd.f32 %v3685_v43, %v1842_v30  ;;  %v2003_v35 = vadd.f32 %v3685_v43, %v2002_v31  ;;  %v1525_v36 = vpop.f32.mrf.mxu0  ;;  %v1685_v37 = vpop.f32.mrf.mxu1  ;;  %v3471_v31 = vld [vmem:[%s3616_s30 + $0x260] sm:$0xff] }
  0xc2   : > { %v1526_v40 = vadd.f32 %v3685_v43, %v1525_v36  ;;  %v1686_v41 = vadd.f32 %v3685_v43, %v1685_v37 }
  0xc3   : > { %v2286_v42 = vmax.f32 %v1843_v34, 0.0  ;;  %v2350_v44 = vmax.f32 %v2003_v35, 0.0 }
  0xc4   : > { %v2159_v45 = vmax.f32 %v1526_v40, 0.0  ;;  %v2223_v46 = vmax.f32 %v1686_v41, 0.0  ;;  %3275 = vmatmul.msk.bf16.gmra.mxu0 %vm1114_vm2, %v3405_v32  ;;  %3307 = vmatmul.msk.bf16.gmra.mxu1 %vm1114_vm2, %v3437_v33  ;;  %v3503_v32 = vld [vmem:[%s3616_s30 + $0x360] sm:$0xff] }
  0xc5   : > { %2543 = vst.msk [vmem:[%s3697_s9 + $0x418] sm:$0xff] %vm2411_vm3, %v2286_v42  ;;  %3339 = vmatmul.msk.bf16.gmra.mxu2 %vm1114_vm2, %v3469_v38  ;;  %3371 = vmatmul.msk.bf16.gmra.mxu3 %vm1114_vm2, %v3501_v39 }
  0xc6   : > { %2607 = vst.msk [vmem:[%s3697_s9 + $0x618] sm:$0xff] %vm2411_vm3, %v2350_v44 }
  0xc7   : > { %2416 = vst.msk [vmem:[%s3697_s9 + $0x20] sm:$0xff] %vm2411_vm3, %v2159_v45 }
  0xc8   : > { %2480 = vst.msk [vmem:[%s3697_s9 + $0x220] sm:$0xff] %vm2411_vm3, %v2223_v46  ;;  %v1845_v47 = vpop.f32.mrf.mxu2  ;;  %v2005_v48 = vpop.f32.mrf.mxu3 }
  0xc9   : > { %v1846_v49 = vadd.f32 %v3685_v43, %v1845_v47  ;;  %v2006_v50 = vadd.f32 %v3685_v43, %v2005_v48  ;;  %v1527_v51 = vpop.f32.mrf.mxu0  ;;  %v1687_v52 = vpop.f32.mrf.mxu1 }
  0xca   : > { %v1528_v53 = vadd.f32 %v3685_v43, %v1527_v51  ;;  %v1688_v54 = vadd.f32 %v3685_v43, %v1687_v52 }
  0xcb   : > { %v2287_v55 = vmax.f32 %v1846_v49, 0.0  ;;  %v2351_v56 = vmax.f32 %v2006_v50, 0.0 }
  0xcc   : > { %v2160_v57 = vmax.f32 %v1528_v53, 0.0  ;;  %v2224_v58 = vmax.f32 %v1688_v54, 0.0  ;;  %v3408_v54 = vld [vmem:[%s3616_s30 + $0x68] sm:$0xff] }
  0xcd   : > { %2544 = vst.msk [vmem:[%s3697_s9 + $0x420] sm:$0xff] %vm2411_vm3, %v2287_v55  ;;  %v3440_v55 = vld [vmem:[%s3616_s30 + $0x168] sm:$0xff] }
  0xce   : > { %2608 = vst.msk [vmem:[%s3697_s9 + $0x620] sm:$0xff] %vm2411_vm3, %v2351_v56 }
  0xcf   : > { %2417 = vst.msk [vmem:[%s3697_s9 + $0x28] sm:$0xff] %vm2411_vm3, %v2160_v57 }
  0xd0   : > { %2481 = vst.msk [vmem:[%s3697_s9 + $0x228] sm:$0xff] %vm2411_vm3, %v2224_v58  ;;  %v1847_v59 = vpop.f32.mrf.mxu2  ;;  %v2007_v60 = vpop.f32.mrf.mxu3 }
  0xd1   : > { %v1848_v63 = vadd.f32 %v3685_v43, %v1847_v59  ;;  %v2008_v0 = vadd.f32 %v3685_v43, %v2007_v60  ;;  %v1530_v1 = vpop.f32.mrf.mxu0  ;;  %v1690_v2 = vpop.f32.mrf.mxu1  ;;  %v3472_v60 = vld [vmem:[%s3616_s30 + $0x268] sm:$0xff] }
  0xd2   : > { %v1531_v5 = vadd.f32 %v3685_v43, %v1530_v1  ;;  %v1691_v6 = vadd.f32 %v3685_v43, %v1690_v2 }
  0xd3   : > { %v2288_v7 = vmax.f32 %v1848_v63, 0.0  ;;  %v2352_v8 = vmax.f32 %v2008_v0, 0.0 }
  0xd4   : > { %v2161_v9 = vmax.f32 %v1531_v5, 0.0  ;;  %v2225_v10 = vmax.f32 %v1691_v6, 0.0  ;;  %3276 = vmatmul.msk.bf16.gmra.mxu0 %vm1114_vm2, %v3406_v61  ;;  %3308 = vmatmul.msk.bf16.gmra.mxu1 %vm1114_vm2, %v3438_v62  ;;  %v3504_v61 = vld [vmem:[%s3616_s30 + $0x368] sm:$0xff] }
  0xd5   : > { %2545 = vst.msk [vmem:[%s3697_s9 + $0x428] sm:$0xff] %vm2411_vm3, %v2288_v7  ;;  %3340 = vmatmul.msk.bf16.gmra.mxu2 %vm1114_vm2, %v3470_v3  ;;  %3372 = vmatmul.msk.bf16.gmra.mxu3 %vm1114_vm2, %v3502_v4 }
  0xd6   : > { %2609 = vst.msk [vmem:[%s3697_s9 + $0x628] sm:$0xff] %vm2411_vm3, %v2352_v8 }
  0xd7   : > { %2418 = vst.msk [vmem:[%s3697_s9 + $0x30] sm:$0xff] %vm2411_vm3, %v2161_v9 }
  0xd8   : > { %2482 = vst.msk [vmem:[%s3697_s9 + $0x230] sm:$0xff] %vm2411_vm3, %v2225_v10  ;;  %v1850_v11 = vpop.f32.mrf.mxu2  ;;  %v2010_v12 = vpop.f32.mrf.mxu3 }
  0xd9   : > { %v1851_v13 = vadd.f32 %v3685_v43, %v1850_v11  ;;  %v2011_v14 = vadd.f32 %v3685_v43, %v2010_v12  ;;  %v1532_v15 = vpop.f32.mrf.mxu0  ;;  %v1692_v16 = vpop.f32.mrf.mxu1 }
  0xda   : > { %v1533_v17 = vadd.f32 %v3685_v43, %v1532_v15  ;;  %v1693_v18 = vadd.f32 %v3685_v43, %v1692_v16 }
  0xdb   : > { %v2289_v19 = vmax.f32 %v1851_v13, 0.0  ;;  %v2353_v20 = vmax.f32 %v2011_v14, 0.0 }
  0xdc   : > { %v2162_v21 = vmax.f32 %v1533_v17, 0.0  ;;  %v2226_v22 = vmax.f32 %v1693_v18, 0.0  ;;  %v3409_v18 = vld [vmem:[%s3616_s30 + $0x70] sm:$0xff] }
  0xdd   : > { %2546 = vst.msk [vmem:[%s3697_s9 + $0x430] sm:$0xff] %vm2411_vm3, %v2289_v19  ;;  %v3441_v19 = vld [vmem:[%s3616_s30 + $0x170] sm:$0xff] }
  0xde   : > { %2610 = vst.msk [vmem:[%s3697_s9 + $0x630] sm:$0xff] %vm2411_vm3, %v2353_v20 }
  0xdf   : > { %2419 = vst.msk [vmem:[%s3697_s9 + $0x38] sm:$0xff] %vm2411_vm3, %v2162_v21 }
  0xe0   : > { %2483 = vst.msk [vmem:[%s3697_s9 + $0x238] sm:$0xff] %vm2411_vm3, %v2226_v22  ;;  %v1852_v23 = vpop.f32.mrf.mxu2  ;;  %v2012_v24 = vpop.f32.mrf.mxu3 }
  0xe1   : > { %v1853_v27 = vadd.f32 %v3685_v43, %v1852_v23  ;;  %v2013_v28 = vadd.f32 %v3685_v43, %v2012_v24  ;;  %v1535_v29 = vpop.f32.mrf.mxu0  ;;  %v1695_v30 = vpop.f32.mrf.mxu1  ;;  %v3473_v24 = vld [vmem:[%s3616_s30 + $0x270] sm:$0xff] }
  0xe2   : > { %v1536_v33 = vadd.f32 %v3685_v43, %v1535_v29  ;;  %v1696_v34 = vadd.f32 %v3685_v43, %v1695_v30 }
  0xe3   : > { %v2290_v35 = vmax.f32 %v1853_v27, 0.0  ;;  %v2354_v36 = vmax.f32 %v2013_v28, 0.0 }
  0xe4   : > { %v2163_v37 = vmax.f32 %v1536_v33, 0.0  ;;  %v2227_v38 = vmax.f32 %v1696_v34, 0.0  ;;  %3277 = vmatmul.msk.bf16.gmra.mxu0 %vm1114_vm2, %v3407_v25  ;;  %3309 = vmatmul.msk.bf16.gmra.mxu1 %vm1114_vm2, %v3439_v26  ;;  %v3505_v25 = vld [vmem:[%s3616_s30 + $0x370] sm:$0xff] }
  0xe5   : > { %2547 = vst.msk [vmem:[%s3697_s9 + $0x438] sm:$0xff] %vm2411_vm3, %v2290_v35  ;;  %3341 = vmatmul.msk.bf16.gmra.mxu2 %vm1114_vm2, %v3471_v31  ;;  %3373 = vmatmul.msk.bf16.gmra.mxu3 %vm1114_vm2, %v3503_v32 }
  0xe6   : > { %2611 = vst.msk [vmem:[%s3697_s9 + $0x638] sm:$0xff] %vm2411_vm3, %v2354_v36 }
  0xe7   : > { %2420 = vst.msk [vmem:[%s3697_s9 + $0x40] sm:$0xff] %vm2411_vm3, %v2163_v37 }
  0xe8   : > { %2484 = vst.msk [vmem:[%s3697_s9 + $0x240] sm:$0xff] %vm2411_vm3, %v2227_v38  ;;  %v1855_v39 = vpop.f32.mrf.mxu2  ;;  %v2015_v40 = vpop.f32.mrf.mxu3 }
  0xe9   : > { %v1856_v41 = vadd.f32 %v3685_v43, %v1855_v39  ;;  %v2016_v42 = vadd.f32 %v3685_v43, %v2015_v40  ;;  %v1537_v44 = vpop.f32.mrf.mxu0  ;;  %v1697_v45 = vpop.f32.mrf.mxu1 }
  0xea   : > { %v1538_v46 = vadd.f32 %v3685_v43, %v1537_v44  ;;  %v1698_v47 = vadd.f32 %v3685_v43, %v1697_v45 }
  0xeb   : > { %v2291_v48 = vmax.f32 %v1856_v41, 0.0  ;;  %v2355_v49 = vmax.f32 %v2016_v42, 0.0 }
  0xec   : > { %v2164_v50 = vmax.f32 %v1538_v46, 0.0  ;;  %v2228_v51 = vmax.f32 %v1698_v47, 0.0  ;;  %v3410_v47 = vld [vmem:[%s3616_s30 + $0x78] sm:$0xff] }
  0xed   : > { %2548 = vst.msk [vmem:[%s3697_s9 + $0x440] sm:$0xff] %vm2411_vm3, %v2291_v48  ;;  %v3442_v48 = vld [vmem:[%s3616_s30 + $0x178] sm:$0xff] }
  0xee   : > { %2612 = vst.msk [vmem:[%s3697_s9 + $0x640] sm:$0xff] %vm2411_vm3, %v2355_v49 }
  0xef   : > { %2421 = vst.msk [vmem:[%s3697_s9 + $0x48] sm:$0xff] %vm2411_vm3, %v2164_v50 }
  0xf0   : > { %2485 = vst.msk [vmem:[%s3697_s9 + $0x248] sm:$0xff] %vm2411_vm3, %v2228_v51  ;;  %v1857_v52 = vpop.f32.mrf.mxu2  ;;  %v2017_v53 = vpop.f32.mrf.mxu3 }
  0xf1   : > { %v1858_v56 = vadd.f32 %v3685_v43, %v1857_v52  ;;  %v2018_v57 = vadd.f32 %v3685_v43, %v2017_v53  ;;  %v1540_v58 = vpop.f32.mrf.mxu0  ;;  %v1700_v59 = vpop.f32.mrf.mxu1  ;;  %v3474_v53 = vld [vmem:[%s3616_s30 + $0x278] sm:$0xff] }
  0xf2   : > { %v1541_v62 = vadd.f32 %v3685_v43, %v1540_v58  ;;  %v1701_v63 = vadd.f32 %v3685_v43, %v1700_v59 }
  0xf3   : > { %v2292_v0 = vmax.f32 %v1858_v56, 0.0  ;;  %v2356_v1 = vmax.f32 %v2018_v57, 0.0 }
  0xf4   : > { %v2165_v2 = vmax.f32 %v1541_v62, 0.0  ;;  %v2229_v3 = vmax.f32 %v1701_v63, 0.0  ;;  %3278 = vmatmul.msk.bf16.gmra.mxu0 %vm1114_vm2, %v3408_v54  ;;  %3310 = vmatmul.msk.bf16.gmra.mxu1 %vm1114_vm2, %v3440_v55  ;;  %v3506_v54 = vld [vmem:[%s3616_s30 + $0x378] sm:$0xff] }
  0xf5   : > { %2549 = vst.msk [vmem:[%s3697_s9 + $0x448] sm:$0xff] %vm2411_vm3, %v2292_v0  ;;  %3342 = vmatmul.msk.bf16.gmra.mxu2 %vm1114_vm2, %v3472_v60  ;;  %3374 = vmatmul.msk.bf16.gmra.mxu3 %vm1114_vm2, %v3504_v61 }
  0xf6   : > { %2613 = vst.msk [vmem:[%s3697_s9 + $0x648] sm:$0xff] %vm2411_vm3, %v2356_v1 }
  0xf7   : > { %2422 = vst.msk [vmem:[%s3697_s9 + $0x50] sm:$0xff] %vm2411_vm3, %v2165_v2 }
  0xf8   : > { %2486 = vst.msk [vmem:[%s3697_s9 + $0x250] sm:$0xff] %vm2411_vm3, %v2229_v3  ;;  %v1860_v4 = vpop.f32.mrf.mxu2  ;;  %v2020_v5 = vpop.f32.mrf.mxu3 }
  0xf9   : > { %v1861_v6 = vadd.f32 %v3685_v43, %v1860_v4  ;;  %v2021_v7 = vadd.f32 %v3685_v43, %v2020_v5  ;;  %v1542_v8 = vpop.f32.mrf.mxu0  ;;  %v1702_v9 = vpop.f32.mrf.mxu1 }
  0xfa   : > { %v1543_v10 = vadd.f32 %v3685_v43, %v1542_v8  ;;  %v1703_v11 = vadd.f32 %v3685_v43, %v1702_v9 }
  0xfb   : > { %v2293_v12 = vmax.f32 %v1861_v6, 0.0  ;;  %v2357_v13 = vmax.f32 %v2021_v7, 0.0 }
  0xfc   : > { %v2166_v14 = vmax.f32 %v1543_v10, 0.0  ;;  %v2230_v15 = vmax.f32 %v1703_v11, 0.0  ;;  %v3411_v11 = vld [vmem:[%s3616_s30 + $0x80] sm:$0xff] }
  0xfd   : > { %2550 = vst.msk [vmem:[%s3697_s9 + $0x450] sm:$0xff] %vm2411_vm3, %v2293_v12  ;;  %v3443_v12 = vld [vmem:[%s3616_s30 + $0x180] sm:$0xff] }
  0xfe   : > { %2614 = vst.msk [vmem:[%s3697_s9 + $0x650] sm:$0xff] %vm2411_vm3, %v2357_v13 }
  0xff   : > { %2423 = vst.msk [vmem:[%s3697_s9 + $0x58] sm:$0xff] %vm2411_vm3, %v2166_v14 }
 0x100   : > { %2487 = vst.msk [vmem:[%s3697_s9 + $0x258] sm:$0xff] %vm2411_vm3, %v2230_v15  ;;  %v1862_v16 = vpop.f32.mrf.mxu2  ;;  %v2022_v17 = vpop.f32.mrf.mxu3 }
 0x101   : > { %v1863_v20 = vadd.f32 %v3685_v43, %v1862_v16  ;;  %v2023_v21 = vadd.f32 %v3685_v43, %v2022_v17  ;;  %v1545_v22 = vpop.f32.mrf.mxu0  ;;  %v1705_v23 = vpop.f32.mrf.mxu1  ;;  %v3475_v17 = vld [vmem:[%s3616_s30 + $0x280] sm:$0xff] }
 0x102   : > { %v1546_v26 = vadd.f32 %v3685_v43, %v1545_v22  ;;  %v1706_v27 = vadd.f32 %v3685_v43, %v1705_v23 }
 0x103   : > { %v2294_v28 = vmax.f32 %v1863_v20, 0.0  ;;  %v2358_v29 = vmax.f32 %v2023_v21, 0.0 }
 0x104   : > { %v2167_v30 = vmax.f32 %v1546_v26, 0.0  ;;  %v2231_v31 = vmax.f32 %v1706_v27, 0.0  ;;  %3279 = vmatmul.msk.bf16.gmra.mxu0 %vm1114_vm2, %v3409_v18  ;;  %3311 = vmatmul.msk.bf16.gmra.mxu1 %vm1114_vm2, %v3441_v19  ;;  %v3507_v18 = vld [vmem:[%s3616_s30 + $0x380] sm:$0xff] }
 0x105   : > { %2551 = vst.msk [vmem:[%s3697_s9 + $0x458] sm:$0xff] %vm2411_vm3, %v2294_v28  ;;  %3343 = vmatmul.msk.bf16.gmra.mxu2 %vm1114_vm2, %v3473_v24  ;;  %3375 = vmatmul.msk.bf16.gmra.mxu3 %vm1114_vm2, %v3505_v25 }
 0x106   : > { %2615 = vst.msk [vmem:[%s3697_s9 + $0x658] sm:$0xff] %vm2411_vm3, %v2358_v29 }
 0x107   : > { %2424 = vst.msk [vmem:[%s3697_s9 + $0x60] sm:$0xff] %vm2411_vm3, %v2167_v30 }
 0x108   : > { %2488 = vst.msk [vmem:[%s3697_s9 + $0x260] sm:$0xff] %vm2411_vm3, %v2231_v31  ;;  %v1865_v32 = vpop.f32.mrf.mxu2  ;;  %v2025_v33 = vpop.f32.mrf.mxu3 }
 0x109   : > { %v1866_v34 = vadd.f32 %v3685_v43, %v1865_v32  ;;  %v2026_v35 = vadd.f32 %v3685_v43, %v2025_v33  ;;  %v1547_v36 = vpop.f32.mrf.mxu0  ;;  %v1707_v37 = vpop.f32.mrf.mxu1 }
 0x10a   : > { %v1548_v38 = vadd.f32 %v3685_v43, %v1547_v36  ;;  %v1708_v39 = vadd.f32 %v3685_v43, %v1707_v37 }
 0x10b   : > { %v2295_v40 = vmax.f32 %v1866_v34, 0.0  ;;  %v2359_v41 = vmax.f32 %v2026_v35, 0.0 }
 0x10c   : > { %v2168_v42 = vmax.f32 %v1548_v38, 0.0  ;;  %v2232_v44 = vmax.f32 %v1708_v39, 0.0  ;;  %v3412_v39 = vld [vmem:[%s3616_s30 + $0x88] sm:$0xff] }
 0x10d   : > { %2552 = vst.msk [vmem:[%s3697_s9 + $0x460] sm:$0xff] %vm2411_vm3, %v2295_v40  ;;  %v3444_v40 = vld [vmem:[%s3616_s30 + $0x188] sm:$0xff] }
 0x10e   : > { %2616 = vst.msk [vmem:[%s3697_s9 + $0x660] sm:$0xff] %vm2411_vm3, %v2359_v41 }
 0x10f   : > { %2425 = vst.msk [vmem:[%s3697_s9 + $0x68] sm:$0xff] %vm2411_vm3, %v2168_v42 }
 0x110   : > { %2489 = vst.msk [vmem:[%s3697_s9 + $0x268] sm:$0xff] %vm2411_vm3, %v2232_v44  ;;  %v1867_v45 = vpop.f32.mrf.mxu2  ;;  %v2027_v46 = vpop.f32.mrf.mxu3 }
 0x111   : > { %v1868_v49 = vadd.f32 %v3685_v43, %v1867_v45  ;;  %v2028_v50 = vadd.f32 %v3685_v43, %v2027_v46  ;;  %v1550_v51 = vpop.f32.mrf.mxu0  ;;  %v1710_v52 = vpop.f32.mrf.mxu1  ;;  %v3476_v46 = vld [vmem:[%s3616_s30 + $0x288] sm:$0xff] }
 0x112   : > { %v1551_v55 = vadd.f32 %v3685_v43, %v1550_v51  ;;  %v1711_v56 = vadd.f32 %v3685_v43, %v1710_v52 }
 0x113   : > { %v2296_v57 = vmax.f32 %v1868_v49, 0.0  ;;  %v2360_v58 = vmax.f32 %v2028_v50, 0.0 }
 0x114   : > { %v2169_v59 = vmax.f32 %v1551_v55, 0.0  ;;  %v2233_v60 = vmax.f32 %v1711_v56, 0.0  ;;  %3280 = vmatmul.msk.bf16.gmra.mxu0 %vm1114_vm2, %v3410_v47  ;;  %3312 = vmatmul.msk.bf16.gmra.mxu1 %vm1114_vm2, %v3442_v48  ;;  %v3508_v47 = vld [vmem:[%s3616_s30 + $0x388] sm:$0xff] }
 0x115   : > { %2553 = vst.msk [vmem:[%s3697_s9 + $0x468] sm:$0xff] %vm2411_vm3, %v2296_v57  ;;  %3344 = vmatmul.msk.bf16.gmra.mxu2 %vm1114_vm2, %v3474_v53  ;;  %3376 = vmatmul.msk.bf16.gmra.mxu3 %vm1114_vm2, %v3506_v54 }
 0x116   : > { %2617 = vst.msk [vmem:[%s3697_s9 + $0x668] sm:$0xff] %vm2411_vm3, %v2360_v58 }
 0x117   : > { %2426 = vst.msk [vmem:[%s3697_s9 + $0x70] sm:$0xff] %vm2411_vm3, %v2169_v59 }
 0x118   : > { %2490 = vst.msk [vmem:[%s3697_s9 + $0x270] sm:$0xff] %vm2411_vm3, %v2233_v60  ;;  %v1870_v61 = vpop.f32.mrf.mxu2  ;;  %v2030_v62 = vpop.f32.mrf.mxu3 }
 0x119   : > { %v1871_v63 = vadd.f32 %v3685_v43, %v1870_v61  ;;  %v2031_v0 = vadd.f32 %v3685_v43, %v2030_v62  ;;  %v1552_v1 = vpop.f32.mrf.mxu0  ;;  %v1712_v2 = vpop.f32.mrf.mxu1 }
 0x11a   : > { %v1553_v3 = vadd.f32 %v3685_v43, %v1552_v1  ;;  %v1713_v4 = vadd.f32 %v3685_v43, %v1712_v2 }
 0x11b   : > { %v2297_v5 = vmax.f32 %v1871_v63, 0.0  ;;  %v2361_v6 = vmax.f32 %v2031_v0, 0.0 }
 0x11c   : > { %v2170_v7 = vmax.f32 %v1553_v3, 0.0  ;;  %v2234_v8 = vmax.f32 %v1713_v4, 0.0  ;;  %v3413_v4 = vld [vmem:[%s3616_s30 + $0x90] sm:$0xff] }
 0x11d   : > { %2554 = vst.msk [vmem:[%s3697_s9 + $0x470] sm:$0xff] %vm2411_vm3, %v2297_v5  ;;  %v3445_v5 = vld [vmem:[%s3616_s30 + $0x190] sm:$0xff] }
 0x11e   : > { %2618 = vst.msk [vmem:[%s3697_s9 + $0x670] sm:$0xff] %vm2411_vm3, %v2361_v6 }
 0x11f   : > { %2427 = vst.msk [vmem:[%s3697_s9 + $0x78] sm:$0xff] %vm2411_vm3, %v2170_v7 }
 0x120   : > { %2491 = vst.msk [vmem:[%s3697_s9 + $0x278] sm:$0xff] %vm2411_vm3, %v2234_v8  ;;  %v1872_v9 = vpop.f32.mrf.mxu2  ;;  %v2032_v10 = vpop.f32.mrf.mxu3 }
 0x121   : > { %v1873_v13 = vadd.f32 %v3685_v43, %v1872_v9  ;;  %v2033_v14 = vadd.f32 %v3685_v43, %v2032_v10  ;;  %v1555_v15 = vpop.f32.mrf.mxu0  ;;  %v1715_v16 = vpop.f32.mrf.mxu1  ;;  %v3477_v10 = vld [vmem:[%s3616_s30 + $0x290] sm:$0xff] }
 0x122   : > { %v1556_v19 = vadd.f32 %v3685_v43, %v1555_v15  ;;  %v1716_v20 = vadd.f32 %v3685_v43, %v1715_v16 }
 0x123   : > { %v2298_v21 = vmax.f32 %v1873_v13, 0.0  ;;  %v2362_v22 = vmax.f32 %v2033_v14, 0.0 }
 0x124   : > { %v2171_v23 = vmax.f32 %v1556_v19, 0.0  ;;  %v2235_v24 = vmax.f32 %v1716_v20, 0.0  ;;  %3281 = vmatmul.msk.bf16.gmra.mxu0 %vm1114_vm2, %v3411_v11  ;;  %3313 = vmatmul.msk.bf16.gmra.mxu1 %vm1114_vm2, %v3443_v12  ;;  %v3509_v11 = vld [vmem:[%s3616_s30 + $0x390] sm:$0xff] }
 0x125   : > { %2555 = vst.msk [vmem:[%s3697_s9 + $0x478] sm:$0xff] %vm2411_vm3, %v2298_v21  ;;  %3345 = vmatmul.msk.bf16.gmra.mxu2 %vm1114_vm2, %v3475_v17  ;;  %3377 = vmatmul.msk.bf16.gmra.mxu3 %vm1114_vm2, %v3507_v18 }
 0x126   : > { %2619 = vst.msk [vmem:[%s3697_s9 + $0x678] sm:$0xff] %vm2411_vm3, %v2362_v22 }
 0x127   : > { %2428 = vst.msk [vmem:[%s3697_s9 + $0x80] sm:$0xff] %vm2411_vm3, %v2171_v23 }
 0x128   : > { %2492 = vst.msk [vmem:[%s3697_s9 + $0x280] sm:$0xff] %vm2411_vm3, %v2235_v24  ;;  %v1875_v25 = vpop.f32.mrf.mxu2  ;;  %v2035_v26 = vpop.f32.mrf.mxu3 }
 0x129   : > { %v1876_v27 = vadd.f32 %v3685_v43, %v1875_v25  ;;  %v2036_v28 = vadd.f32 %v3685_v43, %v2035_v26  ;;  %v1557_v29 = vpop.f32.mrf.mxu0  ;;  %v1717_v30 = vpop.f32.mrf.mxu1 }
 0x12a   : > { %v1558_v31 = vadd.f32 %v3685_v43, %v1557_v29  ;;  %v1718_v32 = vadd.f32 %v3685_v43, %v1717_v30 }
 0x12b   : > { %v2299_v33 = vmax.f32 %v1876_v27, 0.0  ;;  %v2363_v34 = vmax.f32 %v2036_v28, 0.0 }
 0x12c   : > { %v2172_v35 = vmax.f32 %v1558_v31, 0.0  ;;  %v2236_v36 = vmax.f32 %v1718_v32, 0.0  ;;  %v3414_v32 = vld [vmem:[%s3616_s30 + $0x98] sm:$0xff] }
 0x12d   : > { %2556 = vst.msk [vmem:[%s3697_s9 + $0x480] sm:$0xff] %vm2411_vm3, %v2299_v33  ;;  %v3446_v33 = vld [vmem:[%s3616_s30 + $0x198] sm:$0xff] }
 0x12e   : > { %2620 = vst.msk [vmem:[%s3697_s9 + $0x680] sm:$0xff] %vm2411_vm3, %v2363_v34 }
 0x12f   : > { %2429 = vst.msk [vmem:[%s3697_s9 + $0x88] sm:$0xff] %vm2411_vm3, %v2172_v35 }
 0x130   : > { %2493 = vst.msk [vmem:[%s3697_s9 + $0x288] sm:$0xff] %vm2411_vm3, %v2236_v36  ;;  %v1877_v37 = vpop.f32.mrf.mxu2  ;;  %v2037_v38 = vpop.f32.mrf.mxu3 }
 0x131   : > { %v1878_v41 = vadd.f32 %v3685_v43, %v1877_v37  ;;  %v2038_v42 = vadd.f32 %v3685_v43, %v2037_v38  ;;  %v1560_v44 = vpop.f32.mrf.mxu0  ;;  %v1720_v45 = vpop.f32.mrf.mxu1  ;;  %v3478_v38 = vld [vmem:[%s3616_s30 + $0x298] sm:$0xff] }
 0x132   : > { %v1561_v48 = vadd.f32 %v3685_v43, %v1560_v44  ;;  %v1721_v49 = vadd.f32 %v3685_v43, %v1720_v45 }
 0x133   : > { %v2300_v50 = vmax.f32 %v1878_v41, 0.0  ;;  %v2364_v51 = vmax.f32 %v2038_v42, 0.0 }
 0x134   : > { %v2173_v52 = vmax.f32 %v1561_v48, 0.0  ;;  %v2237_v53 = vmax.f32 %v1721_v49, 0.0  ;;  %3282 = vmatmul.msk.bf16.gmra.mxu0 %vm1114_vm2, %v3412_v39  ;;  %3314 = vmatmul.msk.bf16.gmra.mxu1 %vm1114_vm2, %v3444_v40  ;;  %v3510_v39 = vld [vmem:[%s3616_s30 + $0x398] sm:$0xff] }
 0x135   : > { %2557 = vst.msk [vmem:[%s3697_s9 + $0x488] sm:$0xff] %vm2411_vm3, %v2300_v50  ;;  %3346 = vmatmul.msk.bf16.gmra.mxu2 %vm1114_vm2, %v3476_v46  ;;  %3378 = vmatmul.msk.bf16.gmra.mxu3 %vm1114_vm2, %v3508_v47 }
 0x136   : > { %2621 = vst.msk [vmem:[%s3697_s9 + $0x688] sm:$0xff] %vm2411_vm3, %v2364_v51 }
 0x137   : > { %2430 = vst.msk [vmem:[%s3697_s9 + $0x90] sm:$0xff] %vm2411_vm3, %v2173_v52 }
 0x138   : > { %2494 = vst.msk [vmem:[%s3697_s9 + $0x290] sm:$0xff] %vm2411_vm3, %v2237_v53  ;;  %v1880_v54 = vpop.f32.mrf.mxu2  ;;  %v2040_v55 = vpop.f32.mrf.mxu3 }
 0x139   : > { %v1881_v56 = vadd.f32 %v3685_v43, %v1880_v54  ;;  %v2041_v57 = vadd.f32 %v3685_v43, %v2040_v55  ;;  %v1562_v58 = vpop.f32.mrf.mxu0  ;;  %v1722_v59 = vpop.f32.mrf.mxu1 }
 0x13a   : > { %v1563_v60 = vadd.f32 %v3685_v43, %v1562_v58  ;;  %v1723_v61 = vadd.f32 %v3685_v43, %v1722_v59 }
 0x13b   : > { %v2301_v62 = vmax.f32 %v1881_v56, 0.0  ;;  %v2365_v63 = vmax.f32 %v2041_v57, 0.0 }
 0x13c   : > { %v2174_v0 = vmax.f32 %v1563_v60, 0.0  ;;  %v2238_v1 = vmax.f32 %v1723_v61, 0.0  ;;  %v3415_v61 = vld [vmem:[%s3616_s30 + $0xa0] sm:$0xff] }
 0x13d   : > { %2558 = vst.msk [vmem:[%s3697_s9 + $0x490] sm:$0xff] %vm2411_vm3, %v2301_v62  ;;  %v3447_v62 = vld [vmem:[%s3616_s30 + $0x1a0] sm:$0xff] }
 0x13e   : > { %2622 = vst.msk [vmem:[%s3697_s9 + $0x690] sm:$0xff] %vm2411_vm3, %v2365_v63 }
 0x13f   : > { %2431 = vst.msk [vmem:[%s3697_s9 + $0x98] sm:$0xff] %vm2411_vm3, %v2174_v0 }
 0x140   : > { %2495 = vst.msk [vmem:[%s3697_s9 + $0x298] sm:$0xff] %vm2411_vm3, %v2238_v1  ;;  %v1882_v2 = vpop.f32.mrf.mxu2  ;;  %v2042_v3 = vpop.f32.mrf.mxu3 }
 0x141   : > { %v1883_v6 = vadd.f32 %v3685_v43, %v1882_v2  ;;  %v2043_v7 = vadd.f32 %v3685_v43, %v2042_v3  ;;  %v1565_v8 = vpop.f32.mrf.mxu0  ;;  %v1725_v9 = vpop.f32.mrf.mxu1  ;;  %v3479_v3 = vld [vmem:[%s3616_s30 + $0x2a0] sm:$0xff] }
 0x142   : > { %v1566_v12 = vadd.f32 %v3685_v43, %v1565_v8  ;;  %v1726_v13 = vadd.f32 %v3685_v43, %v1725_v9 }
 0x143   : > { %v2302_v14 = vmax.f32 %v1883_v6, 0.0  ;;  %v2366_v15 = vmax.f32 %v2043_v7, 0.0 }
 0x144   : > { %v2175_v16 = vmax.f32 %v1566_v12, 0.0  ;;  %v2239_v17 = vmax.f32 %v1726_v13, 0.0  ;;  %3283 = vmatmul.msk.bf16.gmra.mxu0 %vm1114_vm2, %v3413_v4  ;;  %3315 = vmatmul.msk.bf16.gmra.mxu1 %vm1114_vm2, %v3445_v5  ;;  %v3511_v4 = vld [vmem:[%s3616_s30 + $0x3a0] sm:$0xff] }
 0x145   : > { %2559 = vst.msk [vmem:[%s3697_s9 + $0x498] sm:$0xff] %vm2411_vm3, %v2302_v14  ;;  %3347 = vmatmul.msk.bf16.gmra.mxu2 %vm1114_vm2, %v3477_v10  ;;  %3379 = vmatmul.msk.bf16.gmra.mxu3 %vm1114_vm2, %v3509_v11 }
 0x146   : > { %2623 = vst.msk [vmem:[%s3697_s9 + $0x698] sm:$0xff] %vm2411_vm3, %v2366_v15 }
 0x147   : > { %2432 = vst.msk [vmem:[%s3697_s9 + $0xa0] sm:$0xff] %vm2411_vm3, %v2175_v16 }
 0x148   : > { %2496 = vst.msk [vmem:[%s3697_s9 + $0x2a0] sm:$0xff] %vm2411_vm3, %v2239_v17  ;;  %v1885_v18 = vpop.f32.mrf.mxu2  ;;  %v2045_v19 = vpop.f32.mrf.mxu3 }
 0x149   : > { %v1886_v20 = vadd.f32 %v3685_v43, %v1885_v18  ;;  %v2046_v21 = vadd.f32 %v3685_v43, %v2045_v19  ;;  %v1567_v22 = vpop.f32.mrf.mxu0  ;;  %v1727_v23 = vpop.f32.mrf.mxu1 }
 0x14a   : > { %v1568_v24 = vadd.f32 %v3685_v43, %v1567_v22  ;;  %v1728_v25 = vadd.f32 %v3685_v43, %v1727_v23 }
 0x14b   : > { %v2303_v26 = vmax.f32 %v1886_v20, 0.0  ;;  %v2367_v27 = vmax.f32 %v2046_v21, 0.0 }
 0x14c   : > { %v2176_v28 = vmax.f32 %v1568_v24, 0.0  ;;  %v2240_v29 = vmax.f32 %v1728_v25, 0.0  ;;  %v3416_v25 = vld [vmem:[%s3616_s30 + $0xa8] sm:$0xff] }
 0x14d   : > { %2560 = vst.msk [vmem:[%s3697_s9 + $0x4a0] sm:$0xff] %vm2411_vm3, %v2303_v26  ;;  %v3448_v26 = vld [vmem:[%s3616_s30 + $0x1a8] sm:$0xff] }
 0x14e   : > { %2624 = vst.msk [vmem:[%s3697_s9 + $0x6a0] sm:$0xff] %vm2411_vm3, %v2367_v27 }
 0x14f   : > { %2433 = vst.msk [vmem:[%s3697_s9 + $0xa8] sm:$0xff] %vm2411_vm3, %v2176_v28 }
 0x150   : > { %2497 = vst.msk [vmem:[%s3697_s9 + $0x2a8] sm:$0xff] %vm2411_vm3, %v2240_v29  ;;  %v1887_v30 = vpop.f32.mrf.mxu2  ;;  %v2047_v31 = vpop.f32.mrf.mxu3 }
 0x151   : > { %v1888_v34 = vadd.f32 %v3685_v43, %v1887_v30  ;;  %v2048_v35 = vadd.f32 %v3685_v43, %v2047_v31  ;;  %v1570_v36 = vpop.f32.mrf.mxu0  ;;  %v1730_v37 = vpop.f32.mrf.mxu1  ;;  %v3480_v31 = vld [vmem:[%s3616_s30 + $0x2a8] sm:$0xff] }
 0x152   : > { %v1571_v40 = vadd.f32 %v3685_v43, %v1570_v36  ;;  %v1731_v41 = vadd.f32 %v3685_v43, %v1730_v37 }
 0x153   : > { %v2304_v42 = vmax.f32 %v1888_v34, 0.0  ;;  %v2368_v44 = vmax.f32 %v2048_v35, 0.0 }
 0x154   : > { %v2177_v45 = vmax.f32 %v1571_v40, 0.0  ;;  %v2241_v46 = vmax.f32 %v1731_v41, 0.0  ;;  %3284 = vmatmul.msk.bf16.gmra.mxu0 %vm1114_vm2, %v3414_v32  ;;  %3316 = vmatmul.msk.bf16.gmra.mxu1 %vm1114_vm2, %v3446_v33  ;;  %v3512_v32 = vld [vmem:[%s3616_s30 + $0x3a8] sm:$0xff] }
 0x155   : > { %2561 = vst.msk [vmem:[%s3697_s9 + $0x4a8] sm:$0xff] %vm2411_vm3, %v2304_v42  ;;  %3348 = vmatmul.msk.bf16.gmra.mxu2 %vm1114_vm2, %v3478_v38  ;;  %3380 = vmatmul.msk.bf16.gmra.mxu3 %vm1114_vm2, %v3510_v39 }
 0x156   : > { %2625 = vst.msk [vmem:[%s3697_s9 + $0x6a8] sm:$0xff] %vm2411_vm3, %v2368_v44 }
 0x157   : > { %2434 = vst.msk [vmem:[%s3697_s9 + $0xb0] sm:$0xff] %vm2411_vm3, %v2177_v45 }
 0x158   : > { %2498 = vst.msk [vmem:[%s3697_s9 + $0x2b0] sm:$0xff] %vm2411_vm3, %v2241_v46  ;;  %v1890_v47 = vpop.f32.mrf.mxu2  ;;  %v2050_v48 = vpop.f32.mrf.mxu3 }
 0x159   : > { %v1891_v49 = vadd.f32 %v3685_v43, %v1890_v47  ;;  %v2051_v50 = vadd.f32 %v3685_v43, %v2050_v48  ;;  %v1572_v51 = vpop.f32.mrf.mxu0  ;;  %v1732_v52 = vpop.f32.mrf.mxu1 }
 0x15a   : > { %v1573_v53 = vadd.f32 %v3685_v43, %v1572_v51  ;;  %v1733_v54 = vadd.f32 %v3685_v43, %v1732_v52 }
 0x15b   : > { %v2305_v55 = vmax.f32 %v1891_v49, 0.0  ;;  %v2369_v56 = vmax.f32 %v2051_v50, 0.0 }
 0x15c   : > { %v2178_v57 = vmax.f32 %v1573_v53, 0.0  ;;  %v2242_v58 = vmax.f32 %v1733_v54, 0.0  ;;  %v3417_v54 = vld [vmem:[%s3616_s30 + $0xb0] sm:$0xff] }
 0x15d   : > { %2562 = vst.msk [vmem:[%s3697_s9 + $0x4b0] sm:$0xff] %vm2411_vm3, %v2305_v55  ;;  %v3449_v55 = vld [vmem:[%s3616_s30 + $0x1b0] sm:$0xff] }
 0x15e   : > { %2626 = vst.msk [vmem:[%s3697_s9 + $0x6b0] sm:$0xff] %vm2411_vm3, %v2369_v56 }
 0x15f   : > { %2435 = vst.msk [vmem:[%s3697_s9 + $0xb8] sm:$0xff] %vm2411_vm3, %v2178_v57 }
 0x160   : > { %2499 = vst.msk [vmem:[%s3697_s9 + $0x2b8] sm:$0xff] %vm2411_vm3, %v2242_v58  ;;  %v1892_v59 = vpop.f32.mrf.mxu2  ;;  %v2052_v60 = vpop.f32.mrf.mxu3 }
 0x161   : > { %v1893_v63 = vadd.f32 %v3685_v43, %v1892_v59  ;;  %v2053_v0 = vadd.f32 %v3685_v43, %v2052_v60  ;;  %v1575_v1 = vpop.f32.mrf.mxu0  ;;  %v1735_v2 = vpop.f32.mrf.mxu1  ;;  %v3481_v60 = vld [vmem:[%s3616_s30 + $0x2b0] sm:$0xff] }
 0x162   : > { %v1576_v5 = vadd.f32 %v3685_v43, %v1575_v1  ;;  %v1736_v6 = vadd.f32 %v3685_v43, %v1735_v2 }
 0x163   : > { %v2306_v7 = vmax.f32 %v1893_v63, 0.0  ;;  %v2370_v8 = vmax.f32 %v2053_v0, 0.0 }
 0x164   : > { %v2179_v9 = vmax.f32 %v1576_v5, 0.0  ;;  %v2243_v10 = vmax.f32 %v1736_v6, 0.0  ;;  %3285 = vmatmul.msk.bf16.gmra.mxu0 %vm1114_vm2, %v3415_v61  ;;  %3317 = vmatmul.msk.bf16.gmra.mxu1 %vm1114_vm2, %v3447_v62  ;;  %v3513_v61 = vld [vmem:[%s3616_s30 + $0x3b0] sm:$0xff] }
 0x165   : > { %2563 = vst.msk [vmem:[%s3697_s9 + $0x4b8] sm:$0xff] %vm2411_vm3, %v2306_v7  ;;  %3349 = vmatmul.msk.bf16.gmra.mxu2 %vm1114_vm2, %v3479_v3  ;;  %3381 = vmatmul.msk.bf16.gmra.mxu3 %vm1114_vm2, %v3511_v4 }
 0x166   : > { %2627 = vst.msk [vmem:[%s3697_s9 + $0x6b8] sm:$0xff] %vm2411_vm3, %v2370_v8 }
 0x167   : > { %2436 = vst.msk [vmem:[%s3697_s9 + $0xc0] sm:$0xff] %vm2411_vm3, %v2179_v9 }
 0x168   : > { %2500 = vst.msk [vmem:[%s3697_s9 + $0x2c0] sm:$0xff] %vm2411_vm3, %v2243_v10  ;;  %v1895_v11 = vpop.f32.mrf.mxu2  ;;  %v2055_v12 = vpop.f32.mrf.mxu3 }
 0x169   : > { %v1896_v13 = vadd.f32 %v3685_v43, %v1895_v11  ;;  %v2056_v14 = vadd.f32 %v3685_v43, %v2055_v12  ;;  %v1577_v15 = vpop.f32.mrf.mxu0  ;;  %v1737_v16 = vpop.f32.mrf.mxu1 }
 0x16a   : > { %v1578_v17 = vadd.f32 %v3685_v43, %v1577_v15  ;;  %v1738_v18 = vadd.f32 %v3685_v43, %v1737_v16  ;;  %v4108_v43 = vld [vmem:[%s4668_s2] ss:$0 sm:$0xff] }
 0x16b   : > { %v2307_v19 = vmax.f32 %v1896_v13, 0.0  ;;  %v2371_v20 = vmax.f32 %v2056_v14, 0.0 }
 0x16c   : > { %v2180_v21 = vmax.f32 %v1578_v17, 0.0  ;;  %v2244_v22 = vmax.f32 %v1738_v18, 0.0  ;;  %v3418_v18 = vld [vmem:[%s3616_s30 + $0xb8] sm:$0xff] }
 0x16d   : > { %2564 = vst.msk [vmem:[%s3697_s9 + $0x4c0] sm:$0xff] %vm2411_vm3, %v2307_v19  ;;  %v3450_v19 = vld [vmem:[%s3616_s30 + $0x1b8] sm:$0xff] }
 0x16e   : > { %2628 = vst.msk [vmem:[%s3697_s9 + $0x6c0] sm:$0xff] %vm2411_vm3, %v2371_v20 }
 0x16f   : > { %2437 = vst.msk [vmem:[%s3697_s9 + $0xc8] sm:$0xff] %vm2411_vm3, %v2180_v21 }
 0x170   : > { %2501 = vst.msk [vmem:[%s3697_s9 + $0x2c8] sm:$0xff] %vm2411_vm3, %v2244_v22  ;;  %v1897_v23 = vpop.f32.mrf.mxu2  ;;  %v2057_v24 = vpop.f32.mrf.mxu3 }
 0x171   : > { %v1898_v27 = vadd.f32 %v4108_v43, %v1897_v23  ;;  %v2058_v28 = vadd.f32 %v4108_v43, %v2057_v24  ;;  %v1580_v29 = vpop.f32.mrf.mxu0  ;;  %v1740_v30 = vpop.f32.mrf.mxu1  ;;  %v3482_v24 = vld [vmem:[%s3616_s30 + $0x2b8] sm:$0xff] }
 0x172   : > { %v1581_v33 = vadd.f32 %v4108_v43, %v1580_v29  ;;  %v1741_v34 = vadd.f32 %v4108_v43, %v1740_v30 }
 0x173   : > { %v2308_v35 = vmax.f32 %v1898_v27, 0.0  ;;  %v2372_v36 = vmax.f32 %v2058_v28, 0.0 }
 0x174   : > { %v2181_v37 = vmax.f32 %v1581_v33, 0.0  ;;  %v2245_v38 = vmax.f32 %v1741_v34, 0.0  ;;  %3286 = vmatmul.msk.bf16.gmra.mxu0 %vm1114_vm2, %v3416_v25  ;;  %3318 = vmatmul.msk.bf16.gmra.mxu1 %vm1114_vm2, %v3448_v26  ;;  %v3514_v25 = vld [vmem:[%s3616_s30 + $0x3b8] sm:$0xff] }
 0x175   : > { %2565 = vst.msk [vmem:[%s3697_s9 + $0x4c8] sm:$0xff] %vm2411_vm3, %v2308_v35  ;;  %3350 = vmatmul.msk.bf16.gmra.mxu2 %vm1114_vm2, %v3480_v31  ;;  %3382 = vmatmul.msk.bf16.gmra.mxu3 %vm1114_vm2, %v3512_v32 }
 0x176   : > { %2629 = vst.msk [vmem:[%s3697_s9 + $0x6c8] sm:$0xff] %vm2411_vm3, %v2372_v36 }
 0x177   : > { %2438 = vst.msk [vmem:[%s3697_s9 + $0xd0] sm:$0xff] %vm2411_vm3, %v2181_v37 }
 0x178   : > { %2502 = vst.msk [vmem:[%s3697_s9 + $0x2d0] sm:$0xff] %vm2411_vm3, %v2245_v38  ;;  %v1900_v39 = vpop.f32.mrf.mxu2  ;;  %v2060_v40 = vpop.f32.mrf.mxu3 }
 0x179   : > { %v1901_v41 = vadd.f32 %v4108_v43, %v1900_v39  ;;  %v2061_v42 = vadd.f32 %v4108_v43, %v2060_v40  ;;  %v1582_v44 = vpop.f32.mrf.mxu0  ;;  %v1742_v45 = vpop.f32.mrf.mxu1 }
 0x17a   : > { %v1583_v46 = vadd.f32 %v4108_v43, %v1582_v44  ;;  %v1743_v47 = vadd.f32 %v4108_v43, %v1742_v45 }
 0x17b   : > { %v2309_v48 = vmax.f32 %v1901_v41, 0.0  ;;  %v2373_v49 = vmax.f32 %v2061_v42, 0.0 }
 0x17c   : > { %v2182_v50 = vmax.f32 %v1583_v46, 0.0  ;;  %v2246_v51 = vmax.f32 %v1743_v47, 0.0  ;;  %v3419_v47 = vld [vmem:[%s3616_s30 + $0xc0] sm:$0xff] }
 0x17d   : > { %2566 = vst.msk [vmem:[%s3697_s9 + $0x4d0] sm:$0xff] %vm2411_vm3, %v2309_v48  ;;  %v3451_v48 = vld [vmem:[%s3616_s30 + $0x1c0] sm:$0xff] }
 0x17e   : > { %2630 = vst.msk [vmem:[%s3697_s9 + $0x6d0] sm:$0xff] %vm2411_vm3, %v2373_v49 }
 0x17f   : > { %2439 = vst.msk [vmem:[%s3697_s9 + $0xd8] sm:$0xff] %vm2411_vm3, %v2182_v50 }
 0x180   : > { %2503 = vst.msk [vmem:[%s3697_s9 + $0x2d8] sm:$0xff] %vm2411_vm3, %v2246_v51  ;;  %v1902_v52 = vpop.f32.mrf.mxu2  ;;  %v2062_v53 = vpop.f32.mrf.mxu3 }
 0x181   : > { %v1903_v56 = vadd.f32 %v4108_v43, %v1902_v52  ;;  %v2063_v57 = vadd.f32 %v4108_v43, %v2062_v53  ;;  %v1585_v58 = vpop.f32.mrf.mxu0  ;;  %v1745_v59 = vpop.f32.mrf.mxu1  ;;  %v3483_v53 = vld [vmem:[%s3616_s30 + $0x2c0] sm:$0xff] }
 0x182   : > { %v1586_v62 = vadd.f32 %v4108_v43, %v1585_v58  ;;  %v1746_v63 = vadd.f32 %v4108_v43, %v1745_v59 }
 0x183   : > { %v2310_v0 = vmax.f32 %v1903_v56, 0.0  ;;  %v2374_v1 = vmax.f32 %v2063_v57, 0.0 }
 0x184   : > { %v2183_v2 = vmax.f32 %v1586_v62, 0.0  ;;  %v2247_v3 = vmax.f32 %v1746_v63, 0.0  ;;  %3287 = vmatmul.msk.bf16.gmra.mxu0 %vm1114_vm2, %v3417_v54  ;;  %3319 = vmatmul.msk.bf16.gmra.mxu1 %vm1114_vm2, %v3449_v55  ;;  %v3515_v54 = vld [vmem:[%s3616_s30 + $0x3c0] sm:$0xff] }
 0x185   : > { %2567 = vst.msk [vmem:[%s3697_s9 + $0x4d8] sm:$0xff] %vm2411_vm3, %v2310_v0  ;;  %3351 = vmatmul.msk.bf16.gmra.mxu2 %vm1114_vm2, %v3481_v60  ;;  %3383 = vmatmul.msk.bf16.gmra.mxu3 %vm1114_vm2, %v3513_v61 }
 0x186   : > { %2631 = vst.msk [vmem:[%s3697_s9 + $0x6d8] sm:$0xff] %vm2411_vm3, %v2374_v1 }
 0x187   : > { %2440 = vst.msk [vmem:[%s3697_s9 + $0xe0] sm:$0xff] %vm2411_vm3, %v2183_v2 }
 0x188   : > { %2504 = vst.msk [vmem:[%s3697_s9 + $0x2e0] sm:$0xff] %vm2411_vm3, %v2247_v3  ;;  %v1905_v4 = vpop.f32.mrf.mxu2  ;;  %v2065_v5 = vpop.f32.mrf.mxu3 }
 0x189   : > { %v1906_v6 = vadd.f32 %v4108_v43, %v1905_v4  ;;  %v2066_v7 = vadd.f32 %v4108_v43, %v2065_v5  ;;  %v1587_v8 = vpop.f32.mrf.mxu0  ;;  %v1747_v9 = vpop.f32.mrf.mxu1 }
 0x18a   : > { %v1588_v10 = vadd.f32 %v4108_v43, %v1587_v8  ;;  %v1748_v11 = vadd.f32 %v4108_v43, %v1747_v9 }
 0x18b   : > { %v2311_v12 = vmax.f32 %v1906_v6, 0.0  ;;  %v2375_v13 = vmax.f32 %v2066_v7, 0.0 }
 0x18c   : > { %v2184_v14 = vmax.f32 %v1588_v10, 0.0  ;;  %v2248_v15 = vmax.f32 %v1748_v11, 0.0  ;;  %v3420_v11 = vld [vmem:[%s3616_s30 + $0xc8] sm:$0xff] }
 0x18d   : > { %2568 = vst.msk [vmem:[%s3697_s9 + $0x4e0] sm:$0xff] %vm2411_vm3, %v2311_v12  ;;  %v3452_v12 = vld [vmem:[%s3616_s30 + $0x1c8] sm:$0xff] }
 0x18e   : > { %2632 = vst.msk [vmem:[%s3697_s9 + $0x6e0] sm:$0xff] %vm2411_vm3, %v2375_v13 }
 0x18f   : > { %2441 = vst.msk [vmem:[%s3697_s9 + $0xe8] sm:$0xff] %vm2411_vm3, %v2184_v14 }
 0x190   : > { %2505 = vst.msk [vmem:[%s3697_s9 + $0x2e8] sm:$0xff] %vm2411_vm3, %v2248_v15  ;;  %v1907_v16 = vpop.f32.mrf.mxu2  ;;  %v2067_v17 = vpop.f32.mrf.mxu3 }
 0x191   : > { %v1908_v20 = vadd.f32 %v4108_v43, %v1907_v16  ;;  %v2068_v21 = vadd.f32 %v4108_v43, %v2067_v17  ;;  %v1590_v22 = vpop.f32.mrf.mxu0  ;;  %v1750_v23 = vpop.f32.mrf.mxu1  ;;  %v3484_v17 = vld [vmem:[%s3616_s30 + $0x2c8] sm:$0xff] }
 0x192   : > { %v1591_v26 = vadd.f32 %v4108_v43, %v1590_v22  ;;  %v1751_v27 = vadd.f32 %v4108_v43, %v1750_v23 }
 0x193   : > { %v2312_v28 = vmax.f32 %v1908_v20, 0.0  ;;  %v2376_v29 = vmax.f32 %v2068_v21, 0.0 }
 0x194   : > { %v2185_v30 = vmax.f32 %v1591_v26, 0.0  ;;  %v2249_v31 = vmax.f32 %v1751_v27, 0.0  ;;  %3288 = vmatmul.msk.bf16.gmra.mxu0 %vm1114_vm2, %v3418_v18  ;;  %3320 = vmatmul.msk.bf16.gmra.mxu1 %vm1114_vm2, %v3450_v19  ;;  %v3516_v18 = vld [vmem:[%s3616_s30 + $0x3c8] sm:$0xff] }
 0x195   : > { %2569 = vst.msk [vmem:[%s3697_s9 + $0x4e8] sm:$0xff] %vm2411_vm3, %v2312_v28  ;;  %3352 = vmatmul.msk.bf16.gmra.mxu2 %vm1114_vm2, %v3482_v24  ;;  %3384 = vmatmul.msk.bf16.gmra.mxu3 %vm1114_vm2, %v3514_v25 }
 0x196   : > { %2633 = vst.msk [vmem:[%s3697_s9 + $0x6e8] sm:$0xff] %vm2411_vm3, %v2376_v29 }
 0x197   : > { %2442 = vst.msk [vmem:[%s3697_s9 + $0xf0] sm:$0xff] %vm2411_vm3, %v2185_v30 }
 0x198   : > { %2506 = vst.msk [vmem:[%s3697_s9 + $0x2f0] sm:$0xff] %vm2411_vm3, %v2249_v31  ;;  %v1910_v32 = vpop.f32.mrf.mxu2  ;;  %v2070_v33 = vpop.f32.mrf.mxu3 }
 0x199   : > { %v1911_v34 = vadd.f32 %v4108_v43, %v1910_v32  ;;  %v2071_v35 = vadd.f32 %v4108_v43, %v2070_v33  ;;  %v1592_v36 = vpop.f32.mrf.mxu0  ;;  %v1752_v37 = vpop.f32.mrf.mxu1 }
 0x19a   : > { %v1593_v38 = vadd.f32 %v4108_v43, %v1592_v36  ;;  %v1753_v39 = vadd.f32 %v4108_v43, %v1752_v37 }
 0x19b   : > { %v2313_v40 = vmax.f32 %v1911_v34, 0.0  ;;  %v2377_v41 = vmax.f32 %v2071_v35, 0.0 }
 0x19c   : > { %v2186_v42 = vmax.f32 %v1593_v38, 0.0  ;;  %v2250_v44 = vmax.f32 %v1753_v39, 0.0  ;;  %v3421_v39 = vld [vmem:[%s3616_s30 + $0xd0] sm:$0xff] }
 0x19d   : > { %2570 = vst.msk [vmem:[%s3697_s9 + $0x4f0] sm:$0xff] %vm2411_vm3, %v2313_v40  ;;  %v3453_v40 = vld [vmem:[%s3616_s30 + $0x1d0] sm:$0xff] }
 0x19e   : > { %2634 = vst.msk [vmem:[%s3697_s9 + $0x6f0] sm:$0xff] %vm2411_vm3, %v2377_v41 }
 0x19f   : > { %2443 = vst.msk [vmem:[%s3697_s9 + $0xf8] sm:$0xff] %vm2411_vm3, %v2186_v42 }
 0x1a0   : > { %2507 = vst.msk [vmem:[%s3697_s9 + $0x2f8] sm:$0xff] %vm2411_vm3, %v2250_v44  ;;  %v1912_v45 = vpop.f32.mrf.mxu2  ;;  %v2072_v46 = vpop.f32.mrf.mxu3 }
 0x1a1   : > { %v1913_v49 = vadd.f32 %v4108_v43, %v1912_v45  ;;  %v2073_v50 = vadd.f32 %v4108_v43, %v2072_v46  ;;  %v1595_v51 = vpop.f32.mrf.mxu0  ;;  %v1755_v52 = vpop.f32.mrf.mxu1  ;;  %v3485_v46 = vld [vmem:[%s3616_s30 + $0x2d0] sm:$0xff] }
 0x1a2   : > { %v1596_v55 = vadd.f32 %v4108_v43, %v1595_v51  ;;  %v1756_v56 = vadd.f32 %v4108_v43, %v1755_v52 }
 0x1a3   : > { %v2314_v57 = vmax.f32 %v1913_v49, 0.0  ;;  %v2378_v58 = vmax.f32 %v2073_v50, 0.0 }
 0x1a4   : > { %v2187_v59 = vmax.f32 %v1596_v55, 0.0  ;;  %v2251_v60 = vmax.f32 %v1756_v56, 0.0  ;;  %3289 = vmatmul.msk.bf16.gmra.mxu0 %vm1114_vm2, %v3419_v47  ;;  %3321 = vmatmul.msk.bf16.gmra.mxu1 %vm1114_vm2, %v3451_v48  ;;  %v3517_v47 = vld [vmem:[%s3616_s30 + $0x3d0] sm:$0xff] }
 0x1a5   : > { %2571 = vst.msk [vmem:[%s3697_s9 + $0x4f8] sm:$0xff] %vm2411_vm3, %v2314_v57  ;;  %3353 = vmatmul.msk.bf16.gmra.mxu2 %vm1114_vm2, %v3483_v53  ;;  %3385 = vmatmul.msk.bf16.gmra.mxu3 %vm1114_vm2, %v3515_v54 }
 0x1a6   : > { %2635 = vst.msk [vmem:[%s3697_s9 + $0x6f8] sm:$0xff] %vm2411_vm3, %v2378_v58 }
 0x1a7   : > { %2444 = vst.msk [vmem:[%s3697_s9 + $0x100] sm:$0xff] %vm2411_vm3, %v2187_v59 }
 0x1a8   : > { %2508 = vst.msk [vmem:[%s3697_s9 + $0x300] sm:$0xff] %vm2411_vm3, %v2251_v60  ;;  %v1915_v61 = vpop.f32.mrf.mxu2  ;;  %v2075_v62 = vpop.f32.mrf.mxu3 }
 0x1a9   : > { %v1916_v63 = vadd.f32 %v4108_v43, %v1915_v61  ;;  %v2076_v0 = vadd.f32 %v4108_v43, %v2075_v62  ;;  %v1597_v1 = vpop.f32.mrf.mxu0  ;;  %v1757_v2 = vpop.f32.mrf.mxu1 }
 0x1aa   : > { %v1598_v3 = vadd.f32 %v4108_v43, %v1597_v1  ;;  %v1758_v4 = vadd.f32 %v4108_v43, %v1757_v2 }
 0x1ab   : > { %v2315_v5 = vmax.f32 %v1916_v63, 0.0  ;;  %v2379_v6 = vmax.f32 %v2076_v0, 0.0 }
 0x1ac   : > { %v2188_v7 = vmax.f32 %v1598_v3, 0.0  ;;  %v2252_v8 = vmax.f32 %v1758_v4, 0.0  ;;  %v3422_v4 = vld [vmem:[%s3616_s30 + $0xd8] sm:$0xff] }
 0x1ad   : > { %2572 = vst.msk [vmem:[%s3697_s9 + $0x500] sm:$0xff] %vm2411_vm3, %v2315_v5  ;;  %v3454_v5 = vld [vmem:[%s3616_s30 + $0x1d8] sm:$0xff] }
 0x1ae   : > { %2636 = vst.msk [vmem:[%s3697_s9 + $0x700] sm:$0xff] %vm2411_vm3, %v2379_v6 }
 0x1af   : > { %2445 = vst.msk [vmem:[%s3697_s9 + $0x108] sm:$0xff] %vm2411_vm3, %v2188_v7 }
 0x1b0   : > { %2509 = vst.msk [vmem:[%s3697_s9 + $0x308] sm:$0xff] %vm2411_vm3, %v2252_v8  ;;  %v1917_v9 = vpop.f32.mrf.mxu2  ;;  %v2077_v10 = vpop.f32.mrf.mxu3 }
 0x1b1   : > { %v1918_v13 = vadd.f32 %v4108_v43, %v1917_v9  ;;  %v2078_v14 = vadd.f32 %v4108_v43, %v2077_v10  ;;  %v1600_v15 = vpop.f32.mrf.mxu0  ;;  %v1760_v16 = vpop.f32.mrf.mxu1  ;;  %v3486_v10 = vld [vmem:[%s3616_s30 + $0x2d8] sm:$0xff] }
 0x1b2   : > { %v1601_v19 = vadd.f32 %v4108_v43, %v1600_v15  ;;  %v1761_v20 = vadd.f32 %v4108_v43, %v1760_v16 }
 0x1b3   : > { %v2316_v21 = vmax.f32 %v1918_v13, 0.0  ;;  %v2380_v22 = vmax.f32 %v2078_v14, 0.0 }
 0x1b4   : > { %v2189_v23 = vmax.f32 %v1601_v19, 0.0  ;;  %v2253_v24 = vmax.f32 %v1761_v20, 0.0  ;;  %3290 = vmatmul.msk.bf16.gmra.mxu0 %vm1114_vm2, %v3420_v11  ;;  %3322 = vmatmul.msk.bf16.gmra.mxu1 %vm1114_vm2, %v3452_v12  ;;  %v3518_v11 = vld [vmem:[%s3616_s30 + $0x3d8] sm:$0xff] }
 0x1b5   : > { %2573 = vst.msk [vmem:[%s3697_s9 + $0x508] sm:$0xff] %vm2411_vm3, %v2316_v21  ;;  %3354 = vmatmul.msk.bf16.gmra.mxu2 %vm1114_vm2, %v3484_v17  ;;  %3386 = vmatmul.msk.bf16.gmra.mxu3 %vm1114_vm2, %v3516_v18 }
 0x1b6   : > { %2637 = vst.msk [vmem:[%s3697_s9 + $0x708] sm:$0xff] %vm2411_vm3, %v2380_v22 }
 0x1b7   : > { %2446 = vst.msk [vmem:[%s3697_s9 + $0x110] sm:$0xff] %vm2411_vm3, %v2189_v23 }
 0x1b8   : > { %2510 = vst.msk [vmem:[%s3697_s9 + $0x310] sm:$0xff] %vm2411_vm3, %v2253_v24  ;;  %v1920_v25 = vpop.f32.mrf.mxu2  ;;  %v2080_v26 = vpop.f32.mrf.mxu3 }
 0x1b9   : > { %v1921_v27 = vadd.f32 %v4108_v43, %v1920_v25  ;;  %v2081_v28 = vadd.f32 %v4108_v43, %v2080_v26  ;;  %v1602_v29 = vpop.f32.mrf.mxu0  ;;  %v1762_v30 = vpop.f32.mrf.mxu1 }
 0x1ba   : > { %v1603_v31 = vadd.f32 %v4108_v43, %v1602_v29  ;;  %v1763_v32 = vadd.f32 %v4108_v43, %v1762_v30 }
 0x1bb   : > { %v2317_v33 = vmax.f32 %v1921_v27, 0.0  ;;  %v2381_v34 = vmax.f32 %v2081_v28, 0.0 }
 0x1bc   : > { %v2190_v35 = vmax.f32 %v1603_v31, 0.0  ;;  %v2254_v36 = vmax.f32 %v1763_v32, 0.0  ;;  %v3423_v32 = vld [vmem:[%s3616_s30 + $0xe0] sm:$0xff] }
 0x1bd   : > { %2574 = vst.msk [vmem:[%s3697_s9 + $0x510] sm:$0xff] %vm2411_vm3, %v2317_v33  ;;  %v3455_v33 = vld [vmem:[%s3616_s30 + $0x1e0] sm:$0xff] }
 0x1be   : > { %2638 = vst.msk [vmem:[%s3697_s9 + $0x710] sm:$0xff] %vm2411_vm3, %v2381_v34 }
 0x1bf   : > { %2447 = vst.msk [vmem:[%s3697_s9 + $0x118] sm:$0xff] %vm2411_vm3, %v2190_v35 }
 0x1c0   : > { %2511 = vst.msk [vmem:[%s3697_s9 + $0x318] sm:$0xff] %vm2411_vm3, %v2254_v36  ;;  %v1922_v37 = vpop.f32.mrf.mxu2  ;;  %v2082_v38 = vpop.f32.mrf.mxu3 }
 0x1c1   : > { %v1923_v41 = vadd.f32 %v4108_v43, %v1922_v37  ;;  %v2083_v42 = vadd.f32 %v4108_v43, %v2082_v38  ;;  %v1605_v44 = vpop.f32.mrf.mxu0  ;;  %v1765_v45 = vpop.f32.mrf.mxu1  ;;  %v3487_v38 = vld [vmem:[%s3616_s30 + $0x2e0] sm:$0xff] }
 0x1c2   : > { %v1606_v48 = vadd.f32 %v4108_v43, %v1605_v44  ;;  %v1766_v49 = vadd.f32 %v4108_v43, %v1765_v45 }
 0x1c3   : > { %v2318_v50 = vmax.f32 %v1923_v41, 0.0  ;;  %v2382_v51 = vmax.f32 %v2083_v42, 0.0 }
 0x1c4   : > { %v2191_v52 = vmax.f32 %v1606_v48, 0.0  ;;  %v2255_v53 = vmax.f32 %v1766_v49, 0.0  ;;  %3291 = vmatmul.msk.bf16.gmra.mxu0 %vm1114_vm2, %v3421_v39  ;;  %3323 = vmatmul.msk.bf16.gmra.mxu1 %vm1114_vm2, %v3453_v40  ;;  %v3519_v39 = vld [vmem:[%s3616_s30 + $0x3e0] sm:$0xff] }
 0x1c5   : > { %2575 = vst.msk [vmem:[%s3697_s9 + $0x518] sm:$0xff] %vm2411_vm3, %v2318_v50  ;;  %3355 = vmatmul.msk.bf16.gmra.mxu2 %vm1114_vm2, %v3485_v46  ;;  %3387 = vmatmul.msk.bf16.gmra.mxu3 %vm1114_vm2, %v3517_v47 }
 0x1c6   : > { %2639 = vst.msk [vmem:[%s3697_s9 + $0x718] sm:$0xff] %vm2411_vm3, %v2382_v51 }
 0x1c7   : > { %2448 = vst.msk [vmem:[%s3697_s9 + $0x120] sm:$0xff] %vm2411_vm3, %v2191_v52 }
 0x1c8   : > { %2512 = vst.msk [vmem:[%s3697_s9 + $0x320] sm:$0xff] %vm2411_vm3, %v2255_v53  ;;  %v1925_v54 = vpop.f32.mrf.mxu2  ;;  %v2085_v55 = vpop.f32.mrf.mxu3 }
 0x1c9   : > { %v1926_v56 = vadd.f32 %v4108_v43, %v1925_v54  ;;  %v2086_v57 = vadd.f32 %v4108_v43, %v2085_v55  ;;  %v1607_v58 = vpop.f32.mrf.mxu0  ;;  %v1767_v59 = vpop.f32.mrf.mxu1 }
 0x1ca   : > { %v1608_v60 = vadd.f32 %v4108_v43, %v1607_v58  ;;  %v1768_v61 = vadd.f32 %v4108_v43, %v1767_v59 }
 0x1cb   : > { %v2319_v62 = vmax.f32 %v1926_v56, 0.0  ;;  %v2383_v63 = vmax.f32 %v2086_v57, 0.0 }
 0x1cc   : > { %v2192_v0 = vmax.f32 %v1608_v60, 0.0  ;;  %v2256_v1 = vmax.f32 %v1768_v61, 0.0  ;;  %v3424_v61 = vld [vmem:[%s3616_s30 + $0xe8] sm:$0xff] }
 0x1cd   : > { %2576 = vst.msk [vmem:[%s3697_s9 + $0x520] sm:$0xff] %vm2411_vm3, %v2319_v62  ;;  %v3456_v62 = vld [vmem:[%s3616_s30 + $0x1e8] sm:$0xff] }
 0x1ce   : > { %2640 = vst.msk [vmem:[%s3697_s9 + $0x720] sm:$0xff] %vm2411_vm3, %v2383_v63 }
 0x1cf   : > { %2449 = vst.msk [vmem:[%s3697_s9 + $0x128] sm:$0xff] %vm2411_vm3, %v2192_v0 }
 0x1d0   : > { %2513 = vst.msk [vmem:[%s3697_s9 + $0x328] sm:$0xff] %vm2411_vm3, %v2256_v1  ;;  %v1927_v2 = vpop.f32.mrf.mxu2  ;;  %v2087_v3 = vpop.f32.mrf.mxu3 }
 0x1d1   : > { %v1928_v6 = vadd.f32 %v4108_v43, %v1927_v2  ;;  %v2088_v7 = vadd.f32 %v4108_v43, %v2087_v3  ;;  %v1610_v8 = vpop.f32.mrf.mxu0  ;;  %v1770_v9 = vpop.f32.mrf.mxu1  ;;  %v3488_v3 = vld [vmem:[%s3616_s30 + $0x2e8] sm:$0xff] }
 0x1d2   : > { %v1611_v12 = vadd.f32 %v4108_v43, %v1610_v8  ;;  %v1771_v13 = vadd.f32 %v4108_v43, %v1770_v9 }
 0x1d3   : > { %v2320_v14 = vmax.f32 %v1928_v6, 0.0  ;;  %v2384_v15 = vmax.f32 %v2088_v7, 0.0 }
 0x1d4   : > { %v2193_v16 = vmax.f32 %v1611_v12, 0.0  ;;  %v2257_v17 = vmax.f32 %v1771_v13, 0.0  ;;  %3292 = vmatmul.msk.bf16.gmra.mxu0 %vm1114_vm2, %v3422_v4  ;;  %3324 = vmatmul.msk.bf16.gmra.mxu1 %vm1114_vm2, %v3454_v5  ;;  %v3520_v4 = vld [vmem:[%s3616_s30 + $0x3e8] sm:$0xff] }
 0x1d5   : > { %2577 = vst.msk [vmem:[%s3697_s9 + $0x528] sm:$0xff] %vm2411_vm3, %v2320_v14  ;;  %3356 = vmatmul.msk.bf16.gmra.mxu2 %vm1114_vm2, %v3486_v10  ;;  %3388 = vmatmul.msk.bf16.gmra.mxu3 %vm1114_vm2, %v3518_v11 }
 0x1d6   : > { %2641 = vst.msk [vmem:[%s3697_s9 + $0x728] sm:$0xff] %vm2411_vm3, %v2384_v15 }
 0x1d7   : > { %2450 = vst.msk [vmem:[%s3697_s9 + $0x130] sm:$0xff] %vm2411_vm3, %v2193_v16 }
 0x1d8   : > { %2514 = vst.msk [vmem:[%s3697_s9 + $0x330] sm:$0xff] %vm2411_vm3, %v2257_v17  ;;  %v1930_v18 = vpop.f32.mrf.mxu2  ;;  %v2090_v19 = vpop.f32.mrf.mxu3 }
 0x1d9   : > { %v1931_v20 = vadd.f32 %v4108_v43, %v1930_v18  ;;  %v2091_v21 = vadd.f32 %v4108_v43, %v2090_v19  ;;  %v1612_v22 = vpop.f32.mrf.mxu0  ;;  %v1772_v23 = vpop.f32.mrf.mxu1 }
 0x1da   : > { %v1613_v24 = vadd.f32 %v4108_v43, %v1612_v22  ;;  %v1773_v25 = vadd.f32 %v4108_v43, %v1772_v23 }
 0x1db   : > { %v2321_v26 = vmax.f32 %v1931_v20, 0.0  ;;  %v2385_v27 = vmax.f32 %v2091_v21, 0.0 }
 0x1dc   : > { %v2194_v28 = vmax.f32 %v1613_v24, 0.0  ;;  %v2258_v29 = vmax.f32 %v1773_v25, 0.0  ;;  %v3425_v25 = vld [vmem:[%s3616_s30 + $0xf0] sm:$0xff] }
 0x1dd   : > { %2578 = vst.msk [vmem:[%s3697_s9 + $0x530] sm:$0xff] %vm2411_vm3, %v2321_v26  ;;  %v3457_v26 = vld [vmem:[%s3616_s30 + $0x1f0] sm:$0xff] }
 0x1de   : > { %2642 = vst.msk [vmem:[%s3697_s9 + $0x730] sm:$0xff] %vm2411_vm3, %v2385_v27 }
 0x1df   : > { %2451 = vst.msk [vmem:[%s3697_s9 + $0x138] sm:$0xff] %vm2411_vm3, %v2194_v28 }
 0x1e0   : > { %2515 = vst.msk [vmem:[%s3697_s9 + $0x338] sm:$0xff] %vm2411_vm3, %v2258_v29  ;;  %v1932_v30 = vpop.f32.mrf.mxu2  ;;  %v2092_v31 = vpop.f32.mrf.mxu3 }
 0x1e1   : > { %v1933_v34 = vadd.f32 %v4108_v43, %v1932_v30  ;;  %v2093_v35 = vadd.f32 %v4108_v43, %v2092_v31  ;;  %v1615_v36 = vpop.f32.mrf.mxu0  ;;  %v1775_v37 = vpop.f32.mrf.mxu1  ;;  %v3489_v31 = vld [vmem:[%s3616_s30 + $0x2f0] sm:$0xff] }
 0x1e2   : > { %v1616_v40 = vadd.f32 %v4108_v43, %v1615_v36  ;;  %v1776_v41 = vadd.f32 %v4108_v43, %v1775_v37 }
 0x1e3   : > { %v2322_v42 = vmax.f32 %v1933_v34, 0.0  ;;  %v2386_v44 = vmax.f32 %v2093_v35, 0.0 }
 0x1e4   : > { %v2195_v45 = vmax.f32 %v1616_v40, 0.0  ;;  %v2259_v46 = vmax.f32 %v1776_v41, 0.0  ;;  %3293 = vmatmul.msk.bf16.gmra.mxu0 %vm1114_vm2, %v3423_v32  ;;  %3325 = vmatmul.msk.bf16.gmra.mxu1 %vm1114_vm2, %v3455_v33  ;;  %v3521_v32 = vld [vmem:[%s3616_s30 + $0x3f0] sm:$0xff] }
 0x1e5   : > { %2579 = vst.msk [vmem:[%s3697_s9 + $0x538] sm:$0xff] %vm2411_vm3, %v2322_v42  ;;  %3357 = vmatmul.msk.bf16.gmra.mxu2 %vm1114_vm2, %v3487_v38  ;;  %3389 = vmatmul.msk.bf16.gmra.mxu3 %vm1114_vm2, %v3519_v39 }
 0x1e6   : > { %2643 = vst.msk [vmem:[%s3697_s9 + $0x738] sm:$0xff] %vm2411_vm3, %v2386_v44 }
 0x1e7   : > { %2452 = vst.msk [vmem:[%s3697_s9 + $0x140] sm:$0xff] %vm2411_vm3, %v2195_v45 }
 0x1e8   : > { %2516 = vst.msk [vmem:[%s3697_s9 + $0x340] sm:$0xff] %vm2411_vm3, %v2259_v46  ;;  %v1935_v47 = vpop.f32.mrf.mxu2  ;;  %v2095_v48 = vpop.f32.mrf.mxu3 }
 0x1e9   : > { %v1936_v49 = vadd.f32 %v4108_v43, %v1935_v47  ;;  %v2096_v50 = vadd.f32 %v4108_v43, %v2095_v48  ;;  %v1617_v51 = vpop.f32.mrf.mxu0  ;;  %v1777_v52 = vpop.f32.mrf.mxu1 }
 0x1ea   : > { %v1618_v53 = vadd.f32 %v4108_v43, %v1617_v51  ;;  %v1778_v54 = vadd.f32 %v4108_v43, %v1777_v52 }
 0x1eb   : > { %v2323_v55 = vmax.f32 %v1936_v49, 0.0  ;;  %v2387_v56 = vmax.f32 %v2096_v50, 0.0 }
 0x1ec   : > { %v2196_v57 = vmax.f32 %v1618_v53, 0.0  ;;  %v2260_v58 = vmax.f32 %v1778_v54, 0.0  ;;  %v3426_v54 = vld [vmem:[%s3616_s30 + $0xf8] sm:$0xff] }
 0x1ed   : > { %2580 = vst.msk [vmem:[%s3697_s9 + $0x540] sm:$0xff] %vm2411_vm3, %v2323_v55  ;;  %v3458_v55 = vld [vmem:[%s3616_s30 + $0x1f8] sm:$0xff] }
 0x1ee   : > { %2644 = vst.msk [vmem:[%s3697_s9 + $0x740] sm:$0xff] %vm2411_vm3, %v2387_v56 }
 0x1ef   : > { %2453 = vst.msk [vmem:[%s3697_s9 + $0x148] sm:$0xff] %vm2411_vm3, %v2196_v57 }
 0x1f0   : > { %2517 = vst.msk [vmem:[%s3697_s9 + $0x348] sm:$0xff] %vm2411_vm3, %v2260_v58  ;;  %v1937_v59 = vpop.f32.mrf.mxu2  ;;  %v2097_v60 = vpop.f32.mrf.mxu3 }
 0x1f1   : > { %v1938_v63 = vadd.f32 %v4108_v43, %v1937_v59  ;;  %v2098_v0 = vadd.f32 %v4108_v43, %v2097_v60  ;;  %v1620_v1 = vpop.f32.mrf.mxu0  ;;  %v1780_v2 = vpop.f32.mrf.mxu1  ;;  %v3490_v60 = vld [vmem:[%s3616_s30 + $0x2f8] sm:$0xff] }
 0x1f2   : > { %v1621_v5 = vadd.f32 %v4108_v43, %v1620_v1  ;;  %v1781_v6 = vadd.f32 %v4108_v43, %v1780_v2 }
 0x1f3   : > { %v2324_v7 = vmax.f32 %v1938_v63, 0.0  ;;  %v2388_v8 = vmax.f32 %v2098_v0, 0.0 }
 0x1f4   : > { %v2197_v9 = vmax.f32 %v1621_v5, 0.0  ;;  %v2261_v10 = vmax.f32 %v1781_v6, 0.0  ;;  %3294 = vmatmul.msk.bf16.gmra.mxu0 %vm1114_vm2, %v3424_v61  ;;  %3326 = vmatmul.msk.bf16.gmra.mxu1 %vm1114_vm2, %v3456_v62  ;;  %v3522_v61 = vld [vmem:[%s3616_s30 + $0x3f8] sm:$0xff] }
 0x1f5   : > { %2581 = vst.msk [vmem:[%s3697_s9 + $0x548] sm:$0xff] %vm2411_vm3, %v2324_v7  ;;  %3358 = vmatmul.msk.bf16.gmra.mxu2 %vm1114_vm2, %v3488_v3  ;;  %3390 = vmatmul.msk.bf16.gmra.mxu3 %vm1114_vm2, %v3520_v4 }
 0x1f6   : > { %2645 = vst.msk [vmem:[%s3697_s9 + $0x748] sm:$0xff] %vm2411_vm3, %v2388_v8 }
 0x1f7   : > { %2454 = vst.msk [vmem:[%s3697_s9 + $0x150] sm:$0xff] %vm2411_vm3, %v2197_v9 }
 0x1f8   : > { %2518 = vst.msk [vmem:[%s3697_s9 + $0x350] sm:$0xff] %vm2411_vm3, %v2261_v10  ;;  %v1940_v11 = vpop.f32.mrf.mxu2  ;;  %v2100_v12 = vpop.f32.mrf.mxu3 }
 0x1f9   : > { %v1941_v13 = vadd.f32 %v4108_v43, %v1940_v11  ;;  %v2101_v14 = vadd.f32 %v4108_v43, %v2100_v12  ;;  %v1622_v15 = vpop.f32.mrf.mxu0  ;;  %v1782_v16 = vpop.f32.mrf.mxu1 }
 0x1fa   : > { %v1623_v17 = vadd.f32 %v4108_v43, %v1622_v15  ;;  %v1783_v18 = vadd.f32 %v4108_v43, %v1782_v16 }
 0x1fb   : > { %v2325_v19 = vmax.f32 %v1941_v13, 0.0  ;;  %v2389_v20 = vmax.f32 %v2101_v14, 0.0 }
 0x1fc   : > { %v2198_v21 = vmax.f32 %v1623_v17, 0.0  ;;  %v2262_v22 = vmax.f32 %v1783_v18, 0.0 }
 0x1fd   : > { %2582 = vst.msk [vmem:[%s3697_s9 + $0x550] sm:$0xff] %vm2411_vm3, %v2325_v19 }
 0x1fe   : > { %2646 = vst.msk [vmem:[%s3697_s9 + $0x750] sm:$0xff] %vm2411_vm3, %v2389_v20 }
 0x1ff   : > { %2455 = vst.msk [vmem:[%s3697_s9 + $0x158] sm:$0xff] %vm2411_vm3, %v2198_v21 }
 0x200   : > { %2519 = vst.msk [vmem:[%s3697_s9 + $0x358] sm:$0xff] %vm2411_vm3, %v2262_v22  ;;  %v1942_v23 = vpop.f32.mrf.mxu2  ;;  %v2102_v24 = vpop.f32.mrf.mxu3 }
 0x201   : > { %v1943_v27 = vadd.f32 %v4108_v43, %v1942_v23  ;;  %v2103_v28 = vadd.f32 %v4108_v43, %v2102_v24  ;;  %v1625_v29 = vpop.f32.mrf.mxu0  ;;  %v1785_v30 = vpop.f32.mrf.mxu1 }
 0x202   : > { %v1626_v33 = vadd.f32 %v4108_v43, %v1625_v29  ;;  %v1786_v34 = vadd.f32 %v4108_v43, %v1785_v30 }
 0x203   : > { %v2326_v35 = vmax.f32 %v1943_v27, 0.0  ;;  %v2390_v36 = vmax.f32 %v2103_v28, 0.0 }
 0x204   : > { %v2199_v37 = vmax.f32 %v1626_v33, 0.0  ;;  %v2263_v38 = vmax.f32 %v1786_v34, 0.0  ;;  %3295 = vmatmul.msk.bf16.gmra.mxu0 %vm1114_vm2, %v3425_v25  ;;  %3327 = vmatmul.msk.bf16.gmra.mxu1 %vm1114_vm2, %v3457_v26 }
 0x205   : > { %2583 = vst.msk [vmem:[%s3697_s9 + $0x558] sm:$0xff] %vm2411_vm3, %v2326_v35  ;;  %3359 = vmatmul.msk.bf16.gmra.mxu2 %vm1114_vm2, %v3489_v31  ;;  %3391 = vmatmul.msk.bf16.gmra.mxu3 %vm1114_vm2, %v3521_v32 }
 0x206   : > { %2647 = vst.msk [vmem:[%s3697_s9 + $0x758] sm:$0xff] %vm2411_vm3, %v2390_v36 }
 0x207   : > { %2456 = vst.msk [vmem:[%s3697_s9 + $0x160] sm:$0xff] %vm2411_vm3, %v2199_v37 }
 0x208   : > { %2520 = vst.msk [vmem:[%s3697_s9 + $0x360] sm:$0xff] %vm2411_vm3, %v2263_v38  ;;  %v1945_v39 = vpop.f32.mrf.mxu2  ;;  %v2105_v40 = vpop.f32.mrf.mxu3 }
 0x209   : > { %v1946_v41 = vadd.f32 %v4108_v43, %v1945_v39  ;;  %v2106_v42 = vadd.f32 %v4108_v43, %v2105_v40  ;;  %v1627_v44 = vpop.f32.mrf.mxu0  ;;  %v1787_v45 = vpop.f32.mrf.mxu1 }
 0x20a   : > { %v1628_v46 = vadd.f32 %v4108_v43, %v1627_v44  ;;  %v1788_v47 = vadd.f32 %v4108_v43, %v1787_v45 }
 0x20b   : > { %v2327_v48 = vmax.f32 %v1946_v41, 0.0  ;;  %v2391_v49 = vmax.f32 %v2106_v42, 0.0 }
 0x20c   : > { %v2200_v50 = vmax.f32 %v1628_v46, 0.0  ;;  %v2264_v51 = vmax.f32 %v1788_v47, 0.0 }
 0x20d   : > { %2584 = vst.msk [vmem:[%s3697_s9 + $0x560] sm:$0xff] %vm2411_vm3, %v2327_v48 }
 0x20e   : > { %2648 = vst.msk [vmem:[%s3697_s9 + $0x760] sm:$0xff] %vm2411_vm3, %v2391_v49 }
 0x20f   : > { %2457 = vst.msk [vmem:[%s3697_s9 + $0x168] sm:$0xff] %vm2411_vm3, %v2200_v50 }
 0x210   : > { %2521 = vst.msk [vmem:[%s3697_s9 + $0x368] sm:$0xff] %vm2411_vm3, %v2264_v51  ;;  %v1947_v52 = vpop.f32.mrf.mxu2  ;;  %v2107_v53 = vpop.f32.mrf.mxu3 }
 0x211   : > { %v1948_v56 = vadd.f32 %v4108_v43, %v1947_v52  ;;  %v2108_v57 = vadd.f32 %v4108_v43, %v2107_v53  ;;  %v1630_v58 = vpop.f32.mrf.mxu0  ;;  %v1790_v59 = vpop.f32.mrf.mxu1 }
 0x212   : > { %v1631_v62 = vadd.f32 %v4108_v43, %v1630_v58  ;;  %v1791_v63 = vadd.f32 %v4108_v43, %v1790_v59 }
 0x213   : > { %v2328_v0 = vmax.f32 %v1948_v56, 0.0  ;;  %v2392_v1 = vmax.f32 %v2108_v57, 0.0 }
 0x214   : > { %v2201_v2 = vmax.f32 %v1631_v62, 0.0  ;;  %v2265_v3 = vmax.f32 %v1791_v63, 0.0  ;;  %3296 = vmatmul.msk.bf16.gmra.mxu0 %vm1114_vm2, %v3426_v54  ;;  %3328 = vmatmul.msk.bf16.gmra.mxu1 %vm1114_vm2, %v3458_v55 }
 0x215   : > { %2585 = vst.msk [vmem:[%s3697_s9 + $0x568] sm:$0xff] %vm2411_vm3, %v2328_v0  ;;  %3360 = vmatmul.msk.bf16.gmra.mxu2 %vm1114_vm2, %v3490_v60  ;;  %3392 = vmatmul.msk.bf16.gmra.mxu3 %vm1114_vm2, %v3522_v61 }
 0x216   : > { %2649 = vst.msk [vmem:[%s3697_s9 + $0x768] sm:$0xff] %vm2411_vm3, %v2392_v1 }
 0x217   : > { %2458 = vst.msk [vmem:[%s3697_s9 + $0x170] sm:$0xff] %vm2411_vm3, %v2201_v2 }
 0x218   : > { %2522 = vst.msk [vmem:[%s3697_s9 + $0x370] sm:$0xff] %vm2411_vm3, %v2265_v3  ;;  %v1950_v4 = vpop.f32.mrf.mxu2  ;;  %v2110_v5 = vpop.f32.mrf.mxu3 }
 0x219   : > { %v1951_v6 = vadd.f32 %v4108_v43, %v1950_v4  ;;  %v2111_v7 = vadd.f32 %v4108_v43, %v2110_v5  ;;  %v1632_v8 = vpop.f32.mrf.mxu0  ;;  %v1792_v9 = vpop.f32.mrf.mxu1 }
 0x21a   : > { %v1633_v10 = vadd.f32 %v4108_v43, %v1632_v8  ;;  %v1793_v11 = vadd.f32 %v4108_v43, %v1792_v9 }
 0x21b   : > { %v2329_v12 = vmax.f32 %v1951_v6, 0.0  ;;  %v2393_v13 = vmax.f32 %v2111_v7, 0.0 }
 0x21c   : > { %v2202_v14 = vmax.f32 %v1633_v10, 0.0  ;;  %v2266_v15 = vmax.f32 %v1793_v11, 0.0 }
 0x21d   : > { %2586 = vst.msk [vmem:[%s3697_s9 + $0x570] sm:$0xff] %vm2411_vm3, %v2329_v12 }
 0x21e   : > { %2650 = vst.msk [vmem:[%s3697_s9 + $0x770] sm:$0xff] %vm2411_vm3, %v2393_v13 }
 0x21f   : > { %2459 = vst.msk [vmem:[%s3697_s9 + $0x178] sm:$0xff] %vm2411_vm3, %v2202_v14 }
 0x220   : > { %2523 = vst.msk [vmem:[%s3697_s9 + $0x378] sm:$0xff] %vm2411_vm3, %v2266_v15  ;;  %v1952_v16 = vpop.f32.mrf.mxu2  ;;  %v2112_v17 = vpop.f32.mrf.mxu3 }
 0x221   : > { %v1953_v18 = vadd.f32 %v4108_v43, %v1952_v16  ;;  %v2113_v19 = vadd.f32 %v4108_v43, %v2112_v17  ;;  %v1635_v20 = vpop.f32.mrf.mxu0  ;;  %v1795_v21 = vpop.f32.mrf.mxu1 }
 0x222   : > { %v1636_v22 = vadd.f32 %v4108_v43, %v1635_v20  ;;  %v1796_v23 = vadd.f32 %v4108_v43, %v1795_v21 }
 0x223   : > { %v2330_v24 = vmax.f32 %v1953_v18, 0.0  ;;  %v2394_v25 = vmax.f32 %v2113_v19, 0.0 }
 0x224   : > { %v2203_v26 = vmax.f32 %v1636_v22, 0.0  ;;  %v2267_v27 = vmax.f32 %v1796_v23, 0.0 }
 0x225   : > { %2587 = vst.msk [vmem:[%s3697_s9 + $0x578] sm:$0xff] %vm2411_vm3, %v2330_v24 }
 0x226   : > { %2651 = vst.msk [vmem:[%s3697_s9 + $0x778] sm:$0xff] %vm2411_vm3, %v2394_v25 }
 0x227   : > { %2460 = vst.msk [vmem:[%s3697_s9 + $0x180] sm:$0xff] %vm2411_vm3, %v2203_v26 }
 0x228   : > { %2524 = vst.msk [vmem:[%s3697_s9 + $0x380] sm:$0xff] %vm2411_vm3, %v2267_v27  ;;  %v1955_v28 = vpop.f32.mrf.mxu2  ;;  %v2115_v29 = vpop.f32.mrf.mxu3 }
 0x229   : > { %v1956_v30 = vadd.f32 %v4108_v43, %v1955_v28  ;;  %v2116_v31 = vadd.f32 %v4108_v43, %v2115_v29  ;;  %v1637_v32 = vpop.f32.mrf.mxu0  ;;  %v1797_v33 = vpop.f32.mrf.mxu1 }
 0x22a   : > { %v1638_v34 = vadd.f32 %v4108_v43, %v1637_v32  ;;  %v1798_v35 = vadd.f32 %v4108_v43, %v1797_v33 }
 0x22b   : > { %v2331_v36 = vmax.f32 %v1956_v30, 0.0  ;;  %v2395_v37 = vmax.f32 %v2116_v31, 0.0 }
 0x22c   : > { %v2204_v38 = vmax.f32 %v1638_v34, 0.0  ;;  %v2268_v39 = vmax.f32 %v1798_v35, 0.0 }
 0x22d   : > { %2588 = vst.msk [vmem:[%s3697_s9 + $0x580] sm:$0xff] %vm2411_vm3, %v2331_v36 }
 0x22e   : > { %2652 = vst.msk [vmem:[%s3697_s9 + $0x780] sm:$0xff] %vm2411_vm3, %v2395_v37 }
 0x22f   : > { %2461 = vst.msk [vmem:[%s3697_s9 + $0x188] sm:$0xff] %vm2411_vm3, %v2204_v38 }
 0x230   : > { %2525 = vst.msk [vmem:[%s3697_s9 + $0x388] sm:$0xff] %vm2411_vm3, %v2268_v39  ;;  %v1957_v40 = vpop.f32.mrf.mxu2  ;;  %v2117_v41 = vpop.f32.mrf.mxu3 }
 0x231   : > { %v1958_v42 = vadd.f32 %v4108_v43, %v1957_v40  ;;  %v2118_v44 = vadd.f32 %v4108_v43, %v2117_v41  ;;  %v1640_v45 = vpop.f32.mrf.mxu0  ;;  %v1800_v46 = vpop.f32.mrf.mxu1 }
 0x232   : > { %v1641_v47 = vadd.f32 %v4108_v43, %v1640_v45  ;;  %v1801_v48 = vadd.f32 %v4108_v43, %v1800_v46 }
 0x233   : > { %v2332_v49 = vmax.f32 %v1958_v42, 0.0  ;;  %v2396_v50 = vmax.f32 %v2118_v44, 0.0 }
 0x234   : > { %v2205_v51 = vmax.f32 %v1641_v47, 0.0  ;;  %v2269_v52 = vmax.f32 %v1801_v48, 0.0 }
 0x235   : > { %2589 = vst.msk [vmem:[%s3697_s9 + $0x588] sm:$0xff] %vm2411_vm3, %v2332_v49 }
 0x236   : > { %2653 = vst.msk [vmem:[%s3697_s9 + $0x788] sm:$0xff] %vm2411_vm3, %v2396_v50 }
 0x237   : > { %2462 = vst.msk [vmem:[%s3697_s9 + $0x190] sm:$0xff] %vm2411_vm3, %v2205_v51 }
 0x238   : > { %2526 = vst.msk [vmem:[%s3697_s9 + $0x390] sm:$0xff] %vm2411_vm3, %v2269_v52  ;;  %v1960_v53 = vpop.f32.mrf.mxu2  ;;  %v2120_v54 = vpop.f32.mrf.mxu3 }
 0x239   : > { %v1961_v55 = vadd.f32 %v4108_v43, %v1960_v53  ;;  %v2121_v56 = vadd.f32 %v4108_v43, %v2120_v54  ;;  %v1642_v57 = vpop.f32.mrf.mxu0  ;;  %v1802_v58 = vpop.f32.mrf.mxu1 }
 0x23a   : > { %v1643_v59 = vadd.f32 %v4108_v43, %v1642_v57  ;;  %v1803_v60 = vadd.f32 %v4108_v43, %v1802_v58 }
 0x23b   : > { %v2333_v61 = vmax.f32 %v1961_v55, 0.0  ;;  %v2397_v62 = vmax.f32 %v2121_v56, 0.0 }
 0x23c   : > { %v2206_v63 = vmax.f32 %v1643_v59, 0.0  ;;  %v2270_v0 = vmax.f32 %v1803_v60, 0.0 }
 0x23d   : > { %2590 = vst.msk [vmem:[%s3697_s9 + $0x590] sm:$0xff] %vm2411_vm3, %v2333_v61 }
 0x23e   : > { %2654 = vst.msk [vmem:[%s3697_s9 + $0x790] sm:$0xff] %vm2411_vm3, %v2397_v62 }
 0x23f   : > { %2463 = vst.msk [vmem:[%s3697_s9 + $0x198] sm:$0xff] %vm2411_vm3, %v2206_v63 }
 0x240   : > { %2527 = vst.msk [vmem:[%s3697_s9 + $0x398] sm:$0xff] %vm2411_vm3, %v2270_v0  ;;  %v1962_v1 = vpop.f32.mrf.mxu2  ;;  %v2122_v2 = vpop.f32.mrf.mxu3 }
 0x241   : > { %v1963_v3 = vadd.f32 %v4108_v43, %v1962_v1  ;;  %v2123_v4 = vadd.f32 %v4108_v43, %v2122_v2  ;;  %v1645_v5 = vpop.f32.mrf.mxu0  ;;  %v1805_v6 = vpop.f32.mrf.mxu1 }
 0x242   : > { %v1646_v7 = vadd.f32 %v4108_v43, %v1645_v5  ;;  %v1806_v8 = vadd.f32 %v4108_v43, %v1805_v6  ;;  %v4523_v43 = vld [vmem:[%s4668_s2] ss:$0 sm:$0xff] }
 0x243   : > { %v2334_v9 = vmax.f32 %v1963_v3, 0.0  ;;  %v2398_v10 = vmax.f32 %v2123_v4, 0.0 }
 0x244   : > { %v2207_v11 = vmax.f32 %v1646_v7, 0.0  ;;  %v2271_v12 = vmax.f32 %v1806_v8, 0.0 }
 0x245   : > { %2591 = vst.msk [vmem:[%s3697_s9 + $0x598] sm:$0xff] %vm2411_vm3, %v2334_v9 }
 0x246   : > { %2655 = vst.msk [vmem:[%s3697_s9 + $0x798] sm:$0xff] %vm2411_vm3, %v2398_v10 }
 0x247   : > { %2464 = vst.msk [vmem:[%s3697_s9 + $0x1a0] sm:$0xff] %vm2411_vm3, %v2207_v11 }
 0x248   : > { %2528 = vst.msk [vmem:[%s3697_s9 + $0x3a0] sm:$0xff] %vm2411_vm3, %v2271_v12  ;;  %v1965_v13 = vpop.f32.mrf.mxu2  ;;  %v2125_v14 = vpop.f32.mrf.mxu3 }
 0x249   : > { %v1966_v15 = vadd.f32 %v4523_v43, %v1965_v13  ;;  %v2126_v16 = vadd.f32 %v4523_v43, %v2125_v14  ;;  %v1647_v17 = vpop.f32.mrf.mxu0  ;;  %v1807_v18 = vpop.f32.mrf.mxu1 }
 0x24a   : > { %v1648_v19 = vadd.f32 %v4523_v43, %v1647_v17  ;;  %v1808_v20 = vadd.f32 %v4523_v43, %v1807_v18 }
 0x24b   : > { %v2335_v21 = vmax.f32 %v1966_v15, 0.0  ;;  %v2399_v22 = vmax.f32 %v2126_v16, 0.0 }
 0x24c   : > { %v2208_v23 = vmax.f32 %v1648_v19, 0.0  ;;  %v2272_v24 = vmax.f32 %v1808_v20, 0.0 }
 0x24d   : > { %2592 = vst.msk [vmem:[%s3697_s9 + $0x5a0] sm:$0xff] %vm2411_vm3, %v2335_v21 }
 0x24e   : > { %2656 = vst.msk [vmem:[%s3697_s9 + $0x7a0] sm:$0xff] %vm2411_vm3, %v2399_v22 }
 0x24f   : > { %2465 = vst.msk [vmem:[%s3697_s9 + $0x1a8] sm:$0xff] %vm2411_vm3, %v2208_v23 }
 0x250   : > { %2529 = vst.msk [vmem:[%s3697_s9 + $0x3a8] sm:$0xff] %vm2411_vm3, %v2272_v24  ;;  %v1967_v25 = vpop.f32.mrf.mxu2  ;;  %v2127_v26 = vpop.f32.mrf.mxu3 }
 0x251   : > { %v1968_v27 = vadd.f32 %v4523_v43, %v1967_v25  ;;  %v2128_v28 = vadd.f32 %v4523_v43, %v2127_v26  ;;  %v1650_v29 = vpop.f32.mrf.mxu0  ;;  %v1810_v30 = vpop.f32.mrf.mxu1 }
 0x252   : > { %v1651_v31 = vadd.f32 %v4523_v43, %v1650_v29  ;;  %v1811_v32 = vadd.f32 %v4523_v43, %v1810_v30 }
 0x253   : > { %v2336_v33 = vmax.f32 %v1968_v27, 0.0  ;;  %v2400_v34 = vmax.f32 %v2128_v28, 0.0 }
 0x254   : > { %v2209_v35 = vmax.f32 %v1651_v31, 0.0  ;;  %v2273_v36 = vmax.f32 %v1811_v32, 0.0 }
 0x255   : > { %2593 = vst.msk [vmem:[%s3697_s9 + $0x5a8] sm:$0xff] %vm2411_vm3, %v2336_v33 }
 0x256   : > { %2657 = vst.msk [vmem:[%s3697_s9 + $0x7a8] sm:$0xff] %vm2411_vm3, %v2400_v34 }
 0x257   : > { %2466 = vst.msk [vmem:[%s3697_s9 + $0x1b0] sm:$0xff] %vm2411_vm3, %v2209_v35 }
 0x258   : > { %2530 = vst.msk [vmem:[%s3697_s9 + $0x3b0] sm:$0xff] %vm2411_vm3, %v2273_v36  ;;  %v1970_v37 = vpop.f32.mrf.mxu2  ;;  %v2130_v38 = vpop.f32.mrf.mxu3 }
 0x259   : > { %v1971_v39 = vadd.f32 %v4523_v43, %v1970_v37  ;;  %v2131_v40 = vadd.f32 %v4523_v43, %v2130_v38  ;;  %v1652_v41 = vpop.f32.mrf.mxu0  ;;  %v1812_v42 = vpop.f32.mrf.mxu1 }
 0x25a   : > { %v1653_v44 = vadd.f32 %v4523_v43, %v1652_v41  ;;  %v1813_v45 = vadd.f32 %v4523_v43, %v1812_v42 }
 0x25b   : > { %v2337_v46 = vmax.f32 %v1971_v39, 0.0  ;;  %v2401_v47 = vmax.f32 %v2131_v40, 0.0 }
 0x25c   : > { %v2210_v48 = vmax.f32 %v1653_v44, 0.0  ;;  %v2274_v49 = vmax.f32 %v1813_v45, 0.0 }
 0x25d   : > { %2594 = vst.msk [vmem:[%s3697_s9 + $0x5b0] sm:$0xff] %vm2411_vm3, %v2337_v46 }
 0x25e   : > { %2658 = vst.msk [vmem:[%s3697_s9 + $0x7b0] sm:$0xff] %vm2411_vm3, %v2401_v47 }
 0x25f   : > { %2467 = vst.msk [vmem:[%s3697_s9 + $0x1b8] sm:$0xff] %vm2411_vm3, %v2210_v48 }
 0x260   : > { %2531 = vst.msk [vmem:[%s3697_s9 + $0x3b8] sm:$0xff] %vm2411_vm3, %v2274_v49  ;;  %v1972_v50 = vpop.f32.mrf.mxu2  ;;  %v2132_v51 = vpop.f32.mrf.mxu3 }
 0x261   : > { %v1973_v52 = vadd.f32 %v4523_v43, %v1972_v50  ;;  %v2133_v53 = vadd.f32 %v4523_v43, %v2132_v51  ;;  %v1655_v54 = vpop.f32.mrf.mxu0  ;;  %v1815_v55 = vpop.f32.mrf.mxu1 }
 0x262   : > { %v1656_v56 = vadd.f32 %v4523_v43, %v1655_v54  ;;  %v1816_v57 = vadd.f32 %v4523_v43, %v1815_v55 }
 0x263   : > { %v2338_v58 = vmax.f32 %v1973_v52, 0.0  ;;  %v2402_v59 = vmax.f32 %v2133_v53, 0.0 }
 0x264   : > { %v2211_v60 = vmax.f32 %v1656_v56, 0.0  ;;  %v2275_v61 = vmax.f32 %v1816_v57, 0.0 }
 0x265   : > { %2595 = vst.msk [vmem:[%s3697_s9 + $0x5b8] sm:$0xff] %vm2411_vm3, %v2338_v58 }
 0x266   : > { %2659 = vst.msk [vmem:[%s3697_s9 + $0x7b8] sm:$0xff] %vm2411_vm3, %v2402_v59 }
 0x267   : > { %2468 = vst.msk [vmem:[%s3697_s9 + $0x1c0] sm:$0xff] %vm2411_vm3, %v2211_v60 }
 0x268   : > { %2532 = vst.msk [vmem:[%s3697_s9 + $0x3c0] sm:$0xff] %vm2411_vm3, %v2275_v61  ;;  %v1975_v62 = vpop.f32.mrf.mxu2  ;;  %v2135_v63 = vpop.f32.mrf.mxu3 }
 0x269   : > { %v1976_v0 = vadd.f32 %v4523_v43, %v1975_v62  ;;  %v2136_v1 = vadd.f32 %v4523_v43, %v2135_v63  ;;  %v1657_v2 = vpop.f32.mrf.mxu0  ;;  %v1817_v3 = vpop.f32.mrf.mxu1 }
 0x26a   : > { %v1658_v4 = vadd.f32 %v4523_v43, %v1657_v2  ;;  %v1818_v5 = vadd.f32 %v4523_v43, %v1817_v3 }
 0x26b   : > { %v2339_v6 = vmax.f32 %v1976_v0, 0.0  ;;  %v2403_v7 = vmax.f32 %v2136_v1, 0.0 }
 0x26c   : > { %v2212_v8 = vmax.f32 %v1658_v4, 0.0  ;;  %v2276_v9 = vmax.f32 %v1818_v5, 0.0 }
 0x26d   : > { %2596 = vst.msk [vmem:[%s3697_s9 + $0x5c0] sm:$0xff] %vm2411_vm3, %v2339_v6 }
 0x26e   : > { %2660 = vst.msk [vmem:[%s3697_s9 + $0x7c0] sm:$0xff] %vm2411_vm3, %v2403_v7 }
 0x26f   : > { %2469 = vst.msk [vmem:[%s3697_s9 + $0x1c8] sm:$0xff] %vm2411_vm3, %v2212_v8 }
 0x270   : > { %2533 = vst.msk [vmem:[%s3697_s9 + $0x3c8] sm:$0xff] %vm2411_vm3, %v2276_v9  ;;  %v1977_v10 = vpop.f32.mrf.mxu2  ;;  %v2137_v11 = vpop.f32.mrf.mxu3 }
 0x271   : > { %v1978_v12 = vadd.f32 %v4523_v43, %v1977_v10  ;;  %v2138_v13 = vadd.f32 %v4523_v43, %v2137_v11  ;;  %v1660_v14 = vpop.f32.mrf.mxu0  ;;  %v1820_v15 = vpop.f32.mrf.mxu1 }
 0x272   : > { %v1661_v16 = vadd.f32 %v4523_v43, %v1660_v14  ;;  %v1821_v17 = vadd.f32 %v4523_v43, %v1820_v15 }
 0x273   : > { %v2340_v18 = vmax.f32 %v1978_v12, 0.0  ;;  %v2404_v19 = vmax.f32 %v2138_v13, 0.0 }
 0x274   : > { %v2213_v20 = vmax.f32 %v1661_v16, 0.0  ;;  %v2277_v21 = vmax.f32 %v1821_v17, 0.0 }
 0x275   : > { %2597 = vst.msk [vmem:[%s3697_s9 + $0x5c8] sm:$0xff] %vm2411_vm3, %v2340_v18 }
 0x276   : > { %2661 = vst.msk [vmem:[%s3697_s9 + $0x7c8] sm:$0xff] %vm2411_vm3, %v2404_v19 }
 0x277   : > { %2470 = vst.msk [vmem:[%s3697_s9 + $0x1d0] sm:$0xff] %vm2411_vm3, %v2213_v20 }
 0x278   : > { %2534 = vst.msk [vmem:[%s3697_s9 + $0x3d0] sm:$0xff] %vm2411_vm3, %v2277_v21  ;;  %v1980_v22 = vpop.f32.mrf.mxu2  ;;  %v2140_v23 = vpop.f32.mrf.mxu3 }
 0x279   : > { %v1981_v24 = vadd.f32 %v4523_v43, %v1980_v22  ;;  %v2141_v25 = vadd.f32 %v4523_v43, %v2140_v23  ;;  %v1662_v26 = vpop.f32.mrf.mxu0  ;;  %v1822_v27 = vpop.f32.mrf.mxu1 }
 0x27a   : > { %v1663_v28 = vadd.f32 %v4523_v43, %v1662_v26  ;;  %v1823_v29 = vadd.f32 %v4523_v43, %v1822_v27 }
 0x27b   : > { %v2341_v30 = vmax.f32 %v1981_v24, 0.0  ;;  %v2405_v31 = vmax.f32 %v2141_v25, 0.0 }
 0x27c   : > { %v2214_v32 = vmax.f32 %v1663_v28, 0.0  ;;  %v2278_v33 = vmax.f32 %v1823_v29, 0.0 }
 0x27d   : > { %2598 = vst.msk [vmem:[%s3697_s9 + $0x5d0] sm:$0xff] %vm2411_vm3, %v2341_v30 }
 0x27e   : > { %2662 = vst.msk [vmem:[%s3697_s9 + $0x7d0] sm:$0xff] %vm2411_vm3, %v2405_v31 }
 0x27f   : > { %2471 = vst.msk [vmem:[%s3697_s9 + $0x1d8] sm:$0xff] %vm2411_vm3, %v2214_v32 }
 0x280   : > { %2535 = vst.msk [vmem:[%s3697_s9 + $0x3d8] sm:$0xff] %vm2411_vm3, %v2278_v33  ;;  %v1982_v34 = vpop.f32.mrf.mxu2  ;;  %v2142_v35 = vpop.f32.mrf.mxu3 }
 0x281   : > { %v1983_v36 = vadd.f32 %v4523_v43, %v1982_v34  ;;  %v2143_v37 = vadd.f32 %v4523_v43, %v2142_v35  ;;  %v1665_v38 = vpop.f32.mrf.mxu0  ;;  %v1825_v39 = vpop.f32.mrf.mxu1 }
 0x282   : > { %v1666_v40 = vadd.f32 %v4523_v43, %v1665_v38  ;;  %v1826_v41 = vadd.f32 %v4523_v43, %v1825_v39 }
 0x283   : > { %v2342_v42 = vmax.f32 %v1983_v36, 0.0  ;;  %v2406_v44 = vmax.f32 %v2143_v37, 0.0 }
 0x284   : > { %v2215_v45 = vmax.f32 %v1666_v40, 0.0  ;;  %v2279_v46 = vmax.f32 %v1826_v41, 0.0 }
 0x285   : > { %2599 = vst.msk [vmem:[%s3697_s9 + $0x5d8] sm:$0xff] %vm2411_vm3, %v2342_v42 }
 0x286   : > { %2663 = vst.msk [vmem:[%s3697_s9 + $0x7d8] sm:$0xff] %vm2411_vm3, %v2406_v44 }
 0x287   : > { %2472 = vst.msk [vmem:[%s3697_s9 + $0x1e0] sm:$0xff] %vm2411_vm3, %v2215_v45 }
 0x288   : > { %2536 = vst.msk [vmem:[%s3697_s9 + $0x3e0] sm:$0xff] %vm2411_vm3, %v2279_v46  ;;  %v1985_v47 = vpop.f32.mrf.mxu2  ;;  %v2145_v48 = vpop.f32.mrf.mxu3 }
 0x289   : > { %v1986_v49 = vadd.f32 %v4523_v43, %v1985_v47  ;;  %v2146_v50 = vadd.f32 %v4523_v43, %v2145_v48  ;;  %v1667_v51 = vpop.f32.mrf.mxu0  ;;  %v1827_v52 = vpop.f32.mrf.mxu1 }
 0x28a   : > { %v1668_v53 = vadd.f32 %v4523_v43, %v1667_v51  ;;  %v1828_v54 = vadd.f32 %v4523_v43, %v1827_v52 }
 0x28b   : > { %v2343_v55 = vmax.f32 %v1986_v49, 0.0  ;;  %v2407_v56 = vmax.f32 %v2146_v50, 0.0 }
 0x28c   : > { %v2216_v57 = vmax.f32 %v1668_v53, 0.0  ;;  %v2280_v58 = vmax.f32 %v1828_v54, 0.0 }
 0x28d   : > { %2600 = vst.msk [vmem:[%s3697_s9 + $0x5e0] sm:$0xff] %vm2411_vm3, %v2343_v55 }
 0x28e   : > { %2664 = vst.msk [vmem:[%s3697_s9 + $0x7e0] sm:$0xff] %vm2411_vm3, %v2407_v56 }
 0x28f   : > { %2473 = vst.msk [vmem:[%s3697_s9 + $0x1e8] sm:$0xff] %vm2411_vm3, %v2216_v57 }
 0x290   : > { %2537 = vst.msk [vmem:[%s3697_s9 + $0x3e8] sm:$0xff] %vm2411_vm3, %v2280_v58  ;;  %v1987_v59 = vpop.f32.mrf.mxu2  ;;  %v2147_v60 = vpop.f32.mrf.mxu3 }
 0x291   : > { %v1988_v61 = vadd.f32 %v4523_v43, %v1987_v59  ;;  %v2148_v62 = vadd.f32 %v4523_v43, %v2147_v60  ;;  %v1670_v63 = vpop.f32.mrf.mxu0  ;;  %v1830_v0 = vpop.f32.mrf.mxu1 }
 0x292   : > { %v1671_v1 = vadd.f32 %v4523_v43, %v1670_v63  ;;  %v1831_v2 = vadd.f32 %v4523_v43, %v1830_v0 }
 0x293   : > { %v2344_v3 = vmax.f32 %v1988_v61, 0.0  ;;  %v2408_v4 = vmax.f32 %v2148_v62, 0.0 }
 0x294   : > { %v2217_v5 = vmax.f32 %v1671_v1, 0.0  ;;  %v2281_v6 = vmax.f32 %v1831_v2, 0.0 }
 0x295   : > { %2601 = vst.msk [vmem:[%s3697_s9 + $0x5e8] sm:$0xff] %vm2411_vm3, %v2344_v3 }
 0x296   : > { %2665 = vst.msk [vmem:[%s3697_s9 + $0x7e8] sm:$0xff] %vm2411_vm3, %v2408_v4 }
 0x297   : > { %2474 = vst.msk [vmem:[%s3697_s9 + $0x1f0] sm:$0xff] %vm2411_vm3, %v2217_v5 }
 0x298   : > { %2538 = vst.msk [vmem:[%s3697_s9 + $0x3f0] sm:$0xff] %vm2411_vm3, %v2281_v6  ;;  %v1990_v7 = vpop.f32.mrf.mxu2  ;;  %v2150_v8 = vpop.f32.mrf.mxu3 }
 0x299   : > { %v1991_v9 = vadd.f32 %v4523_v43, %v1990_v7  ;;  %v2151_v10 = vadd.f32 %v4523_v43, %v2150_v8  ;;  %v1672_v11 = vpop.f32.mrf.mxu0  ;;  %v1832_v12 = vpop.f32.mrf.mxu1 }
 0x29a   : > { %v1673_v13 = vadd.f32 %v4523_v43, %v1672_v11  ;;  %v1833_v14 = vadd.f32 %v4523_v43, %v1832_v12 }
 0x29b   : > { %v2345_v15 = vmax.f32 %v1991_v9, 0.0  ;;  %v2409_v16 = vmax.f32 %v2151_v10, 0.0 }
 0x29c   : > { %v2218_v17 = vmax.f32 %v1673_v13, 0.0  ;;  %v2282_v18 = vmax.f32 %v1833_v14, 0.0 }
 0x29d   : > { %2602 = vst.msk [vmem:[%s3697_s9 + $0x5f0] sm:$0xff] %vm2411_vm3, %v2345_v15 }
 0x29e   : > { %2666 = vst.msk [vmem:[%s3697_s9 + $0x7f0] sm:$0xff] %vm2411_vm3, %v2409_v16 }
 0x29f   : > { %2475 = vst.msk [vmem:[%s3697_s9 + $0x1f8] sm:$0xff] %vm2411_vm3, %v2218_v17 }
 0x2a0   : > { %2539 = vst.msk [vmem:[%s3697_s9 + $0x3f8] sm:$0xff] %vm2411_vm3, %v2282_v18  ;;  %v1992_v19 = vpop.f32.mrf.mxu2  ;;  %v2152_v20 = vpop.f32.mrf.mxu3 }
 0x2a1   : > { %v1993_v21 = vadd.f32 %v4523_v43, %v1992_v19  ;;  %v2153_v22 = vadd.f32 %v4523_v43, %v2152_v20 }
 0x2a3   : > { %v2346_v23 = vmax.f32 %v1993_v21, 0.0  ;;  %v2410_v24 = vmax.f32 %v2153_v22, 0.0 }
 0x2a5   : > { %2603 = vst.msk [vmem:[%s3697_s9 + $0x5f8] sm:$0xff] %vm2411_vm3, %v2346_v23 }
 0x2a6   : > { %2667 = vst.msk [vmem:[%s3697_s9 + $0x7f8] sm:$0xff] %vm2411_vm3, %v2410_v24 }
 0x2a7 PF: > { %s13_s12 = sadd.s32 1, %s3561_s12  }
 0x2a8   : > { %p10_p4 = scmp.ge.s32.totalorder %s13_s12, 5  }
 0x2aa   :  { %12 = sbr.rel (!%p10_p4) target bundleno = 1 (0x1), region = 62 }

// kernel: planner_forward.6
= control target key start
LH: loop header
LB: loop body
LE: loop exit
PB: predicated region body
PF: predicated region fallthrough
CT: control target
= control target key end

     0   :  { %s4060_s12 = smov 0   ;;  %s4894_s0 = inlined_call_operand.vmem [shape: bf16[1536,400], index: 0, kind: input, shape index: {}]   ;;  %s4895_s1 = inlined_call_operand.vmem [shape: bf16[400,32], index: 1, kind: input, shape index: {}]   ;;  %s4896_s2 = inlined_call_operand.vmem [shape: f32[1,32], index: 2, kind: input, shape index: {}]   ;;  %s4897_s3 = inlined_call_operand.vmem [shape: f32[1536,32], index: 3, kind: output, shape index: {}]  }
   0x1 LB: > { %s2876_s13 = sadd.s32 4294967295, %s4038_s12   ;;  %p2880_p0 = scmp.ge.s32.totalorder %s4038_s12, 1  ;;  %s4038_s12 = sphi %s4060_s12, %s13_s12  }
   0x2   : > { %p139_p1 = scmp.lt.s32.totalorder %s4038_s12, 3 }
   0x4   : > { %p140_p2 = pnand %p2880_p0, %p139_p1 }
   0x5   : > { %s164_s20 = smul.u32 (!%p140_p2), 96, %s2876_s13 }
   0x6   : > { %143 = sbr.rel (%p140_p2) target bundleno = 944 (0x3b0), region = 32 }
   0x7   : > { %p165_p3 = scmp.lt.s32.totalorder (!%p140_p2), %s164_s20, 191 }
   0xb   : > { %v4002_v0 = vld [vmem:[%s4895_s1 + $0x38] sm:$0xff]  ;;  %v4001_v3 = vld [vmem:[%s4895_s1 + $0x30] sm:$0xff]  ;;  %s4899_s20 = smov (!%p165_p3, %s164_s20), 191  ;;  %v4000_v6 = vld [vmem:[%s4895_s1 + $0x28] sm:$0xff]  ;;  %vm1486_vm0 = vcmask 130048   ;;  %vm2723_vm1 = vcmask 261120  }
   0xc   : > { %v4010_v1 = vld [vmem:[%s4895_s1 + $0x78] sm:$0xff]  ;;  %1631 = vmatpush.bf16.msra.mxu0 %v4002_v0  ;;  %v4009_v4 = vld [vmem:[%s4895_s1 + $0x70] sm:$0xff]  ;;  %v4008_v7 = vld [vmem:[%s4895_s1 + $0x68] sm:$0xff]  ;;  %s3802_s6 = sshll.u32 %s4899_s20, 4  ;;  %s2883_s22 = sshll.u32 %s4899_s20, 3 }
   0xd   : > { %v4018_v2 = vld [vmem:[%s4895_s1 + $0xb8] sm:$0xff]  ;;  %1880 = vmatpush.bf16.msra.mxu1 %v4010_v1  ;;  %v4017_v5 = vld [vmem:[%s4895_s1 + $0xb0] sm:$0xff]  ;;  %v4019_v8 = vld [vmem:[%s4895_s1 + $0xc0] sm:$0xff]  ;;  %s4104_s11 = scalar_lea.vmem %s4894_s0, %s3802_s6  ;;  %s4248_s25 = scalar_lea.vmem %s4897_s3, %s2883_s22 }
   0xe   : > { %2129 = vmatpush.bf16.msra.mxu2 %v4018_v2  ;;  %v4016_v9 = vld [vmem:[%s4895_s1 + $0xa8] sm:$0xff]  ;;  %2385 = vmatpush.bf16.msra.mxu3 %v4019_v8  ;;  %v2896_v11 = vld [vmem:[%s4104_s11 + $0x18] sm:$0xf0]  ;;  %v3999_v13 = vld [vmem:[%s4895_s1 + $0x20] sm:$0xff] }
   0xf   : > { %v3804_v10 = vld [vmem:[%s4104_s11 + $0xc] sm:$0xf]  ;;  %v4007_v14 = vld [vmem:[%s4895_s1 + $0x60] sm:$0xff]  ;;  %v3998_v16 = vld [vmem:[%s4895_s1 + $0x18] sm:$0xff] }
  0x10   : > { %1632 = vmatpush.bf16.msra.mxu0 %v4001_v3  ;;  %v2899_v12 = vor.u32 %v3804_v10, %v2896_v11  ;;  %v4015_v15 = vld [vmem:[%s4895_s1 + $0xa0] sm:$0xff]  ;;  %v4006_v17 = vld [vmem:[%s4895_s1 + $0x58] sm:$0xff]  ;;  %v3997_v19 = vld [vmem:[%s4895_s1 + $0x10] sm:$0xff] }
  0x11   : > { %1881 = vmatpush.bf16.msra.mxu1 %v4009_v4  ;;  %v4014_v18 = vld [vmem:[%s4895_s1 + $0x98] sm:$0xff]  ;;  %v4005_v20 = vld [vmem:[%s4895_s1 + $0x50] sm:$0xff]  ;;  %v3808_v22 = vld [vmem:[%s4104_s11 + $0x2c] sm:$0xf] }
  0x12   : > { %2130 = vmatpush.bf16.msra.mxu2 %v4017_v5  ;;  %3752 = vmatmul.msk.bf16.vlgmr.msra.gmra.mxu3 %vm1486_vm0, %v2899_v12  ;;  %v4013_v21 = vld [vmem:[%s4895_s1 + $0x90] sm:$0xff]  ;;  %v2912_v23 = vld [vmem:[%s4104_s11 + $0x38] sm:$0xf0]  ;;  %v3996_v24 = vld [vmem:[%s4895_s1 + $0x8] sm:$0xff] }
  0x13   : > { %v4004_v25 = vld [vmem:[%s4895_s1 + $0x48] sm:$0xff]  ;;  %v2915_v27 = vor.u32 %v3808_v22, %v2912_v23  ;;  %v3995_v28 = vld [vmem:[%s4895_s1] sm:$0xff]  ;;  %v3805_v31 = vld [vmem:[%s4104_s11 + $0xc] sm:$0xf0] }
  0x14   : > { %1633 = vmatpush.bf16.msra.mxu0 %v4000_v6  ;;  %v4012_v26 = vld [vmem:[%s4895_s1 + $0x88] sm:$0xff]  ;;  %v4003_v29 = vld [vmem:[%s4895_s1 + $0x40] sm:$0xff]  ;;  %v2888_v33 = vld [vmem:[%s4104_s11 + $0x10] sm:$0xf0] }
  0x15   : > { %1882 = vmatpush.bf16.msra.mxu1 %v4008_v7  ;;  %v2886_v30 = vld [vmem:[%s4104_s11] sm:$0xf]  ;;  %v3803_v32 = vld [vmem:[%s4104_s11 + $0x4] sm:$0xf]  ;;  %v2894_v35 = vld [vmem:[%s4104_s11 + $0x8] sm:$0xf] }
  0x16   : > { %2131 = vmatpush.bf16.msra.mxu2 %v4016_v9  ;;  %v4011_v34 = vld [vmem:[%s4895_s1 + $0x80] sm:$0xff]  ;;  %v3806_v36 = vld [vmem:[%s4104_s11 + $0x14] sm:$0xf0]  ;;  %v2887_v37 = vor.u32 %v3805_v31, %v2886_v30  ;;  %v2891_v38 = vor.u32 %v3803_v32, %v2888_v33  ;;  %v3812_v40 = vld [vmem:[%s4104_s11 + $0x4c] sm:$0xf] }
  0x17   : > { %v2895_v39 = vor.u32 %v3806_v36, %v2894_v35  ;;  %v2928_v41 = vld [vmem:[%s4104_s11 + $0x58] sm:$0xf0]  ;;  %v2902_v43 = vld [vmem:[%s4104_s11 + $0x20] sm:$0xf]  ;;  %v3809_v44 = vld [vmem:[%s4104_s11 + $0x2c] sm:$0xf0] }
  0x18   : > { %1634 = vmatpush.bf16.msra.mxu0 %v3999_v13  ;;  %v2931_v42 = vor.u32 %v3812_v40, %v2928_v41  ;;  %v3807_v45 = vld [vmem:[%s4104_s11 + $0x24] sm:$0xf]  ;;  %v2904_v46 = vld [vmem:[%s4104_s11 + $0x30] sm:$0xf0]  ;;  %v2910_v47 = vld [vmem:[%s4104_s11 + $0x28] sm:$0xf]  ;;  %v2903_v49 = vor.u32 %v3809_v44, %v2902_v43 }
  0x19   : > { %1883 = vmatpush.bf16.msra.mxu1 %v4007_v14  ;;  %v3810_v48 = vld [vmem:[%s4104_s11 + $0x34] sm:$0xf0]  ;;  %v2907_v50 = vor.u32 %v3807_v45, %v2904_v46  ;;  %v3816_v52 = vld [vmem:[%s4104_s11 + $0x6c] sm:$0xf]  ;;  %v2944_v53 = vld [vmem:[%s4104_s11 + $0x78] sm:$0xf0] }
  0x1a   : > { %2132 = vmatpush.bf16.msra.mxu2 %v4015_v15  ;;  %v2911_v51 = vor.u32 %v3810_v48, %v2910_v47  ;;  %v2947_v54 = vor.u32 %v3816_v52, %v2944_v53  ;;  %v2918_v55 = vld [vmem:[%s4104_s11 + $0x40] sm:$0xf]  ;;  %v3813_v56 = vld [vmem:[%s4104_s11 + $0x4c] sm:$0xf0]  ;;  %v3811_v57 = vld [vmem:[%s4104_s11 + $0x44] sm:$0xf] }
  0x1b   : > { %v2920_v58 = vld [vmem:[%s4104_s11 + $0x50] sm:$0xf0]  ;;  %v2926_v59 = vld [vmem:[%s4104_s11 + $0x48] sm:$0xf]  ;;  %v3814_v60 = vld [vmem:[%s4104_s11 + $0x54] sm:$0xf0]  ;;  %v2919_v61 = vor.u32 %v3813_v56, %v2918_v55 }
  0x1c   : > { %1635 = vmatpush.bf16.msra.mxu0 %v3998_v16  ;;  %v2923_v62 = vor.u32 %v3811_v57, %v2920_v58  ;;  %v2927_v63 = vor.u32 %v3814_v60, %v2926_v59  ;;  %v3820_v0 = vld [vmem:[%s4104_s11 + $0x8c] sm:$0xf]  ;;  %v2960_v1 = vld [vmem:[%s4104_s11 + $0x98] sm:$0xf0]  ;;  %v2934_v3 = vld [vmem:[%s4104_s11 + $0x60] sm:$0xf] }
  0x1d   : > { %1884 = vmatpush.bf16.msra.mxu1 %v4006_v17  ;;  %v2963_v2 = vor.u32 %v3820_v0, %v2960_v1  ;;  %v3817_v4 = vld [vmem:[%s4104_s11 + $0x6c] sm:$0xf0]  ;;  %v3815_v5 = vld [vmem:[%s4104_s11 + $0x64] sm:$0xf]  ;;  %v2936_v6 = vld [vmem:[%s4104_s11 + $0x70] sm:$0xf0] }
  0x1e   : > { %2133 = vmatpush.bf16.msra.mxu2 %v4014_v18  ;;  %v2942_v7 = vld [vmem:[%s4104_s11 + $0x68] sm:$0xf]  ;;  %v3818_v8 = vld [vmem:[%s4104_s11 + $0x74] sm:$0xf0]  ;;  %v2935_v9 = vor.u32 %v3817_v4, %v2934_v3  ;;  %v2939_v10 = vor.u32 %v3815_v5, %v2936_v6  ;;  %v3824_v12 = vld [vmem:[%s4104_s11 + $0xac] sm:$0xf] }
  0x1f   : > { %v2943_v11 = vor.u32 %v3818_v8, %v2942_v7  ;;  %v2976_v13 = vld [vmem:[%s4104_s11 + $0xb8] sm:$0xf0]  ;;  %v2950_v15 = vld [vmem:[%s4104_s11 + $0x80] sm:$0xf]  ;;  %v3821_v16 = vld [vmem:[%s4104_s11 + $0x8c] sm:$0xf0] }
  0x20   : > { %1636 = vmatpush.bf16.msra.mxu0 %v3997_v19  ;;  %v2979_v14 = vor.u32 %v3824_v12, %v2976_v13  ;;  %v3819_v17 = vld [vmem:[%s4104_s11 + $0x84] sm:$0xf]  ;;  %v2952_v18 = vld [vmem:[%s4104_s11 + $0x90] sm:$0xf0]  ;;  %v2958_v19 = vld [vmem:[%s4104_s11 + $0x88] sm:$0xf] }
  0x21   : > { %1885 = vmatpush.bf16.msra.mxu1 %v4005_v20  ;;  %v3822_v20 = vld [vmem:[%s4104_s11 + $0x94] sm:$0xf0]  ;;  %v2955_v22 = vor.u32 %v3819_v17, %v2952_v18  ;;  %v2968_v30 = vld [vmem:[%s4104_s11 + $0xb0] sm:$0xf0]  ;;  %v2974_v31 = vld [vmem:[%s4104_s11 + $0xa8] sm:$0xf] }
  0x22   : > { %2134 = vmatpush.bf16.msra.mxu2 %v4013_v21  ;;  %3753 = vmatmul.msk.bf16.gmra.mxu3 %vm1486_vm0, %v2915_v27  ;;  %v2951_v21 = vor.u32 %v3821_v16, %v2950_v15  ;;  %v2959_v23 = vor.u32 %v3822_v20, %v2958_v19  ;;  %v2966_v27 = vld [vmem:[%s4104_s11 + $0xa0] sm:$0xf]  ;;  %v3826_v32 = vld [vmem:[%s4104_s11 + $0xb4] sm:$0xf0]  ;;  %v3832_v36 = vld [vmem:[%s4104_s11 + $0xec] sm:$0xf] }
  0x23   : > { %v2975_v35 = vor.u32 %v3826_v32, %v2974_v31  ;;  %v3829_v40 = vld [vmem:[%s4104_s11 + $0xcc] sm:$0xf0]  ;;  %v3827_v41 = vld [vmem:[%s4104_s11 + $0xc4] sm:$0xf]  ;;  %v2990_v43 = vld [vmem:[%s4104_s11 + $0xc8] sm:$0xf] }
  0x24   : > { %1637 = vmatpush.bf16.msra.mxu0 %v3996_v24  ;;  %v3828_v24 = vld [vmem:[%s4104_s11 + $0xcc] sm:$0xf]  ;;  %v3830_v44 = vld [vmem:[%s4104_s11 + $0xd4] sm:$0xf0]  ;;  %v3833_v52 = vld [vmem:[%s4104_s11 + $0xec] sm:$0xf0] }
  0x25   : > { %1886 = vmatpush.bf16.msra.mxu1 %v4004_v25  ;;  %v2992_v25 = vld [vmem:[%s4104_s11 + $0xd8] sm:$0xf0]  ;;  %v2991_v47 = vor.u32 %v3830_v44, %v2990_v43  ;;  %v3836_v48 = vld [vmem:[%s4104_s11 + $0x10c] sm:$0xf]  ;;  %v3831_v53 = vld [vmem:[%s4104_s11 + $0xe4] sm:$0xf] }
  0x26   : > { %2135 = vmatpush.bf16.msra.mxu2 %v4012_v26  ;;  %v2995_v26 = vor.u32 %v3828_v24, %v2992_v25  ;;  %v3006_v55 = vld [vmem:[%s4104_s11 + $0xe8] sm:$0xf]  ;;  %v3834_v56 = vld [vmem:[%s4104_s11 + $0xf4] sm:$0xf0]  ;;  %v3014_v1 = vld [vmem:[%s4104_s11 + $0x100] sm:$0xf] }
  0x27   : > { %v3007_v59 = vor.u32 %v3834_v56, %v3006_v55  ;;  %v3835_v3 = vld [vmem:[%s4104_s11 + $0x104] sm:$0xf]  ;;  %v3016_v4 = vld [vmem:[%s4104_s11 + $0x110] sm:$0xf0]  ;;  %v4235_v5 = vld [vmem:[%s4896_s2] ss:$0 sm:$0xff] }
  0x28   : > { %1638 = vmatpush.bf16.msra.mxu0 %v3995_v28  ;;  %v3825_v28 = vld [vmem:[%s4104_s11 + $0xac] sm:$0xf0]  ;;  %v3022_v6 = vld [vmem:[%s4104_s11 + $0x108] sm:$0xf]  ;;  %v3838_v7 = vld [vmem:[%s4104_s11 + $0x114] sm:$0xf0] }
  0x29   : > { %1887 = vmatpush.bf16.msra.mxu1 %v4003_v29  ;;  %v3823_v29 = vld [vmem:[%s4104_s11 + $0xa4] sm:$0xf]  ;;  %v2967_v33 = vor.u32 %v3825_v28, %v2966_v27  ;;  %v3023_v12 = vor.u32 %v3838_v7, %v3022_v6  ;;  %v3844_v16 = vld [vmem:[%s4104_s11 + $0x14c] sm:$0xf]  ;;  %v3056_v17 = vld [vmem:[%s4104_s11 + $0x158] sm:$0xf0] }
  0x2a   : > { %2136 = vmatpush.bf16.msra.mxu2 %v4011_v34  ;;  %v2971_v34 = vor.u32 %v3823_v29, %v2968_v30  ;;  %v3841_v27 = vld [vmem:[%s4104_s11 + $0x12c] sm:$0xf0]  ;;  %v3839_v29 = vld [vmem:[%s4104_s11 + $0x124] sm:$0xf]  ;;  %v3032_v30 = vld [vmem:[%s4104_s11 + $0x130] sm:$0xf0] }
  0x2b   : > { %1639 = vmatmul.bf16.vlgmr.msra.gmra.mxu0 %v2887_v37  ;;  %v3008_v37 = vld [vmem:[%s4104_s11 + $0xf8] sm:$0xf0]  ;;  %v3038_v31 = vld [vmem:[%s4104_s11 + $0x128] sm:$0xf]  ;;  %v3842_v32 = vld [vmem:[%s4104_s11 + $0x134] sm:$0xf0] }
  0x2c   : > { %1888 = vmatmul.bf16.vlgmr.msra.gmra.mxu1 %v2891_v38  ;;  %v3011_v38 = vor.u32 %v3832_v36, %v3008_v37  ;;  %v3035_v36 = vor.u32 %v3839_v29, %v3032_v30  ;;  %v3046_v56 = vld [vmem:[%s4104_s11 + $0x140] sm:$0xf]  ;;  %v3850_v29 = vld [vmem:[%s4104_s11 + $0x174] sm:$0xf0] }
  0x2d   : > { %2137 = vmatmul.bf16.vlgmr.msra.gmra.mxu2 %v2895_v39  ;;  %v2982_v39 = vld [vmem:[%s4104_s11 + $0xc0] sm:$0xf] }
  0x2e   : > { %v2983_v45 = vor.u32 %v3829_v40, %v2982_v39  ;;  %v3039_v40 = vor.u32 %v3842_v32, %v3038_v31 }
  0x32   : > { %3754 = vmatmul.msk.bf16.gmra.mxu3 %vm1486_vm0, %v2931_v42  ;;  %v2984_v42 = vld [vmem:[%s4104_s11 + $0xd0] sm:$0xf0] }
  0x33   : > { %v2987_v46 = vor.u32 %v3827_v41, %v2984_v42 }
  0x3b   : > { %1644 = vmatmul.bf16.gmra.mxu0 %v2903_v49  ;;  %v3024_v49 = vld [vmem:[%s4104_s11 + $0x118] sm:$0xf0] }
  0x3c   : > { %1893 = vmatmul.bf16.gmra.mxu1 %v2907_v50  ;;  %v3027_v50 = vor.u32 %v3836_v48, %v3024_v49 }
  0x3d   : > { %2142 = vmatmul.bf16.gmra.mxu2 %v2911_v51  ;;  %v2998_v51 = vld [vmem:[%s4104_s11 + $0xe0] sm:$0xf] }
  0x3e   : > { %v2999_v57 = vor.u32 %v3833_v52, %v2998_v51 }
  0x42   : > { %3755 = vmatmul.msk.bf16.gmra.mxu3 %vm1486_vm0, %v2947_v54  ;;  %v3000_v54 = vld [vmem:[%s4104_s11 + $0xf0] sm:$0xf0] }
  0x43   : > { %v3003_v58 = vor.u32 %v3831_v53, %v3000_v54 }
  0x4b   : > { %1649 = vmatmul.bf16.gmra.mxu0 %v2919_v61  ;;  %v3840_v61 = vld [vmem:[%s4104_s11 + $0x12c] sm:$0xf] }
  0x4c   : > { %1898 = vmatmul.bf16.gmra.mxu1 %v2923_v62  ;;  %v3040_v62 = vld [vmem:[%s4104_s11 + $0x138] sm:$0xf0] }
  0x4d   : > { %2147 = vmatmul.bf16.gmra.mxu2 %v2927_v63  ;;  %v3043_v0 = vor.u32 %v3840_v61, %v3040_v62  ;;  %v3054_v61 = vld [vmem:[%s4104_s11 + $0x148] sm:$0xf]  ;;  %v3846_v62 = vld [vmem:[%s4104_s11 + $0x154] sm:$0xf0] }
  0x4e   : > { %v3055_v7 = vor.u32 %v3846_v62, %v3054_v61 }
  0x52   : > { %3756 = vmatmul.msk.bf16.gmra.mxu3 %vm1486_vm0, %v2963_v2  ;;  %v3837_v2 = vld [vmem:[%s4104_s11 + $0x10c] sm:$0xf0] }
  0x53   : > { %v3015_v8 = vor.u32 %v3837_v2, %v3014_v1 }
  0x5b   : > { %1654 = vmatmul.bf16.gmra.mxu0 %v2935_v9  ;;  %v3019_v9 = vor.u32 %v3835_v3, %v3016_v4 }
  0x5c   : > { %1903 = vmatmul.bf16.gmra.mxu1 %v2939_v10 }
  0x5d   : > { %2152 = vmatmul.bf16.gmra.mxu2 %v2943_v11 }
  0x62   : > { %3757 = vmatmul.msk.bf16.gmra.mxu3 %vm1486_vm0, %v2979_v14 }
  0x6b   : > { %1659 = vmatmul.bf16.gmra.mxu0 %v2951_v21 }
  0x6c   : > { %1908 = vmatmul.bf16.gmra.mxu1 %v2955_v22 }
  0x6d   : > { %2157 = vmatmul.bf16.gmra.mxu2 %v2959_v23  ;;  %v3059_v23 = vor.u32 %v3844_v16, %v3056_v17 }
  0x72   : > { %3758 = vmatmul.msk.bf16.gmra.mxu3 %vm1486_vm0, %v2995_v26  ;;  %v3030_v26 = vld [vmem:[%s4104_s11 + $0x120] sm:$0xf] }
  0x7b   : > { %1664 = vmatmul.bf16.gmra.mxu0 %v2967_v33 }
  0x7c   : > { %1913 = vmatmul.bf16.gmra.mxu1 %v2971_v34 }
  0x7d   : > { %2162 = vmatmul.bf16.gmra.mxu2 %v2975_v35  ;;  %v3031_v35 = vor.u32 %v3841_v27, %v3030_v26  ;;  %v3847_v26 = vld [vmem:[%s4104_s11 + $0x164] sm:$0xf]  ;;  %v3064_v27 = vld [vmem:[%s4104_s11 + $0x170] sm:$0xf0] }
  0x82   : > { %3759 = vmatmul.msk.bf16.gmra.mxu3 %vm1486_vm0, %v3011_v38 }
  0x8b   : > { %1669 = vmatmul.bf16.gmra.mxu0 %v2983_v45 }
  0x8c   : > { %1918 = vmatmul.bf16.gmra.mxu1 %v2987_v46  ;;  %v3848_v46 = vld [vmem:[%s4104_s11 + $0x16c] sm:$0xf] }
  0x8d   : > { %2167 = vmatmul.bf16.gmra.mxu2 %v2991_v47  ;;  %v3072_v47 = vld [vmem:[%s4104_s11 + $0x178] sm:$0xf0] }
  0x8e   : > { %v3075_v53 = vor.u32 %v3848_v46, %v3072_v47 }
  0x92   : > { %3760 = vmatmul.msk.bf16.gmra.mxu3 %vm1486_vm0, %v3027_v50 }
  0x95   : > { %v2387_v60 = vpop.f32.mrf.mxu3 }
  0x9b   : > { %1674 = vmatmul.bf16.gmra.mxu0 %v2999_v57  ;;  %v3845_v57 = vld [vmem:[%s4104_s11 + $0x14c] sm:$0xf0] }
  0x9c   : > { %1923 = vmatmul.bf16.gmra.mxu1 %v3003_v58  ;;  %v3047_v1 = vor.u32 %v3845_v57, %v3046_v56  ;;  %v3851_v56 = vld [vmem:[%s4104_s11 + $0x184] sm:$0xf]  ;;  %v3080_v57 = vld [vmem:[%s4104_s11 + $0x190] sm:$0xf0] }
  0x9d   : > { %2172 = vmatmul.bf16.gmra.mxu2 %v3007_v59  ;;  %v2389_v63 = vpop.f32.mrf.mxu3  ;;  %v3843_v59 = vld [vmem:[%s4104_s11 + $0x144] sm:$0xf] }
  0xa2   : > { %3761 = vmatmul.msk.bf16.gmra.mxu3 %vm1486_vm0, %v3043_v0 }
  0xa5   : > { %v2392_v14 = vpop.f32.mrf.mxu3 }
  0xa8   : > { %v1640_v10 = vpop.f32.mrf.mxu0 }
  0xa9   : > { %v1889_v11 = vpop.f32.mrf.mxu1  ;;  %v1641_v13 = vadd.f32 %v4235_v5, %v1640_v10 }
  0xab   : > { %1679 = vmatmul.bf16.gmra.mxu0 %v3015_v8  ;;  %v1890_v15 = vadd.f32 %v1889_v11, %v1641_v13  ;;  %v3852_v13 = vld [vmem:[%s4104_s11 + $0x18c] sm:$0xf] }
  0xac   : > { %1928 = vmatmul.bf16.gmra.mxu1 %v3019_v9 }
  0xad   : > { %2177 = vmatmul.bf16.gmra.mxu2 %v3023_v12  ;;  %v2394_v22 = vpop.f32.mrf.mxu3 }
  0xb0   : > { %v2138_v18 = vpop.f32.mrf.mxu2  ;;  %v1642_v20 = vpop.f32.mrf.mxu0 }
  0xb1   : > { %v2139_v19 = vadd.f32 %v2138_v18, %v1890_v15  ;;  %v1891_v21 = vpop.f32.mrf.mxu1  ;;  %v1643_v25 = vadd.f32 %v4235_v5, %v1642_v20 }
  0xb2   : > { %3762 = vmatmul.msk.bf16.gmra.mxu3 %vm1486_vm0, %v3059_v23  ;;  %v3062_v23 = vld [vmem:[%s4104_s11 + $0x160] sm:$0xf] }
  0xb3   : > { %v2388_v24 = vadd.f32 %v2387_v60, %v2139_v19  ;;  %v1892_v33 = vadd.f32 %v1891_v21, %v1643_v25  ;;  %v3048_v60 = vld [vmem:[%s4104_s11 + $0x150] sm:$0xf0] }
  0xb4   : > { %v3051_v2 = vor.u32 %v3843_v59, %v3048_v60  ;;  %v3854_v59 = vld [vmem:[%s4104_s11 + $0x194] sm:$0xf0] }
  0xb5   : > { %v2627_v28 = vmax.f32 %v2388_v24, 0.0  ;;  %v2397_v42 = vpop.f32.mrf.mxu3  ;;  %v3849_v24 = vld [vmem:[%s4104_s11 + $0x16c] sm:$0xf0] }
  0xb6   : > { %v3063_v32 = vor.u32 %v3849_v24, %v3062_v23  ;;  %v3855_v23 = vld [vmem:[%s4104_s11 + $0x1a4] sm:$0xf]  ;;  %v3096_v24 = vld [vmem:[%s4104_s11 + $0x1b0] sm:$0xf0] }
  0xb7   : > { %2724 = vst.msk [vmem:[%s4248_s25] sm:$0xff] %vm2723_vm1, %v2627_v28  ;;  %v3070_v28 = vld [vmem:[%s4104_s11 + $0x168] sm:$0xf] }
  0xb8   : > { %v2140_v34 = vpop.f32.mrf.mxu2  ;;  %v1645_v38 = vpop.f32.mrf.mxu0 }
  0xb9   : > { %v2141_v37 = vadd.f32 %v2140_v34, %v1892_v33  ;;  %v1894_v39 = vpop.f32.mrf.mxu1  ;;  %v1646_v41 = vadd.f32 %v4235_v5, %v1645_v38  ;;  %v3067_v33 = vor.u32 %v3847_v26, %v3064_v27  ;;  %v3858_v26 = vld [vmem:[%s4104_s11 + $0x1b4] sm:$0xf0] }
  0xbb   : > { %v2390_v43 = vadd.f32 %v2389_v63, %v2141_v37  ;;  %1684 = vmatmul.bf16.gmra.mxu0 %v3031_v35  ;;  %v1895_v45 = vadd.f32 %v1894_v39, %v1646_v41  ;;  %v3071_v37 = vor.u32 %v3850_v29, %v3070_v28 }
  0xbc   : > { %1933 = vmatmul.bf16.gmra.mxu1 %v3035_v36 }
  0xbd   : > { %v2628_v44 = vmax.f32 %v2390_v43, 0.0  ;;  %2182 = vmatmul.bf16.gmra.mxu2 %v3039_v40  ;;  %v2399_v52 = vpop.f32.mrf.mxu3  ;;  %v3856_v43 = vld [vmem:[%s4104_s11 + $0x1ac] sm:$0xf] }
  0xbf   : > { %2725 = vst.msk [vmem:[%s4248_s25 + $0x8] sm:$0xff] %vm2723_vm1, %v2628_v44  ;;  %v3104_v44 = vld [vmem:[%s4104_s11 + $0x1b8] sm:$0xf0] }
  0xc0   : > { %v2143_v48 = vpop.f32.mrf.mxu2  ;;  %v1647_v50 = vpop.f32.mrf.mxu0 }
  0xc1   : > { %v2144_v49 = vadd.f32 %v2143_v48, %v1895_v45  ;;  %v1896_v51 = vpop.f32.mrf.mxu1  ;;  %v1648_v55 = vadd.f32 %v4235_v5, %v1647_v50  ;;  %v3107_v50 = vor.u32 %v3856_v43, %v3104_v44 }
  0xc2   : > { %3763 = vmatmul.msk.bf16.gmra.mxu3 %vm1486_vm0, %v3075_v53  ;;  %v3078_v53 = vld [vmem:[%s4104_s11 + $0x180] sm:$0xf] }
  0xc3   : > { %v2393_v54 = vadd.f32 %v2392_v14, %v2144_v49  ;;  %v1897_v63 = vadd.f32 %v1896_v51, %v1648_v55  ;;  %v3088_v14 = vld [vmem:[%s4104_s11 + $0x198] sm:$0xf0] }
  0xc4   : > { %v3091_v20 = vor.u32 %v3852_v13, %v3088_v14 }
  0xc5   : > { %v2629_v58 = vmax.f32 %v2393_v54, 0.0  ;;  %v2402_v9 = vpop.f32.mrf.mxu3  ;;  %v3853_v54 = vld [vmem:[%s4104_s11 + $0x18c] sm:$0xf0] }
  0xc6   : > { %v3079_v62 = vor.u32 %v3853_v54, %v3078_v53  ;;  %v3859_v53 = vld [vmem:[%s4104_s11 + $0x1c4] sm:$0xf]  ;;  %v3112_v54 = vld [vmem:[%s4104_s11 + $0x1d0] sm:$0xf0] }
  0xc7   : > { %2726 = vst.msk [vmem:[%s4248_s25 + $0x10] sm:$0xff] %vm2723_vm1, %v2629_v58  ;;  %v3086_v58 = vld [vmem:[%s4104_s11 + $0x188] sm:$0xf] }
  0xc8   : > { %v2145_v0 = vpop.f32.mrf.mxu2  ;;  %v1650_v4 = vpop.f32.mrf.mxu0 }
  0xc9   : > { %v2146_v3 = vadd.f32 %v2145_v0, %v1897_v63  ;;  %v1899_v6 = vpop.f32.mrf.mxu1  ;;  %v1651_v8 = vadd.f32 %v4235_v5, %v1650_v4  ;;  %v3083_v63 = vor.u32 %v3851_v56, %v3080_v57  ;;  %v3862_v56 = vld [vmem:[%s4104_s11 + $0x1d4] sm:$0xf0] }
  0xcb   : > { %v2395_v10 = vadd.f32 %v2394_v22, %v2146_v3  ;;  %1689 = vmatmul.bf16.gmra.mxu0 %v3047_v1  ;;  %v1900_v12 = vadd.f32 %v1899_v6, %v1651_v8  ;;  %v3087_v3 = vor.u32 %v3854_v59, %v3086_v58 }
  0xcc   : > { %1938 = vmatmul.bf16.gmra.mxu1 %v3051_v2 }
  0xcd   : > { %v2630_v11 = vmax.f32 %v2395_v10, 0.0  ;;  %2187 = vmatmul.bf16.gmra.mxu2 %v3055_v7  ;;  %v2404_v19 = vpop.f32.mrf.mxu3  ;;  %v3860_v10 = vld [vmem:[%s4104_s11 + $0x1cc] sm:$0xf] }
  0xcf   : > { %2727 = vst.msk [vmem:[%s4248_s25 + $0x18] sm:$0xff] %vm2723_vm1, %v2630_v11  ;;  %v3120_v11 = vld [vmem:[%s4104_s11 + $0x1d8] sm:$0xf0] }
  0xd0   : > { %v2148_v15 = vpop.f32.mrf.mxu2  ;;  %v1652_v17 = vpop.f32.mrf.mxu0 }
  0xd1   : > { %v2149_v16 = vadd.f32 %v2148_v15, %v1900_v12  ;;  %v1901_v18 = vpop.f32.mrf.mxu1  ;;  %v1653_v22 = vadd.f32 %v4235_v5, %v1652_v17  ;;  %v3123_v17 = vor.u32 %v3860_v10, %v3120_v11 }
  0xd2   : > { %3764 = vmatmul.msk.bf16.gmra.mxu3 %vm1486_vm0, %v3091_v20  ;;  %v3094_v20 = vld [vmem:[%s4104_s11 + $0x1a0] sm:$0xf] }
  0xd3   : > { %v2398_v21 = vadd.f32 %v2397_v42, %v2149_v16  ;;  %v1902_v30 = vadd.f32 %v1901_v18, %v1653_v22 }
  0xd5   : > { %v2631_v25 = vmax.f32 %v2398_v21, 0.0  ;;  %v2407_v39 = vpop.f32.mrf.mxu3  ;;  %v3857_v21 = vld [vmem:[%s4104_s11 + $0x1ac] sm:$0xf0] }
  0xd6   : > { %v3095_v29 = vor.u32 %v3857_v21, %v3094_v20  ;;  %v3863_v20 = vld [vmem:[%s4104_s11 + $0x1e4] sm:$0xf]  ;;  %v3128_v21 = vld [vmem:[%s4104_s11 + $0x1f0] sm:$0xf0] }
  0xd7   : > { %2728 = vst.msk [vmem:[%s4248_s25 + $0x20] sm:$0xff] %vm2723_vm1, %v2631_v25  ;;  %v3102_v25 = vld [vmem:[%s4104_s11 + $0x1a8] sm:$0xf] }
  0xd8   : > { %v2150_v31 = vpop.f32.mrf.mxu2  ;;  %v1655_v35 = vpop.f32.mrf.mxu0 }
  0xd9   : > { %v2151_v34 = vadd.f32 %v2150_v31, %v1902_v30  ;;  %v1904_v36 = vpop.f32.mrf.mxu1  ;;  %v1656_v38 = vadd.f32 %v4235_v5, %v1655_v35  ;;  %v3099_v30 = vor.u32 %v3855_v23, %v3096_v24  ;;  %v3866_v23 = vld [vmem:[%s4104_s11 + $0x1f4] sm:$0xf0] }
  0xdb   : > { %v2400_v40 = vadd.f32 %v2399_v52, %v2151_v34  ;;  %1694 = vmatmul.bf16.gmra.mxu0 %v3063_v32  ;;  %v1905_v42 = vadd.f32 %v1904_v36, %v1656_v38  ;;  %v3103_v34 = vor.u32 %v3858_v26, %v3102_v25 }
  0xdc   : > { %1943 = vmatmul.bf16.gmra.mxu1 %v3067_v33 }
  0xdd   : > { %v2632_v41 = vmax.f32 %v2400_v40, 0.0  ;;  %2192 = vmatmul.bf16.gmra.mxu2 %v3071_v37  ;;  %v2409_v49 = vpop.f32.mrf.mxu3  ;;  %v3864_v40 = vld [vmem:[%s4104_s11 + $0x1ec] sm:$0xf] }
  0xdf   : > { %2729 = vst.msk [vmem:[%s4248_s25 + $0x28] sm:$0xff] %vm2723_vm1, %v2632_v41  ;;  %v3136_v41 = vld [vmem:[%s4104_s11 + $0x1f8] sm:$0xf0] }
  0xe0   : > { %v2153_v45 = vpop.f32.mrf.mxu2  ;;  %v1657_v47 = vpop.f32.mrf.mxu0 }
  0xe1   : > { %v2154_v46 = vadd.f32 %v2153_v45, %v1905_v42  ;;  %v1906_v48 = vpop.f32.mrf.mxu1  ;;  %v1658_v52 = vadd.f32 %v4235_v5, %v1657_v47  ;;  %v3139_v47 = vor.u32 %v3864_v40, %v3136_v41 }
  0xe2   : > { %3765 = vmatmul.msk.bf16.gmra.mxu3 %vm1486_vm0, %v3107_v50  ;;  %v3110_v50 = vld [vmem:[%s4104_s11 + $0x1c0] sm:$0xf] }
  0xe3   : > { %v2403_v51 = vadd.f32 %v2402_v9, %v2154_v46  ;;  %v1907_v60 = vadd.f32 %v1906_v48, %v1658_v52 }
  0xe5   : > { %v2633_v55 = vmax.f32 %v2403_v51, 0.0  ;;  %v2412_v6 = vpop.f32.mrf.mxu3  ;;  %v3861_v51 = vld [vmem:[%s4104_s11 + $0x1cc] sm:$0xf0] }
  0xe6   : > { %v3111_v59 = vor.u32 %v3861_v51, %v3110_v50  ;;  %v3867_v50 = vld [vmem:[%s4104_s11 + $0x204] sm:$0xf]  ;;  %v3144_v51 = vld [vmem:[%s4104_s11 + $0x210] sm:$0xf0] }
  0xe7   : > { %2730 = vst.msk [vmem:[%s4248_s25 + $0x30] sm:$0xff] %vm2723_vm1, %v2633_v55  ;;  %v3118_v55 = vld [vmem:[%s4104_s11 + $0x1c8] sm:$0xf] }
  0xe8   : > { %v2155_v61 = vpop.f32.mrf.mxu2  ;;  %v1660_v1 = vpop.f32.mrf.mxu0 }
  0xe9   : > { %v2156_v0 = vadd.f32 %v2155_v61, %v1907_v60  ;;  %v1909_v2 = vpop.f32.mrf.mxu1  ;;  %v1661_v4 = vadd.f32 %v4235_v5, %v1660_v1  ;;  %v3115_v60 = vor.u32 %v3859_v53, %v3112_v54  ;;  %v3870_v53 = vld [vmem:[%s4104_s11 + $0x214] sm:$0xf0] }
  0xeb   : > { %v2405_v7 = vadd.f32 %v2404_v19, %v2156_v0  ;;  %1699 = vmatmul.bf16.gmra.mxu0 %v3079_v62  ;;  %v1910_v9 = vadd.f32 %v1909_v2, %v1661_v4  ;;  %v3119_v0 = vor.u32 %v3862_v56, %v3118_v55 }
  0xec   : > { %1948 = vmatmul.bf16.gmra.mxu1 %v3083_v63 }
  0xed   : > { %v2634_v8 = vmax.f32 %v2405_v7, 0.0  ;;  %2197 = vmatmul.bf16.gmra.mxu2 %v3087_v3  ;;  %v2414_v16 = vpop.f32.mrf.mxu3  ;;  %v3868_v7 = vld [vmem:[%s4104_s11 + $0x20c] sm:$0xf] }
  0xef   : > { %2731 = vst.msk [vmem:[%s4248_s25 + $0x38] sm:$0xff] %vm2723_vm1, %v2634_v8  ;;  %v3152_v8 = vld [vmem:[%s4104_s11 + $0x218] sm:$0xf0] }
  0xf0   : > { %v2158_v12 = vpop.f32.mrf.mxu2  ;;  %v1662_v14 = vpop.f32.mrf.mxu0 }
  0xf1   : > { %v2159_v13 = vadd.f32 %v2158_v12, %v1910_v9  ;;  %v1911_v15 = vpop.f32.mrf.mxu1  ;;  %v1663_v19 = vadd.f32 %v4235_v5, %v1662_v14  ;;  %v3155_v14 = vor.u32 %v3868_v7, %v3152_v8 }
  0xf2   : > { %3766 = vmatmul.msk.bf16.gmra.mxu3 %vm1486_vm0, %v3123_v17  ;;  %v3126_v17 = vld [vmem:[%s4104_s11 + $0x1e0] sm:$0xf] }
  0xf3   : > { %v2408_v18 = vadd.f32 %v2407_v39, %v2159_v13  ;;  %v1912_v27 = vadd.f32 %v1911_v15, %v1663_v19 }
  0xf5   : > { %v2635_v22 = vmax.f32 %v2408_v18, 0.0  ;;  %v2417_v36 = vpop.f32.mrf.mxu3  ;;  %v3865_v18 = vld [vmem:[%s4104_s11 + $0x1ec] sm:$0xf0] }
  0xf6   : > { %v3127_v26 = vor.u32 %v3865_v18, %v3126_v17  ;;  %v3871_v17 = vld [vmem:[%s4104_s11 + $0x224] sm:$0xf]  ;;  %v3160_v18 = vld [vmem:[%s4104_s11 + $0x230] sm:$0xf0] }
  0xf7   : > { %2732 = vst.msk [vmem:[%s4248_s25 + $0x40] sm:$0xff] %vm2723_vm1, %v2635_v22  ;;  %v3134_v22 = vld [vmem:[%s4104_s11 + $0x1e8] sm:$0xf] }
  0xf8   : > { %v2160_v28 = vpop.f32.mrf.mxu2  ;;  %v1665_v32 = vpop.f32.mrf.mxu0 }
  0xf9   : > { %v2161_v31 = vadd.f32 %v2160_v28, %v1912_v27  ;;  %v1914_v33 = vpop.f32.mrf.mxu1  ;;  %v1666_v35 = vadd.f32 %v4235_v5, %v1665_v32  ;;  %v3131_v27 = vor.u32 %v3863_v20, %v3128_v21  ;;  %v3874_v20 = vld [vmem:[%s4104_s11 + $0x234] sm:$0xf0] }
  0xfb   : > { %v2410_v37 = vadd.f32 %v2409_v49, %v2161_v31  ;;  %1704 = vmatmul.bf16.gmra.mxu0 %v3095_v29  ;;  %v1915_v39 = vadd.f32 %v1914_v33, %v1666_v35  ;;  %v3135_v31 = vor.u32 %v3866_v23, %v3134_v22 }
  0xfc   : > { %1953 = vmatmul.bf16.gmra.mxu1 %v3099_v30 }
  0xfd   : > { %v2636_v38 = vmax.f32 %v2410_v37, 0.0  ;;  %2202 = vmatmul.bf16.gmra.mxu2 %v3103_v34  ;;  %v2419_v46 = vpop.f32.mrf.mxu3  ;;  %v3872_v37 = vld [vmem:[%s4104_s11 + $0x22c] sm:$0xf] }
  0xff   : > { %2733 = vst.msk [vmem:[%s4248_s25 + $0x48] sm:$0xff] %vm2723_vm1, %v2636_v38  ;;  %v3168_v38 = vld [vmem:[%s4104_s11 + $0x238] sm:$0xf0] }
 0x100   : > { %v2163_v42 = vpop.f32.mrf.mxu2  ;;  %v1667_v44 = vpop.f32.mrf.mxu0 }
 0x101   : > { %v2164_v43 = vadd.f32 %v2163_v42, %v1915_v39  ;;  %v1916_v45 = vpop.f32.mrf.mxu1  ;;  %v1668_v49 = vadd.f32 %v4235_v5, %v1667_v44  ;;  %v3171_v44 = vor.u32 %v3872_v37, %v3168_v38 }
 0x102   : > { %3767 = vmatmul.msk.bf16.gmra.mxu3 %vm1486_vm0, %v3139_v47  ;;  %v3142_v47 = vld [vmem:[%s4104_s11 + $0x200] sm:$0xf] }
 0x103   : > { %v2413_v48 = vadd.f32 %v2412_v6, %v2164_v43  ;;  %v1917_v57 = vadd.f32 %v1916_v45, %v1668_v49 }
 0x105   : > { %v2637_v52 = vmax.f32 %v2413_v48, 0.0  ;;  %v2422_v2 = vpop.f32.mrf.mxu3  ;;  %v3869_v48 = vld [vmem:[%s4104_s11 + $0x20c] sm:$0xf0] }
 0x106   : > { %v3143_v56 = vor.u32 %v3869_v48, %v3142_v47  ;;  %v3875_v47 = vld [vmem:[%s4104_s11 + $0x244] sm:$0xf]  ;;  %v3176_v48 = vld [vmem:[%s4104_s11 + $0x250] sm:$0xf0] }
 0x107   : > { %2734 = vst.msk [vmem:[%s4248_s25 + $0x50] sm:$0xff] %vm2723_vm1, %v2637_v52  ;;  %v3150_v52 = vld [vmem:[%s4104_s11 + $0x208] sm:$0xf] }
 0x108   : > { %v2165_v58 = vpop.f32.mrf.mxu2  ;;  %v1670_v62 = vpop.f32.mrf.mxu0 }
 0x109   : > { %v2166_v61 = vadd.f32 %v2165_v58, %v1917_v57  ;;  %v1919_v63 = vpop.f32.mrf.mxu1  ;;  %v1671_v1 = vadd.f32 %v4235_v5, %v1670_v62  ;;  %v3147_v57 = vor.u32 %v3867_v50, %v3144_v51  ;;  %v3878_v50 = vld [vmem:[%s4104_s11 + $0x254] sm:$0xf0] }
 0x10b   : > { %v2415_v3 = vadd.f32 %v2414_v16, %v2166_v61  ;;  %1709 = vmatmul.bf16.gmra.mxu0 %v3111_v59  ;;  %v1920_v6 = vadd.f32 %v1919_v63, %v1671_v1  ;;  %v3151_v61 = vor.u32 %v3870_v53, %v3150_v52 }
 0x10c   : > { %1958 = vmatmul.bf16.gmra.mxu1 %v3115_v60 }
 0x10d   : > { %v2638_v4 = vmax.f32 %v2415_v3, 0.0  ;;  %2207 = vmatmul.bf16.gmra.mxu2 %v3119_v0  ;;  %v2424_v13 = vpop.f32.mrf.mxu3  ;;  %v3876_v3 = vld [vmem:[%s4104_s11 + $0x24c] sm:$0xf] }
 0x10f   : > { %2735 = vst.msk [vmem:[%s4248_s25 + $0x58] sm:$0xff] %vm2723_vm1, %v2638_v4  ;;  %v3184_v4 = vld [vmem:[%s4104_s11 + $0x258] sm:$0xf0] }
 0x110   : > { %v2168_v9 = vpop.f32.mrf.mxu2  ;;  %v1672_v11 = vpop.f32.mrf.mxu0 }
 0x111   : > { %v2169_v10 = vadd.f32 %v2168_v9, %v1920_v6  ;;  %v1921_v12 = vpop.f32.mrf.mxu1  ;;  %v1673_v16 = vadd.f32 %v4235_v5, %v1672_v11  ;;  %v3187_v11 = vor.u32 %v3876_v3, %v3184_v4 }
 0x112   : > { %3768 = vmatmul.msk.bf16.gmra.mxu3 %vm1486_vm0, %v3155_v14  ;;  %v3158_v14 = vld [vmem:[%s4104_s11 + $0x220] sm:$0xf] }
 0x113   : > { %v2418_v15 = vadd.f32 %v2417_v36, %v2169_v10  ;;  %v1922_v24 = vadd.f32 %v1921_v12, %v1673_v16 }
 0x115   : > { %v2639_v19 = vmax.f32 %v2418_v15, 0.0  ;;  %v2427_v33 = vpop.f32.mrf.mxu3  ;;  %v3873_v15 = vld [vmem:[%s4104_s11 + $0x22c] sm:$0xf0] }
 0x116   : > { %v3159_v23 = vor.u32 %v3873_v15, %v3158_v14  ;;  %v3879_v14 = vld [vmem:[%s4104_s11 + $0x264] sm:$0xf]  ;;  %v3192_v15 = vld [vmem:[%s4104_s11 + $0x270] sm:$0xf0] }
 0x117   : > { %2736 = vst.msk [vmem:[%s4248_s25 + $0x60] sm:$0xff] %vm2723_vm1, %v2639_v19  ;;  %v3166_v19 = vld [vmem:[%s4104_s11 + $0x228] sm:$0xf] }
 0x118   : > { %v2170_v25 = vpop.f32.mrf.mxu2  ;;  %v1675_v29 = vpop.f32.mrf.mxu0 }
 0x119   : > { %v2171_v28 = vadd.f32 %v2170_v25, %v1922_v24  ;;  %v1924_v30 = vpop.f32.mrf.mxu1  ;;  %v1676_v32 = vadd.f32 %v4235_v5, %v1675_v29  ;;  %v3163_v24 = vor.u32 %v3871_v17, %v3160_v18  ;;  %v3882_v17 = vld [vmem:[%s4104_s11 + $0x274] sm:$0xf0] }
 0x11b   : > { %v2420_v34 = vadd.f32 %v2419_v46, %v2171_v28  ;;  %1714 = vmatmul.bf16.gmra.mxu0 %v3127_v26  ;;  %v1925_v36 = vadd.f32 %v1924_v30, %v1676_v32  ;;  %v3167_v28 = vor.u32 %v3874_v20, %v3166_v19 }
 0x11c   : > { %1963 = vmatmul.bf16.gmra.mxu1 %v3131_v27 }
 0x11d   : > { %v2640_v35 = vmax.f32 %v2420_v34, 0.0  ;;  %2212 = vmatmul.bf16.gmra.mxu2 %v3135_v31  ;;  %v2429_v43 = vpop.f32.mrf.mxu3  ;;  %v3880_v34 = vld [vmem:[%s4104_s11 + $0x26c] sm:$0xf] }
 0x11f   : > { %2737 = vst.msk [vmem:[%s4248_s25 + $0x68] sm:$0xff] %vm2723_vm1, %v2640_v35  ;;  %v3200_v35 = vld [vmem:[%s4104_s11 + $0x278] sm:$0xf0] }
 0x120   : > { %v2173_v39 = vpop.f32.mrf.mxu2  ;;  %v1677_v41 = vpop.f32.mrf.mxu0 }
 0x121   : > { %v2174_v40 = vadd.f32 %v2173_v39, %v1925_v36  ;;  %v1926_v42 = vpop.f32.mrf.mxu1  ;;  %v1678_v46 = vadd.f32 %v4235_v5, %v1677_v41  ;;  %v3203_v41 = vor.u32 %v3880_v34, %v3200_v35 }
 0x122   : > { %3769 = vmatmul.msk.bf16.gmra.mxu3 %vm1486_vm0, %v3171_v44  ;;  %v3174_v44 = vld [vmem:[%s4104_s11 + $0x240] sm:$0xf] }
 0x123   : > { %v2423_v45 = vadd.f32 %v2422_v2, %v2174_v40  ;;  %v1927_v54 = vadd.f32 %v1926_v42, %v1678_v46 }
 0x125   : > { %v2641_v49 = vmax.f32 %v2423_v45, 0.0  ;;  %v2432_v63 = vpop.f32.mrf.mxu3  ;;  %v3877_v45 = vld [vmem:[%s4104_s11 + $0x24c] sm:$0xf0] }
 0x126   : > { %v3175_v53 = vor.u32 %v3877_v45, %v3174_v44  ;;  %v3883_v44 = vld [vmem:[%s4104_s11 + $0x284] sm:$0xf]  ;;  %v3208_v45 = vld [vmem:[%s4104_s11 + $0x290] sm:$0xf0] }
 0x127   : > { %2738 = vst.msk [vmem:[%s4248_s25 + $0x70] sm:$0xff] %vm2723_vm1, %v2641_v49  ;;  %v3182_v49 = vld [vmem:[%s4104_s11 + $0x248] sm:$0xf] }
 0x128   : > { %v2175_v55 = vpop.f32.mrf.mxu2  ;;  %v1680_v59 = vpop.f32.mrf.mxu0 }
 0x129   : > { %v2176_v58 = vadd.f32 %v2175_v55, %v1927_v54  ;;  %v1929_v60 = vpop.f32.mrf.mxu1  ;;  %v1681_v62 = vadd.f32 %v4235_v5, %v1680_v59  ;;  %v3179_v54 = vor.u32 %v3875_v47, %v3176_v48  ;;  %v3886_v47 = vld [vmem:[%s4104_s11 + $0x294] sm:$0xf0] }
 0x12b   : > { %v2425_v0 = vadd.f32 %v2424_v13, %v2176_v58  ;;  %1719 = vmatmul.bf16.gmra.mxu0 %v3143_v56  ;;  %v1930_v2 = vadd.f32 %v1929_v60, %v1681_v62  ;;  %v3183_v58 = vor.u32 %v3878_v50, %v3182_v49 }
 0x12c   : > { %1968 = vmatmul.bf16.gmra.mxu1 %v3147_v57 }
 0x12d   : > { %v2642_v1 = vmax.f32 %v2425_v0, 0.0  ;;  %2217 = vmatmul.bf16.gmra.mxu2 %v3151_v61  ;;  %v2434_v10 = vpop.f32.mrf.mxu3  ;;  %v3884_v0 = vld [vmem:[%s4104_s11 + $0x28c] sm:$0xf] }
 0x12f   : > { %2739 = vst.msk [vmem:[%s4248_s25 + $0x78] sm:$0xff] %vm2723_vm1, %v2642_v1  ;;  %v3216_v1 = vld [vmem:[%s4104_s11 + $0x298] sm:$0xf0] }
 0x130   : > { %v2178_v6 = vpop.f32.mrf.mxu2  ;;  %v1682_v8 = vpop.f32.mrf.mxu0 }
 0x131   : > { %v2179_v7 = vadd.f32 %v2178_v6, %v1930_v2  ;;  %v1931_v9 = vpop.f32.mrf.mxu1  ;;  %v1683_v13 = vadd.f32 %v4235_v5, %v1682_v8  ;;  %v3219_v8 = vor.u32 %v3884_v0, %v3216_v1 }
 0x132   : > { %3770 = vmatmul.msk.bf16.gmra.mxu3 %vm1486_vm0, %v3187_v11  ;;  %v3190_v11 = vld [vmem:[%s4104_s11 + $0x260] sm:$0xf] }
 0x133   : > { %v2428_v12 = vadd.f32 %v2427_v33, %v2179_v7  ;;  %v1932_v21 = vadd.f32 %v1931_v9, %v1683_v13 }
 0x135   : > { %v2643_v16 = vmax.f32 %v2428_v12, 0.0  ;;  %v2437_v30 = vpop.f32.mrf.mxu3  ;;  %v3881_v12 = vld [vmem:[%s4104_s11 + $0x26c] sm:$0xf0] }
 0x136   : > { %v3191_v20 = vor.u32 %v3881_v12, %v3190_v11  ;;  %v3887_v11 = vld [vmem:[%s4104_s11 + $0x2a4] sm:$0xf]  ;;  %v3224_v12 = vld [vmem:[%s4104_s11 + $0x2b0] sm:$0xf0] }
 0x137   : > { %2740 = vst.msk [vmem:[%s4248_s25 + $0x80] sm:$0xff] %vm2723_vm1, %v2643_v16  ;;  %v3198_v16 = vld [vmem:[%s4104_s11 + $0x268] sm:$0xf] }
 0x138   : > { %v2180_v22 = vpop.f32.mrf.mxu2  ;;  %v1685_v26 = vpop.f32.mrf.mxu0 }
 0x139   : > { %v2181_v25 = vadd.f32 %v2180_v22, %v1932_v21  ;;  %v1934_v27 = vpop.f32.mrf.mxu1  ;;  %v1686_v29 = vadd.f32 %v4235_v5, %v1685_v26  ;;  %v3195_v21 = vor.u32 %v3879_v14, %v3192_v15  ;;  %v3890_v14 = vld [vmem:[%s4104_s11 + $0x2b4] sm:$0xf0] }
 0x13b   : > { %v2430_v31 = vadd.f32 %v2429_v43, %v2181_v25  ;;  %1724 = vmatmul.bf16.gmra.mxu0 %v3159_v23  ;;  %v1935_v33 = vadd.f32 %v1934_v27, %v1686_v29  ;;  %v3199_v25 = vor.u32 %v3882_v17, %v3198_v16 }
 0x13c   : > { %1973 = vmatmul.bf16.gmra.mxu1 %v3163_v24 }
 0x13d   : > { %v2644_v32 = vmax.f32 %v2430_v31, 0.0  ;;  %2222 = vmatmul.bf16.gmra.mxu2 %v3167_v28  ;;  %v2439_v40 = vpop.f32.mrf.mxu3  ;;  %v3888_v31 = vld [vmem:[%s4104_s11 + $0x2ac] sm:$0xf] }
 0x13f   : > { %2741 = vst.msk [vmem:[%s4248_s25 + $0x88] sm:$0xff] %vm2723_vm1, %v2644_v32  ;;  %v3232_v32 = vld [vmem:[%s4104_s11 + $0x2b8] sm:$0xf0] }
 0x140   : > { %v2183_v36 = vpop.f32.mrf.mxu2  ;;  %v1687_v38 = vpop.f32.mrf.mxu0 }
 0x141   : > { %v2184_v37 = vadd.f32 %v2183_v36, %v1935_v33  ;;  %v1936_v39 = vpop.f32.mrf.mxu1  ;;  %v1688_v43 = vadd.f32 %v4235_v5, %v1687_v38  ;;  %v3235_v38 = vor.u32 %v3888_v31, %v3232_v32 }
 0x142   : > { %3771 = vmatmul.msk.bf16.gmra.mxu3 %vm1486_vm0, %v3203_v41  ;;  %v3206_v41 = vld [vmem:[%s4104_s11 + $0x280] sm:$0xf] }
 0x143   : > { %v2433_v42 = vadd.f32 %v2432_v63, %v2184_v37  ;;  %v1937_v51 = vadd.f32 %v1936_v39, %v1688_v43 }
 0x145   : > { %v2645_v46 = vmax.f32 %v2433_v42, 0.0  ;;  %v2442_v60 = vpop.f32.mrf.mxu3  ;;  %v3885_v42 = vld [vmem:[%s4104_s11 + $0x28c] sm:$0xf0] }
 0x146   : > { %v3207_v50 = vor.u32 %v3885_v42, %v3206_v41  ;;  %v3891_v41 = vld [vmem:[%s4104_s11 + $0x2c4] sm:$0xf]  ;;  %v3240_v42 = vld [vmem:[%s4104_s11 + $0x2d0] sm:$0xf0] }
 0x147   : > { %2742 = vst.msk [vmem:[%s4248_s25 + $0x90] sm:$0xff] %vm2723_vm1, %v2645_v46  ;;  %v3214_v46 = vld [vmem:[%s4104_s11 + $0x288] sm:$0xf] }
 0x148   : > { %v2185_v52 = vpop.f32.mrf.mxu2  ;;  %v1690_v56 = vpop.f32.mrf.mxu0 }
 0x149   : > { %v2186_v55 = vadd.f32 %v2185_v52, %v1937_v51  ;;  %v1939_v57 = vpop.f32.mrf.mxu1  ;;  %v1691_v59 = vadd.f32 %v4235_v5, %v1690_v56  ;;  %v3211_v51 = vor.u32 %v3883_v44, %v3208_v45  ;;  %v3894_v44 = vld [vmem:[%s4104_s11 + $0x2d4] sm:$0xf0] }
 0x14b   : > { %v2435_v61 = vadd.f32 %v2434_v10, %v2186_v55  ;;  %1729 = vmatmul.bf16.gmra.mxu0 %v3175_v53  ;;  %v1940_v63 = vadd.f32 %v1939_v57, %v1691_v59  ;;  %v3215_v55 = vor.u32 %v3886_v47, %v3214_v46 }
 0x14c   : > { %1978 = vmatmul.bf16.gmra.mxu1 %v3179_v54 }
 0x14d   : > { %v2646_v62 = vmax.f32 %v2435_v61, 0.0  ;;  %2227 = vmatmul.bf16.gmra.mxu2 %v3183_v58  ;;  %v2444_v7 = vpop.f32.mrf.mxu3  ;;  %v3892_v61 = vld [vmem:[%s4104_s11 + $0x2cc] sm:$0xf] }
 0x14f   : > { %2743 = vst.msk [vmem:[%s4248_s25 + $0x98] sm:$0xff] %vm2723_vm1, %v2646_v62  ;;  %v3248_v62 = vld [vmem:[%s4104_s11 + $0x2d8] sm:$0xf0] }
 0x150   : > { %v2188_v2 = vpop.f32.mrf.mxu2  ;;  %v1692_v4 = vpop.f32.mrf.mxu0 }
 0x151   : > { %v2189_v3 = vadd.f32 %v2188_v2, %v1940_v63  ;;  %v1941_v6 = vpop.f32.mrf.mxu1  ;;  %v1693_v10 = vadd.f32 %v4235_v5, %v1692_v4  ;;  %v3251_v4 = vor.u32 %v3892_v61, %v3248_v62 }
 0x152   : > { %3772 = vmatmul.msk.bf16.gmra.mxu3 %vm1486_vm0, %v3219_v8  ;;  %v3222_v8 = vld [vmem:[%s4104_s11 + $0x2a0] sm:$0xf] }
 0x153   : > { %v2438_v9 = vadd.f32 %v2437_v30, %v2189_v3  ;;  %v1942_v18 = vadd.f32 %v1941_v6, %v1693_v10 }
 0x155   : > { %v2647_v13 = vmax.f32 %v2438_v9, 0.0  ;;  %v2447_v27 = vpop.f32.mrf.mxu3  ;;  %v3889_v9 = vld [vmem:[%s4104_s11 + $0x2ac] sm:$0xf0] }
 0x156   : > { %v3223_v17 = vor.u32 %v3889_v9, %v3222_v8  ;;  %v3895_v8 = vld [vmem:[%s4104_s11 + $0x2e4] sm:$0xf]  ;;  %v3256_v9 = vld [vmem:[%s4104_s11 + $0x2f0] sm:$0xf0] }
 0x157   : > { %2744 = vst.msk [vmem:[%s4248_s25 + $0xa0] sm:$0xff] %vm2723_vm1, %v2647_v13  ;;  %v3230_v13 = vld [vmem:[%s4104_s11 + $0x2a8] sm:$0xf] }
 0x158   : > { %v2190_v19 = vpop.f32.mrf.mxu2  ;;  %v1695_v23 = vpop.f32.mrf.mxu0 }
 0x159   : > { %v2191_v22 = vadd.f32 %v2190_v19, %v1942_v18  ;;  %v1944_v24 = vpop.f32.mrf.mxu1  ;;  %v1696_v26 = vadd.f32 %v4235_v5, %v1695_v23  ;;  %v3227_v18 = vor.u32 %v3887_v11, %v3224_v12  ;;  %v3898_v11 = vld [vmem:[%s4104_s11 + $0x2f4] sm:$0xf0] }
 0x15b   : > { %v2440_v28 = vadd.f32 %v2439_v40, %v2191_v22  ;;  %1734 = vmatmul.bf16.gmra.mxu0 %v3191_v20  ;;  %v1945_v30 = vadd.f32 %v1944_v24, %v1696_v26  ;;  %v3231_v22 = vor.u32 %v3890_v14, %v3230_v13 }
 0x15c   : > { %1983 = vmatmul.bf16.gmra.mxu1 %v3195_v21 }
 0x15d   : > { %v2648_v29 = vmax.f32 %v2440_v28, 0.0  ;;  %2232 = vmatmul.bf16.gmra.mxu2 %v3199_v25  ;;  %v2449_v37 = vpop.f32.mrf.mxu3  ;;  %v3896_v28 = vld [vmem:[%s4104_s11 + $0x2ec] sm:$0xf] }
 0x15f   : > { %2745 = vst.msk [vmem:[%s4248_s25 + $0xa8] sm:$0xff] %vm2723_vm1, %v2648_v29  ;;  %v3264_v29 = vld [vmem:[%s4104_s11 + $0x2f8] sm:$0xf0] }
 0x160   : > { %v2193_v33 = vpop.f32.mrf.mxu2  ;;  %v1697_v35 = vpop.f32.mrf.mxu0 }
 0x161   : > { %v2194_v34 = vadd.f32 %v2193_v33, %v1945_v30  ;;  %v1946_v36 = vpop.f32.mrf.mxu1  ;;  %v1698_v40 = vadd.f32 %v4235_v5, %v1697_v35  ;;  %v3267_v35 = vor.u32 %v3896_v28, %v3264_v29 }
 0x162   : > { %3773 = vmatmul.msk.bf16.gmra.mxu3 %vm1486_vm0, %v3235_v38  ;;  %v3238_v38 = vld [vmem:[%s4104_s11 + $0x2c0] sm:$0xf] }
 0x163   : > { %v2443_v39 = vadd.f32 %v2442_v60, %v2194_v34  ;;  %v1947_v48 = vadd.f32 %v1946_v36, %v1698_v40 }
 0x165   : > { %v2649_v43 = vmax.f32 %v2443_v39, 0.0  ;;  %v2452_v57 = vpop.f32.mrf.mxu3  ;;  %v3893_v39 = vld [vmem:[%s4104_s11 + $0x2cc] sm:$0xf0] }
 0x166   : > { %v3239_v47 = vor.u32 %v3893_v39, %v3238_v38  ;;  %v3899_v38 = vld [vmem:[%s4104_s11 + $0x304] sm:$0xf]  ;;  %v3272_v39 = vld [vmem:[%s4104_s11 + $0x310] sm:$0xf0] }
 0x167   : > { %2746 = vst.msk [vmem:[%s4248_s25 + $0xb0] sm:$0xff] %vm2723_vm1, %v2649_v43  ;;  %v3246_v43 = vld [vmem:[%s4104_s11 + $0x2c8] sm:$0xf] }
 0x168   : > { %v2195_v49 = vpop.f32.mrf.mxu2  ;;  %v1700_v53 = vpop.f32.mrf.mxu0 }
 0x169   : > { %v2196_v52 = vadd.f32 %v2195_v49, %v1947_v48  ;;  %v1949_v54 = vpop.f32.mrf.mxu1  ;;  %v1701_v56 = vadd.f32 %v4235_v5, %v1700_v53  ;;  %v3243_v48 = vor.u32 %v3891_v41, %v3240_v42  ;;  %v3902_v41 = vld [vmem:[%s4104_s11 + $0x314] sm:$0xf0] }
 0x16b   : > { %v2445_v58 = vadd.f32 %v2444_v7, %v2196_v52  ;;  %1739 = vmatmul.bf16.gmra.mxu0 %v3207_v50  ;;  %v1950_v60 = vadd.f32 %v1949_v54, %v1701_v56  ;;  %v4457_v52 = vld [vmem:[%s4896_s2] ss:$0 sm:$0xff] }
 0x16c   : > { %1988 = vmatmul.bf16.gmra.mxu1 %v3211_v51  ;;  %v3247_v51 = vor.u32 %v3894_v44, %v3246_v43 }
 0x16d   : > { %v2650_v59 = vmax.f32 %v2445_v58, 0.0  ;;  %2237 = vmatmul.bf16.gmra.mxu2 %v3215_v55  ;;  %v2454_v3 = vpop.f32.mrf.mxu3  ;;  %v3900_v58 = vld [vmem:[%s4104_s11 + $0x30c] sm:$0xf] }
 0x16f   : > { %2747 = vst.msk [vmem:[%s4248_s25 + $0xb8] sm:$0xff] %vm2723_vm1, %v2650_v59  ;;  %v3280_v59 = vld [vmem:[%s4104_s11 + $0x318] sm:$0xf0] }
 0x170   : > { %v2198_v63 = vpop.f32.mrf.mxu2  ;;  %v1702_v1 = vpop.f32.mrf.mxu0 }
 0x171   : > { %v2199_v0 = vadd.f32 %v2198_v63, %v1950_v60  ;;  %v1951_v2 = vpop.f32.mrf.mxu1  ;;  %v1703_v7 = vadd.f32 %v4235_v5, %v1702_v1  ;;  %v3283_v1 = vor.u32 %v3900_v58, %v3280_v59 }
 0x172   : > { %3774 = vmatmul.msk.bf16.gmra.mxu3 %vm1486_vm0, %v3251_v4  ;;  %v3254_v4 = vld [vmem:[%s4104_s11 + $0x2e0] sm:$0xf] }
 0x173   : > { %v2448_v6 = vadd.f32 %v2447_v27, %v2199_v0  ;;  %v1952_v15 = vadd.f32 %v1951_v2, %v1703_v7 }
 0x175   : > { %v2651_v10 = vmax.f32 %v2448_v6, 0.0  ;;  %v2457_v24 = vpop.f32.mrf.mxu3  ;;  %v3897_v6 = vld [vmem:[%s4104_s11 + $0x2ec] sm:$0xf0] }
 0x176   : > { %v3255_v14 = vor.u32 %v3897_v6, %v3254_v4  ;;  %v3903_v4 = vld [vmem:[%s4104_s11 + $0x324] sm:$0xf]  ;;  %v3288_v6 = vld [vmem:[%s4104_s11 + $0x330] sm:$0xf0] }
 0x177   : > { %2748 = vst.msk [vmem:[%s4248_s25 + $0xc0] sm:$0xff] %vm2723_vm1, %v2651_v10  ;;  %v3262_v10 = vld [vmem:[%s4104_s11 + $0x2e8] sm:$0xf] }
 0x178   : > { %v2200_v16 = vpop.f32.mrf.mxu2  ;;  %v1705_v20 = vpop.f32.mrf.mxu0 }
 0x179   : > { %v2201_v19 = vadd.f32 %v2200_v16, %v1952_v15  ;;  %v1954_v21 = vpop.f32.mrf.mxu1  ;;  %v1706_v23 = vadd.f32 %v4235_v5, %v1705_v20  ;;  %v3259_v15 = vor.u32 %v3895_v8, %v3256_v9  ;;  %v3906_v8 = vld [vmem:[%s4104_s11 + $0x334] sm:$0xf0] }
 0x17b   : > { %v2450_v25 = vadd.f32 %v2449_v37, %v2201_v19  ;;  %1744 = vmatmul.bf16.gmra.mxu0 %v3223_v17  ;;  %v1955_v27 = vadd.f32 %v1954_v21, %v1706_v23  ;;  %v3263_v19 = vor.u32 %v3898_v11, %v3262_v10 }
 0x17c   : > { %1993 = vmatmul.bf16.gmra.mxu1 %v3227_v18 }
 0x17d   : > { %v2652_v26 = vmax.f32 %v2450_v25, 0.0  ;;  %2242 = vmatmul.bf16.gmra.mxu2 %v3231_v22  ;;  %v2459_v34 = vpop.f32.mrf.mxu3  ;;  %v3904_v25 = vld [vmem:[%s4104_s11 + $0x32c] sm:$0xf] }
 0x17f   : > { %2749 = vst.msk [vmem:[%s4248_s25 + $0xc8] sm:$0xff] %vm2723_vm1, %v2652_v26  ;;  %v3296_v26 = vld [vmem:[%s4104_s11 + $0x338] sm:$0xf0] }
 0x180   : > { %v2203_v30 = vpop.f32.mrf.mxu2  ;;  %v1707_v32 = vpop.f32.mrf.mxu0 }
 0x181   : > { %v2204_v31 = vadd.f32 %v2203_v30, %v1955_v27  ;;  %v1956_v33 = vpop.f32.mrf.mxu1  ;;  %v1708_v37 = vadd.f32 %v4235_v5, %v1707_v32  ;;  %v3299_v32 = vor.u32 %v3904_v25, %v3296_v26 }
 0x182   : > { %3775 = vmatmul.msk.bf16.gmra.mxu3 %vm1486_vm0, %v3267_v35  ;;  %v3270_v35 = vld [vmem:[%s4104_s11 + $0x300] sm:$0xf] }
 0x183   : > { %v2453_v36 = vadd.f32 %v2452_v57, %v2204_v31  ;;  %v1957_v45 = vadd.f32 %v1956_v33, %v1708_v37 }
 0x185   : > { %v2653_v40 = vmax.f32 %v2453_v36, 0.0  ;;  %v2462_v54 = vpop.f32.mrf.mxu3  ;;  %v3901_v36 = vld [vmem:[%s4104_s11 + $0x30c] sm:$0xf0] }
 0x186   : > { %v3271_v44 = vor.u32 %v3901_v36, %v3270_v35  ;;  %v3907_v35 = vld [vmem:[%s4104_s11 + $0x344] sm:$0xf]  ;;  %v3304_v36 = vld [vmem:[%s4104_s11 + $0x350] sm:$0xf0] }
 0x187   : > { %2750 = vst.msk [vmem:[%s4248_s25 + $0xd0] sm:$0xff] %vm2723_vm1, %v2653_v40  ;;  %v3278_v40 = vld [vmem:[%s4104_s11 + $0x308] sm:$0xf] }
 0x188   : > { %v2205_v46 = vpop.f32.mrf.mxu2  ;;  %v1710_v5 = vpop.f32.mrf.mxu0 }
 0x189   : > { %v2206_v49 = vadd.f32 %v2205_v46, %v1957_v45  ;;  %v1959_v50 = vpop.f32.mrf.mxu1  ;;  %v1711_v53 = vadd.f32 %v4457_v52, %v1710_v5  ;;  %v3275_v45 = vor.u32 %v3899_v38, %v3272_v39  ;;  %v3910_v38 = vld [vmem:[%s4104_s11 + $0x354] sm:$0xf0] }
 0x18b   : > { %v2455_v55 = vadd.f32 %v2454_v3, %v2206_v49  ;;  %1749 = vmatmul.bf16.gmra.mxu0 %v3239_v47  ;;  %v1960_v57 = vadd.f32 %v1959_v50, %v1711_v53  ;;  %v3279_v49 = vor.u32 %v3902_v41, %v3278_v40 }
 0x18c   : > { %1998 = vmatmul.bf16.gmra.mxu1 %v3243_v48 }
 0x18d   : > { %v2654_v56 = vmax.f32 %v2455_v55, 0.0  ;;  %2247 = vmatmul.bf16.gmra.mxu2 %v3247_v51  ;;  %v2464_v0 = vpop.f32.mrf.mxu3  ;;  %v3908_v55 = vld [vmem:[%s4104_s11 + $0x34c] sm:$0xf] }
 0x18f   : > { %2751 = vst.msk [vmem:[%s4248_s25 + $0xd8] sm:$0xff] %vm2723_vm1, %v2654_v56  ;;  %v3312_v56 = vld [vmem:[%s4104_s11 + $0x358] sm:$0xf0] }
 0x190   : > { %v2208_v60 = vpop.f32.mrf.mxu2  ;;  %v1712_v62 = vpop.f32.mrf.mxu0 }
 0x191   : > { %v2209_v61 = vadd.f32 %v2208_v60, %v1960_v57  ;;  %v1961_v63 = vpop.f32.mrf.mxu1  ;;  %v1713_v3 = vadd.f32 %v4457_v52, %v1712_v62  ;;  %v3315_v62 = vor.u32 %v3908_v55, %v3312_v56 }
 0x192   : > { %3776 = vmatmul.msk.bf16.gmra.mxu3 %vm1486_vm0, %v3283_v1  ;;  %v3286_v1 = vld [vmem:[%s4104_s11 + $0x320] sm:$0xf] }
 0x193   : > { %v2458_v2 = vadd.f32 %v2457_v24, %v2209_v61  ;;  %v1962_v12 = vadd.f32 %v1961_v63, %v1713_v3 }
 0x195   : > { %v2655_v7 = vmax.f32 %v2458_v2, 0.0  ;;  %v2467_v21 = vpop.f32.mrf.mxu3  ;;  %v3905_v2 = vld [vmem:[%s4104_s11 + $0x32c] sm:$0xf0] }
 0x196   : > { %v3287_v11 = vor.u32 %v3905_v2, %v3286_v1  ;;  %v3911_v1 = vld [vmem:[%s4104_s11 + $0x364] sm:$0xf]  ;;  %v3320_v2 = vld [vmem:[%s4104_s11 + $0x370] sm:$0xf0] }
 0x197   : > { %2752 = vst.msk [vmem:[%s4248_s25 + $0xe0] sm:$0xff] %vm2723_vm1, %v2655_v7  ;;  %v3294_v7 = vld [vmem:[%s4104_s11 + $0x328] sm:$0xf] }
 0x198   : > { %v2210_v13 = vpop.f32.mrf.mxu2  ;;  %v1715_v17 = vpop.f32.mrf.mxu0 }
 0x199   : > { %v2211_v16 = vadd.f32 %v2210_v13, %v1962_v12  ;;  %v1964_v18 = vpop.f32.mrf.mxu1  ;;  %v1716_v20 = vadd.f32 %v4457_v52, %v1715_v17  ;;  %v3291_v12 = vor.u32 %v3903_v4, %v3288_v6  ;;  %v3914_v4 = vld [vmem:[%s4104_s11 + $0x374] sm:$0xf0] }
 0x19b   : > { %v2460_v22 = vadd.f32 %v2459_v34, %v2211_v16  ;;  %1754 = vmatmul.bf16.gmra.mxu0 %v3255_v14  ;;  %v1965_v24 = vadd.f32 %v1964_v18, %v1716_v20  ;;  %v3295_v16 = vor.u32 %v3906_v8, %v3294_v7 }
 0x19c   : > { %2003 = vmatmul.bf16.gmra.mxu1 %v3259_v15 }
 0x19d   : > { %v2656_v23 = vmax.f32 %v2460_v22, 0.0  ;;  %2252 = vmatmul.bf16.gmra.mxu2 %v3263_v19  ;;  %v2469_v31 = vpop.f32.mrf.mxu3  ;;  %v3912_v22 = vld [vmem:[%s4104_s11 + $0x36c] sm:$0xf] }
 0x19f   : > { %2753 = vst.msk [vmem:[%s4248_s25 + $0xe8] sm:$0xff] %vm2723_vm1, %v2656_v23  ;;  %v3328_v23 = vld [vmem:[%s4104_s11 + $0x378] sm:$0xf0] }
 0x1a0   : > { %v2213_v27 = vpop.f32.mrf.mxu2  ;;  %v1717_v29 = vpop.f32.mrf.mxu0 }
 0x1a1   : > { %v2214_v28 = vadd.f32 %v2213_v27, %v1965_v24  ;;  %v1966_v30 = vpop.f32.mrf.mxu1  ;;  %v1718_v34 = vadd.f32 %v4457_v52, %v1717_v29  ;;  %v3331_v29 = vor.u32 %v3912_v22, %v3328_v23 }
 0x1a2   : > { %3777 = vmatmul.msk.bf16.gmra.mxu3 %vm1486_vm0, %v3299_v32  ;;  %v3302_v32 = vld [vmem:[%s4104_s11 + $0x340] sm:$0xf] }
 0x1a3   : > { %v2463_v33 = vadd.f32 %v2462_v54, %v2214_v28  ;;  %v1967_v42 = vadd.f32 %v1966_v30, %v1718_v34 }
 0x1a5   : > { %v2657_v37 = vmax.f32 %v2463_v33, 0.0  ;;  %v2472_v50 = vpop.f32.mrf.mxu3  ;;  %v3909_v33 = vld [vmem:[%s4104_s11 + $0x34c] sm:$0xf0] }
 0x1a6   : > { %v3303_v41 = vor.u32 %v3909_v33, %v3302_v32  ;;  %v3915_v32 = vld [vmem:[%s4104_s11 + $0x384] sm:$0xf]  ;;  %v3336_v33 = vld [vmem:[%s4104_s11 + $0x390] sm:$0xf0] }
 0x1a7   : > { %2754 = vst.msk [vmem:[%s4248_s25 + $0xf0] sm:$0xff] %vm2723_vm1, %v2657_v37  ;;  %v3310_v37 = vld [vmem:[%s4104_s11 + $0x348] sm:$0xf] }
 0x1a8   : > { %v2215_v43 = vpop.f32.mrf.mxu2  ;;  %v1720_v47 = vpop.f32.mrf.mxu0 }
 0x1a9   : > { %v2216_v46 = vadd.f32 %v2215_v43, %v1967_v42  ;;  %v1969_v48 = vpop.f32.mrf.mxu1  ;;  %v1721_v5 = vadd.f32 %v4457_v52, %v1720_v47  ;;  %v3307_v42 = vor.u32 %v3907_v35, %v3304_v36  ;;  %v3918_v35 = vld [vmem:[%s4104_s11 + $0x394] sm:$0xf0] }
 0x1ab   : > { %v2465_v51 = vadd.f32 %v2464_v0, %v2216_v46  ;;  %1759 = vmatmul.bf16.gmra.mxu0 %v3271_v44  ;;  %v1970_v54 = vadd.f32 %v1969_v48, %v1721_v5  ;;  %v3311_v46 = vor.u32 %v3910_v38, %v3310_v37 }
 0x1ac   : > { %2008 = vmatmul.bf16.gmra.mxu1 %v3275_v45 }
 0x1ad   : > { %v2658_v53 = vmax.f32 %v2465_v51, 0.0  ;;  %2257 = vmatmul.bf16.gmra.mxu2 %v3279_v49  ;;  %v2474_v61 = vpop.f32.mrf.mxu3  ;;  %v3916_v51 = vld [vmem:[%s4104_s11 + $0x38c] sm:$0xf] }
 0x1af   : > { %2755 = vst.msk [vmem:[%s4248_s25 + $0xf8] sm:$0xff] %vm2723_vm1, %v2658_v53  ;;  %v3344_v53 = vld [vmem:[%s4104_s11 + $0x398] sm:$0xf0] }
 0x1b0   : > { %v2218_v57 = vpop.f32.mrf.mxu2  ;;  %v1722_v59 = vpop.f32.mrf.mxu0 }
 0x1b1   : > { %v2219_v58 = vadd.f32 %v2218_v57, %v1970_v54  ;;  %v1971_v60 = vpop.f32.mrf.mxu1  ;;  %v1723_v0 = vadd.f32 %v4457_v52, %v1722_v59  ;;  %v3347_v59 = vor.u32 %v3916_v51, %v3344_v53 }
 0x1b2   : > { %3778 = vmatmul.msk.bf16.gmra.mxu3 %vm1486_vm0, %v3315_v62  ;;  %v3318_v62 = vld [vmem:[%s4104_s11 + $0x360] sm:$0xf] }
 0x1b3   : > { %v2468_v63 = vadd.f32 %v2467_v21, %v2219_v58  ;;  %v1972_v9 = vadd.f32 %v1971_v60, %v1723_v0 }
 0x1b5   : > { %v2659_v3 = vmax.f32 %v2468_v63, 0.0  ;;  %v2477_v18 = vpop.f32.mrf.mxu3  ;;  %v3913_v63 = vld [vmem:[%s4104_s11 + $0x36c] sm:$0xf0] }
 0x1b6   : > { %v3319_v8 = vor.u32 %v3913_v63, %v3318_v62  ;;  %v3919_v62 = vld [vmem:[%s4104_s11 + $0x3a4] sm:$0xf]  ;;  %v3352_v63 = vld [vmem:[%s4104_s11 + $0x3b0] sm:$0xf0] }
 0x1b7   : > { %2756 = vst.msk [vmem:[%s4248_s25 + $0x100] sm:$0xff] %vm2723_vm1, %v2659_v3  ;;  %v3326_v3 = vld [vmem:[%s4104_s11 + $0x368] sm:$0xf] }
 0x1b8   : > { %v2220_v10 = vpop.f32.mrf.mxu2  ;;  %v1725_v14 = vpop.f32.mrf.mxu0 }
 0x1b9   : > { %v2221_v13 = vadd.f32 %v2220_v10, %v1972_v9  ;;  %v1974_v15 = vpop.f32.mrf.mxu1  ;;  %v1726_v17 = vadd.f32 %v4457_v52, %v1725_v14  ;;  %v3323_v9 = vor.u32 %v3911_v1, %v3320_v2  ;;  %v3922_v1 = vld [vmem:[%s4104_s11 + $0x3b4] sm:$0xf0] }
 0x1bb   : > { %v2470_v19 = vadd.f32 %v2469_v31, %v2221_v13  ;;  %1764 = vmatmul.bf16.gmra.mxu0 %v3287_v11  ;;  %v1975_v21 = vadd.f32 %v1974_v15, %v1726_v17  ;;  %v3327_v13 = vor.u32 %v3914_v4, %v3326_v3 }
 0x1bc   : > { %2013 = vmatmul.bf16.gmra.mxu1 %v3291_v12 }
 0x1bd   : > { %v2660_v20 = vmax.f32 %v2470_v19, 0.0  ;;  %2262 = vmatmul.bf16.gmra.mxu2 %v3295_v16  ;;  %v2479_v28 = vpop.f32.mrf.mxu3  ;;  %v3920_v19 = vld [vmem:[%s4104_s11 + $0x3ac] sm:$0xf] }
 0x1bf   : > { %2757 = vst.msk [vmem:[%s4248_s25 + $0x108] sm:$0xff] %vm2723_vm1, %v2660_v20  ;;  %v3360_v20 = vld [vmem:[%s4104_s11 + $0x3b8] sm:$0xf0] }
 0x1c0   : > { %v2223_v24 = vpop.f32.mrf.mxu2  ;;  %v1727_v26 = vpop.f32.mrf.mxu0 }
 0x1c1   : > { %v2224_v25 = vadd.f32 %v2223_v24, %v1975_v21  ;;  %v1976_v27 = vpop.f32.mrf.mxu1  ;;  %v1728_v31 = vadd.f32 %v4457_v52, %v1727_v26  ;;  %v3363_v26 = vor.u32 %v3920_v19, %v3360_v20 }
 0x1c2   : > { %3779 = vmatmul.msk.bf16.gmra.mxu3 %vm1486_vm0, %v3331_v29  ;;  %v3334_v29 = vld [vmem:[%s4104_s11 + $0x380] sm:$0xf] }
 0x1c3   : > { %v2473_v30 = vadd.f32 %v2472_v50, %v2224_v25  ;;  %v1977_v39 = vadd.f32 %v1976_v27, %v1728_v31 }
 0x1c5   : > { %v2661_v34 = vmax.f32 %v2473_v30, 0.0  ;;  %v2482_v48 = vpop.f32.mrf.mxu3  ;;  %v3917_v30 = vld [vmem:[%s4104_s11 + $0x38c] sm:$0xf0] }
 0x1c6   : > { %v3335_v38 = vor.u32 %v3917_v30, %v3334_v29  ;;  %v3923_v29 = vld [vmem:[%s4104_s11 + $0x3c4] sm:$0xf]  ;;  %v3368_v30 = vld [vmem:[%s4104_s11 + $0x3d0] sm:$0xf0] }
 0x1c7   : > { %2758 = vst.msk [vmem:[%s4248_s25 + $0x110] sm:$0xff] %vm2723_vm1, %v2661_v34  ;;  %v3342_v34 = vld [vmem:[%s4104_s11 + $0x388] sm:$0xf] }
 0x1c8   : > { %v2225_v40 = vpop.f32.mrf.mxu2  ;;  %v1730_v44 = vpop.f32.mrf.mxu0 }
 0x1c9   : > { %v2226_v43 = vadd.f32 %v2225_v40, %v1977_v39  ;;  %v1979_v45 = vpop.f32.mrf.mxu1  ;;  %v1731_v47 = vadd.f32 %v4457_v52, %v1730_v44  ;;  %v3339_v39 = vor.u32 %v3915_v32, %v3336_v33  ;;  %v3926_v32 = vld [vmem:[%s4104_s11 + $0x3d4] sm:$0xf0] }
 0x1cb   : > { %v2475_v49 = vadd.f32 %v2474_v61, %v2226_v43  ;;  %1769 = vmatmul.bf16.gmra.mxu0 %v3303_v41  ;;  %v1980_v50 = vadd.f32 %v1979_v45, %v1731_v47  ;;  %v3343_v43 = vor.u32 %v3918_v35, %v3342_v34 }
 0x1cc   : > { %2018 = vmatmul.bf16.gmra.mxu1 %v3307_v42 }
 0x1cd   : > { %v2662_v5 = vmax.f32 %v2475_v49, 0.0  ;;  %2267 = vmatmul.bf16.gmra.mxu2 %v3311_v46  ;;  %v2484_v58 = vpop.f32.mrf.mxu3  ;;  %v3924_v49 = vld [vmem:[%s4104_s11 + $0x3cc] sm:$0xf] }
 0x1cf   : > { %2759 = vst.msk [vmem:[%s4248_s25 + $0x118] sm:$0xff] %vm2723_vm1, %v2662_v5  ;;  %v3376_v5 = vld [vmem:[%s4104_s11 + $0x3d8] sm:$0xf0] }
 0x1d0   : > { %v2228_v54 = vpop.f32.mrf.mxu2  ;;  %v1732_v56 = vpop.f32.mrf.mxu0 }
 0x1d1   : > { %v2229_v55 = vadd.f32 %v2228_v54, %v1980_v50  ;;  %v1981_v57 = vpop.f32.mrf.mxu1  ;;  %v1733_v61 = vadd.f32 %v4457_v52, %v1732_v56  ;;  %v3379_v56 = vor.u32 %v3924_v49, %v3376_v5 }
 0x1d2   : > { %3780 = vmatmul.msk.bf16.gmra.mxu3 %vm1486_vm0, %v3347_v59  ;;  %v3350_v59 = vld [vmem:[%s4104_s11 + $0x3a0] sm:$0xf] }
 0x1d3   : > { %v2478_v60 = vadd.f32 %v2477_v18, %v2229_v55  ;;  %v1982_v6 = vadd.f32 %v1981_v57, %v1733_v61 }
 0x1d5   : > { %v2663_v0 = vmax.f32 %v2478_v60, 0.0  ;;  %v2487_v15 = vpop.f32.mrf.mxu3  ;;  %v3921_v60 = vld [vmem:[%s4104_s11 + $0x3ac] sm:$0xf0] }
 0x1d6   : > { %v3351_v4 = vor.u32 %v3921_v60, %v3350_v59  ;;  %v3927_v59 = vld [vmem:[%s4104_s11 + $0x3e4] sm:$0xf]  ;;  %v3384_v60 = vld [vmem:[%s4104_s11 + $0x3f0] sm:$0xf0] }
 0x1d7   : > { %2760 = vst.msk [vmem:[%s4248_s25 + $0x120] sm:$0xff] %vm2723_vm1, %v2663_v0  ;;  %v3358_v0 = vld [vmem:[%s4104_s11 + $0x3a8] sm:$0xf] }
 0x1d8   : > { %v2230_v7 = vpop.f32.mrf.mxu2  ;;  %v1735_v11 = vpop.f32.mrf.mxu0 }
 0x1d9   : > { %v2231_v10 = vadd.f32 %v2230_v7, %v1982_v6  ;;  %v1984_v12 = vpop.f32.mrf.mxu1  ;;  %v1736_v14 = vadd.f32 %v4457_v52, %v1735_v11  ;;  %v3355_v6 = vor.u32 %v3919_v62, %v3352_v63  ;;  %v3930_v62 = vld [vmem:[%s4104_s11 + $0x3f4] sm:$0xf0] }
 0x1db   : > { %v2480_v16 = vadd.f32 %v2479_v28, %v2231_v10  ;;  %1774 = vmatmul.bf16.gmra.mxu0 %v3319_v8  ;;  %v1985_v18 = vadd.f32 %v1984_v12, %v1736_v14  ;;  %v3359_v10 = vor.u32 %v3922_v1, %v3358_v0 }
 0x1dc   : > { %2023 = vmatmul.bf16.gmra.mxu1 %v3323_v9 }
 0x1dd   : > { %v2664_v17 = vmax.f32 %v2480_v16, 0.0  ;;  %2272 = vmatmul.bf16.gmra.mxu2 %v3327_v13  ;;  %v2489_v25 = vpop.f32.mrf.mxu3  ;;  %v3928_v16 = vld [vmem:[%s4104_s11 + $0x3ec] sm:$0xf] }
 0x1df   : > { %2761 = vst.msk [vmem:[%s4248_s25 + $0x128] sm:$0xff] %vm2723_vm1, %v2664_v17  ;;  %v3392_v17 = vld [vmem:[%s4104_s11 + $0x3f8] sm:$0xf0] }
 0x1e0   : > { %v2233_v21 = vpop.f32.mrf.mxu2  ;;  %v1737_v23 = vpop.f32.mrf.mxu0 }
 0x1e1   : > { %v2234_v22 = vadd.f32 %v2233_v21, %v1985_v18  ;;  %v1986_v24 = vpop.f32.mrf.mxu1  ;;  %v1738_v28 = vadd.f32 %v4457_v52, %v1737_v23  ;;  %v3395_v23 = vor.u32 %v3928_v16, %v3392_v17 }
 0x1e2   : > { %3781 = vmatmul.msk.bf16.gmra.mxu3 %vm1486_vm0, %v3363_v26  ;;  %v3366_v26 = vld [vmem:[%s4104_s11 + $0x3c0] sm:$0xf] }
 0x1e3   : > { %v2483_v27 = vadd.f32 %v2482_v48, %v2234_v22  ;;  %v1987_v36 = vadd.f32 %v1986_v24, %v1738_v28 }
 0x1e5   : > { %v2665_v31 = vmax.f32 %v2483_v27, 0.0  ;;  %v2492_v45 = vpop.f32.mrf.mxu3  ;;  %v3925_v27 = vld [vmem:[%s4104_s11 + $0x3cc] sm:$0xf0] }
 0x1e6   : > { %v3367_v35 = vor.u32 %v3925_v27, %v3366_v26  ;;  %v3931_v26 = vld [vmem:[%s4104_s11 + $0x404] sm:$0xf]  ;;  %v3400_v27 = vld [vmem:[%s4104_s11 + $0x410] sm:$0xf0] }
 0x1e7   : > { %2762 = vst.msk [vmem:[%s4248_s25 + $0x130] sm:$0xff] %vm2723_vm1, %v2665_v31  ;;  %v3374_v31 = vld [vmem:[%s4104_s11 + $0x3c8] sm:$0xf] }
 0x1e8   : > { %v2235_v37 = vpop.f32.mrf.mxu2  ;;  %v1740_v41 = vpop.f32.mrf.mxu0 }
 0x1e9   : > { %v2236_v40 = vadd.f32 %v2235_v37, %v1987_v36  ;;  %v1989_v42 = vpop.f32.mrf.mxu1  ;;  %v1741_v44 = vadd.f32 %v4457_v52, %v1740_v41  ;;  %v3371_v36 = vor.u32 %v3923_v29, %v3368_v30  ;;  %v3934_v29 = vld [vmem:[%s4104_s11 + $0x414] sm:$0xf0] }
 0x1eb   : > { %v2485_v46 = vadd.f32 %v2484_v58, %v2236_v40  ;;  %1779 = vmatmul.bf16.gmra.mxu0 %v3335_v38  ;;  %v1990_v48 = vadd.f32 %v1989_v42, %v1741_v44  ;;  %v3375_v40 = vor.u32 %v3926_v32, %v3374_v31 }
 0x1ec   : > { %2028 = vmatmul.bf16.gmra.mxu1 %v3339_v39 }
 0x1ed   : > { %v2666_v47 = vmax.f32 %v2485_v46, 0.0  ;;  %2277 = vmatmul.bf16.gmra.mxu2 %v3343_v43  ;;  %v2494_v55 = vpop.f32.mrf.mxu3  ;;  %v3932_v46 = vld [vmem:[%s4104_s11 + $0x40c] sm:$0xf] }
 0x1ef   : > { %2763 = vst.msk [vmem:[%s4248_s25 + $0x138] sm:$0xff] %vm2723_vm1, %v2666_v47  ;;  %v3408_v47 = vld [vmem:[%s4104_s11 + $0x418] sm:$0xf0] }
 0x1f0   : > { %v2238_v50 = vpop.f32.mrf.mxu2  ;;  %v1742_v53 = vpop.f32.mrf.mxu0 }
 0x1f1   : > { %v2239_v51 = vadd.f32 %v2238_v50, %v1990_v48  ;;  %v1991_v54 = vpop.f32.mrf.mxu1  ;;  %v1743_v58 = vadd.f32 %v4457_v52, %v1742_v53  ;;  %v3411_v53 = vor.u32 %v3932_v46, %v3408_v47 }
 0x1f2   : > { %3782 = vmatmul.msk.bf16.gmra.mxu3 %vm1486_vm0, %v3379_v56  ;;  %v3382_v56 = vld [vmem:[%s4104_s11 + $0x3e0] sm:$0xf] }
 0x1f3   : > { %v2488_v57 = vadd.f32 %v2487_v15, %v2239_v51  ;;  %v1992_v2 = vadd.f32 %v1991_v54, %v1743_v58 }
 0x1f5   : > { %v2667_v61 = vmax.f32 %v2488_v57, 0.0  ;;  %v2497_v12 = vpop.f32.mrf.mxu3  ;;  %v3929_v57 = vld [vmem:[%s4104_s11 + $0x3ec] sm:$0xf0] }
 0x1f6   : > { %v3383_v1 = vor.u32 %v3929_v57, %v3382_v56  ;;  %v3935_v56 = vld [vmem:[%s4104_s11 + $0x424] sm:$0xf]  ;;  %v3416_v57 = vld [vmem:[%s4104_s11 + $0x430] sm:$0xf0] }
 0x1f7   : > { %2764 = vst.msk [vmem:[%s4248_s25 + $0x140] sm:$0xff] %vm2723_vm1, %v2667_v61  ;;  %v3390_v61 = vld [vmem:[%s4104_s11 + $0x3e8] sm:$0xf] }
 0x1f8   : > { %v2240_v3 = vpop.f32.mrf.mxu2  ;;  %v1745_v8 = vpop.f32.mrf.mxu0 }
 0x1f9   : > { %v2241_v7 = vadd.f32 %v2240_v3, %v1992_v2  ;;  %v1994_v9 = vpop.f32.mrf.mxu1  ;;  %v1746_v11 = vadd.f32 %v4457_v52, %v1745_v8  ;;  %v3387_v2 = vor.u32 %v3927_v59, %v3384_v60  ;;  %v3938_v59 = vld [vmem:[%s4104_s11 + $0x434] sm:$0xf0] }
 0x1fb   : > { %v2490_v13 = vadd.f32 %v2489_v25, %v2241_v7  ;;  %1784 = vmatmul.bf16.gmra.mxu0 %v3351_v4  ;;  %v1995_v15 = vadd.f32 %v1994_v9, %v1746_v11  ;;  %v3391_v7 = vor.u32 %v3930_v62, %v3390_v61 }
 0x1fc   : > { %2033 = vmatmul.bf16.gmra.mxu1 %v3355_v6 }
 0x1fd   : > { %v2668_v14 = vmax.f32 %v2490_v13, 0.0  ;;  %2282 = vmatmul.bf16.gmra.mxu2 %v3359_v10  ;;  %v2499_v22 = vpop.f32.mrf.mxu3  ;;  %v3936_v13 = vld [vmem:[%s4104_s11 + $0x42c] sm:$0xf] }
 0x1ff   : > { %2765 = vst.msk [vmem:[%s4248_s25 + $0x148] sm:$0xff] %vm2723_vm1, %v2668_v14  ;;  %v3424_v14 = vld [vmem:[%s4104_s11 + $0x438] sm:$0xf0] }
 0x200   : > { %v2243_v18 = vpop.f32.mrf.mxu2  ;;  %v1747_v20 = vpop.f32.mrf.mxu0 }
 0x201   : > { %v2244_v19 = vadd.f32 %v2243_v18, %v1995_v15  ;;  %v1996_v21 = vpop.f32.mrf.mxu1  ;;  %v1748_v25 = vadd.f32 %v4457_v52, %v1747_v20  ;;  %v3427_v20 = vor.u32 %v3936_v13, %v3424_v14 }
 0x202   : > { %3783 = vmatmul.msk.bf16.gmra.mxu3 %vm1486_vm0, %v3395_v23  ;;  %v3398_v23 = vld [vmem:[%s4104_s11 + $0x400] sm:$0xf] }
 0x203   : > { %v2493_v24 = vadd.f32 %v2492_v45, %v2244_v19  ;;  %v1997_v33 = vadd.f32 %v1996_v21, %v1748_v25 }
 0x205   : > { %v2669_v28 = vmax.f32 %v2493_v24, 0.0  ;;  %v2502_v42 = vpop.f32.mrf.mxu3  ;;  %v3933_v24 = vld [vmem:[%s4104_s11 + $0x40c] sm:$0xf0] }
 0x206   : > { %v3399_v32 = vor.u32 %v3933_v24, %v3398_v23  ;;  %v3939_v23 = vld [vmem:[%s4104_s11 + $0x444] sm:$0xf]  ;;  %v3432_v24 = vld [vmem:[%s4104_s11 + $0x450] sm:$0xf0] }
 0x207   : > { %2766 = vst.msk [vmem:[%s4248_s25 + $0x150] sm:$0xff] %vm2723_vm1, %v2669_v28  ;;  %v3406_v28 = vld [vmem:[%s4104_s11 + $0x408] sm:$0xf] }
 0x208   : > { %v2245_v34 = vpop.f32.mrf.mxu2  ;;  %v1750_v38 = vpop.f32.mrf.mxu0 }
 0x209   : > { %v2246_v37 = vadd.f32 %v2245_v34, %v1997_v33  ;;  %v1999_v39 = vpop.f32.mrf.mxu1  ;;  %v1751_v41 = vadd.f32 %v4457_v52, %v1750_v38  ;;  %v3403_v33 = vor.u32 %v3931_v26, %v3400_v27  ;;  %v3942_v26 = vld [vmem:[%s4104_s11 + $0x454] sm:$0xf0] }
 0x20b   : > { %v2495_v43 = vadd.f32 %v2494_v55, %v2246_v37  ;;  %1789 = vmatmul.bf16.gmra.mxu0 %v3367_v35  ;;  %v2000_v45 = vadd.f32 %v1999_v39, %v1751_v41  ;;  %v3407_v37 = vor.u32 %v3934_v29, %v3406_v28 }
 0x20c   : > { %2038 = vmatmul.bf16.gmra.mxu1 %v3371_v36 }
 0x20d   : > { %v2670_v44 = vmax.f32 %v2495_v43, 0.0  ;;  %2287 = vmatmul.bf16.gmra.mxu2 %v3375_v40  ;;  %v2504_v51 = vpop.f32.mrf.mxu3  ;;  %v3940_v43 = vld [vmem:[%s4104_s11 + $0x44c] sm:$0xf] }
 0x20f   : > { %2767 = vst.msk [vmem:[%s4248_s25 + $0x158] sm:$0xff] %vm2723_vm1, %v2670_v44  ;;  %v3440_v44 = vld [vmem:[%s4104_s11 + $0x458] sm:$0xf0] }
 0x210   : > { %v2248_v48 = vpop.f32.mrf.mxu2  ;;  %v1752_v5 = vpop.f32.mrf.mxu0 }
 0x211   : > { %v2249_v49 = vadd.f32 %v2248_v48, %v2000_v45  ;;  %v2001_v50 = vpop.f32.mrf.mxu1  ;;  %v1753_v55 = vadd.f32 %v4457_v52, %v1752_v5  ;;  %v3443_v5 = vor.u32 %v3940_v43, %v3440_v44 }
 0x212   : > { %3784 = vmatmul.msk.bf16.gmra.mxu3 %vm1486_vm0, %v3411_v53  ;;  %v3414_v53 = vld [vmem:[%s4104_s11 + $0x420] sm:$0xf] }
 0x213   : > { %v2498_v54 = vadd.f32 %v2497_v12, %v2249_v49  ;;  %v2002_v63 = vadd.f32 %v2001_v50, %v1753_v55 }
 0x215   : > { %v2671_v58 = vmax.f32 %v2498_v54, 0.0  ;;  %v2507_v9 = vpop.f32.mrf.mxu3  ;;  %v3937_v54 = vld [vmem:[%s4104_s11 + $0x42c] sm:$0xf0] }
 0x216   : > { %v3415_v62 = vor.u32 %v3937_v54, %v3414_v53  ;;  %v3943_v53 = vld [vmem:[%s4104_s11 + $0x464] sm:$0xf]  ;;  %v3448_v54 = vld [vmem:[%s4104_s11 + $0x470] sm:$0xf0] }
 0x217   : > { %2768 = vst.msk [vmem:[%s4248_s25 + $0x160] sm:$0xff] %vm2723_vm1, %v2671_v58  ;;  %v3422_v58 = vld [vmem:[%s4104_s11 + $0x428] sm:$0xf] }
 0x218   : > { %v2250_v0 = vpop.f32.mrf.mxu2  ;;  %v1755_v4 = vpop.f32.mrf.mxu0 }
 0x219   : > { %v2251_v3 = vadd.f32 %v2250_v0, %v2002_v63  ;;  %v2004_v6 = vpop.f32.mrf.mxu1  ;;  %v1756_v8 = vadd.f32 %v4457_v52, %v1755_v4  ;;  %v3419_v63 = vor.u32 %v3935_v56, %v3416_v57  ;;  %v3946_v56 = vld [vmem:[%s4104_s11 + $0x474] sm:$0xf0] }
 0x21b   : > { %v2500_v10 = vadd.f32 %v2499_v22, %v2251_v3  ;;  %1794 = vmatmul.bf16.gmra.mxu0 %v3383_v1  ;;  %v2005_v12 = vadd.f32 %v2004_v6, %v1756_v8  ;;  %v3423_v3 = vor.u32 %v3938_v59, %v3422_v58 }
 0x21c   : > { %2043 = vmatmul.bf16.gmra.mxu1 %v3387_v2 }
 0x21d   : > { %v2672_v11 = vmax.f32 %v2500_v10, 0.0  ;;  %2292 = vmatmul.bf16.gmra.mxu2 %v3391_v7  ;;  %v2509_v19 = vpop.f32.mrf.mxu3  ;;  %v3944_v10 = vld [vmem:[%s4104_s11 + $0x46c] sm:$0xf] }
 0x21f   : > { %2769 = vst.msk [vmem:[%s4248_s25 + $0x168] sm:$0xff] %vm2723_vm1, %v2672_v11  ;;  %v3456_v11 = vld [vmem:[%s4104_s11 + $0x478] sm:$0xf0] }
 0x220   : > { %v2253_v15 = vpop.f32.mrf.mxu2  ;;  %v1757_v17 = vpop.f32.mrf.mxu0 }
 0x221   : > { %v2254_v16 = vadd.f32 %v2253_v15, %v2005_v12  ;;  %v2006_v18 = vpop.f32.mrf.mxu1  ;;  %v1758_v22 = vadd.f32 %v4457_v52, %v1757_v17  ;;  %v3459_v17 = vor.u32 %v3944_v10, %v3456_v11 }
 0x222   : > { %3785 = vmatmul.msk.bf16.gmra.mxu3 %vm1486_vm0, %v3427_v20  ;;  %v3430_v20 = vld [vmem:[%s4104_s11 + $0x440] sm:$0xf] }
 0x223   : > { %v2503_v21 = vadd.f32 %v2502_v42, %v2254_v16  ;;  %v2007_v30 = vadd.f32 %v2006_v18, %v1758_v22 }
 0x225   : > { %v2673_v25 = vmax.f32 %v2503_v21, 0.0  ;;  %v2512_v39 = vpop.f32.mrf.mxu3  ;;  %v3941_v21 = vld [vmem:[%s4104_s11 + $0x44c] sm:$0xf0] }
 0x226   : > { %v3431_v29 = vor.u32 %v3941_v21, %v3430_v20  ;;  %v3947_v20 = vld [vmem:[%s4104_s11 + $0x484] sm:$0xf]  ;;  %v3464_v21 = vld [vmem:[%s4104_s11 + $0x490] sm:$0xf0] }
 0x227   : > { %2770 = vst.msk [vmem:[%s4248_s25 + $0x170] sm:$0xff] %vm2723_vm1, %v2673_v25  ;;  %v3438_v25 = vld [vmem:[%s4104_s11 + $0x448] sm:$0xf] }
 0x228   : > { %v2255_v31 = vpop.f32.mrf.mxu2  ;;  %v1760_v35 = vpop.f32.mrf.mxu0 }
 0x229   : > { %v2256_v34 = vadd.f32 %v2255_v31, %v2007_v30  ;;  %v2009_v36 = vpop.f32.mrf.mxu1  ;;  %v1761_v38 = vadd.f32 %v4457_v52, %v1760_v35  ;;  %v3435_v30 = vor.u32 %v3939_v23, %v3432_v24  ;;  %v3950_v23 = vld [vmem:[%s4104_s11 + $0x494] sm:$0xf0] }
 0x22b   : > { %v2505_v40 = vadd.f32 %v2504_v51, %v2256_v34  ;;  %1799 = vmatmul.bf16.gmra.mxu0 %v3399_v32  ;;  %v2010_v42 = vadd.f32 %v2009_v36, %v1761_v38  ;;  %v3439_v34 = vor.u32 %v3942_v26, %v3438_v25 }
 0x22c   : > { %2048 = vmatmul.bf16.gmra.mxu1 %v3403_v33 }
 0x22d   : > { %v2674_v41 = vmax.f32 %v2505_v40, 0.0  ;;  %2297 = vmatmul.bf16.gmra.mxu2 %v3407_v37  ;;  %v2514_v49 = vpop.f32.mrf.mxu3  ;;  %v3948_v40 = vld [vmem:[%s4104_s11 + $0x48c] sm:$0xf] }
 0x22f   : > { %2771 = vst.msk [vmem:[%s4248_s25 + $0x178] sm:$0xff] %vm2723_vm1, %v2674_v41  ;;  %v3472_v41 = vld [vmem:[%s4104_s11 + $0x498] sm:$0xf0] }
 0x230   : > { %v2258_v45 = vpop.f32.mrf.mxu2  ;;  %v1762_v47 = vpop.f32.mrf.mxu0 }
 0x231   : > { %v2259_v46 = vadd.f32 %v2258_v45, %v2010_v42  ;;  %v2011_v48 = vpop.f32.mrf.mxu1  ;;  %v1763_v51 = vadd.f32 %v4457_v52, %v1762_v47  ;;  %v3475_v47 = vor.u32 %v3948_v40, %v3472_v41 }
 0x232   : > { %3786 = vmatmul.msk.bf16.gmra.mxu3 %vm1486_vm0, %v3443_v5  ;;  %v3446_v5 = vld [vmem:[%s4104_s11 + $0x460] sm:$0xf] }
 0x233   : > { %v2508_v50 = vadd.f32 %v2507_v9, %v2259_v46  ;;  %v2012_v60 = vadd.f32 %v2011_v48, %v1763_v51 }
 0x235   : > { %v2675_v55 = vmax.f32 %v2508_v50, 0.0  ;;  %v2517_v6 = vpop.f32.mrf.mxu3  ;;  %v3945_v50 = vld [vmem:[%s4104_s11 + $0x46c] sm:$0xf0] }
 0x236   : > { %v3447_v59 = vor.u32 %v3945_v50, %v3446_v5  ;;  %v3951_v5 = vld [vmem:[%s4104_s11 + $0x4a4] sm:$0xf]  ;;  %v3480_v50 = vld [vmem:[%s4104_s11 + $0x4b0] sm:$0xf0] }
 0x237   : > { %2772 = vst.msk [vmem:[%s4248_s25 + $0x180] sm:$0xff] %vm2723_vm1, %v2675_v55  ;;  %v3454_v55 = vld [vmem:[%s4104_s11 + $0x468] sm:$0xf] }
 0x238   : > { %v2260_v61 = vpop.f32.mrf.mxu2  ;;  %v1765_v1 = vpop.f32.mrf.mxu0 }
 0x239   : > { %v2261_v0 = vadd.f32 %v2260_v61, %v2012_v60  ;;  %v2014_v2 = vpop.f32.mrf.mxu1  ;;  %v1766_v4 = vadd.f32 %v4457_v52, %v1765_v1  ;;  %v3451_v60 = vor.u32 %v3943_v53, %v3448_v54  ;;  %v3954_v53 = vld [vmem:[%s4104_s11 + $0x4b4] sm:$0xf0] }
 0x23b   : > { %v2510_v7 = vadd.f32 %v2509_v19, %v2261_v0  ;;  %1804 = vmatmul.bf16.gmra.mxu0 %v3415_v62  ;;  %v2015_v9 = vadd.f32 %v2014_v2, %v1766_v4  ;;  %v3455_v0 = vor.u32 %v3946_v56, %v3454_v55 }
 0x23c   : > { %2053 = vmatmul.bf16.gmra.mxu1 %v3419_v63 }
 0x23d   : > { %v2676_v8 = vmax.f32 %v2510_v7, 0.0  ;;  %2302 = vmatmul.bf16.gmra.mxu2 %v3423_v3  ;;  %v2519_v16 = vpop.f32.mrf.mxu3  ;;  %v3952_v7 = vld [vmem:[%s4104_s11 + $0x4ac] sm:$0xf] }
 0x23f   : > { %2773 = vst.msk [vmem:[%s4248_s25 + $0x188] sm:$0xff] %vm2723_vm1, %v2676_v8  ;;  %v3488_v8 = vld [vmem:[%s4104_s11 + $0x4b8] sm:$0xf0] }
 0x240   : > { %v2263_v12 = vpop.f32.mrf.mxu2  ;;  %v1767_v14 = vpop.f32.mrf.mxu0 }
 0x241   : > { %v2264_v13 = vadd.f32 %v2263_v12, %v2015_v9  ;;  %v2016_v15 = vpop.f32.mrf.mxu1  ;;  %v1768_v19 = vadd.f32 %v4457_v52, %v1767_v14  ;;  %v3491_v14 = vor.u32 %v3952_v7, %v3488_v8 }
 0x242   : > { %3787 = vmatmul.msk.bf16.gmra.mxu3 %vm1486_vm0, %v3459_v17  ;;  %v3462_v17 = vld [vmem:[%s4104_s11 + $0x480] sm:$0xf] }
 0x243   : > { %v2513_v18 = vadd.f32 %v2512_v39, %v2264_v13  ;;  %v2017_v27 = vadd.f32 %v2016_v15, %v1768_v19 }
 0x245   : > { %v2677_v22 = vmax.f32 %v2513_v18, 0.0  ;;  %v2522_v36 = vpop.f32.mrf.mxu3  ;;  %v3949_v18 = vld [vmem:[%s4104_s11 + $0x48c] sm:$0xf0] }
 0x246   : > { %v3463_v26 = vor.u32 %v3949_v18, %v3462_v17  ;;  %v3955_v17 = vld [vmem:[%s4104_s11 + $0x4c4] sm:$0xf]  ;;  %v3496_v18 = vld [vmem:[%s4104_s11 + $0x4d0] sm:$0xf0] }
 0x247   : > { %2774 = vst.msk [vmem:[%s4248_s25 + $0x190] sm:$0xff] %vm2723_vm1, %v2677_v22  ;;  %v3470_v22 = vld [vmem:[%s4104_s11 + $0x488] sm:$0xf] }
 0x248   : > { %v2265_v28 = vpop.f32.mrf.mxu2  ;;  %v1770_v32 = vpop.f32.mrf.mxu0 }
 0x249   : > { %v2266_v31 = vadd.f32 %v2265_v28, %v2017_v27  ;;  %v2019_v33 = vpop.f32.mrf.mxu1  ;;  %v1771_v35 = vadd.f32 %v4457_v52, %v1770_v32  ;;  %v3467_v27 = vor.u32 %v3947_v20, %v3464_v21  ;;  %v3958_v20 = vld [vmem:[%s4104_s11 + $0x4d4] sm:$0xf0] }
 0x24b   : > { %v2515_v37 = vadd.f32 %v2514_v49, %v2266_v31  ;;  %1809 = vmatmul.bf16.gmra.mxu0 %v3431_v29  ;;  %v2020_v39 = vadd.f32 %v2019_v33, %v1771_v35  ;;  %v3471_v31 = vor.u32 %v3950_v23, %v3470_v22 }
 0x24c   : > { %2058 = vmatmul.bf16.gmra.mxu1 %v3435_v30 }
 0x24d   : > { %v2678_v38 = vmax.f32 %v2515_v37, 0.0  ;;  %2307 = vmatmul.bf16.gmra.mxu2 %v3439_v34  ;;  %v2524_v46 = vpop.f32.mrf.mxu3  ;;  %v3956_v37 = vld [vmem:[%s4104_s11 + $0x4cc] sm:$0xf] }
 0x24f   : > { %2775 = vst.msk [vmem:[%s4248_s25 + $0x198] sm:$0xff] %vm2723_vm1, %v2678_v38  ;;  %v3504_v38 = vld [vmem:[%s4104_s11 + $0x4d8] sm:$0xf0] }
 0x250   : > { %v2268_v42 = vpop.f32.mrf.mxu2  ;;  %v1772_v44 = vpop.f32.mrf.mxu0 }
 0x251   : > { %v2269_v43 = vadd.f32 %v2268_v42, %v2020_v39  ;;  %v2021_v45 = vpop.f32.mrf.mxu1  ;;  %v1773_v49 = vadd.f32 %v4457_v52, %v1772_v44 }
 0x252   : > { %3788 = vmatmul.msk.bf16.gmra.mxu3 %vm1486_vm0, %v3475_v47  ;;  %v3478_v47 = vld [vmem:[%s4104_s11 + $0x4a0] sm:$0xf] }
 0x253   : > { %v2518_v48 = vadd.f32 %v2517_v6, %v2269_v43  ;;  %v2022_v57 = vadd.f32 %v2021_v45, %v1773_v49  ;;  %v3507_v43 = vor.u32 %v3956_v37, %v3504_v38  ;;  %v4677_v45 = vld [vmem:[%s4896_s2] ss:$0 sm:$0xff] }
 0x255   : > { %v2679_v51 = vmax.f32 %v2518_v48, 0.0  ;;  %v2527_v2 = vpop.f32.mrf.mxu3  ;;  %v3953_v48 = vld [vmem:[%s4104_s11 + $0x4ac] sm:$0xf0] }
 0x256   : > { %v3479_v56 = vor.u32 %v3953_v48, %v3478_v47  ;;  %v3959_v47 = vld [vmem:[%s4104_s11 + $0x4e4] sm:$0xf]  ;;  %v3512_v48 = vld [vmem:[%s4104_s11 + $0x4f0] sm:$0xf0] }
 0x257   : > { %2776 = vst.msk [vmem:[%s4248_s25 + $0x1a0] sm:$0xff] %vm2723_vm1, %v2679_v51  ;;  %v3486_v51 = vld [vmem:[%s4104_s11 + $0x4a8] sm:$0xf] }
 0x258   : > { %v2270_v58 = vpop.f32.mrf.mxu2  ;;  %v1775_v62 = vpop.f32.mrf.mxu0 }
 0x259   : > { %v2271_v61 = vadd.f32 %v2270_v58, %v2022_v57  ;;  %v2024_v63 = vpop.f32.mrf.mxu1  ;;  %v1776_v1 = vadd.f32 %v4457_v52, %v1775_v62  ;;  %v3483_v57 = vor.u32 %v3951_v5, %v3480_v50  ;;  %v3962_v5 = vld [vmem:[%s4104_s11 + $0x4f4] sm:$0xf0] }
 0x25b   : > { %v2520_v3 = vadd.f32 %v2519_v16, %v2271_v61  ;;  %1814 = vmatmul.bf16.gmra.mxu0 %v3447_v59  ;;  %v2025_v6 = vadd.f32 %v2024_v63, %v1776_v1  ;;  %v3487_v61 = vor.u32 %v3954_v53, %v3486_v51 }
 0x25c   : > { %2063 = vmatmul.bf16.gmra.mxu1 %v3451_v60 }
 0x25d   : > { %v2680_v4 = vmax.f32 %v2520_v3, 0.0  ;;  %2312 = vmatmul.bf16.gmra.mxu2 %v3455_v0  ;;  %v2529_v13 = vpop.f32.mrf.mxu3  ;;  %v3960_v3 = vld [vmem:[%s4104_s11 + $0x4ec] sm:$0xf] }
 0x25f   : > { %2777 = vst.msk [vmem:[%s4248_s25 + $0x1a8] sm:$0xff] %vm2723_vm1, %v2680_v4  ;;  %v3520_v4 = vld [vmem:[%s4104_s11 + $0x4f8] sm:$0xf0] }
 0x260   : > { %v2273_v9 = vpop.f32.mrf.mxu2  ;;  %v1777_v11 = vpop.f32.mrf.mxu0 }
 0x261   : > { %v2274_v10 = vadd.f32 %v2273_v9, %v2025_v6  ;;  %v2026_v12 = vpop.f32.mrf.mxu1  ;;  %v1778_v16 = vadd.f32 %v4457_v52, %v1777_v11  ;;  %v3523_v11 = vor.u32 %v3960_v3, %v3520_v4 }
 0x262   : > { %3789 = vmatmul.msk.bf16.gmra.mxu3 %vm1486_vm0, %v3491_v14  ;;  %v3494_v14 = vld [vmem:[%s4104_s11 + $0x4c0] sm:$0xf] }
 0x263   : > { %v2523_v15 = vadd.f32 %v2522_v36, %v2274_v10  ;;  %v2027_v24 = vadd.f32 %v2026_v12, %v1778_v16 }
 0x265   : > { %v2681_v19 = vmax.f32 %v2523_v15, 0.0  ;;  %v2532_v33 = vpop.f32.mrf.mxu3  ;;  %v3957_v15 = vld [vmem:[%s4104_s11 + $0x4cc] sm:$0xf0] }
 0x266   : > { %v3495_v23 = vor.u32 %v3957_v15, %v3494_v14  ;;  %v3963_v14 = vld [vmem:[%s4104_s11 + $0x504] sm:$0xf]  ;;  %v3528_v15 = vld [vmem:[%s4104_s11 + $0x510] sm:$0xf0] }
 0x267   : > { %2778 = vst.msk [vmem:[%s4248_s25 + $0x1b0] sm:$0xff] %vm2723_vm1, %v2681_v19  ;;  %v3502_v19 = vld [vmem:[%s4104_s11 + $0x4c8] sm:$0xf] }
 0x268   : > { %v2275_v25 = vpop.f32.mrf.mxu2  ;;  %v1780_v29 = vpop.f32.mrf.mxu0 }
 0x269   : > { %v2276_v28 = vadd.f32 %v2275_v25, %v2027_v24  ;;  %v2029_v30 = vpop.f32.mrf.mxu1  ;;  %v1781_v32 = vadd.f32 %v4457_v52, %v1780_v29  ;;  %v3499_v24 = vor.u32 %v3955_v17, %v3496_v18  ;;  %v3966_v17 = vld [vmem:[%s4104_s11 + $0x514] sm:$0xf0] }
 0x26b   : > { %v2525_v34 = vadd.f32 %v2524_v46, %v2276_v28  ;;  %1819 = vmatmul.bf16.gmra.mxu0 %v3463_v26  ;;  %v2030_v36 = vadd.f32 %v2029_v30, %v1781_v32  ;;  %v3503_v28 = vor.u32 %v3958_v20, %v3502_v19 }
 0x26c   : > { %2068 = vmatmul.bf16.gmra.mxu1 %v3467_v27 }
 0x26d   : > { %v2682_v35 = vmax.f32 %v2525_v34, 0.0  ;;  %2317 = vmatmul.bf16.gmra.mxu2 %v3471_v31  ;;  %v2534_v42 = vpop.f32.mrf.mxu3  ;;  %v3964_v34 = vld [vmem:[%s4104_s11 + $0x50c] sm:$0xf] }
 0x26f   : > { %2779 = vst.msk [vmem:[%s4248_s25 + $0x1b8] sm:$0xff] %vm2723_vm1, %v2682_v35  ;;  %v3536_v35 = vld [vmem:[%s4104_s11 + $0x518] sm:$0xf0] }
 0x270   : > { %v2278_v39 = vpop.f32.mrf.mxu2  ;;  %v1782_v52 = vpop.f32.mrf.mxu0 }
 0x271   : > { %v2279_v40 = vadd.f32 %v2278_v39, %v2030_v36  ;;  %v2031_v41 = vpop.f32.mrf.mxu1  ;;  %v1783_v46 = vadd.f32 %v4677_v45, %v1782_v52  ;;  %v3539_v52 = vor.u32 %v3964_v34, %v3536_v35 }
 0x272   : > { %3790 = vmatmul.msk.bf16.gmra.mxu3 %vm1486_vm0, %v3507_v43  ;;  %v3510_v43 = vld [vmem:[%s4104_s11 + $0x4e0] sm:$0xf] }
 0x273   : > { %v2528_v44 = vadd.f32 %v2527_v2, %v2279_v40  ;;  %v2032_v54 = vadd.f32 %v2031_v41, %v1783_v46 }
 0x275   : > { %v2683_v49 = vmax.f32 %v2528_v44, 0.0  ;;  %v2537_v63 = vpop.f32.mrf.mxu3  ;;  %v3961_v44 = vld [vmem:[%s4104_s11 + $0x4ec] sm:$0xf0] }
 0x276   : > { %v3511_v53 = vor.u32 %v3961_v44, %v3510_v43  ;;  %v3967_v43 = vld [vmem:[%s4104_s11 + $0x524] sm:$0xf]  ;;  %v3544_v44 = vld [vmem:[%s4104_s11 + $0x530] sm:$0xf0] }
 0x277   : > { %2780 = vst.msk [vmem:[%s4248_s25 + $0x1c0] sm:$0xff] %vm2723_vm1, %v2683_v49  ;;  %v3518_v49 = vld [vmem:[%s4104_s11 + $0x4e8] sm:$0xf] }
 0x278   : > { %v2280_v55 = vpop.f32.mrf.mxu2  ;;  %v1785_v59 = vpop.f32.mrf.mxu0 }
 0x279   : > { %v2281_v58 = vadd.f32 %v2280_v55, %v2032_v54  ;;  %v2034_v60 = vpop.f32.mrf.mxu1  ;;  %v1786_v62 = vadd.f32 %v4677_v45, %v1785_v59  ;;  %v3515_v54 = vor.u32 %v3959_v47, %v3512_v48  ;;  %v3970_v47 = vld [vmem:[%s4104_s11 + $0x534] sm:$0xf0] }
 0x27b   : > { %v2530_v0 = vadd.f32 %v2529_v13, %v2281_v58  ;;  %1824 = vmatmul.bf16.gmra.mxu0 %v3479_v56  ;;  %v2035_v2 = vadd.f32 %v2034_v60, %v1786_v62  ;;  %v3519_v58 = vor.u32 %v3962_v5, %v3518_v49 }
 0x27c   : > { %2073 = vmatmul.bf16.gmra.mxu1 %v3483_v57 }
 0x27d   : > { %v2684_v1 = vmax.f32 %v2530_v0, 0.0  ;;  %2322 = vmatmul.bf16.gmra.mxu2 %v3487_v61  ;;  %v2539_v10 = vpop.f32.mrf.mxu3  ;;  %v3968_v0 = vld [vmem:[%s4104_s11 + $0x52c] sm:$0xf] }
 0x27f   : > { %2781 = vst.msk [vmem:[%s4248_s25 + $0x1c8] sm:$0xff] %vm2723_vm1, %v2684_v1  ;;  %v3552_v1 = vld [vmem:[%s4104_s11 + $0x538] sm:$0xf0] }
 0x280   : > { %v2283_v6 = vpop.f32.mrf.mxu2  ;;  %v1787_v8 = vpop.f32.mrf.mxu0 }
 0x281   : > { %v2284_v7 = vadd.f32 %v2283_v6, %v2035_v2  ;;  %v2036_v9 = vpop.f32.mrf.mxu1  ;;  %v1788_v13 = vadd.f32 %v4677_v45, %v1787_v8  ;;  %v3555_v8 = vor.u32 %v3968_v0, %v3552_v1 }
 0x282   : > { %3791 = vmatmul.msk.bf16.gmra.mxu3 %vm1486_vm0, %v3523_v11  ;;  %v3526_v11 = vld [vmem:[%s4104_s11 + $0x500] sm:$0xf] }
 0x283   : > { %v2533_v12 = vadd.f32 %v2532_v33, %v2284_v7  ;;  %v2037_v21 = vadd.f32 %v2036_v9, %v1788_v13 }
 0x285   : > { %v2685_v16 = vmax.f32 %v2533_v12, 0.0  ;;  %v2542_v30 = vpop.f32.mrf.mxu3  ;;  %v3965_v12 = vld [vmem:[%s4104_s11 + $0x50c] sm:$0xf0] }
 0x286   : > { %v3527_v20 = vor.u32 %v3965_v12, %v3526_v11  ;;  %v3971_v11 = vld [vmem:[%s4104_s11 + $0x544] sm:$0xf]  ;;  %v3560_v12 = vld [vmem:[%s4104_s11 + $0x550] sm:$0xf0] }
 0x287   : > { %2782 = vst.msk [vmem:[%s4248_s25 + $0x1d0] sm:$0xff] %vm2723_vm1, %v2685_v16  ;;  %v3534_v16 = vld [vmem:[%s4104_s11 + $0x508] sm:$0xf] }
 0x288   : > { %v2285_v22 = vpop.f32.mrf.mxu2  ;;  %v1790_v26 = vpop.f32.mrf.mxu0 }
 0x289   : > { %v2286_v25 = vadd.f32 %v2285_v22, %v2037_v21  ;;  %v2039_v27 = vpop.f32.mrf.mxu1  ;;  %v1791_v29 = vadd.f32 %v4677_v45, %v1790_v26  ;;  %v3531_v21 = vor.u32 %v3963_v14, %v3528_v15  ;;  %v3974_v14 = vld [vmem:[%s4104_s11 + $0x554] sm:$0xf0] }
 0x28b   : > { %v2535_v31 = vadd.f32 %v2534_v42, %v2286_v25  ;;  %1829 = vmatmul.bf16.gmra.mxu0 %v3495_v23  ;;  %v2040_v33 = vadd.f32 %v2039_v27, %v1791_v29  ;;  %v3535_v25 = vor.u32 %v3966_v17, %v3534_v16 }
 0x28c   : > { %2078 = vmatmul.bf16.gmra.mxu1 %v3499_v24 }
 0x28d   : > { %v2686_v32 = vmax.f32 %v2535_v31, 0.0  ;;  %2327 = vmatmul.bf16.gmra.mxu2 %v3503_v28  ;;  %v2544_v40 = vpop.f32.mrf.mxu3  ;;  %v3972_v31 = vld [vmem:[%s4104_s11 + $0x54c] sm:$0xf] }
 0x28f   : > { %2783 = vst.msk [vmem:[%s4248_s25 + $0x1d8] sm:$0xff] %vm2723_vm1, %v2686_v32  ;;  %v3568_v32 = vld [vmem:[%s4104_s11 + $0x558] sm:$0xf0] }
 0x290   : > { %v2288_v36 = vpop.f32.mrf.mxu2  ;;  %v1792_v38 = vpop.f32.mrf.mxu0 }
 0x291   : > { %v2289_v37 = vadd.f32 %v2288_v36, %v2040_v33  ;;  %v2041_v39 = vpop.f32.mrf.mxu1  ;;  %v1793_v42 = vadd.f32 %v4677_v45, %v1792_v38  ;;  %v3571_v38 = vor.u32 %v3972_v31, %v3568_v32 }
 0x292   : > { %3792 = vmatmul.msk.bf16.gmra.mxu3 %vm1486_vm0, %v3539_v52  ;;  %v3542_v52 = vld [vmem:[%s4104_s11 + $0x520] sm:$0xf] }
 0x293   : > { %v2538_v41 = vadd.f32 %v2537_v63, %v2289_v37  ;;  %v2042_v50 = vadd.f32 %v2041_v39, %v1793_v42 }
 0x295   : > { %v2687_v46 = vmax.f32 %v2538_v41, 0.0  ;;  %v2547_v60 = vpop.f32.mrf.mxu3  ;;  %v3969_v41 = vld [vmem:[%s4104_s11 + $0x52c] sm:$0xf0] }
 0x296   : > { %v3543_v5 = vor.u32 %v3969_v41, %v3542_v52  ;;  %v3975_v52 = vld [vmem:[%s4104_s11 + $0x564] sm:$0xf]  ;;  %v3576_v41 = vld [vmem:[%s4104_s11 + $0x570] sm:$0xf0] }
 0x297   : > { %2784 = vst.msk [vmem:[%s4248_s25 + $0x1e0] sm:$0xff] %vm2723_vm1, %v2687_v46  ;;  %v3550_v46 = vld [vmem:[%s4104_s11 + $0x528] sm:$0xf] }
 0x298   : > { %v2290_v51 = vpop.f32.mrf.mxu2  ;;  %v1795_v56 = vpop.f32.mrf.mxu0 }
 0x299   : > { %v2291_v55 = vadd.f32 %v2290_v51, %v2042_v50  ;;  %v2044_v57 = vpop.f32.mrf.mxu1  ;;  %v1796_v59 = vadd.f32 %v4677_v45, %v1795_v56  ;;  %v3547_v50 = vor.u32 %v3967_v43, %v3544_v44  ;;  %v3978_v43 = vld [vmem:[%s4104_s11 + $0x574] sm:$0xf0] }
 0x29b   : > { %v2540_v61 = vadd.f32 %v2539_v10, %v2291_v55  ;;  %1834 = vmatmul.bf16.gmra.mxu0 %v3511_v53  ;;  %v2045_v63 = vadd.f32 %v2044_v57, %v1796_v59  ;;  %v3551_v55 = vor.u32 %v3970_v47, %v3550_v46 }
 0x29c   : > { %2083 = vmatmul.bf16.gmra.mxu1 %v3515_v54 }
 0x29d   : > { %v2688_v62 = vmax.f32 %v2540_v61, 0.0  ;;  %2332 = vmatmul.bf16.gmra.mxu2 %v3519_v58  ;;  %v2549_v7 = vpop.f32.mrf.mxu3  ;;  %v3976_v61 = vld [vmem:[%s4104_s11 + $0x56c] sm:$0xf] }
 0x29f   : > { %2785 = vst.msk [vmem:[%s4248_s25 + $0x1e8] sm:$0xff] %vm2723_vm1, %v2688_v62  ;;  %v3584_v62 = vld [vmem:[%s4104_s11 + $0x578] sm:$0xf0] }
 0x2a0   : > { %v2293_v2 = vpop.f32.mrf.mxu2  ;;  %v1797_v4 = vpop.f32.mrf.mxu0 }
 0x2a1   : > { %v2294_v3 = vadd.f32 %v2293_v2, %v2045_v63  ;;  %v2046_v6 = vpop.f32.mrf.mxu1  ;;  %v1798_v10 = vadd.f32 %v4677_v45, %v1797_v4  ;;  %v3587_v4 = vor.u32 %v3976_v61, %v3584_v62 }
 0x2a2   : > { %3793 = vmatmul.msk.bf16.gmra.mxu3 %vm1486_vm0, %v3555_v8  ;;  %v3558_v8 = vld [vmem:[%s4104_s11 + $0x540] sm:$0xf] }
 0x2a3   : > { %v2543_v9 = vadd.f32 %v2542_v30, %v2294_v3  ;;  %v2047_v18 = vadd.f32 %v2046_v6, %v1798_v10 }
 0x2a5   : > { %v2689_v13 = vmax.f32 %v2543_v9, 0.0  ;;  %v2552_v27 = vpop.f32.mrf.mxu3  ;;  %v3973_v9 = vld [vmem:[%s4104_s11 + $0x54c] sm:$0xf0] }
 0x2a6   : > { %v3559_v17 = vor.u32 %v3973_v9, %v3558_v8  ;;  %v3979_v8 = vld [vmem:[%s4104_s11 + $0x584] sm:$0xf]  ;;  %v3592_v9 = vld [vmem:[%s4104_s11 + $0x590] sm:$0xf0] }
 0x2a7   : > { %2786 = vst.msk [vmem:[%s4248_s25 + $0x1f0] sm:$0xff] %vm2723_vm1, %v2689_v13  ;;  %v3566_v13 = vld [vmem:[%s4104_s11 + $0x548] sm:$0xf] }
 0x2a8   : > { %v2295_v19 = vpop.f32.mrf.mxu2  ;;  %v1800_v23 = vpop.f32.mrf.mxu0 }
 0x2a9   : > { %v2296_v22 = vadd.f32 %v2295_v19, %v2047_v18  ;;  %v2049_v24 = vpop.f32.mrf.mxu1  ;;  %v1801_v26 = vadd.f32 %v4677_v45, %v1800_v23  ;;  %v3563_v18 = vor.u32 %v3971_v11, %v3560_v12  ;;  %v3982_v11 = vld [vmem:[%s4104_s11 + $0x594] sm:$0xf0] }
 0x2ab   : > { %v2545_v28 = vadd.f32 %v2544_v40, %v2296_v22  ;;  %1839 = vmatmul.bf16.gmra.mxu0 %v3527_v20  ;;  %v2050_v30 = vadd.f32 %v2049_v24, %v1801_v26  ;;  %v3567_v22 = vor.u32 %v3974_v14, %v3566_v13 }
 0x2ac   : > { %2088 = vmatmul.bf16.gmra.mxu1 %v3531_v21 }
 0x2ad   : > { %v2690_v29 = vmax.f32 %v2545_v28, 0.0  ;;  %2337 = vmatmul.bf16.gmra.mxu2 %v3535_v25  ;;  %v2554_v37 = vpop.f32.mrf.mxu3  ;;  %v3980_v28 = vld [vmem:[%s4104_s11 + $0x58c] sm:$0xf] }
 0x2af   : > { %2787 = vst.msk [vmem:[%s4248_s25 + $0x1f8] sm:$0xff] %vm2723_vm1, %v2690_v29  ;;  %v3600_v29 = vld [vmem:[%s4104_s11 + $0x598] sm:$0xf0] }
 0x2b0   : > { %v2298_v33 = vpop.f32.mrf.mxu2  ;;  %v1802_v35 = vpop.f32.mrf.mxu0 }
 0x2b1   : > { %v2299_v34 = vadd.f32 %v2298_v33, %v2050_v30  ;;  %v2051_v36 = vpop.f32.mrf.mxu1  ;;  %v1803_v40 = vadd.f32 %v4677_v45, %v1802_v35  ;;  %v3603_v35 = vor.u32 %v3980_v28, %v3600_v29 }
 0x2b2   : > { %3794 = vmatmul.msk.bf16.gmra.mxu3 %vm1486_vm0, %v3571_v38  ;;  %v3574_v38 = vld [vmem:[%s4104_s11 + $0x560] sm:$0xf] }
 0x2b3   : > { %v2548_v39 = vadd.f32 %v2547_v60, %v2299_v34  ;;  %v2052_v48 = vadd.f32 %v2051_v36, %v1803_v40 }
 0x2b5   : > { %v2691_v42 = vmax.f32 %v2548_v39, 0.0  ;;  %v2557_v57 = vpop.f32.mrf.mxu3  ;;  %v3977_v39 = vld [vmem:[%s4104_s11 + $0x56c] sm:$0xf0] }
 0x2b6   : > { %v3575_v47 = vor.u32 %v3977_v39, %v3574_v38  ;;  %v3983_v38 = vld [vmem:[%s4104_s11 + $0x5a4] sm:$0xf]  ;;  %v3608_v39 = vld [vmem:[%s4104_s11 + $0x5b0] sm:$0xf0] }
 0x2b7   : > { %2788 = vst.msk [vmem:[%s4248_s25 + $0x200] sm:$0xff] %vm2723_vm1, %v2691_v42  ;;  %v3582_v42 = vld [vmem:[%s4104_s11 + $0x568] sm:$0xf] }
 0x2b8   : > { %v2300_v49 = vpop.f32.mrf.mxu2  ;;  %v1805_v53 = vpop.f32.mrf.mxu0 }
 0x2b9   : > { %v2301_v51 = vadd.f32 %v2300_v49, %v2052_v48  ;;  %v2054_v54 = vpop.f32.mrf.mxu1  ;;  %v1806_v56 = vadd.f32 %v4677_v45, %v1805_v53  ;;  %v3579_v48 = vor.u32 %v3975_v52, %v3576_v41  ;;  %v3986_v52 = vld [vmem:[%s4104_s11 + $0x5b4] sm:$0xf0] }
 0x2bb   : > { %v2550_v58 = vadd.f32 %v2549_v7, %v2301_v51  ;;  %1844 = vmatmul.bf16.gmra.mxu0 %v3543_v5  ;;  %v2055_v60 = vadd.f32 %v2054_v54, %v1806_v56  ;;  %v3583_v51 = vor.u32 %v3978_v43, %v3582_v42 }
 0x2bc   : > { %2093 = vmatmul.bf16.gmra.mxu1 %v3547_v50 }
 0x2bd   : > { %v2692_v59 = vmax.f32 %v2550_v58, 0.0  ;;  %2342 = vmatmul.bf16.gmra.mxu2 %v3551_v55  ;;  %v2559_v3 = vpop.f32.mrf.mxu3  ;;  %v3984_v58 = vld [vmem:[%s4104_s11 + $0x5ac] sm:$0xf] }
 0x2bf   : > { %2789 = vst.msk [vmem:[%s4248_s25 + $0x208] sm:$0xff] %vm2723_vm1, %v2692_v59  ;;  %v3616_v59 = vld [vmem:[%s4104_s11 + $0x5b8] sm:$0xf0] }
 0x2c0   : > { %v2303_v63 = vpop.f32.mrf.mxu2  ;;  %v1807_v1 = vpop.f32.mrf.mxu0 }
 0x2c1   : > { %v2304_v0 = vadd.f32 %v2303_v63, %v2055_v60  ;;  %v2056_v2 = vpop.f32.mrf.mxu1  ;;  %v1808_v7 = vadd.f32 %v4677_v45, %v1807_v1  ;;  %v3619_v1 = vor.u32 %v3984_v58, %v3616_v59 }
 0x2c2   : > { %3795 = vmatmul.msk.bf16.gmra.mxu3 %vm1486_vm0, %v3587_v4  ;;  %v3590_v4 = vld [vmem:[%s4104_s11 + $0x580] sm:$0xf] }
 0x2c3   : > { %v2553_v6 = vadd.f32 %v2552_v27, %v2304_v0  ;;  %v2057_v15 = vadd.f32 %v2056_v2, %v1808_v7 }
 0x2c5   : > { %v2693_v10 = vmax.f32 %v2553_v6, 0.0  ;;  %v2562_v24 = vpop.f32.mrf.mxu3  ;;  %v3981_v6 = vld [vmem:[%s4104_s11 + $0x58c] sm:$0xf0] }
 0x2c6   : > { %v3591_v14 = vor.u32 %v3981_v6, %v3590_v4  ;;  %v3987_v4 = vld [vmem:[%s4104_s11 + $0x5c4] sm:$0xf]  ;;  %v3624_v6 = vld [vmem:[%s4104_s11 + $0x5d0] sm:$0xf0] }
 0x2c7   : > { %2790 = vst.msk [vmem:[%s4248_s25 + $0x210] sm:$0xff] %vm2723_vm1, %v2693_v10  ;;  %v3598_v10 = vld [vmem:[%s4104_s11 + $0x588] sm:$0xf] }
 0x2c8   : > { %v2305_v16 = vpop.f32.mrf.mxu2  ;;  %v1810_v20 = vpop.f32.mrf.mxu0 }
 0x2c9   : > { %v2306_v19 = vadd.f32 %v2305_v16, %v2057_v15  ;;  %v2059_v21 = vpop.f32.mrf.mxu1  ;;  %v1811_v23 = vadd.f32 %v4677_v45, %v1810_v20  ;;  %v3595_v15 = vor.u32 %v3979_v8, %v3592_v9  ;;  %v3990_v8 = vld [vmem:[%s4104_s11 + $0x5d4] sm:$0xf0] }
 0x2cb   : > { %v2555_v25 = vadd.f32 %v2554_v37, %v2306_v19  ;;  %1849 = vmatmul.bf16.gmra.mxu0 %v3559_v17  ;;  %v2060_v27 = vadd.f32 %v2059_v21, %v1811_v23  ;;  %v3599_v19 = vor.u32 %v3982_v11, %v3598_v10 }
 0x2cc   : > { %2098 = vmatmul.bf16.gmra.mxu1 %v3563_v18 }
 0x2cd   : > { %v2694_v26 = vmax.f32 %v2555_v25, 0.0  ;;  %2347 = vmatmul.bf16.gmra.mxu2 %v3567_v22  ;;  %v2564_v34 = vpop.f32.mrf.mxu3  ;;  %v3988_v25 = vld [vmem:[%s4104_s11 + $0x5cc] sm:$0xf] }
 0x2cf   : > { %2791 = vst.msk [vmem:[%s4248_s25 + $0x218] sm:$0xff] %vm2723_vm1, %v2694_v26  ;;  %v3632_v26 = vld [vmem:[%s4104_s11 + $0x5d8] sm:$0xf0] }
 0x2d0   : > { %v2308_v30 = vpop.f32.mrf.mxu2  ;;  %v1812_v32 = vpop.f32.mrf.mxu0 }
 0x2d1   : > { %v2309_v31 = vadd.f32 %v2308_v30, %v2060_v27  ;;  %v2061_v33 = vpop.f32.mrf.mxu1  ;;  %v1813_v37 = vadd.f32 %v4677_v45, %v1812_v32  ;;  %v3635_v32 = vor.u32 %v3988_v25, %v3632_v26 }
 0x2d2   : > { %3796 = vmatmul.msk.bf16.gmra.mxu3 %vm1486_vm0, %v3603_v35  ;;  %v3606_v35 = vld [vmem:[%s4104_s11 + $0x5a0] sm:$0xf] }
 0x2d3   : > { %v2558_v36 = vadd.f32 %v2557_v57, %v2309_v31  ;;  %v2062_v44 = vadd.f32 %v2061_v33, %v1813_v37 }
 0x2d5   : > { %v2695_v40 = vmax.f32 %v2558_v36, 0.0  ;;  %v2567_v54 = vpop.f32.mrf.mxu3  ;;  %v3985_v36 = vld [vmem:[%s4104_s11 + $0x5ac] sm:$0xf0] }
 0x2d6   : > { %v3607_v43 = vor.u32 %v3985_v36, %v3606_v35  ;;  %v3994_v35 = vld [vmem:[%s4104_s11 + $0x5f4] sm:$0xf0] }
 0x2d7   : > { %2792 = vst.msk [vmem:[%s4248_s25 + $0x220] sm:$0xff] %vm2723_vm1, %v2695_v40  ;;  %v3614_v40 = vld [vmem:[%s4104_s11 + $0x5a8] sm:$0xf] }
 0x2d8   : > { %v2310_v46 = vpop.f32.mrf.mxu2  ;;  %v1815_v5 = vpop.f32.mrf.mxu0 }
 0x2d9   : > { %v2311_v49 = vadd.f32 %v2310_v46, %v2062_v44  ;;  %v2064_v50 = vpop.f32.mrf.mxu1  ;;  %v1816_v53 = vadd.f32 %v4677_v45, %v1815_v5  ;;  %v3611_v44 = vor.u32 %v3983_v38, %v3608_v39 }
 0x2db   : > { %v2560_v55 = vadd.f32 %v2559_v3, %v2311_v49  ;;  %1854 = vmatmul.bf16.gmra.mxu0 %v3575_v47  ;;  %v2065_v57 = vadd.f32 %v2064_v50, %v1816_v53  ;;  %v3615_v49 = vor.u32 %v3986_v52, %v3614_v40 }
 0x2dc   : > { %2103 = vmatmul.bf16.gmra.mxu1 %v3579_v48 }
 0x2dd   : > { %v2696_v56 = vmax.f32 %v2560_v55, 0.0  ;;  %2352 = vmatmul.bf16.gmra.mxu2 %v3583_v51  ;;  %v2569_v0 = vpop.f32.mrf.mxu3  ;;  %v3992_v55 = vld [vmem:[%s4104_s11 + $0x5ec] sm:$0xf] }
 0x2df   : > { %2793 = vst.msk [vmem:[%s4248_s25 + $0x228] sm:$0xff] %vm2723_vm1, %v2696_v56  ;;  %v3648_v56 = vld [vmem:[%s4104_s11 + $0x5f8] sm:$0xf0] }
 0x2e0   : > { %v2313_v60 = vpop.f32.mrf.mxu2  ;;  %v1817_v62 = vpop.f32.mrf.mxu0 }
 0x2e1   : > { %v2314_v61 = vadd.f32 %v2313_v60, %v2065_v57  ;;  %v2066_v63 = vpop.f32.mrf.mxu1  ;;  %v1818_v3 = vadd.f32 %v4677_v45, %v1817_v62  ;;  %v3651_v62 = vor.u32 %v3992_v55, %v3648_v56 }
 0x2e2   : > { %3797 = vmatmul.msk.bf16.gmra.mxu3 %vm1486_vm0, %v3619_v1  ;;  %v3622_v1 = vld [vmem:[%s4104_s11 + $0x5c0] sm:$0xf] }
 0x2e3   : > { %v2563_v2 = vadd.f32 %v2562_v24, %v2314_v61  ;;  %v2067_v12 = vadd.f32 %v2066_v63, %v1818_v3 }
 0x2e5   : > { %v2697_v7 = vmax.f32 %v2563_v2, 0.0  ;;  %v2572_v21 = vpop.f32.mrf.mxu3  ;;  %v3989_v2 = vld [vmem:[%s4104_s11 + $0x5cc] sm:$0xf0] }
 0x2e6   : > { %v3623_v11 = vor.u32 %v3989_v2, %v3622_v1 }
 0x2e7   : > { %2794 = vst.msk [vmem:[%s4248_s25 + $0x230] sm:$0xff] %vm2723_vm1, %v2697_v7  ;;  %v3630_v7 = vld [vmem:[%s4104_s11 + $0x5c8] sm:$0xf] }
 0x2e8   : > { %v2315_v13 = vpop.f32.mrf.mxu2  ;;  %v1820_v17 = vpop.f32.mrf.mxu0 }
 0x2e9   : > { %v2316_v16 = vadd.f32 %v2315_v13, %v2067_v12  ;;  %v2069_v18 = vpop.f32.mrf.mxu1  ;;  %v1821_v20 = vadd.f32 %v4677_v45, %v1820_v17  ;;  %v3627_v12 = vor.u32 %v3987_v4, %v3624_v6 }
 0x2eb   : > { %v2565_v22 = vadd.f32 %v2564_v34, %v2316_v16  ;;  %1859 = vmatmul.bf16.gmra.mxu0 %v3591_v14  ;;  %v2070_v24 = vadd.f32 %v2069_v18, %v1821_v20  ;;  %v3631_v16 = vor.u32 %v3990_v8, %v3630_v7 }
 0x2ec   : > { %2108 = vmatmul.bf16.gmra.mxu1 %v3595_v15 }
 0x2ed   : > { %v2698_v23 = vmax.f32 %v2565_v22, 0.0  ;;  %2357 = vmatmul.bf16.gmra.mxu2 %v3599_v19  ;;  %v2574_v31 = vpop.f32.mrf.mxu3 }
 0x2ef   : > { %2795 = vst.msk [vmem:[%s4248_s25 + $0x238] sm:$0xff] %vm2723_vm1, %v2698_v23 }
 0x2f0   : > { %v2318_v27 = vpop.f32.mrf.mxu2  ;;  %v1822_v29 = vpop.f32.mrf.mxu0 }
 0x2f1   : > { %v2319_v28 = vadd.f32 %v2318_v27, %v2070_v24  ;;  %v2071_v30 = vpop.f32.mrf.mxu1  ;;  %v1823_v34 = vadd.f32 %v4677_v45, %v1822_v29  ;;  %v3638_v29 = vld [vmem:[%s4104_s11 + $0x5e0] sm:$0xf] }
 0x2f2   : > { %3798 = vmatmul.msk.bf16.gmra.mxu3 %vm1486_vm0, %v3635_v32  ;;  %v3991_v32 = vld [vmem:[%s4104_s11 + $0x5e4] sm:$0xf] }
 0x2f3   : > { %v2568_v33 = vadd.f32 %v2567_v54, %v2319_v28  ;;  %v2072_v41 = vadd.f32 %v2071_v30, %v1823_v34  ;;  %v3993_v30 = vld [vmem:[%s4104_s11 + $0x5ec] sm:$0xf0]  ;;  %v3646_v34 = vld [vmem:[%s4104_s11 + $0x5e8] sm:$0xf] }
 0x2f4   : > { %v3639_v38 = vor.u32 %v3993_v30, %v3638_v29 }
 0x2f5   : > { %v2699_v37 = vmax.f32 %v2568_v33, 0.0  ;;  %v2577_v50 = vpop.f32.mrf.mxu3  ;;  %v3640_v33 = vld [vmem:[%s4104_s11 + $0x5f0] sm:$0xf0] }
 0x2f6   : > { %v3643_v39 = vor.u32 %v3991_v32, %v3640_v33 }
 0x2f7   : > { %2796 = vst.msk [vmem:[%s4248_s25 + $0x240] sm:$0xff] %vm2723_vm1, %v2699_v37 }
 0x2f8   : > { %v2320_v42 = vpop.f32.mrf.mxu2  ;;  %v1825_v47 = vpop.f32.mrf.mxu0 }
 0x2f9   : > { %v2321_v46 = vadd.f32 %v2320_v42, %v2072_v41  ;;  %v2074_v48 = vpop.f32.mrf.mxu1  ;;  %v1826_v5 = vadd.f32 %v4677_v45, %v1825_v47  ;;  %v3647_v42 = vor.u32 %v3994_v35, %v3646_v34 }
 0x2fb   : > { %v2570_v51 = vadd.f32 %v2569_v0, %v2321_v46  ;;  %1864 = vmatmul.bf16.gmra.mxu0 %v3607_v43  ;;  %v2075_v54 = vadd.f32 %v2074_v48, %v1826_v5 }
 0x2fc   : > { %2113 = vmatmul.bf16.gmra.mxu1 %v3611_v44 }
 0x2fd   : > { %v2700_v53 = vmax.f32 %v2570_v51, 0.0  ;;  %2362 = vmatmul.bf16.gmra.mxu2 %v3615_v49  ;;  %v2579_v61 = vpop.f32.mrf.mxu3 }
 0x2ff   : > { %2797 = vst.msk [vmem:[%s4248_s25 + $0x248] sm:$0xff] %vm2723_vm1, %v2700_v53 }
 0x300   : > { %v2323_v57 = vpop.f32.mrf.mxu2  ;;  %v1827_v59 = vpop.f32.mrf.mxu0 }
 0x301   : > { %v2324_v58 = vadd.f32 %v2323_v57, %v2075_v54  ;;  %v2076_v60 = vpop.f32.mrf.mxu1  ;;  %v1828_v0 = vadd.f32 %v4677_v45, %v1827_v59 }
 0x302   : > { %3799 = vmatmul.msk.bf16.gmra.mxu3 %vm1486_vm0, %v3651_v62 }
 0x303   : > { %v2573_v63 = vadd.f32 %v2572_v21, %v2324_v58  ;;  %v2077_v9 = vadd.f32 %v2076_v60, %v1828_v0 }
 0x305   : > { %v2701_v3 = vmax.f32 %v2573_v63, 0.0  ;;  %v2582_v18 = vpop.f32.mrf.mxu3 }
 0x307   : > { %2798 = vst.msk [vmem:[%s4248_s25 + $0x250] sm:$0xff] %vm2723_vm1, %v2701_v3 }
 0x308   : > { %v2325_v10 = vpop.f32.mrf.mxu2  ;;  %v1830_v14 = vpop.f32.mrf.mxu0 }
 0x309   : > { %v2326_v13 = vadd.f32 %v2325_v10, %v2077_v9  ;;  %v2079_v15 = vpop.f32.mrf.mxu1  ;;  %v1831_v17 = vadd.f32 %v4677_v45, %v1830_v14 }
 0x30b   : > { %v2575_v19 = vadd.f32 %v2574_v31, %v2326_v13  ;;  %1869 = vmatmul.bf16.gmra.mxu0 %v3623_v11  ;;  %v2080_v21 = vadd.f32 %v2079_v15, %v1831_v17 }
 0x30c   : > { %2118 = vmatmul.bf16.gmra.mxu1 %v3627_v12 }
 0x30d   : > { %v2702_v20 = vmax.f32 %v2575_v19, 0.0  ;;  %2367 = vmatmul.bf16.gmra.mxu2 %v3631_v16  ;;  %v2584_v26 = vpop.f32.mrf.mxu3 }
 0x30f   : > { %2799 = vst.msk [vmem:[%s4248_s25 + $0x258] sm:$0xff] %vm2723_vm1, %v2702_v20 }
 0x310   : > { %v2328_v22 = vpop.f32.mrf.mxu2  ;;  %v1832_v24 = vpop.f32.mrf.mxu0 }
 0x311   : > { %v2329_v23 = vadd.f32 %v2328_v22, %v2080_v21  ;;  %v2081_v25 = vpop.f32.mrf.mxu1  ;;  %v1833_v28 = vadd.f32 %v4677_v45, %v1832_v24 }
 0x313   : > { %v2578_v27 = vadd.f32 %v2577_v50, %v2329_v23  ;;  %v2082_v36 = vadd.f32 %v2081_v25, %v1833_v28 }
 0x315   : > { %v2703_v31 = vmax.f32 %v2578_v27, 0.0  ;;  %v2587_v44 = vpop.f32.mrf.mxu3 }
 0x317   : > { %2800 = vst.msk [vmem:[%s4248_s25 + $0x260] sm:$0xff] %vm2723_vm1, %v2703_v31 }
 0x318   : > { %v2330_v37 = vpop.f32.mrf.mxu2  ;;  %v1835_v52 = vpop.f32.mrf.mxu0 }
 0x319   : > { %v2331_v40 = vadd.f32 %v2330_v37, %v2082_v36  ;;  %v2084_v41 = vpop.f32.mrf.mxu1  ;;  %v1836_v43 = vadd.f32 %v4677_v45, %v1835_v52 }
 0x31b   : > { %v2580_v46 = vadd.f32 %v2579_v61, %v2331_v40  ;;  %1874 = vmatmul.bf16.gmra.mxu0 %v3639_v38  ;;  %v2085_v48 = vadd.f32 %v2084_v41, %v1836_v43 }
 0x31c   : > { %2123 = vmatmul.bf16.gmra.mxu1 %v3643_v39 }
 0x31d   : > { %v2704_v47 = vmax.f32 %v2580_v46, 0.0  ;;  %2372 = vmatmul.bf16.gmra.mxu2 %v3647_v42  ;;  %v2589_v53 = vpop.f32.mrf.mxu3 }
 0x31f   : > { %2801 = vst.msk [vmem:[%s4248_s25 + $0x268] sm:$0xff] %vm2723_vm1, %v2704_v47 }
 0x320   : > { %v2333_v49 = vpop.f32.mrf.mxu2  ;;  %v1837_v50 = vpop.f32.mrf.mxu0 }
 0x321   : > { %v2334_v5 = vadd.f32 %v2333_v49, %v2085_v48  ;;  %v2086_v51 = vpop.f32.mrf.mxu1  ;;  %v1838_v55 = vadd.f32 %v4677_v45, %v1837_v50 }
 0x323   : > { %v2583_v54 = vadd.f32 %v2582_v18, %v2334_v5  ;;  %v2087_v57 = vadd.f32 %v2086_v51, %v1838_v55 }
 0x325   : > { %v2705_v56 = vmax.f32 %v2583_v54, 0.0  ;;  %v2592_v63 = vpop.f32.mrf.mxu3 }
 0x327   : > { %2802 = vst.msk [vmem:[%s4248_s25 + $0x270] sm:$0xff] %vm2723_vm1, %v2705_v56 }
 0x328   : > { %v2335_v58 = vpop.f32.mrf.mxu2  ;;  %v1840_v60 = vpop.f32.mrf.mxu0 }
 0x329   : > { %v2336_v59 = vadd.f32 %v2335_v58, %v2087_v57  ;;  %v2089_v61 = vpop.f32.mrf.mxu1  ;;  %v1841_v62 = vadd.f32 %v4677_v45, %v1840_v60 }
 0x32b   : > { %v2585_v0 = vadd.f32 %v2584_v26, %v2336_v59  ;;  %v2090_v2 = vadd.f32 %v2089_v61, %v1841_v62 }
 0x32d   : > { %v2706_v1 = vmax.f32 %v2585_v0, 0.0  ;;  %v2594_v8 = vpop.f32.mrf.mxu3 }
 0x32f   : > { %2803 = vst.msk [vmem:[%s4248_s25 + $0x278] sm:$0xff] %vm2723_vm1, %v2706_v1 }
 0x330   : > { %v2338_v3 = vpop.f32.mrf.mxu2  ;;  %v1842_v6 = vpop.f32.mrf.mxu0 }
 0x331   : > { %v2339_v4 = vadd.f32 %v2338_v3, %v2090_v2  ;;  %v2091_v7 = vpop.f32.mrf.mxu1  ;;  %v1843_v10 = vadd.f32 %v4677_v45, %v1842_v6 }
 0x333   : > { %v2588_v9 = vadd.f32 %v2587_v44, %v2339_v4  ;;  %v2092_v12 = vadd.f32 %v2091_v7, %v1843_v10 }
 0x335   : > { %v2707_v11 = vmax.f32 %v2588_v9, 0.0  ;;  %v2597_v19 = vpop.f32.mrf.mxu3 }
 0x337   : > { %2804 = vst.msk [vmem:[%s4248_s25 + $0x280] sm:$0xff] %vm2723_vm1, %v2707_v11 }
 0x338   : > { %v2340_v13 = vpop.f32.mrf.mxu2  ;;  %v1845_v15 = vpop.f32.mrf.mxu0 }
 0x339   : > { %v2341_v14 = vadd.f32 %v2340_v13, %v2092_v12  ;;  %v2094_v16 = vpop.f32.mrf.mxu1  ;;  %v1846_v17 = vadd.f32 %v4677_v45, %v1845_v15 }
 0x33b   : > { %v2590_v18 = vadd.f32 %v2589_v53, %v2341_v14  ;;  %v2095_v21 = vadd.f32 %v2094_v16, %v1846_v17 }
 0x33d   : > { %v2708_v20 = vmax.f32 %v2590_v18, 0.0  ;;  %v2599_v29 = vpop.f32.mrf.mxu3 }
 0x33f   : > { %2805 = vst.msk [vmem:[%s4248_s25 + $0x288] sm:$0xff] %vm2723_vm1, %v2708_v20 }
 0x340   : > { %v2343_v22 = vpop.f32.mrf.mxu2  ;;  %v1847_v24 = vpop.f32.mrf.mxu0 }
 0x341   : > { %v2344_v23 = vadd.f32 %v2343_v22, %v2095_v21  ;;  %v2096_v25 = vpop.f32.mrf.mxu1  ;;  %v1848_v27 = vadd.f32 %v4677_v45, %v1847_v24 }
 0x343   : > { %v2593_v26 = vadd.f32 %v2592_v63, %v2344_v23  ;;  %v2097_v30 = vadd.f32 %v2096_v25, %v1848_v27 }
 0x345   : > { %v2709_v28 = vmax.f32 %v2593_v26, 0.0  ;;  %v2602_v40 = vpop.f32.mrf.mxu3 }
 0x347   : > { %2806 = vst.msk [vmem:[%s4248_s25 + $0x290] sm:$0xff] %vm2723_vm1, %v2709_v28 }
 0x348   : > { %v2345_v31 = vpop.f32.mrf.mxu2  ;;  %v1850_v33 = vpop.f32.mrf.mxu0 }
 0x349   : > { %v2346_v32 = vadd.f32 %v2345_v31, %v2097_v30  ;;  %v2099_v34 = vpop.f32.mrf.mxu1  ;;  %v1851_v35 = vadd.f32 %v4677_v45, %v1850_v33 }
 0x34b   : > { %v2595_v36 = vadd.f32 %v2594_v8, %v2346_v32  ;;  %v2100_v38 = vadd.f32 %v2099_v34, %v1851_v35 }
 0x34d   : > { %v2710_v37 = vmax.f32 %v2595_v36, 0.0  ;;  %v2604_v53 = vpop.f32.mrf.mxu3 }
 0x34f   : > { %2807 = vst.msk [vmem:[%s4248_s25 + $0x298] sm:$0xff] %vm2723_vm1, %v2710_v37 }
 0x350   : > { %v2348_v39 = vpop.f32.mrf.mxu2  ;;  %v1852_v41 = vpop.f32.mrf.mxu0 }
 0x351   : > { %v2349_v52 = vadd.f32 %v2348_v39, %v2100_v38  ;;  %v2101_v42 = vpop.f32.mrf.mxu1  ;;  %v1853_v44 = vadd.f32 %v4677_v45, %v1852_v41  ;;  %v4031_v41 = vld [vmem:[%s4896_s2] ss:$0 sm:$0xff] }
 0x353   : > { %v2598_v43 = vadd.f32 %v2597_v19, %v2349_v52  ;;  %v2102_v47 = vadd.f32 %v2101_v42, %v1853_v44 }
 0x355   : > { %v2711_v46 = vmax.f32 %v2598_v43, 0.0  ;;  %v2607_v63 = vpop.f32.mrf.mxu3 }
 0x357   : > { %2808 = vst.msk [vmem:[%s4248_s25 + $0x2a0] sm:$0xff] %vm2723_vm1, %v2711_v46 }
 0x358   : > { %v2350_v48 = vpop.f32.mrf.mxu2  ;;  %v1855_v5 = vpop.f32.mrf.mxu0 }
 0x359   : > { %v2351_v49 = vadd.f32 %v2350_v48, %v2102_v47  ;;  %v2104_v50 = vpop.f32.mrf.mxu1  ;;  %v1856_v51 = vadd.f32 %v4677_v45, %v1855_v5 }
 0x35b   : > { %v2600_v54 = vadd.f32 %v2599_v29, %v2351_v49  ;;  %v2105_v56 = vadd.f32 %v2104_v50, %v1856_v51 }
 0x35d   : > { %v2712_v55 = vmax.f32 %v2600_v54, 0.0  ;;  %v2609_v11 = vpop.f32.mrf.mxu3 }
 0x35f   : > { %2809 = vst.msk [vmem:[%s4248_s25 + $0x2a8] sm:$0xff] %vm2723_vm1, %v2712_v55 }
 0x360   : > { %v2353_v57 = vpop.f32.mrf.mxu2  ;;  %v1857_v59 = vpop.f32.mrf.mxu0 }
 0x361   : > { %v2354_v58 = vadd.f32 %v2353_v57, %v2105_v56  ;;  %v2106_v60 = vpop.f32.mrf.mxu1  ;;  %v1858_v62 = vadd.f32 %v4677_v45, %v1857_v59 }
 0x363   : > { %v2603_v61 = vadd.f32 %v2602_v40, %v2354_v58  ;;  %v2107_v1 = vadd.f32 %v2106_v60, %v1858_v62 }
 0x365   : > { %v2713_v0 = vmax.f32 %v2603_v61, 0.0  ;;  %v2612_v21 = vpop.f32.mrf.mxu3 }
 0x367   : > { %2810 = vst.msk [vmem:[%s4248_s25 + $0x2b0] sm:$0xff] %vm2723_vm1, %v2713_v0 }
 0x368   : > { %v2355_v2 = vpop.f32.mrf.mxu2  ;;  %v1860_v4 = vpop.f32.mrf.mxu0 }
 0x369   : > { %v2356_v3 = vadd.f32 %v2355_v2, %v2107_v1  ;;  %v2109_v6 = vpop.f32.mrf.mxu1  ;;  %v1861_v7 = vadd.f32 %v4677_v45, %v1860_v4 }
 0x36b   : > { %v2605_v8 = vadd.f32 %v2604_v53, %v2356_v3  ;;  %v2110_v10 = vadd.f32 %v2109_v6, %v1861_v7 }
 0x36d   : > { %v2714_v9 = vmax.f32 %v2605_v8, 0.0  ;;  %v2614_v33 = vpop.f32.mrf.mxu3 }
 0x36f   : > { %2811 = vst.msk [vmem:[%s4248_s25 + $0x2b8] sm:$0xff] %vm2723_vm1, %v2714_v9 }
 0x370   : > { %v2358_v12 = vpop.f32.mrf.mxu2  ;;  %v1862_v14 = vpop.f32.mrf.mxu0 }
 0x371   : > { %v2359_v13 = vadd.f32 %v2358_v12, %v2110_v10  ;;  %v2111_v15 = vpop.f32.mrf.mxu1  ;;  %v1863_v17 = vadd.f32 %v4677_v45, %v1862_v14 }
 0x373   : > { %v2608_v16 = vadd.f32 %v2607_v63, %v2359_v13  ;;  %v2112_v19 = vadd.f32 %v2111_v15, %v1863_v17 }
 0x375   : > { %v2715_v18 = vmax.f32 %v2608_v16, 0.0  ;;  %v2617_v44 = vpop.f32.mrf.mxu3 }
 0x377   : > { %2812 = vst.msk [vmem:[%s4248_s25 + $0x2c0] sm:$0xff] %vm2723_vm1, %v2715_v18 }
 0x378   : > { %v2360_v20 = vpop.f32.mrf.mxu2  ;;  %v1865_v23 = vpop.f32.mrf.mxu0 }
 0x379   : > { %v2361_v22 = vadd.f32 %v2360_v20, %v2112_v19  ;;  %v2114_v24 = vpop.f32.mrf.mxu1  ;;  %v1866_v25 = vadd.f32 %v4677_v45, %v1865_v23 }
 0x37b   : > { %v2610_v26 = vadd.f32 %v2609_v11, %v2361_v22  ;;  %v2115_v28 = vadd.f32 %v2114_v24, %v1866_v25 }
 0x37d   : > { %v2716_v27 = vmax.f32 %v2610_v26, 0.0  ;;  %v2619_v54 = vpop.f32.mrf.mxu3 }
 0x37f   : > { %2813 = vst.msk [vmem:[%s4248_s25 + $0x2c8] sm:$0xff] %vm2723_vm1, %v2716_v27 }
 0x380   : > { %v2363_v29 = vpop.f32.mrf.mxu2  ;;  %v1867_v31 = vpop.f32.mrf.mxu0 }
 0x381   : > { %v2364_v30 = vadd.f32 %v2363_v29, %v2115_v28  ;;  %v2116_v32 = vpop.f32.mrf.mxu1  ;;  %v1868_v35 = vadd.f32 %v4677_v45, %v1867_v31 }
 0x383   : > { %v2613_v34 = vadd.f32 %v2612_v21, %v2364_v30  ;;  %v2117_v37 = vadd.f32 %v2116_v32, %v1868_v35 }
 0x385   : > { %v2717_v36 = vmax.f32 %v2613_v34, 0.0  ;;  %v2622_v0 = vpop.f32.mrf.mxu3 }
 0x387   : > { %2814 = vst.msk [vmem:[%s4248_s25 + $0x2d0] sm:$0xff] %vm2723_vm1, %v2717_v36 }
 0x388   : > { %v2365_v38 = vpop.f32.mrf.mxu2  ;;  %v1870_v40 = vpop.f32.mrf.mxu0 }
 0x389   : > { %v2366_v39 = vadd.f32 %v2365_v38, %v2117_v37  ;;  %v2119_v52 = vpop.f32.mrf.mxu1  ;;  %v1871_v42 = vadd.f32 %v4031_v41, %v1870_v40 }
 0x38b   : > { %v2615_v43 = vadd.f32 %v2614_v33, %v2366_v39  ;;  %v2120_v47 = vadd.f32 %v2119_v52, %v1871_v42 }
 0x38d   : > { %v2718_v46 = vmax.f32 %v2615_v43, 0.0  ;;  %v2624_v12 = vpop.f32.mrf.mxu3 }
 0x38f   : > { %2815 = vst.msk [vmem:[%s4248_s25 + $0x2d8] sm:$0xff] %vm2723_vm1, %v2718_v46 }
 0x390   : > { %v2368_v45 = vpop.f32.mrf.mxu2  ;;  %v1872_v49 = vpop.f32.mrf.mxu0 }
 0x391   : > { %v2369_v48 = vadd.f32 %v2368_v45, %v2120_v47  ;;  %v2121_v5 = vpop.f32.mrf.mxu1  ;;  %v1873_v51 = vadd.f32 %v4031_v41, %v1872_v49 }
 0x393   : > { %v2618_v50 = vadd.f32 %v2617_v44, %v2369_v48  ;;  %v2122_v55 = vadd.f32 %v2121_v5, %v1873_v51 }
 0x395   : > { %v2719_v53 = vmax.f32 %v2618_v50, 0.0 }
 0x397   : > { %2816 = vst.msk [vmem:[%s4248_s25 + $0x2e0] sm:$0xff] %vm2723_vm1, %v2719_v53 }
 0x398   : > { %v2370_v56 = vpop.f32.mrf.mxu2  ;;  %v1875_v58 = vpop.f32.mrf.mxu0 }
 0x399   : > { %v2371_v57 = vadd.f32 %v2370_v56, %v2122_v55  ;;  %v1876_v59 = vadd.f32 %v4031_v41, %v1875_v58  ;;  %v2124_v61 = vpop.f32.mrf.mxu1 }
 0x39b   : > { %v2620_v60 = vadd.f32 %v2619_v54, %v2371_v57  ;;  %v2125_v63 = vadd.f32 %v2124_v61, %v1876_v59 }
 0x39d   : > { %v2720_v62 = vmax.f32 %v2620_v60, 0.0 }
 0x39f   : > { %2817 = vst.msk [vmem:[%s4248_s25 + $0x2e8] sm:$0xff] %vm2723_vm1, %v2720_v62 }
 0x3a0   : > { %v2373_v1 = vpop.f32.mrf.mxu2  ;;  %v1877_v3 = vpop.f32.mrf.mxu0 }
 0x3a1   : > { %v2374_v2 = vadd.f32 %v2373_v1, %v2125_v63  ;;  %v1878_v6 = vadd.f32 %v4031_v41, %v1877_v3  ;;  %v2126_v8 = vpop.f32.mrf.mxu1 }
 0x3a3   : > { %v2623_v4 = vadd.f32 %v2622_v0, %v2374_v2  ;;  %v2127_v9 = vadd.f32 %v2126_v8, %v1878_v6 }
 0x3a5   : > { %v2721_v7 = vmax.f32 %v2623_v4, 0.0 }
 0x3a7   : > { %2818 = vst.msk [vmem:[%s4248_s25 + $0x2f0] sm:$0xff] %vm2723_vm1, %v2721_v7 }
 0x3a8   : > { %v2375_v10 = vpop.f32.mrf.mxu2 }
 0x3a9   : > { %v2376_v11 = vadd.f32 %v2375_v10, %v2127_v9 }
 0x3ab   : > { %v2625_v13 = vadd.f32 %v2624_v12, %v2376_v11 }
 0x3ad   : > { %v2722_v14 = vmax.f32 %v2625_v13, 0.0 }
 0x3af   : > { %2819 = vst.msk [vmem:[%s4248_s25 + $0x2f8] sm:$0xff] %vm2723_vm1, %v2722_v14 }
 0x3b0 PF: > { %s13_s12 = sadd.s32 1, %s4038_s12  }
 0x3b1   : > { %p10_p4 = scmp.ge.s32.totalorder %s13_s12, 4  }
 0x3b3   :  { %12 = sbr.rel (!%p10_p4) target bundleno = 1 (0x1), region = 62 }

// kernel: planner_forward.7
= control target key start
LH: loop header
LB: loop body
LE: loop exit
PB: predicated region body
PF: predicated region fallthrough
CT: control target
= control target key end

     0   :  { %vm1451_vm0 = vcmask 261120   ;;  %s5395_s1 = inlined_call_operand.vmem [shape: bf16[800,32], index: 1, kind: input, shape index: {}]   ;;  %s5396_s2 = inlined_call_operand.vmem [shape: f32[1,32], index: 2, kind: input, shape index: {}]   ;;  %s5397_s0 = inlined_call_operand.vmem [shape: bf16[384,800], index: 0, kind: input, shape index: {}]   ;;  %s5398_s3 = inlined_call_operand.vmem [shape: f32[384,32], index: 3, kind: output, shape index: {}]  }
   0x1   :  { %v3598_v0 = vld [vmem:[%s5395_s1 + $0x38] sm:$0xff]  ;;  %v3597_v3 = vld [vmem:[%s5395_s1 + $0x30] sm:$0xff]  ;;  %v3596_v6 = vld [vmem:[%s5395_s1 + $0x28] sm:$0xff] }
   0x2   :  { %v3693_v1 = vld [vmem:[%s5395_s1 + $0xb8] sm:$0xff]  ;;  %1524 = vmatpush.bf16.msra.mxu0 %v3598_v0  ;;  %3641 = vmatpush.bf16.msra.mxu3 %v3598_v0  ;;  %v3708_v4 = vld [vmem:[%s5395_s1 + $0xb0] sm:$0xff]  ;;  %v3723_v7 = vld [vmem:[%s5395_s1 + $0xa8] sm:$0xff] }
   0x3   :  { %v3698_v2 = vld [vmem:[%s5395_s1 + $0x78] sm:$0xff]  ;;  %1782 = vmatpush.bf16.msra.mxu2 %v3693_v1  ;;  %v3713_v5 = vld [vmem:[%s5395_s1 + $0x70] sm:$0xff]  ;;  %v3728_v8 = vld [vmem:[%s5395_s1 + $0x68] sm:$0xff] }
   0x4   :  { %1653 = vmatpush.bf16.msra.mxu1 %v3698_v2  ;;  %v3595_v9 = vld [vmem:[%s5395_s1 + $0x20] sm:$0xff]  ;;  %v3594_v12 = vld [vmem:[%s5395_s1 + $0x18] sm:$0xff]  ;;  %v3593_v15 = vld [vmem:[%s5395_s1 + $0x10] sm:$0xff] }
   0x5   :  { %v3738_v10 = vld [vmem:[%s5395_s1 + $0xa0] sm:$0xff]  ;;  %v3753_v13 = vld [vmem:[%s5395_s1 + $0x98] sm:$0xff]  ;;  %v3768_v16 = vld [vmem:[%s5395_s1 + $0x90] sm:$0xff] }
   0x6   :  { %1525 = vmatpush.bf16.msra.mxu0 %v3597_v3  ;;  %3642 = vmatpush.bf16.msra.mxu3 %v3597_v3  ;;  %v3743_v11 = vld [vmem:[%s5395_s1 + $0x60] sm:$0xff]  ;;  %v3758_v14 = vld [vmem:[%s5395_s1 + $0x58] sm:$0xff]  ;;  %v3773_v17 = vld [vmem:[%s5395_s1 + $0x50] sm:$0xff] }
   0x7   :  { %1783 = vmatpush.bf16.msra.mxu2 %v3708_v4  ;;  %v3592_v18 = vld [vmem:[%s5395_s1 + $0x8] sm:$0xff]  ;;  %v3591_v21 = vld [vmem:[%s5395_s1] sm:$0xff]  ;;  %v3426_v25 = vld [vmem:[%s5397_s0 + $0x18] sm:$0xf0] }
   0x8   :  { %1654 = vmatpush.bf16.msra.mxu1 %v3713_v5  ;;  %v3783_v19 = vld [vmem:[%s5395_s1 + $0x88] sm:$0xff]  ;;  %v3794_v22 = vld [vmem:[%s5395_s1 + $0x80] sm:$0xff]  ;;  %v3033_v26 = vld [vmem:[%s5397_s0 + $0x3f0] sm:$0xf] }
   0x9   :  { %v3600_v20 = vld [vmem:[%s5395_s1 + $0x48] sm:$0xff]  ;;  %v3799_v23 = vld [vmem:[%s5395_s1 + $0x40] sm:$0xff]  ;;  %v3630_v37 = vld [vmem:[%s5395_s1 + $0x138] sm:$0xff] }
   0xa   :  { %1526 = vmatpush.bf16.msra.mxu0 %v3596_v6  ;;  %3643 = vmatpush.bf16.msra.mxu3 %v3596_v6  ;;  %v2529_v24 = vld [vmem:[%s5397_s0] sm:$0xf]  ;;  %v3552_v27 = vld [vmem:[%s5397_s0 + $0x408] sm:$0xf0]  ;;  %v2537_v28 = vld [vmem:[%s5397_s0 + $0x8] sm:$0xf] }
   0xb   :  { %1784 = vmatpush.bf16.msra.mxu2 %v3723_v7  ;;  %v3427_v29 = vld [vmem:[%s5397_s0 + $0x20] sm:$0xf0]  ;;  %v2531_v31 = vld [vmem:[%s5397_s0 + $0x1c] sm:$0xf0]  ;;  %v3640_v32 = vld [vmem:[%s5395_s1 + $0x188] sm:$0xff]  ;;  %v2530_v33 = vor.u32 %v3426_v25, %v2529_v24  ;;  %v3034_v34 = vor.u32 %v3552_v27, %v3033_v26 }
   0xc   :  { %1655 = vmatpush.bf16.msra.mxu1 %v3728_v8  ;;  %v3423_v30 = vld [vmem:[%s5397_s0 + $0x4] sm:$0xf]  ;;  %v2538_v35 = vor.u32 %v3427_v29, %v2537_v28  ;;  %v3638_v38 = vld [vmem:[%s5395_s1 + $0x178] sm:$0xff]  ;;  %v3629_v39 = vld [vmem:[%s5395_s1 + $0x130] sm:$0xff] }
   0xd   :  { %v2534_v36 = vor.u32 %v3423_v30, %v2531_v31  ;;  %v3637_v40 = vld [vmem:[%s5395_s1 + $0x170] sm:$0xff]  ;;  %v2557_v41 = vld [vmem:[%s5397_s0 + $0x38] sm:$0xf]  ;;  %v3061_v43 = vld [vmem:[%s5397_s0 + $0x428] sm:$0xf] }
   0xe   :  { %1527 = vmatpush.bf16.msra.mxu0 %v3595_v9  ;;  %3644 = vmatpush.bf16.msra.mxu3 %v3595_v9  ;;  %v3433_v42 = vld [vmem:[%s5397_s0 + $0x50] sm:$0xf0]  ;;  %v3559_v44 = vld [vmem:[%s5397_s0 + $0x440] sm:$0xf0]  ;;  %v2565_v45 = vld [vmem:[%s5397_s0 + $0x40] sm:$0xf] }
   0xf   :  { %1785 = vmatpush.bf16.msra.mxu2 %v3738_v10  ;;  %v3434_v46 = vld [vmem:[%s5397_s0 + $0x58] sm:$0xf0]  ;;  %v2559_v48 = vld [vmem:[%s5397_s0 + $0x54] sm:$0xf0]  ;;  %v2558_v49 = vor.u32 %v3433_v42, %v2557_v41  ;;  %v3062_v50 = vor.u32 %v3559_v44, %v3061_v43  ;;  %v2585_v53 = vld [vmem:[%s5397_s0 + $0x70] sm:$0xf] }
  0x10   :  { %1656 = vmatpush.bf16.msra.mxu1 %v3743_v11  ;;  %v3430_v47 = vld [vmem:[%s5397_s0 + $0x3c] sm:$0xf]  ;;  %v2566_v51 = vor.u32 %v3434_v46, %v2565_v45  ;;  %v3440_v54 = vld [vmem:[%s5397_s0 + $0x88] sm:$0xf0]  ;;  %v3089_v55 = vld [vmem:[%s5397_s0 + $0x460] sm:$0xf] }
  0x11   :  { %v2562_v52 = vor.u32 %v3430_v47, %v2559_v48  ;;  %v3566_v56 = vld [vmem:[%s5397_s0 + $0x478] sm:$0xf0]  ;;  %v2593_v57 = vld [vmem:[%s5397_s0 + $0x78] sm:$0xf]  ;;  %v3441_v58 = vld [vmem:[%s5397_s0 + $0x90] sm:$0xf0]  ;;  %v2586_v61 = vor.u32 %v3440_v54, %v2585_v53 }
  0x12   :  { %1528 = vmatpush.bf16.msra.mxu0 %v3594_v12  ;;  %3645 = vmatpush.bf16.msra.mxu3 %v3594_v12  ;;  %v3437_v59 = vld [vmem:[%s5397_s0 + $0x74] sm:$0xf]  ;;  %v2587_v60 = vld [vmem:[%s5397_s0 + $0x8c] sm:$0xf0]  ;;  %v3090_v62 = vor.u32 %v3566_v56, %v3089_v55  ;;  %v2594_v63 = vor.u32 %v3441_v58, %v2593_v57  ;;  %v3447_v3 = vld [vmem:[%s5397_s0 + $0xc0] sm:$0xf0] }
  0x13   :  { %1786 = vmatpush.bf16.msra.mxu2 %v3753_v13  ;;  %v2590_v0 = vor.u32 %v3437_v59, %v2587_v60  ;;  %v3448_v6 = vld [vmem:[%s5397_s0 + $0xc8] sm:$0xf0]  ;;  %v2669_v28 = vld [vmem:[%s5397_s0 + $0x118] sm:$0xf]  ;;  %v3461_v29 = vld [vmem:[%s5397_s0 + $0x130] sm:$0xf0] }
  0x14   :  { %1657 = vmatpush.bf16.msra.mxu1 %v3758_v14  ;;  %v3587_v30 = vld [vmem:[%s5397_s0 + $0x520] sm:$0xf0]  ;;  %v2677_v31 = vld [vmem:[%s5397_s0 + $0x120] sm:$0xf]  ;;  %v2697_v41 = vld [vmem:[%s5397_s0 + $0x150] sm:$0xf] }
  0x15   :  { %v3468_v42 = vld [vmem:[%s5397_s0 + $0x168] sm:$0xf0]  ;;  %v3549_v43 = vld [vmem:[%s5397_s0 + $0x3f4] sm:$0xf]  ;;  %v3035_v44 = vld [vmem:[%s5397_s0 + $0x40c] sm:$0xf0] }
  0x16   :  { %1529 = vmatpush.bf16.msra.mxu0 %v3593_v15  ;;  %3646 = vmatpush.bf16.msra.mxu3 %v3593_v15  ;;  %v3628_v15 = vld [vmem:[%s5395_s1 + $0x128] sm:$0xff]  ;;  %v2705_v45 = vld [vmem:[%s5397_s0 + $0x158] sm:$0xf]  ;;  %v3469_v46 = vld [vmem:[%s5397_s0 + $0x170] sm:$0xf0] }
  0x17   :  { %1787 = vmatpush.bf16.msra.mxu2 %v3768_v16  ;;  %v3465_v47 = vld [vmem:[%s5397_s0 + $0x154] sm:$0xf]  ;;  %v2699_v48 = vld [vmem:[%s5397_s0 + $0x16c] sm:$0xf0]  ;;  %v2725_v53 = vld [vmem:[%s5397_s0 + $0x188] sm:$0xf] }
  0x18   :  { %1658 = vmatpush.bf16.msra.mxu1 %v3773_v17  ;;  %v3475_v54 = vld [vmem:[%s5397_s0 + $0x1a0] sm:$0xf0]  ;;  %v3556_v55 = vld [vmem:[%s5397_s0 + $0x42c] sm:$0xf]  ;;  %v3063_v56 = vld [vmem:[%s5397_s0 + $0x444] sm:$0xf0] }
  0x19   :  { %v2733_v57 = vld [vmem:[%s5397_s0 + $0x190] sm:$0xf]  ;;  %v3476_v58 = vld [vmem:[%s5397_s0 + $0x1a8] sm:$0xf0]  ;;  %v2727_v60 = vld [vmem:[%s5397_s0 + $0x1a4] sm:$0xf0] }
  0x1a   :  { %1530 = vmatpush.bf16.msra.mxu0 %v3592_v18  ;;  %3647 = vmatpush.bf16.msra.mxu3 %v3592_v18  ;;  %v3145_v18 = vld [vmem:[%s5397_s0 + $0x4d0] sm:$0xf]  ;;  %v3472_v59 = vld [vmem:[%s5397_s0 + $0x18c] sm:$0xf] }
  0x1b   :  { %1788 = vmatpush.bf16.msra.mxu2 %v3783_v19 }
  0x1c   :  { %1659 = vmatpush.bf16.msra.mxu1 %v3600_v20 }
  0x1e   :  { %1531 = vmatpush.bf16.msra.mxu0 %v3591_v21  ;;  %3648 = vmatpush.bf16.msra.mxu3 %v3591_v21  ;;  %v3451_v21 = vld [vmem:[%s5397_s0 + $0xe4] sm:$0xf] }
  0x1f   :  { %1789 = vmatpush.bf16.msra.mxu2 %v3794_v22 }
  0x20   :  { %1660 = vmatpush.bf16.msra.mxu1 %v3799_v23 }
  0x21   :  { %1532 = vmatmul.bf16.vlgmr.msra.gmra.mxu0 %v2530_v33  ;;  %1622 = vmatmul.bf16.vlgmr.msra.gmra.mxu3 %v3034_v34  ;;  %v3458_v33 = vld [vmem:[%s5397_s0 + $0x11c] sm:$0xf]  ;;  %v2671_v34 = vld [vmem:[%s5397_s0 + $0x134] sm:$0xf0] }
  0x22   :  { %3649 = vmatpush.bf16.msrb.mxu3 %v3698_v2  ;;  %1790 = vmatmul.bf16.vlgmr.msra.gmra.mxu2 %v2538_v35  ;;  %v2613_v2 = vld [vmem:[%s5397_s0 + $0xa8] sm:$0xf]  ;;  %v2670_v35 = vor.u32 %v3461_v29, %v2669_v28  ;;  %v2781_v29 = vld [vmem:[%s5397_s0 + $0x1f8] sm:$0xf] }
  0x23   :  { %2304 = vmatpush.bf16.msrb.mxu2 %v3640_v32  ;;  %1661 = vmatmul.bf16.vlgmr.msra.gmra.mxu1 %v2534_v36  ;;  %v2614_v9 = vor.u32 %v3447_v3, %v2613_v2  ;;  %v3462_v32 = vld [vmem:[%s5397_s0 + $0x138] sm:$0xf0]  ;;  %v3639_v2 = vld [vmem:[%s5395_s1 + $0x180] sm:$0xff] }
  0x24   :  { %2040 = vmatpush.bf16.msrb.mxu0 %v3630_v37  ;;  %2169 = vmatpush.bf16.msrb.mxu1 %v3638_v38  ;;  %v2678_v37 = vor.u32 %v3462_v32, %v2677_v31  ;;  %v2674_v38 = vor.u32 %v3458_v33, %v2671_v34  ;;  %v2753_v3 = vld [vmem:[%s5397_s0 + $0x1c0] sm:$0xf]  ;;  %v3119_v31 = vld [vmem:[%s5397_s0 + $0x4b4] sm:$0xf0]  ;;  %v3490_v33 = vld [vmem:[%s5397_s0 + $0x218] sm:$0xf0] }
  0x25   :  { %v2789_v32 = vld [vmem:[%s5397_s0 + $0x200] sm:$0xf]  ;;  %v3486_v34 = vld [vmem:[%s5397_s0 + $0x1fc] sm:$0xf] }
  0x26   :  { %3650 = vmatpush.bf16.msrb.mxu3 %v3713_v5  ;;  %v3573_v5 = vld [vmem:[%s5397_s0 + $0x4b0] sm:$0xf0] }
  0x27   :  { %2305 = vmatpush.bf16.msrb.mxu2 %v3639_v2 }
  0x28   :  { %2041 = vmatpush.bf16.msrb.mxu0 %v3629_v39  ;;  %2170 = vmatpush.bf16.msrb.mxu1 %v3637_v40  ;;  %v3627_v39 = vld [vmem:[%s5395_s1 + $0x120] sm:$0xff] }
  0x29   :  { %v3635_v40 = vld [vmem:[%s5395_s1 + $0x160] sm:$0xff] }
  0x2a   :  { %3651 = vmatpush.bf16.msrb.mxu3 %v3728_v8  ;;  %v2615_v8 = vld [vmem:[%s5397_s0 + $0xc4] sm:$0xf0] }
  0x2c   :  { %2042 = vmatpush.bf16.msrb.mxu0 %v3628_v15 }
  0x2e   :  { %3652 = vmatpush.bf16.msrb.mxu3 %v3743_v11 }
  0x30   :  { %2043 = vmatpush.bf16.msrb.mxu0 %v3627_v39 }
  0x31   :  { %1537 = vmatmul.bf16.gmra.mxu0 %v2558_v49  ;;  %1627 = vmatmul.bf16.gmra.mxu3 %v3062_v50  ;;  %v2698_v49 = vor.u32 %v3468_v42, %v2697_v41  ;;  %v3038_v50 = vor.u32 %v3549_v43, %v3035_v44  ;;  %v2790_v42 = vor.u32 %v3490_v33, %v2789_v32 }
  0x32   :  { %3653 = vmatpush.bf16.msrb.mxu3 %v3758_v14  ;;  %1795 = vmatmul.bf16.gmra.mxu2 %v2566_v51  ;;  %v2706_v51 = vor.u32 %v3469_v46, %v2705_v45 }
  0x33   :  { %1666 = vmatmul.bf16.gmra.mxu1 %v2562_v52  ;;  %v2702_v52 = vor.u32 %v3465_v47, %v2699_v48 }
  0x36   :  { %3654 = vmatpush.bf16.msrb.mxu3 %v3773_v17  ;;  %v3636_v17 = vld [vmem:[%s5395_s1 + $0x168] sm:$0xff] }
  0x37   :  { %2171 = vmatpush.bf16.msrb.mxu1 %v3636_v17 }
  0x3a   :  { %3655 = vmatpush.bf16.msrb.mxu3 %v3600_v20  ;;  %v3455_v20 = vld [vmem:[%s5397_s0 + $0x100] sm:$0xf0] }
  0x3b   :  { %2172 = vmatpush.bf16.msrb.mxu1 %v3635_v40 }
  0x3e   :  { %3656 = vmatpush.bf16.msrb.mxu3 %v3799_v23  ;;  %v2643_v23 = vld [vmem:[%s5397_s0 + $0xfc] sm:$0xf0] }
  0x3f   :  { %v2646_v27 = vor.u32 %v3451_v21, %v2643_v23 }
  0x41   :  { %1542 = vmatmul.bf16.gmra.mxu0 %v2586_v61  ;;  %1632 = vmatmul.bf16.gmra.mxu3 %v3090_v62  ;;  %v2726_v61 = vor.u32 %v3475_v54, %v2725_v53  ;;  %v3066_v62 = vor.u32 %v3556_v55, %v3063_v56  ;;  %v2809_v54 = vld [vmem:[%s5397_s0 + $0x230] sm:$0xf]  ;;  %v3496_v55 = vld [vmem:[%s5397_s0 + $0x248] sm:$0xf0]  ;;  %v3577_v56 = vld [vmem:[%s5397_s0 + $0x4d4] sm:$0xf] }
  0x42   :  { %3657 = vmatpush.bf16.msra.mxu3 %v3693_v1  ;;  %1800 = vmatmul.bf16.gmra.mxu2 %v2594_v63  ;;  %v3117_v1 = vld [vmem:[%s5397_s0 + $0x498] sm:$0xf]  ;;  %v2734_v63 = vor.u32 %v3476_v58, %v2733_v57  ;;  %v3147_v57 = vld [vmem:[%s5397_s0 + $0x4ec] sm:$0xf0] }
  0x43   :  { %1671 = vmatmul.bf16.gmra.mxu1 %v2590_v0  ;;  %v3118_v11 = vor.u32 %v3573_v5, %v3117_v1  ;;  %v2730_v0 = vor.u32 %v3472_v59, %v2727_v60  ;;  %v3482_v1 = vld [vmem:[%s5397_s0 + $0x1d8] sm:$0xf0]  ;;  %v2817_v58 = vld [vmem:[%s5397_s0 + $0x238] sm:$0xf]  ;;  %v3497_v59 = vld [vmem:[%s5397_s0 + $0x250] sm:$0xf0]  ;;  %v3150_v2 = vor.u32 %v3577_v56, %v3147_v57 }
  0x44   :  { %v3626_v5 = vld [vmem:[%s5395_s1 + $0x118] sm:$0xff]  ;;  %v2754_v15 = vor.u32 %v3482_v1, %v2753_v3  ;;  %v3493_v60 = vld [vmem:[%s5397_s0 + $0x234] sm:$0xf]  ;;  %v2873_v56 = vld [vmem:[%s5397_s0 + $0x2a8] sm:$0xf] }
  0x45   :  { %2044 = vmatpush.bf16.msrb.mxu0 %v3626_v5  ;;  %v2818_v5 = vor.u32 %v3497_v59, %v2817_v58  ;;  %v3041_v57 = vld [vmem:[%s5397_s0 + $0x3f8] sm:$0xf]  ;;  %v3553_v58 = vld [vmem:[%s5397_s0 + $0x410] sm:$0xf0]  ;;  %v3511_v59 = vld [vmem:[%s5397_s0 + $0x2c0] sm:$0xf0] }
  0x46   :  { %3658 = vmatpush.bf16.msra.mxu3 %v3708_v4  ;;  %v2621_v4 = vld [vmem:[%s5397_s0 + $0xb0] sm:$0xf] }
  0x47   :  { %v2622_v12 = vor.u32 %v3448_v6, %v2621_v4  ;;  %v3634_v4 = vld [vmem:[%s5395_s1 + $0x158] sm:$0xff]  ;;  %v3563_v6 = vld [vmem:[%s5397_s0 + $0x464] sm:$0xf] }
  0x48   :  { %2173 = vmatpush.bf16.msrb.mxu1 %v3634_v4 }
  0x4a   :  { %3659 = vmatpush.bf16.msra.mxu3 %v3723_v7  ;;  %v3444_v7 = vld [vmem:[%s5397_s0 + $0xac] sm:$0xf] }
  0x4b   :  { %v2618_v14 = vor.u32 %v3444_v7, %v2615_v8  ;;  %v3091_v7 = vld [vmem:[%s5397_s0 + $0x47c] sm:$0xf0]  ;;  %v2761_v8 = vld [vmem:[%s5397_s0 + $0x1c8] sm:$0xf] }
  0x4c   :  { %v3094_v17 = vor.u32 %v3563_v6, %v3091_v7  ;;  %v3625_v6 = vld [vmem:[%s5395_s1 + $0x110] sm:$0xff] }
  0x4d   :  { %2045 = vmatpush.bf16.msrb.mxu0 %v3625_v6  ;;  %v2874_v6 = vor.u32 %v3511_v59, %v2873_v56 }
  0x4e   :  { %3660 = vmatpush.bf16.msra.mxu3 %v3738_v10  ;;  %v2641_v10 = vld [vmem:[%s5397_s0 + $0xe0] sm:$0xf] }
  0x51   :  { %1547 = vmatmul.bf16.gmra.mxu0 %v2614_v9  ;;  %1637 = vmatmul.bf16.gmra.mxu3 %v3118_v11  ;;  %v3483_v9 = vld [vmem:[%s5397_s0 + $0x1e0] sm:$0xf0] }
  0x52   :  { %3661 = vmatpush.bf16.msra.mxu3 %v3753_v13  ;;  %1805 = vmatmul.bf16.gmra.mxu2 %v2622_v12  ;;  %v3454_v13 = vld [vmem:[%s5397_s0 + $0xf8] sm:$0xf0]  ;;  %v3479_v11 = vld [vmem:[%s5397_s0 + $0x1c4] sm:$0xf]  ;;  %v2755_v12 = vld [vmem:[%s5397_s0 + $0x1dc] sm:$0xf0] }
  0x53   :  { %1676 = vmatmul.bf16.gmra.mxu1 %v2618_v14  ;;  %v2642_v24 = vor.u32 %v3454_v13, %v2641_v10  ;;  %v4074_v14 = vld [vmem:[%s5396_s2] ss:$0 sm:$0xff]  ;;  %v2762_v13 = vor.u32 %v3483_v9, %v2761_v8  ;;  %v3633_v9 = vld [vmem:[%s5395_s1 + $0x150] sm:$0xff] }
  0x54   :  { %2174 = vmatpush.bf16.msrb.mxu1 %v3633_v9 }
  0x56   :  { %3662 = vmatpush.bf16.msra.mxu3 %v3768_v16  ;;  %v3580_v16 = vld [vmem:[%s5397_s0 + $0x4e8] sm:$0xf0] }
  0x57   :  { %v3146_v25 = vor.u32 %v3580_v16, %v3145_v18  ;;  %v2758_v18 = vor.u32 %v3479_v11, %v2755_v12  ;;  %v3622_v12 = vld [vmem:[%s5395_s1 + $0xf8] sm:$0xff] }
  0x5a   :  { %3663 = vmatpush.bf16.msra.mxu3 %v3783_v19  ;;  %v2649_v19 = vld [vmem:[%s5397_s0 + $0xe8] sm:$0xf] }
  0x5b   :  { %v2650_v26 = vor.u32 %v3455_v20, %v2649_v19 }
  0x5e   :  { %3664 = vmatpush.bf16.msra.mxu3 %v3794_v22  ;;  %v3173_v22 = vld [vmem:[%s5397_s0 + $0x508] sm:$0xf] }
  0x5f   :  { %v3174_v36 = vor.u32 %v3587_v30, %v3173_v22  ;;  %v3489_v22 = vld [vmem:[%s5397_s0 + $0x210] sm:$0xf0]  ;;  %v3570_v30 = vld [vmem:[%s5397_s0 + $0x49c] sm:$0xf] }
  0x60   :  { %v3122_v39 = vor.u32 %v3570_v30, %v3119_v31 }
  0x61   :  { %1552 = vmatmul.bf16.gmra.mxu0 %v2642_v24  ;;  %1642 = vmatmul.bf16.gmra.mxu3 %v3146_v25 }
  0x62   :  { %1810 = vmatmul.bf16.gmra.mxu2 %v2650_v26 }
  0x63   :  { %1681 = vmatmul.bf16.gmra.mxu1 %v2646_v27 }
  0x71   :  { %1557 = vmatmul.bf16.gmra.mxu0 %v2670_v35  ;;  %1647 = vmatmul.bf16.gmra.mxu3 %v3174_v36  ;;  %v2783_v35 = vld [vmem:[%s5397_s0 + $0x214] sm:$0xf0] }
  0x72   :  { %1815 = vmatmul.bf16.gmra.mxu2 %v2678_v37  ;;  %v2786_v43 = vor.u32 %v3486_v34, %v2783_v35 }
  0x73   :  { %1686 = vmatmul.bf16.gmra.mxu1 %v2674_v38  ;;  %v2782_v38 = vor.u32 %v3489_v22, %v2781_v29  ;;  %v3500_v29 = vld [vmem:[%s5397_s0 + $0x26c] sm:$0xf]  ;;  %v2839_v22 = vld [vmem:[%s5397_s0 + $0x284] sm:$0xf0] }
  0x81   :  { %1562 = vmatmul.bf16.gmra.mxu0 %v2698_v49  ;;  %1751 = vmatmul.bf16.vlgmr.msrb.gmra.mxu3 %v3038_v50 }
  0x82   :  { %1820 = vmatmul.bf16.gmra.mxu2 %v2706_v51  ;;  %1911 = vmatpush.bf16.msrb.mxu3 %v3622_v12  ;;  %v3624_v12 = vld [vmem:[%s5395_s1 + $0x108] sm:$0xff] }
  0x83   :  { %1691 = vmatmul.bf16.gmra.mxu1 %v2702_v52  ;;  %2046 = vmatpush.bf16.msrb.mxu0 %v3624_v12 }
  0x91   :  { %1567 = vmatmul.bf16.gmra.mxu0 %v2726_v61  ;;  %1756 = vmatmul.bf16.gmra.mxu3 %v3066_v62  ;;  %v2811_v61 = vld [vmem:[%s5397_s0 + $0x24c] sm:$0xf0] }
  0x92   :  { %1825 = vmatmul.bf16.gmra.mxu2 %v2734_v63  ;;  %v2814_v4 = vor.u32 %v3493_v60, %v2811_v61  ;;  %v3507_v60 = vld [vmem:[%s5397_s0 + $0x2a4] sm:$0xf]  ;;  %v2867_v61 = vld [vmem:[%s5397_s0 + $0x2bc] sm:$0xf0] }
  0x93   :  { %1696 = vmatmul.bf16.gmra.mxu1 %v2730_v0  ;;  %v2810_v0 = vor.u32 %v3496_v55, %v2809_v54  ;;  %v3510_v54 = vld [vmem:[%s5397_s0 + $0x2b8] sm:$0xf0]  ;;  %v3620_v55 = vld [vmem:[%s5395_s1 + $0xe8] sm:$0xff] }
  0x9e   :  { %v1533_v10 = vpop.f32.mrf.mxu0 }
  0x9f   :  { %v1534_v16 = vadd.f32 %v4074_v14, %v1533_v10 }
  0xa0   :  { %v1662_v19 = vpop.f32.mrf.mxu1 }
  0xa1   :  { %v1663_v20 = vadd.f32 %v1662_v19, %v1534_v16  ;;  %1572 = vmatmul.bf16.gmra.mxu0 %v2754_v15  ;;  %1761 = vmatmul.bf16.gmra.mxu3 %v3094_v17 }
  0xa2   :  { %1830 = vmatmul.bf16.gmra.mxu2 %v2762_v13 }
  0xa3   :  { %1701 = vmatmul.bf16.gmra.mxu1 %v2758_v18 }
  0xa4   :  { %v4077_v21 = vpop.f32.mrf.mxu3 }
  0xa5   :  { %v1791_v23 = vpop.f32.mrf.mxu2 }
  0xa6   :  { %v4079_v24 = vadd.f32 %v1791_v23, %v1663_v20  ;;  %v1535_v25 = vpop.f32.mrf.mxu0  ;;  %v2837_v20 = vld [vmem:[%s5397_s0 + $0x268] sm:$0xf]  ;;  %v3503_v23 = vld [vmem:[%s5397_s0 + $0x280] sm:$0xf0] }
  0xa7   :  { %v1536_v26 = vadd.f32 %v4074_v14, %v1535_v25  ;;  %v3584_v25 = vld [vmem:[%s5397_s0 + $0x50c] sm:$0xf]  ;;  %v2838_v32 = vor.u32 %v3503_v23, %v2837_v20  ;;  %v3619_v20 = vld [vmem:[%s5395_s1 + $0xe0] sm:$0xff] }
  0xa8   :  { %v1664_v27 = vpop.f32.mrf.mxu1 }
  0xa9   :  { %v1665_v28 = vadd.f32 %v1664_v27, %v1536_v26  ;;  %v3175_v26 = vld [vmem:[%s5397_s0 + $0x524] sm:$0xf0]  ;;  %v2845_v27 = vld [vmem:[%s5397_s0 + $0x270] sm:$0xf] }
  0xaa   :  { %v3178_v33 = vor.u32 %v3584_v25, %v3175_v26 }
  0xac   :  { %v4106_v36 = vpop.f32.mrf.mxu3 }
  0xad   :  { %v1793_v37 = vpop.f32.mrf.mxu2 }
  0xae   :  { %v4108_v40 = vadd.f32 %v1793_v37, %v1665_v28  ;;  %v1538_v41 = vpop.f32.mrf.mxu0  ;;  %v3504_v28 = vld [vmem:[%s5397_s0 + $0x288] sm:$0xf0] }
  0xaf   :  { %v1539_v44 = vadd.f32 %v4074_v14, %v1538_v41  ;;  %v2846_v37 = vor.u32 %v3504_v28, %v2845_v27  ;;  %v2893_v27 = vld [vmem:[%s5397_s0 + $0x2d8] sm:$0xf]  ;;  %v3517_v28 = vld [vmem:[%s5397_s0 + $0x2f0] sm:$0xf0] }
  0xb0   :  { %v1667_v45 = vpop.f32.mrf.mxu1 }
  0xb1   :  { %v1668_v46 = vadd.f32 %v1667_v45, %v1539_v44  ;;  %1577 = vmatmul.bf16.gmra.mxu0 %v2782_v38  ;;  %1766 = vmatmul.bf16.gmra.mxu3 %v3122_v39  ;;  %v2842_v38 = vor.u32 %v3500_v29, %v2839_v22  ;;  %v3621_v39 = vld [vmem:[%s5395_s1 + $0xf0] sm:$0xff]  ;;  %v2901_v29 = vld [vmem:[%s5397_s0 + $0x2e0] sm:$0xf] }
  0xb2   :  { %1835 = vmatmul.bf16.gmra.mxu2 %v2790_v42  ;;  %1912 = vmatpush.bf16.msrb.mxu3 %v3621_v39  ;;  %v3069_v22 = vld [vmem:[%s5397_s0 + $0x430] sm:$0xf]  ;;  %v2894_v39 = vor.u32 %v3517_v28, %v2893_v27 }
  0xb3   :  { %1706 = vmatmul.bf16.gmra.mxu1 %v2786_v43 }
  0xb4   :  { %v4111_v47 = vpop.f32.mrf.mxu3 }
  0xb5   :  { %v1796_v48 = vpop.f32.mrf.mxu2 }
  0xb6   :  { %v4113_v49 = vadd.f32 %v1796_v48, %v1668_v46  ;;  %v1540_v50 = vpop.f32.mrf.mxu0  ;;  %1913 = vmatpush.bf16.msrb.mxu3 %v3620_v55 }
  0xb7   :  { %v1541_v51 = vadd.f32 %v4074_v14, %v1540_v50 }
  0xb8   :  { %v1669_v52 = vpop.f32.mrf.mxu1 }
  0xb9   :  { %v1670_v53 = vadd.f32 %v1669_v52, %v1541_v51 }
  0xba   :  { %1914 = vmatpush.bf16.msrb.mxu3 %v3619_v20 }
  0xbc   :  { %v4140_v62 = vpop.f32.mrf.mxu3 }
  0xbd   :  { %v1798_v63 = vpop.f32.mrf.mxu2 }
  0xbe   :  { %v4142_v3 = vadd.f32 %v1798_v63, %v1670_v53  ;;  %v1543_v1 = vpop.f32.mrf.mxu0  ;;  %v2865_v53 = vld [vmem:[%s5397_s0 + $0x2a0] sm:$0xf] }
  0xbf   :  { %v1544_v7 = vadd.f32 %v4074_v14, %v1543_v1  ;;  %v3042_v1 = vor.u32 %v3553_v58, %v3041_v57 }
  0xc0   :  { %v1672_v8 = vpop.f32.mrf.mxu1 }
  0xc1   :  { %v1673_v11 = vadd.f32 %v1672_v8, %v1544_v7  ;;  %1582 = vmatmul.bf16.gmra.mxu0 %v2810_v0  ;;  %1771 = vmatmul.bf16.gmra.mxu3 %v3150_v2  ;;  %v2866_v2 = vor.u32 %v3510_v54, %v2865_v53  ;;  %v2870_v7 = vor.u32 %v3507_v60, %v2867_v61  ;;  %v3618_v53 = vld [vmem:[%s5395_s1 + $0xd8] sm:$0xff]  ;;  %v2921_v61 = vld [vmem:[%s5397_s0 + $0x310] sm:$0xf] }
  0xc2   :  { %1840 = vmatmul.bf16.gmra.mxu2 %v2818_v5  ;;  %1915 = vmatpush.bf16.msrb.mxu3 %v3618_v53  ;;  %v3574_v53 = vld [vmem:[%s5397_s0 + $0x4b8] sm:$0xf0] }
  0xc3   :  { %1711 = vmatmul.bf16.gmra.mxu1 %v2814_v4 }
  0xc4   :  { %v4154_v15 = vpop.f32.mrf.mxu3 }
  0xc5   :  { %v1801_v17 = vpop.f32.mrf.mxu2 }
  0xc6   :  { %v4156_v10 = vadd.f32 %v1801_v17, %v1673_v11  ;;  %v1545_v13 = vpop.f32.mrf.mxu0  ;;  %v3632_v17 = vld [vmem:[%s5395_s1 + $0x148] sm:$0xff] }
  0xc7   :  { %v1546_v18 = vadd.f32 %v4074_v14, %v1545_v13  ;;  %2175 = vmatpush.bf16.msrb.mxu1 %v3632_v17 }
  0xc8   :  { %v1674_v16 = vpop.f32.mrf.mxu1 }
  0xc9   :  { %v1675_v19 = vadd.f32 %v1674_v16, %v1546_v18 }
  0xcc   :  { %v4183_v30 = vpop.f32.mrf.mxu3 }
  0xcd   :  { %v1803_v31 = vpop.f32.mrf.mxu2 }
  0xce   :  { %v4185_v34 = vadd.f32 %v1803_v31, %v1675_v19  ;;  %v1548_v35 = vpop.f32.mrf.mxu0  ;;  %v3560_v31 = vld [vmem:[%s5397_s0 + $0x448] sm:$0xf0] }
  0xcf   :  { %v1549_v41 = vadd.f32 %v4074_v14, %v1548_v35  ;;  %v2895_v35 = vld [vmem:[%s5397_s0 + $0x2f4] sm:$0xf0] }
  0xd0   :  { %v1677_v42 = vpop.f32.mrf.mxu1 }
  0xd1   :  { %v1678_v43 = vadd.f32 %v1677_v42, %v1549_v41  ;;  %1587 = vmatmul.bf16.gmra.mxu0 %v2838_v32  ;;  %1776 = vmatmul.bf16.gmra.mxu3 %v3178_v33  ;;  %v3518_v32 = vld [vmem:[%s5397_s0 + $0x2f8] sm:$0xf0]  ;;  %v3070_v41 = vor.u32 %v3560_v31, %v3069_v22 }
  0xd2   :  { %1845 = vmatmul.bf16.gmra.mxu2 %v2846_v37  ;;  %v3514_v33 = vld [vmem:[%s5397_s0 + $0x2dc] sm:$0xf] }
  0xd3   :  { %1716 = vmatmul.bf16.gmra.mxu1 %v2842_v38 }
  0xd4   :  { %v4191_v44 = vpop.f32.mrf.mxu3 }
  0xd5   :  { %v1806_v45 = vpop.f32.mrf.mxu2 }
  0xd6   :  { %v4193_v46 = vadd.f32 %v1806_v45, %v1678_v43  ;;  %v1550_v48 = vpop.f32.mrf.mxu0  ;;  %v2902_v45 = vor.u32 %v3518_v32, %v2901_v29  ;;  %v1624_v29 = vadd.f32 %v4074_v14, %v4077_v21 }
  0xd7   :  { %v1551_v50 = vadd.f32 %v4074_v14, %v1550_v48  ;;  %v2898_v48 = vor.u32 %v3514_v33, %v2895_v35 }
  0xd8   :  { %v1679_v51 = vpop.f32.mrf.mxu1 }
  0xd9   :  { %v1680_v52 = vadd.f32 %v1679_v51, %v1551_v50 }
  0xdc   :  { %v4223_v63 = vpop.f32.mrf.mxu3 }
  0xdd   :  { %v1808_v0 = vpop.f32.mrf.mxu2 }
  0xde   :  { %v4225_v5 = vadd.f32 %v1808_v0, %v1680_v52  ;;  %v1553_v4 = vpop.f32.mrf.mxu0  ;;  %v3524_v0 = vld [vmem:[%s5397_s0 + $0x328] sm:$0xf0] }
  0xdf   :  { %v1554_v8 = vadd.f32 %v4074_v14, %v1553_v4  ;;  %v3567_v4 = vld [vmem:[%s5397_s0 + $0x480] sm:$0xf0]  ;;  %v2922_v12 = vor.u32 %v3524_v0, %v2921_v61 }
  0xe0   :  { %v1682_v9 = vpop.f32.mrf.mxu1 }
  0xe1   :  { %v1683_v11 = vadd.f32 %v1682_v9, %v1554_v8  ;;  %1592 = vmatmul.bf16.gmra.mxu0 %v2866_v2  ;;  %1880 = vmatmul.bf16.vlgmr.msra.gmra.mxu3 %v3042_v1  ;;  %v2929_v2 = vld [vmem:[%s5397_s0 + $0x318] sm:$0xf]  ;;  %v3097_v1 = vld [vmem:[%s5397_s0 + $0x468] sm:$0xf]  ;;  %v2923_v8 = vld [vmem:[%s5397_s0 + $0x32c] sm:$0xf0] }
  0xe2   :  { %1850 = vmatmul.bf16.gmra.mxu2 %v2874_v6  ;;  %v3525_v6 = vld [vmem:[%s5397_s0 + $0x330] sm:$0xf0]  ;;  %v3098_v17 = vor.u32 %v3567_v4, %v3097_v1 }
  0xe3   :  { %1721 = vmatmul.bf16.gmra.mxu1 %v2870_v7  ;;  %v3521_v7 = vld [vmem:[%s5397_s0 + $0x314] sm:$0xf]  ;;  %v2930_v20 = vor.u32 %v3525_v6, %v2929_v2 }
  0xe4   :  { %v4234_v13 = vpop.f32.mrf.mxu3 }
  0xe5   :  { %v1811_v18 = vpop.f32.mrf.mxu2 }
  0xe6   :  { %v4236_v16 = vadd.f32 %v1811_v18, %v1683_v11  ;;  %v1555_v19 = vpop.f32.mrf.mxu0 }
  0xe7   :  { %v1556_v23 = vadd.f32 %v4074_v14, %v1555_v19 }
  0xe8   :  { %v1684_v25 = vpop.f32.mrf.mxu1 }
  0xe9   :  { %v1685_v26 = vadd.f32 %v1684_v25, %v1556_v23  ;;  %v2926_v23 = vor.u32 %v3521_v7, %v2923_v8  ;;  %v3617_v25 = vld [vmem:[%s5395_s1 + $0xd0] sm:$0xff] }
  0xea   :  { %1916 = vmatpush.bf16.msrb.mxu3 %v3617_v25 }
  0xec   :  { %v4266_v37 = vpop.f32.mrf.mxu3 }
  0xed   :  { %v1813_v38 = vpop.f32.mrf.mxu2 }
  0xee   :  { %v4268_v42 = vadd.f32 %v1813_v38, %v1685_v26  ;;  %v1558_v43 = vpop.f32.mrf.mxu0  ;;  %v3623_v38 = vld [vmem:[%s5395_s1 + $0x100] sm:$0xff] }
  0xef   :  { %v1559_v50 = vadd.f32 %v4074_v14, %v1558_v43  ;;  %v3631_v43 = vld [vmem:[%s5395_s1 + $0x140] sm:$0xff]  ;;  %2047 = vmatpush.bf16.msrb.mxu0 %v3623_v38  ;;  %v3153_v38 = vld [vmem:[%s5397_s0 + $0x4d8] sm:$0xf] }
  0xf0   :  { %v1687_v51 = vpop.f32.mrf.mxu1  ;;  %2176 = vmatpush.bf16.msrb.mxu1 %v3631_v43  ;;  %v3539_v43 = vld [vmem:[%s5397_s0 + $0x3a0] sm:$0xf0] }
  0xf1   :  { %v1688_v52 = vadd.f32 %v1687_v51, %v1559_v50  ;;  %1597 = vmatmul.bf16.gmra.mxu0 %v2894_v39  ;;  %1885 = vmatmul.bf16.gmra.mxu3 %v3070_v41  ;;  %v3616_v50 = vld [vmem:[%s5395_s1 + $0xc8] sm:$0xff]  ;;  %v2957_v51 = vld [vmem:[%s5397_s0 + $0x350] sm:$0xf] }
  0xf2   :  { %1855 = vmatmul.bf16.gmra.mxu2 %v2902_v45  ;;  %v2949_v45 = vld [vmem:[%s5397_s0 + $0x348] sm:$0xf]  ;;  %1917 = vmatpush.bf16.msrb.mxu3 %v3616_v50 }
  0xf3   :  { %1726 = vmatmul.bf16.gmra.mxu1 %v2898_v48  ;;  %v3531_v48 = vld [vmem:[%s5397_s0 + $0x360] sm:$0xf0] }
  0xf4   :  { %v4274_v54 = vpop.f32.mrf.mxu3  ;;  %v2950_v2 = vor.u32 %v3531_v48, %v2949_v45  ;;  %v2979_v45 = vld [vmem:[%s5397_s0 + $0x39c] sm:$0xf0] }
  0xf5   :  { %v1816_v55 = vpop.f32.mrf.mxu2 }
  0xf6   :  { %v4276_v56 = vadd.f32 %v1816_v55, %v1688_v52  ;;  %v1560_v57 = vpop.f32.mrf.mxu0  ;;  %v3125_v52 = vld [vmem:[%s5397_s0 + $0x4a0] sm:$0xf]  ;;  %v1626_v55 = vadd.f32 %v4074_v14, %v4106_v36 }
  0xf7   :  { %v1561_v58 = vadd.f32 %v4074_v14, %v1560_v57  ;;  %v3532_v57 = vld [vmem:[%s5397_s0 + $0x368] sm:$0xf0]  ;;  %v3126_v1 = vor.u32 %v3574_v53, %v3125_v52 }
  0xf8   :  { %v1689_v59 = vpop.f32.mrf.mxu1  ;;  %v2958_v6 = vor.u32 %v3532_v57, %v2957_v51 }
  0xf9   :  { %v1690_v60 = vadd.f32 %v1689_v59, %v1561_v58  ;;  %v3528_v58 = vld [vmem:[%s5397_s0 + $0x34c] sm:$0xf]  ;;  %v2951_v59 = vld [vmem:[%s5397_s0 + $0x364] sm:$0xf0] }
  0xfa   :  { %v2954_v7 = vor.u32 %v3528_v58, %v2951_v59 }
  0xfc   :  { %v4303_v9 = vpop.f32.mrf.mxu3 }
  0xfd   :  { %v1818_v11 = vpop.f32.mrf.mxu2 }
  0xfe   :  { %v4305_v18 = vadd.f32 %v1818_v11, %v1690_v60  ;;  %v1563_v19 = vpop.f32.mrf.mxu0 }
  0xff   :  { %v1564_v26 = vadd.f32 %v4074_v14, %v1563_v19 }
 0x100   :  { %v1692_v27 = vpop.f32.mrf.mxu1 }
 0x101   :  { %v1693_v28 = vadd.f32 %v1692_v27, %v1564_v26  ;;  %1602 = vmatmul.bf16.gmra.mxu0 %v2922_v12  ;;  %1890 = vmatmul.bf16.gmra.mxu3 %v3098_v17  ;;  %v1629_v17 = vadd.f32 %v4074_v14, %v4111_v47  ;;  %v3615_v27 = vld [vmem:[%s5395_s1 + $0xc0] sm:$0xff] }
 0x102   :  { %1860 = vmatmul.bf16.gmra.mxu2 %v2930_v20  ;;  %1918 = vmatpush.bf16.msrb.mxu3 %v3615_v27  ;;  %v2977_v47 = vld [vmem:[%s5397_s0 + $0x380] sm:$0xf]  ;;  %v3588_v27 = vld [vmem:[%s5397_s0 + $0x528] sm:$0xf0] }
 0x103   :  { %1731 = vmatmul.bf16.gmra.mxu1 %v2926_v23 }
 0x104   :  { %v1752_v22 = vpop.f32.mrf.mxu3 }
 0x105   :  { %v4313_v31 = vadd.f32 %v1752_v22, %v1624_v29  ;;  %v1821_v32 = vpop.f32.mrf.mxu2 }
 0x106   :  { %v4315_v33 = vadd.f32 %v1821_v32, %v1693_v28  ;;  %v1565_v35 = vpop.f32.mrf.mxu0  ;;  %v3538_v32 = vld [vmem:[%s5397_s0 + $0x398] sm:$0xf0] }
 0x107   :  { %v1566_v39 = vadd.f32 %v4074_v14, %v1565_v35  ;;  %v2985_v35 = vld [vmem:[%s5397_s0 + $0x388] sm:$0xf]  ;;  %v2978_v52 = vor.u32 %v3538_v32, %v2977_v47  ;;  %v3007_v47 = vld [vmem:[%s5397_s0 + $0x3d4] sm:$0xf0] }
 0x108   :  { %v1694_v41 = vpop.f32.mrf.mxu1  ;;  %v2986_v57 = vor.u32 %v3539_v43, %v2985_v35 }
 0x109   :  { %v1695_v21 = vadd.f32 %v1694_v41, %v1566_v39  ;;  %v3581_v39 = vld [vmem:[%s5397_s0 + $0x4f0] sm:$0xf0]  ;;  %v1631_v41 = vadd.f32 %v4074_v14, %v4140_v62 }
 0x10a   :  { %v3154_v53 = vor.u32 %v3581_v39, %v3153_v38 }
 0x10c   :  { %v1754_v60 = vpop.f32.mrf.mxu3 }
 0x10d   :  { %v4353_v61 = vadd.f32 %v1754_v60, %v1626_v55  ;;  %v1823_v0 = vpop.f32.mrf.mxu2 }
 0x10e   :  { %v4355_v36 = vadd.f32 %v1823_v0, %v1695_v21  ;;  %v1568_v4 = vpop.f32.mrf.mxu0  ;;  %v3535_v21 = vld [vmem:[%s5397_s0 + $0x384] sm:$0xf] }
 0x10f   :  { %v1569_v8 = vadd.f32 %v4074_v14, %v1568_v4  ;;  %v2982_v58 = vor.u32 %v3535_v21, %v2979_v45 }
 0x110   :  { %v1697_v11 = vpop.f32.mrf.mxu1 }
 0x111   :  { %v1698_v12 = vadd.f32 %v1697_v11, %v1569_v8  ;;  %1607 = vmatmul.bf16.gmra.mxu0 %v2950_v2  ;;  %1895 = vmatmul.bf16.gmra.mxu3 %v3126_v1  ;;  %v1634_v2 = vadd.f32 %v4074_v14, %v4154_v15  ;;  %v3013_v15 = vld [vmem:[%s5397_s0 + $0x3c0] sm:$0xf] }
 0x112   :  { %1865 = vmatmul.bf16.gmra.mxu2 %v2958_v6 }
 0x113   :  { %1736 = vmatmul.bf16.gmra.mxu1 %v2954_v7 }
 0x114   :  { %v1757_v19 = vpop.f32.mrf.mxu3 }
 0x115   :  { %v4360_v20 = vadd.f32 %v1757_v19, %v1629_v17  ;;  %v1826_v23 = vpop.f32.mrf.mxu2  ;;  %v3005_v19 = vld [vmem:[%s5397_s0 + $0x3b8] sm:$0xf] }
 0x116   :  { %v4362_v25 = vadd.f32 %v1826_v23, %v1698_v12  ;;  %v1570_v26 = vpop.f32.mrf.mxu0  ;;  %v3545_v23 = vld [vmem:[%s5397_s0 + $0x3d0] sm:$0xf0] }
 0x117   :  { %v1571_v28 = vadd.f32 %v4074_v14, %v1570_v26  ;;  %v3181_v26 = vld [vmem:[%s5397_s0 + $0x510] sm:$0xf]  ;;  %v3006_v39 = vor.u32 %v3545_v23, %v3005_v19  ;;  %v3429_v19 = vld [vmem:[%s5397_s0 + $0x30] sm:$0xf0] }
 0x118   :  { %v1699_v29 = vpop.f32.mrf.mxu1  ;;  %v3425_v23 = vld [vmem:[%s5397_s0 + $0x14] sm:$0xf] }
 0x119   :  { %v1700_v22 = vadd.f32 %v1699_v29, %v1571_v28  ;;  %v1636_v28 = vadd.f32 %v4074_v14, %v4183_v30  ;;  %v3546_v29 = vld [vmem:[%s5397_s0 + $0x3d8] sm:$0xf0] }
 0x11a   :  { %v3014_v21 = vor.u32 %v3546_v29, %v3013_v15  ;;  %v2547_v15 = vld [vmem:[%s5397_s0 + $0x2c] sm:$0xf0] }
 0x11c   :  { %v1759_v48 = vpop.f32.mrf.mxu3 }
 0x11d   :  { %v4394_v50 = vadd.f32 %v1759_v48, %v1631_v41  ;;  %v1828_v51 = vpop.f32.mrf.mxu2  ;;  %v3182_v41 = vor.u32 %v3588_v27, %v3181_v26 }
 0x11e   :  { %v4396_v55 = vadd.f32 %v1828_v51, %v1700_v22  ;;  %v1573_v62 = vpop.f32.mrf.mxu0  ;;  %v3542_v22 = vld [vmem:[%s5397_s0 + $0x3bc] sm:$0xf] }
 0x11f   :  { %v1574_v59 = vadd.f32 %v4074_v14, %v1573_v62  ;;  %v3010_v45 = vor.u32 %v3542_v22, %v3007_v47 }
 0x120   :  { %v1702_v60 = vpop.f32.mrf.mxu1 }
 0x121   :  { %v1703_v0 = vadd.f32 %v1702_v60, %v1574_v59  ;;  %1612 = vmatmul.bf16.gmra.mxu0 %v2978_v52  ;;  %1900 = vmatmul.bf16.gmra.mxu3 %v3154_v53  ;;  %v1639_v53 = vadd.f32 %v4074_v14, %v4191_v44  ;;  %v2545_v44 = vld [vmem:[%s5397_s0 + $0x10] sm:$0xf] }
 0x122   :  { %1870 = vmatmul.bf16.gmra.mxu2 %v2986_v57 }
 0x123   :  { %1741 = vmatmul.bf16.gmra.mxu1 %v2982_v58 }
 0x124   :  { %v1762_v1 = vpop.f32.mrf.mxu3 }
 0x125   :  { %v4401_v4 = vadd.f32 %v1762_v1, %v1634_v2  ;;  %v1831_v6 = vpop.f32.mrf.mxu2 }
 0x126   :  { %v4403_v7 = vadd.f32 %v1831_v6, %v1703_v0  ;;  %v1575_v8 = vpop.f32.mrf.mxu0  ;;  %v3424_v6 = vld [vmem:[%s5397_s0 + $0xc] sm:$0xf] }
 0x127   :  { %v1576_v11 = vadd.f32 %v4074_v14, %v1575_v8  ;;  %v2539_v8 = vld [vmem:[%s5397_s0 + $0x24] sm:$0xf0] }
 0x128   :  { %v1704_v12 = vpop.f32.mrf.mxu1  ;;  %v2542_v29 = vor.u32 %v3424_v6, %v2539_v8  ;;  %v2581_v6 = vld [vmem:[%s5397_s0 + $0x50] sm:$0xf]  ;;  %v1646_v8 = vadd.f32 %v4074_v14, %v4266_v37 }
 0x129   :  { %v1705_v17 = vadd.f32 %v1704_v12, %v1576_v11  ;;  %v3428_v11 = vld [vmem:[%s5397_s0 + $0x28] sm:$0xf0]  ;;  %v2553_v12 = vld [vmem:[%s5397_s0 + $0x18] sm:$0xf] }
 0x12a   :  { %v2546_v22 = vor.u32 %v3428_v11, %v2545_v44  ;;  %v3436_v44 = vld [vmem:[%s5397_s0 + $0x68] sm:$0xf0] }
 0x12b   :  { %v3432_v11 = vld [vmem:[%s5397_s0 + $0x4c] sm:$0xf] }
 0x12c   :  { %v1764_v32 = vpop.f32.mrf.mxu3 }
 0x12d   :  { %v4432_v35 = vadd.f32 %v1764_v32, %v1636_v28  ;;  %v1833_v38 = vpop.f32.mrf.mxu2  ;;  %v2554_v32 = vor.u32 %v3429_v19, %v2553_v12  ;;  %v2575_v12 = vld [vmem:[%s5397_s0 + $0x64] sm:$0xf0] }
 0x12e   :  { %v4434_v43 = vadd.f32 %v1833_v38, %v1705_v17  ;;  %v1578_v30 = vpop.f32.mrf.mxu0  ;;  %v1641_v17 = vadd.f32 %v4074_v14, %v4223_v63  ;;  %v2550_v38 = vor.u32 %v3425_v23, %v2547_v15 }
 0x12f   :  { %v1579_v48 = vadd.f32 %v4074_v14, %v1578_v30 }
 0x130   :  { %v1707_v51 = vpop.f32.mrf.mxu1 }
 0x131   :  { %v1708_v52 = vadd.f32 %v1707_v51, %v1579_v48  ;;  %1617 = vmatmul.bf16.gmra.mxu0 %v3006_v39  ;;  %1905 = vmatmul.bf16.gmra.mxu3 %v3182_v41 }
 0x132   :  { %1875 = vmatmul.bf16.gmra.mxu2 %v3014_v21  ;;  %v1644_v21 = vadd.f32 %v4074_v14, %v4234_v13  ;;  %v2573_v13 = vld [vmem:[%s5397_s0 + $0x48] sm:$0xf] }
 0x133   :  { %1746 = vmatmul.bf16.gmra.mxu1 %v3010_v45 }
 0x134   :  { %v1767_v62 = vpop.f32.mrf.mxu3 }
 0x135   :  { %v4439_v57 = vadd.f32 %v1767_v62, %v1639_v53  ;;  %v1836_v58 = vpop.f32.mrf.mxu2 }
 0x136   :  { %v4441_v59 = vadd.f32 %v1836_v58, %v1708_v52  ;;  %v1580_v60 = vpop.f32.mrf.mxu0 }
 0x137   :  { %v1581_v0 = vadd.f32 %v4074_v14, %v1580_v60 }
 0x138   :  { %v1709_v2 = vpop.f32.mrf.mxu1 }
 0x139   :  { %v1710_v1 = vadd.f32 %v1709_v2, %v1581_v0  ;;  %v3431_v0 = vld [vmem:[%s5397_s0 + $0x44] sm:$0xf]  ;;  %v2567_v2 = vld [vmem:[%s5397_s0 + $0x5c] sm:$0xf0] }
 0x13a   :  { %v2570_v15 = vor.u32 %v3431_v0, %v2567_v2  ;;  %v2595_v0 = vld [vmem:[%s5397_s0 + $0x94] sm:$0xf0]  ;;  %v3442_v2 = vld [vmem:[%s5397_s0 + $0x98] sm:$0xf0] }
 0x13c   :  { %v1769_v26 = vpop.f32.mrf.mxu3 }
 0x13d   :  { %v4470_v27 = vadd.f32 %v1769_v26, %v1641_v17  ;;  %v1838_v28 = vpop.f32.mrf.mxu2 }
 0x13e   :  { %v4472_v47 = vadd.f32 %v1838_v28, %v1710_v1  ;;  %v1583_v63 = vpop.f32.mrf.mxu0  ;;  %v3435_v1 = vld [vmem:[%s5397_s0 + $0x60] sm:$0xf0] }
 0x13f   :  { %v1584_v39 = vadd.f32 %v4074_v14, %v1583_v63  ;;  %v2574_v26 = vor.u32 %v3435_v1, %v2573_v13  ;;  %v2609_v13 = vld [vmem:[%s5397_s0 + $0x88] sm:$0xf]  ;;  %v1651_v1 = vadd.f32 %v4074_v14, %v4303_v9 }
 0x140   :  { %v1712_v41 = vpop.f32.mrf.mxu1 }
 0x141   :  { %v1713_v30 = vadd.f32 %v1712_v41, %v1584_v39  ;;  %1919 = vmatmul.bf16.vlgmr.msrb.gmra.mxu3 %v2542_v29  ;;  %2048 = vmatmul.bf16.vlgmr.msrb.gmra.mxu0 %v2546_v22  ;;  %v2582_v29 = vor.u32 %v3436_v44, %v2581_v6  ;;  %v2578_v22 = vor.u32 %v3432_v11, %v2575_v12  ;;  %v3443_v6 = vld [vmem:[%s5397_s0 + $0xa0] sm:$0xf0]  ;;  %v2603_v44 = vld [vmem:[%s5397_s0 + $0x9c] sm:$0xf0] }
 0x142   :  { %3399 = vmatmul.msk.bf16.vlgmr.msrb.gmra.mxu2 %vm1451_vm0, %v2554_v32  ;;  %v1649_v39 = vadd.f32 %v4074_v14, %v4274_v54  ;;  %v2601_v54 = vld [vmem:[%s5397_s0 + $0x80] sm:$0xf] }
 0x143   :  { %2177 = vmatmul.bf16.vlgmr.msrb.gmra.mxu1 %v2550_v38 }
 0x144   :  { %v1772_v45 = vpop.f32.mrf.mxu3 }
 0x145   :  { %v4478_v48 = vadd.f32 %v1772_v45, %v1644_v21  ;;  %v1841_v51 = vpop.f32.mrf.mxu2 }
 0x146   :  { %v4480_v52 = vadd.f32 %v1841_v51, %v1713_v30  ;;  %v1585_v53 = vpop.f32.mrf.mxu0 }
 0x147   :  { %v1586_v62 = vadd.f32 %v4074_v14, %v1585_v53 }
 0x148   :  { %v1714_v58 = vpop.f32.mrf.mxu1 }
 0x149   :  { %v1715_v60 = vadd.f32 %v1714_v58, %v1586_v62 }
 0x14c   :  { %v1774_v17 = vpop.f32.mrf.mxu3 }
 0x14d   :  { %v4509_v19 = vadd.f32 %v1774_v17, %v1646_v8  ;;  %v1843_v23 = vpop.f32.mrf.mxu2  ;;  %v3439_v8 = vld [vmem:[%s5397_s0 + $0x84] sm:$0xf] }
 0x14e   :  { %v4511_v28 = vadd.f32 %v1843_v23, %v1715_v60  ;;  %v1588_v37 = vpop.f32.mrf.mxu0  ;;  %v3438_v60 = vld [vmem:[%s5397_s0 + $0x7c] sm:$0xf] }
 0x14f   :  { %v1589_v63 = vadd.f32 %v4074_v14, %v1588_v37  ;;  %v2598_v23 = vor.u32 %v3438_v60, %v2595_v0  ;;  %v2610_v37 = vor.u32 %v3443_v6, %v2609_v13  ;;  %v3445_v60 = vld [vmem:[%s5397_s0 + $0xb4] sm:$0xf]  ;;  %v2623_v0 = vld [vmem:[%s5397_s0 + $0xcc] sm:$0xf0]  ;;  %v3450_v13 = vld [vmem:[%s5397_s0 + $0xd8] sm:$0xf0] }
 0x150   :  { %v1717_v32 = vpop.f32.mrf.mxu1  ;;  %v2631_v6 = vld [vmem:[%s5397_s0 + $0xd4] sm:$0xf0] }
 0x151   :  { %v1718_v38 = vadd.f32 %v1717_v32, %v1589_v63  ;;  %1924 = vmatmul.bf16.gmra.mxu3 %v2570_v15  ;;  %2053 = vmatmul.bf16.gmra.mxu0 %v2574_v26  ;;  %v2602_v15 = vor.u32 %v3442_v2, %v2601_v54  ;;  %v3449_v54 = vld [vmem:[%s5397_s0 + $0xd0] sm:$0xf0]  ;;  %v2637_v2 = vld [vmem:[%s5397_s0 + $0xc0] sm:$0xf] }
 0x152   :  { %3400 = vmatmul.msk.bf16.gmra.mxu2 %vm1451_vm0, %v2582_v29  ;;  %v2606_v29 = vor.u32 %v3439_v8, %v2603_v44 }
 0x153   :  { %2182 = vmatmul.bf16.gmra.mxu1 %v2578_v22 }
 0x154   :  { %v1777_v41 = vpop.f32.mrf.mxu3 }
 0x155   :  { %v4517_v30 = vadd.f32 %v1777_v41, %v1649_v39  ;;  %v1846_v21 = vpop.f32.mrf.mxu2 }
 0x156   :  { %v4519_v45 = vadd.f32 %v1846_v21, %v1718_v38  ;;  %v1590_v51 = vpop.f32.mrf.mxu0 }
 0x157   :  { %v1591_v53 = vadd.f32 %v4074_v14, %v1590_v51 }
 0x158   :  { %v1719_v62 = vpop.f32.mrf.mxu1 }
 0x159   :  { %v1720_v58 = vadd.f32 %v1719_v62, %v1591_v53 }
 0x15c   :  { %v1779_v11 = vpop.f32.mrf.mxu3 }
 0x15d   :  { %v4548_v12 = vadd.f32 %v1779_v11, %v1651_v1  ;;  %v1848_v17 = vpop.f32.mrf.mxu2  ;;  %v3446_v1 = vld [vmem:[%s5397_s0 + $0xbc] sm:$0xf] }
 0x15e   :  { %v4550_v26 = vadd.f32 %v1848_v17, %v1720_v58  ;;  %v1593_v9 = vpop.f32.mrf.mxu0  ;;  %v2626_v17 = vor.u32 %v3445_v60, %v2623_v0  ;;  %v3452_v0 = vld [vmem:[%s5397_s0 + $0xec] sm:$0xf] }
 0x15f   :  { %v1594_v22 = vadd.f32 %v4074_v14, %v1593_v9 }
 0x160   :  { %v1722_v63 = vpop.f32.mrf.mxu1 }
 0x161   :  { %v1723_v32 = vadd.f32 %v1722_v63, %v1594_v22  ;;  %1929 = vmatmul.bf16.gmra.mxu3 %v2598_v23  ;;  %2058 = vmatmul.bf16.gmra.mxu0 %v2602_v15 }
 0x162   :  { %3401 = vmatmul.msk.bf16.gmra.mxu2 %vm1451_vm0, %v2610_v37  ;;  %v2638_v37 = vor.u32 %v3450_v13, %v2637_v2  ;;  %v2665_v2 = vld [vmem:[%s5397_s0 + $0xf8] sm:$0xf]  ;;  %v3457_v13 = vld [vmem:[%s5397_s0 + $0x110] sm:$0xf0] }
 0x163   :  { %2187 = vmatmul.bf16.gmra.mxu1 %v2606_v29  ;;  %v2634_v29 = vor.u32 %v3446_v1, %v2631_v6  ;;  %v3453_v1 = vld [vmem:[%s5397_s0 + $0xf4] sm:$0xf]  ;;  %v2659_v6 = vld [vmem:[%s5397_s0 + $0x10c] sm:$0xf0] }
 0x164   :  { %v1881_v38 = vpop.f32.mrf.mxu3 }
 0x165   :  { %v1851_v39 = vpop.f32.mrf.mxu2  ;;  %v4555_v41 = vadd.f32 %v1881_v38, %v4313_v31  ;;  %v2629_v31 = vld [vmem:[%s5397_s0 + $0xb8] sm:$0xf] }
 0x166   :  { %v4557_v21 = vadd.f32 %v1851_v39, %v1723_v32  ;;  %v1595_v51 = vpop.f32.mrf.mxu0  ;;  %v2630_v23 = vor.u32 %v3449_v54, %v2629_v31  ;;  %v2651_v31 = vld [vmem:[%s5397_s0 + $0x104] sm:$0xf0]  ;;  %v3456_v54 = vld [vmem:[%s5397_s0 + $0x108] sm:$0xf0] }
 0x167   :  { %v1596_v53 = vadd.f32 %v4074_v14, %v1595_v51 }
 0x168   :  { %v1724_v62 = vpop.f32.mrf.mxu1 }
 0x169   :  { %v1725_v58 = vadd.f32 %v1724_v62, %v1596_v53 }
 0x16c   :  { %v1883_v8 = vpop.f32.mrf.mxu3 }
 0x16d   :  { %v1853_v44 = vpop.f32.mrf.mxu2  ;;  %v4585_v11 = vadd.f32 %v1883_v8, %v4353_v61 }
 0x16e   :  { %v4587_v15 = vadd.f32 %v1853_v44, %v1725_v58  ;;  %v1598_v9 = vpop.f32.mrf.mxu0 }
 0x16f   :  { %v1599_v22 = vadd.f32 %v4074_v14, %v1598_v9 }
 0x170   :  { %v1727_v63 = vpop.f32.mrf.mxu1 }
 0x171   :  { %v1728_v32 = vadd.f32 %v1727_v63, %v1599_v22  ;;  %1934 = vmatmul.bf16.gmra.mxu3 %v2626_v17  ;;  %2063 = vmatmul.bf16.gmra.mxu0 %v2630_v23  ;;  %v2654_v23 = vor.u32 %v3452_v0, %v2651_v31  ;;  %v2666_v22 = vor.u32 %v3457_v13, %v2665_v2  ;;  %v2679_v2 = vld [vmem:[%s5397_s0 + $0x13c] sm:$0xf0]  ;;  %v3463_v13 = vld [vmem:[%s5397_s0 + $0x140] sm:$0xf0] }
 0x172   :  { %3402 = vmatmul.msk.bf16.gmra.mxu2 %vm1451_vm0, %v2638_v37  ;;  %v2662_v63 = vor.u32 %v3453_v1, %v2659_v6  ;;  %v3464_v1 = vld [vmem:[%s5397_s0 + $0x148] sm:$0xf0] }
 0x173   :  { %2192 = vmatmul.bf16.gmra.mxu1 %v2634_v29  ;;  %v3460_v6 = vld [vmem:[%s5397_s0 + $0x12c] sm:$0xf] }
 0x174   :  { %v1886_v38 = vpop.f32.mrf.mxu3 }
 0x175   :  { %v1856_v39 = vpop.f32.mrf.mxu2  ;;  %v4592_v61 = vadd.f32 %v1886_v38, %v4360_v20  ;;  %v2657_v20 = vld [vmem:[%s5397_s0 + $0xf0] sm:$0xf] }
 0x176   :  { %v4594_v51 = vadd.f32 %v1856_v39, %v1728_v32  ;;  %v1600_v53 = vpop.f32.mrf.mxu0  ;;  %v2658_v9 = vor.u32 %v3456_v54, %v2657_v20  ;;  %v3459_v54 = vld [vmem:[%s5397_s0 + $0x124] sm:$0xf] }
 0x177   :  { %v1601_v62 = vadd.f32 %v4074_v14, %v1600_v53 }
 0x178   :  { %v1729_v58 = vpop.f32.mrf.mxu1 }
 0x179   :  { %v1730_v60 = vadd.f32 %v1729_v58, %v1601_v62 }
 0x17c   :  { %v1888_v8 = vpop.f32.mrf.mxu3 }
 0x17d   :  { %v1858_v44 = vpop.f32.mrf.mxu2  ;;  %v4622_v17 = vadd.f32 %v1888_v8, %v4394_v50  ;;  %v2687_v8 = vld [vmem:[%s5397_s0 + $0x144] sm:$0xf0] }
 0x17e   :  { %v4624_v37 = vadd.f32 %v1858_v44, %v1730_v60  ;;  %v1603_v29 = vpop.f32.mrf.mxu0 }
 0x17f   :  { %v1604_v32 = vadd.f32 %v4074_v14, %v1603_v29  ;;  %v2682_v29 = vor.u32 %v3459_v54, %v2679_v2 }
 0x180   :  { %v1732_v38 = vpop.f32.mrf.mxu1 }
 0x181   :  { %v1733_v39 = vadd.f32 %v1732_v38, %v1604_v32  ;;  %1939 = vmatmul.bf16.gmra.mxu3 %v2654_v23  ;;  %2068 = vmatmul.bf16.gmra.mxu0 %v2658_v9 }
 0x182   :  { %3403 = vmatmul.msk.bf16.gmra.mxu2 %vm1451_vm0, %v2666_v22 }
 0x183   :  { %2197 = vmatmul.bf16.gmra.mxu1 %v2662_v63 }
 0x184   :  { %v1891_v53 = vpop.f32.mrf.mxu3 }
 0x185   :  { %v1861_v62 = vpop.f32.mrf.mxu2  ;;  %v4629_v50 = vadd.f32 %v1891_v53, %v4401_v4  ;;  %v2685_v4 = vld [vmem:[%s5397_s0 + $0x128] sm:$0xf]  ;;  %v4666_v53 = vld [vmem:[%s5396_s2] ss:$0 sm:$0xff] }
 0x186   :  { %v4631_v58 = vadd.f32 %v1861_v62, %v1733_v39  ;;  %v1605_v60 = vpop.f32.mrf.mxu0  ;;  %v2686_v22 = vor.u32 %v3463_v13, %v2685_v4  ;;  %v2690_v39 = vor.u32 %v3460_v6, %v2687_v8  ;;  %v2707_v6 = vld [vmem:[%s5397_s0 + $0x174] sm:$0xf0]  ;;  %v3470_v8 = vld [vmem:[%s5397_s0 + $0x178] sm:$0xf0] }
 0x187   :  { %5399 = vst [vmem:[#allocation2_spill] sm:$0xff] %v4629_v50  ;;  %v1606_v0 = vadd.f32 %v4074_v14, %v1605_v60  ;;  %v2693_v14 = vld [vmem:[%s5397_s0 + $0x130] sm:$0xf] }
 0x188   :  { %v1734_v31 = vpop.f32.mrf.mxu1  ;;  %v2694_v38 = vor.u32 %v3464_v1, %v2693_v14  ;;  %v3466_v1 = vld [vmem:[%s5397_s0 + $0x15c] sm:$0xf] }
 0x189   :  { %v1735_v20 = vadd.f32 %v1734_v31, %v1606_v0 }
 0x18c   :  { %v1893_v44 = vpop.f32.mrf.mxu3 }
 0x18d   :  { %v1863_v23 = vpop.f32.mrf.mxu2  ;;  %v4659_v9 = vadd.f32 %v1893_v44, %v4432_v35  ;;  %v2721_v44 = vld [vmem:[%s5397_s0 + $0x168] sm:$0xf] }
 0x18e   :  { %v4661_v63 = vadd.f32 %v1863_v23, %v1735_v20  ;;  %v1608_v32 = vpop.f32.mrf.mxu0  ;;  %v3471_v23 = vld [vmem:[%s5397_s0 + $0x180] sm:$0xf0] }
 0x18f   :  { %5400 = vst [vmem:[#allocation3_spill] sm:$0xff] %v4659_v9  ;;  %v1609_v62 = vadd.f32 %v4666_v53, %v1608_v32 }
 0x190   :  { %v1737_v60 = vpop.f32.mrf.mxu1 }
 0x191   :  { %v1738_v0 = vadd.f32 %v1737_v60, %v1609_v62  ;;  %1944 = vmatmul.bf16.gmra.mxu3 %v2682_v29  ;;  %2073 = vmatmul.bf16.gmra.mxu0 %v2686_v22  ;;  %v3467_v29 = vld [vmem:[%s5397_s0 + $0x164] sm:$0xf]  ;;  %v2715_v22 = vld [vmem:[%s5397_s0 + $0x17c] sm:$0xf0]  ;;  %v2710_v62 = vor.u32 %v3466_v1, %v2707_v6 }
 0x192   :  { %3404 = vmatmul.msk.bf16.gmra.mxu2 %vm1451_vm0, %v2694_v38 }
 0x193   :  { %2202 = vmatmul.bf16.gmra.mxu1 %v2690_v39 }
 0x194   :  { %v1896_v35 = vpop.f32.mrf.mxu3 }
 0x195   :  { %v1866_v31 = vpop.f32.mrf.mxu2  ;;  %v4671_v20 = vadd.f32 %v1896_v35, %v4439_v57  ;;  %v2713_v57 = vld [vmem:[%s5397_s0 + $0x160] sm:$0xf] }
 0x196   :  { %v4673_v54 = vadd.f32 %v1866_v31, %v1738_v0  ;;  %v1610_v2 = vpop.f32.mrf.mxu0  ;;  %v2714_v60 = vor.u32 %v3470_v8, %v2713_v57  ;;  %v2722_v31 = vor.u32 %v3471_v23, %v2721_v44  ;;  %v3473_v44 = vld [vmem:[%s5397_s0 + $0x194] sm:$0xf]  ;;  %v2735_v23 = vld [vmem:[%s5397_s0 + $0x1ac] sm:$0xf0] }
 0x197   :  { %5401 = vst [vmem:[#allocation4_spill] sm:$0xff] %v4671_v20  ;;  %v1611_v4 = vadd.f32 %v4666_v53, %v1610_v2  ;;  %v2718_v2 = vor.u32 %v3467_v29, %v2715_v22  ;;  %v3474_v29 = vld [vmem:[%s5397_s0 + $0x19c] sm:$0xf]  ;;  %v2743_v22 = vld [vmem:[%s5397_s0 + $0x1b4] sm:$0xf0] }
 0x198   :  { %v1739_v13 = vpop.f32.mrf.mxu1 }
 0x199   :  { %v1740_v14 = vadd.f32 %v1739_v13, %v1611_v4 }
 0x19c   :  { %v1898_v32 = vpop.f32.mrf.mxu3 }
 0x19d   :  { %v1868_v38 = vpop.f32.mrf.mxu2  ;;  %v4701_v39 = vadd.f32 %v1898_v32, %v4470_v27 }
 0x19e   :  { %v4703_v0 = vadd.f32 %v1868_v38, %v1740_v14  ;;  %v1613_v35 = vpop.f32.mrf.mxu0 }
 0x19f   :  { %5402 = vst [vmem:[#allocation5_spill] sm:$0xff] %v4701_v39  ;;  %v1614_v4 = vadd.f32 %v4666_v53, %v1613_v35 }
 0x1a0   :  { %v1742_v13 = vpop.f32.mrf.mxu1 }
 0x1a1   :  { %v1743_v20 = vadd.f32 %v1742_v13, %v1614_v4  ;;  %1949 = vmatmul.bf16.gmra.mxu3 %v2710_v62  ;;  %2078 = vmatmul.bf16.gmra.mxu0 %v2714_v60  ;;  %v2738_v60 = vor.u32 %v3473_v44, %v2735_v23  ;;  %v2746_v13 = vor.u32 %v3474_v29, %v2743_v22  ;;  %v3481_v29 = vld [vmem:[%s5397_s0 + $0x1d4] sm:$0xf]  ;;  %v2771_v22 = vld [vmem:[%s5397_s0 + $0x1ec] sm:$0xf0] }
 0x1a2   :  { %3405 = vmatmul.msk.bf16.gmra.mxu2 %vm1451_vm0, %v2722_v31 }
 0x1a3   :  { %2207 = vmatmul.bf16.gmra.mxu1 %v2718_v2 }
 0x1a4   :  { %v1901_v9 = vpop.f32.mrf.mxu3 }
 0x1a5   :  { %v1871_v50 = vpop.f32.mrf.mxu2  ;;  %v4708_v27 = vadd.f32 %v1901_v9, %v4478_v48  ;;  %v2741_v48 = vld [vmem:[%s5397_s0 + $0x198] sm:$0xf]  ;;  %v2749_v9 = vld [vmem:[%s5397_s0 + $0x1a0] sm:$0xf] }
 0x1a6   :  { %v4710_v1 = vadd.f32 %v1871_v50, %v1743_v20  ;;  %v1615_v14 = vpop.f32.mrf.mxu0  ;;  %v3477_v50 = vld [vmem:[%s5397_s0 + $0x1b0] sm:$0xf0]  ;;  %v3478_v20 = vld [vmem:[%s5397_s0 + $0x1b8] sm:$0xf0] }
 0x1a7   :  { %5403 = vst [vmem:[#allocation6_spill] sm:$0xff] %v4708_v27  ;;  %v1616_v6 = vadd.f32 %v4666_v53, %v1615_v14  ;;  %v2742_v35 = vor.u32 %v3477_v50, %v2741_v48  ;;  %v2750_v4 = vor.u32 %v3478_v20, %v2749_v9  ;;  %v3480_v9 = vld [vmem:[%s5397_s0 + $0x1cc] sm:$0xf]  ;;  %v2763_v20 = vld [vmem:[%s5397_s0 + $0x1e4] sm:$0xf0] }
 0x1a8   :  { %v1744_v57 = vpop.f32.mrf.mxu1 }
 0x1a9   :  { %v1745_v8 = vadd.f32 %v1744_v57, %v1616_v6 }
 0x1ac   :  { %v1903_v32 = vpop.f32.mrf.mxu3 }
 0x1ad   :  { %v1873_v38 = vpop.f32.mrf.mxu2  ;;  %v4738_v62 = vadd.f32 %v1903_v32, %v4509_v19 }
 0x1ae   :  { %v4740_v31 = vadd.f32 %v1873_v38, %v1745_v8  ;;  %v1618_v2 = vpop.f32.mrf.mxu0 }
 0x1af   :  { %v1619_v14 = vadd.f32 %v4666_v53, %v1618_v2 }
 0x1b0   :  { %v1747_v6 = vpop.f32.mrf.mxu1 }
 0x1b1   :  { %v1748_v57 = vadd.f32 %v1747_v6, %v1619_v14  ;;  %1954 = vmatmul.bf16.gmra.mxu3 %v2738_v60  ;;  %2083 = vmatmul.bf16.gmra.mxu0 %v2742_v35  ;;  %v2766_v35 = vor.u32 %v3480_v9, %v2763_v20  ;;  %v2774_v6 = vor.u32 %v3481_v29, %v2771_v22  ;;  %v2791_v20 = vld [vmem:[%s5397_s0 + $0x21c] sm:$0xf0]  ;;  %v3488_v29 = vld [vmem:[%s5397_s0 + $0x20c] sm:$0xf]  ;;  %v2799_v22 = vld [vmem:[%s5397_s0 + $0x224] sm:$0xf0] }
 0x1b2   :  { %3406 = vmatmul.msk.bf16.gmra.mxu2 %vm1451_vm0, %v2750_v4 }
 0x1b3   :  { %2212 = vmatmul.bf16.gmra.mxu1 %v2746_v13 }
 0x1b4   :  { %v1906_v27 = vpop.f32.mrf.mxu3 }
 0x1b5   :  { %v1876_v39 = vpop.f32.mrf.mxu2  ;;  %v4745_v19 = vadd.f32 %v1906_v27, %v4517_v30  ;;  %v2769_v30 = vld [vmem:[%s5397_s0 + $0x1d0] sm:$0xf]  ;;  %v3485_v27 = vld [vmem:[%s5397_s0 + $0x1f0] sm:$0xf0] }
 0x1b6   :  { %v4747_v44 = vadd.f32 %v1876_v39, %v1748_v57  ;;  %v1620_v8 = vpop.f32.mrf.mxu0  ;;  %v3484_v39 = vld [vmem:[%s5397_s0 + $0x1e8] sm:$0xf0] }
 0x1b7   :  { %5404 = vst [vmem:[#allocation7_spill] sm:$0xff] %v4745_v19  ;;  %v1621_v23 = vadd.f32 %v4666_v53, %v1620_v8  ;;  %v2777_v53 = vld [vmem:[%s5397_s0 + $0x1d8] sm:$0xf]  ;;  %v2770_v2 = vor.u32 %v3484_v39, %v2769_v30  ;;  %v2797_v30 = vld [vmem:[%s5397_s0 + $0x208] sm:$0xf] }
 0x1b8   :  { %v1749_v48 = vpop.f32.mrf.mxu1  ;;  %v2778_v14 = vor.u32 %v3485_v27, %v2777_v53  ;;  %v2805_v39 = vld [vmem:[%s5397_s0 + $0x210] sm:$0xf]  ;;  %v3492_v27 = vld [vmem:[%s5397_s0 + $0x228] sm:$0xf0] }
 0x1b9   :  { %v1750_v50 = vadd.f32 %v1749_v48, %v1621_v23 }
 0x1bc   :  { %v1908_v32 = vpop.f32.mrf.mxu3 }
 0x1bd   :  { %v1878_v38 = vpop.f32.mrf.mxu2  ;;  %v4775_v60 = vadd.f32 %v1908_v32, %v4548_v12 }
 0x1be   :  { %v4777_v4 = vadd.f32 %v1878_v38, %v1750_v50  ;;  %v2049_v13 = vpop.f32.mrf.mxu0  ;;  %v3487_v50 = vld [vmem:[%s5397_s0 + $0x204] sm:$0xf] }
 0x1c0   :  { %v2178_v57 = vpop.f32.mrf.mxu1 }
 0x1c1   :  { %1959 = vmatmul.bf16.gmra.mxu3 %v2766_v35  ;;  %2088 = vmatmul.bf16.gmra.mxu0 %v2770_v2 }
 0x1c2   :  { %3407 = vmatmul.msk.bf16.gmra.mxu2 %vm1451_vm0, %v2778_v14  ;;  %v2794_v14 = vor.u32 %v3487_v50, %v2791_v20 }
 0x1c3   :  { %2217 = vmatmul.bf16.gmra.mxu1 %v2774_v6 }
 0x1c4   :  { %v1920_v8 = vpop.f32.mrf.mxu3 }
 0x1c5   :  { %v1921_v23 = vadd.f32 %v1920_v8, %v4079_v24  ;;  %v2307_v48 = vpop.f32.mrf.mxu2  ;;  %v3491_v24 = vld [vmem:[%s5397_s0 + $0x220] sm:$0xf0]  ;;  %v2806_v8 = vor.u32 %v3492_v27, %v2805_v39  ;;  %v3494_v27 = vld [vmem:[%s5397_s0 + $0x23c] sm:$0xf] }
 0x1c6   :  { %v2051_v19 = vpop.f32.mrf.mxu0  ;;  %v2798_v6 = vor.u32 %v3491_v24, %v2797_v30 }
 0x1c7   :  { %v2050_v12 = vadd.f32 %v2049_v13, %v1921_v23  ;;  %v2802_v23 = vor.u32 %v3488_v29, %v2799_v22  ;;  %v2819_v29 = vld [vmem:[%s5397_s0 + $0x254] sm:$0xf0]  ;;  %v3498_v22 = vld [vmem:[%s5397_s0 + $0x258] sm:$0xf0] }
 0x1c8   :  { %v2180_v32 = vpop.f32.mrf.mxu1 }
 0x1c9   :  { %v2179_v9 = vadd.f32 %v2178_v57, %v2050_v12 }
 0x1cb   :  { %v2308_v53 = vadd.f32 %v2307_v48, %v2179_v9 }
 0x1cc   :  { %v1922_v38 = vpop.f32.mrf.mxu3 }
 0x1cd   :  { %v2427_v35 = vmax.f32 %v2308_v53, 0.0  ;;  %v1923_v2 = vadd.f32 %v1922_v38, %v4108_v40  ;;  %v2309_v13 = vpop.f32.mrf.mxu2  ;;  %v2833_v38 = vld [vmem:[%s5397_s0 + $0x248] sm:$0xf] }
 0x1ce   :  { %v2054_v57 = vpop.f32.mrf.mxu0 }
 0x1cf   :  { %2475 = vst.msk [vmem:[%s5398_s3] sm:$0xff] %vm1451_vm0, %v2427_v35  ;;  %v2052_v48 = vadd.f32 %v2051_v19, %v1923_v2  ;;  %v3499_v2 = vld [vmem:[%s5397_s0 + $0x260] sm:$0xf0] }
 0x1d0   :  { %v2183_v12 = vpop.f32.mrf.mxu1 }
 0x1d1   :  { %v2181_v9 = vadd.f32 %v2180_v32, %v2052_v48  ;;  %1964 = vmatmul.bf16.gmra.mxu3 %v2794_v14  ;;  %2093 = vmatmul.bf16.gmra.mxu0 %v2798_v6  ;;  %v2827_v14 = vld [vmem:[%s5397_s0 + $0x25c] sm:$0xf0]  ;;  %v2822_v48 = vor.u32 %v3494_v27, %v2819_v29 }
 0x1d2   :  { %3408 = vmatmul.msk.bf16.gmra.mxu2 %vm1451_vm0, %v2806_v8 }
 0x1d3   :  { %2222 = vmatmul.bf16.gmra.mxu1 %v2802_v23  ;;  %v2310_v40 = vadd.f32 %v2309_v13, %v2181_v9  ;;  %v3495_v13 = vld [vmem:[%s5397_s0 + $0x244] sm:$0xf] }
 0x1d4   :  { %v1925_v53 = vpop.f32.mrf.mxu3 }
 0x1d5   :  { %v2428_v50 = vmax.f32 %v2310_v40, 0.0  ;;  %v1926_v20 = vadd.f32 %v1925_v53, %v4113_v49  ;;  %v2312_v30 = vpop.f32.mrf.mxu2  ;;  %v2825_v49 = vld [vmem:[%s5397_s0 + $0x240] sm:$0xf]  ;;  %v2834_v40 = vor.u32 %v3499_v2, %v2833_v38  ;;  %v2830_v53 = vor.u32 %v3495_v13, %v2827_v14  ;;  %v3501_v38 = vld [vmem:[%s5397_s0 + $0x274] sm:$0xf] }
 0x1d6   :  { %v2056_v24 = vpop.f32.mrf.mxu0  ;;  %v3505_v2 = vld [vmem:[%s5397_s0 + $0x290] sm:$0xf0]  ;;  %v2861_v13 = vld [vmem:[%s5397_s0 + $0x280] sm:$0xf] }
 0x1d7   :  { %2476 = vst.msk [vmem:[%s5398_s3 + $0x8] sm:$0xff] %vm1451_vm0, %v2428_v50  ;;  %v2055_v19 = vadd.f32 %v2054_v57, %v1926_v20 }
 0x1d8   :  { %v2185_v39 = vpop.f32.mrf.mxu1 }
 0x1d9   :  { %v2184_v32 = vadd.f32 %v2183_v12, %v2055_v19  ;;  %v2826_v12 = vor.u32 %v3498_v22, %v2825_v49 }
 0x1db   :  { %v2313_v35 = vadd.f32 %v2312_v30, %v2184_v32 }
 0x1dc   :  { %v1927_v6 = vpop.f32.mrf.mxu3 }
 0x1dd   :  { %v2429_v57 = vmax.f32 %v2313_v35, 0.0  ;;  %v1928_v8 = vadd.f32 %v1927_v6, %v4142_v3  ;;  %v2314_v23 = vpop.f32.mrf.mxu2  ;;  %v2847_v35 = vld [vmem:[%s5397_s0 + $0x28c] sm:$0xf0]  ;;  %v3506_v6 = vld [vmem:[%s5397_s0 + $0x298] sm:$0xf0] }
 0x1de   :  { %v2059_v9 = vpop.f32.mrf.mxu0 }
 0x1df   :  { %2477 = vst.msk [vmem:[%s5398_s3 + $0x10] sm:$0xff] %vm1451_vm0, %v2429_v57  ;;  %v2057_v50 = vadd.f32 %v2056_v24, %v1928_v8  ;;  %v3502_v57 = vld [vmem:[%s5397_s0 + $0x27c] sm:$0xf]  ;;  %v2855_v8 = vld [vmem:[%s5397_s0 + $0x294] sm:$0xf0] }
 0x1e0   :  { %v2188_v20 = vpop.f32.mrf.mxu1 }
 0x1e1   :  { %v2186_v30 = vadd.f32 %v2185_v39, %v2057_v50  ;;  %1969 = vmatmul.bf16.gmra.mxu3 %v2822_v48  ;;  %2098 = vmatmul.bf16.gmra.mxu0 %v2826_v12 }
 0x1e2   :  { %3409 = vmatmul.msk.bf16.gmra.mxu2 %vm1451_vm0, %v2834_v40  ;;  %v2850_v40 = vor.u32 %v3501_v38, %v2847_v35 }
 0x1e3   :  { %2227 = vmatmul.bf16.gmra.mxu1 %v2830_v53  ;;  %v2315_v3 = vadd.f32 %v2314_v23, %v2186_v30  ;;  %v2858_v30 = vor.u32 %v3502_v57, %v2855_v8  ;;  %v3513_v57 = vld [vmem:[%s5397_s0 + $0x2d0] sm:$0xf0] }
 0x1e4   :  { %v1930_v19 = vpop.f32.mrf.mxu3  ;;  %v3509_v8 = vld [vmem:[%s5397_s0 + $0x2b4] sm:$0xf] }
 0x1e5   :  { %v2430_v32 = vmax.f32 %v2315_v3, 0.0  ;;  %v1931_v27 = vadd.f32 %v1930_v19, %v4156_v10  ;;  %v2317_v29 = vpop.f32.mrf.mxu2  ;;  %v2853_v10 = vld [vmem:[%s5397_s0 + $0x278] sm:$0xf] }
 0x1e6   :  { %v2061_v49 = vpop.f32.mrf.mxu0  ;;  %v2854_v53 = vor.u32 %v3505_v2, %v2853_v10  ;;  %v3508_v10 = vld [vmem:[%s5397_s0 + $0x2ac] sm:$0xf]  ;;  %v2875_v2 = vld [vmem:[%s5397_s0 + $0x2c4] sm:$0xf0] }
 0x1e7   :  { %2478 = vst.msk [vmem:[%s5398_s3 + $0x18] sm:$0xff] %vm1451_vm0, %v2430_v32  ;;  %v2060_v24 = vadd.f32 %v2059_v9, %v1931_v27 }
 0x1e8   :  { %v2190_v22 = vpop.f32.mrf.mxu1 }
 0x1e9   :  { %v2189_v39 = vadd.f32 %v2188_v20, %v2060_v24  ;;  %v2862_v20 = vor.u32 %v3506_v6, %v2861_v13  ;;  %v3512_v13 = vld [vmem:[%s5397_s0 + $0x2c8] sm:$0xf0] }
 0x1eb   :  { %v2318_v14 = vadd.f32 %v2317_v29, %v2189_v39 }
 0x1ec   :  { %v1932_v23 = vpop.f32.mrf.mxu3 }
 0x1ed   :  { %v2431_v48 = vmax.f32 %v2318_v14, 0.0  ;;  %v1933_v12 = vadd.f32 %v1932_v23, %v4185_v34  ;;  %v2319_v9 = vpop.f32.mrf.mxu2  ;;  %v2889_v14 = vld [vmem:[%s5397_s0 + $0x2b8] sm:$0xf]  ;;  %v2883_v23 = vld [vmem:[%s5397_s0 + $0x2cc] sm:$0xf0] }
 0x1ee   :  { %v2064_v50 = vpop.f32.mrf.mxu0 }
 0x1ef   :  { %2479 = vst.msk [vmem:[%s5398_s3 + $0x20] sm:$0xff] %vm1451_vm0, %v2431_v48  ;;  %v2062_v3 = vadd.f32 %v2061_v49, %v1933_v12 }
 0x1f0   :  { %v2193_v19 = vpop.f32.mrf.mxu1 }
 0x1f1   :  { %v2191_v32 = vadd.f32 %v2190_v22, %v2062_v3  ;;  %1974 = vmatmul.bf16.gmra.mxu3 %v2850_v40  ;;  %2103 = vmatmul.bf16.gmra.mxu0 %v2854_v53  ;;  %v2878_v53 = vor.u32 %v3508_v10, %v2875_v2  ;;  %v2886_v3 = vor.u32 %v3509_v8, %v2883_v23  ;;  %v3515_v10 = vld [vmem:[%s5397_s0 + $0x2e4] sm:$0xf]  ;;  %v2903_v2 = vld [vmem:[%s5397_s0 + $0x2fc] sm:$0xf0]  ;;  %v2911_v8 = vld [vmem:[%s5397_s0 + $0x304] sm:$0xf0] }
 0x1f2   :  { %3410 = vmatmul.msk.bf16.gmra.mxu2 %vm1451_vm0, %v2862_v20 }
 0x1f3   :  { %2232 = vmatmul.bf16.gmra.mxu1 %v2858_v30  ;;  %v2320_v34 = vadd.f32 %v2319_v9, %v2191_v32  ;;  %v2890_v30 = vor.u32 %v3513_v57, %v2889_v14  ;;  %v3516_v57 = vld [vmem:[%s5397_s0 + $0x2ec] sm:$0xf] }
 0x1f4   :  { %v1935_v27 = vpop.f32.mrf.mxu3 }
 0x1f5   :  { %v2432_v29 = vmax.f32 %v2320_v34, 0.0  ;;  %v1936_v24 = vadd.f32 %v1935_v27, %v4193_v46  ;;  %v2322_v39 = vpop.f32.mrf.mxu2  ;;  %v2881_v46 = vld [vmem:[%s5397_s0 + $0x2b0] sm:$0xf] }
 0x1f6   :  { %v2066_v38 = vpop.f32.mrf.mxu0 }
 0x1f7   :  { %2480 = vst.msk [vmem:[%s5398_s3 + $0x28] sm:$0xff] %vm1451_vm0, %v2432_v29  ;;  %v2065_v49 = vadd.f32 %v2064_v50, %v1936_v24  ;;  %v2882_v50 = vor.u32 %v3512_v13, %v2881_v46  ;;  %v3519_v46 = vld [vmem:[%s5397_s0 + $0x300] sm:$0xf0]  ;;  %v2917_v13 = vld [vmem:[%s5397_s0 + $0x2f0] sm:$0xf] }
 0x1f8   :  { %v2195_v35 = vpop.f32.mrf.mxu1 }
 0x1f9   :  { %v2194_v22 = vadd.f32 %v2193_v19, %v2065_v49 }
 0x1fb   :  { %v2323_v6 = vadd.f32 %v2322_v39, %v2194_v22 }
 0x1fc   :  { %v1937_v48 = vpop.f32.mrf.mxu3 }
 0x1fd   :  { %v2433_v12 = vmax.f32 %v2323_v6, 0.0  ;;  %v1938_v9 = vadd.f32 %v1937_v48, %v4225_v5  ;;  %v2324_v40 = vpop.f32.mrf.mxu2  ;;  %v3520_v6 = vld [vmem:[%s5397_s0 + $0x308] sm:$0xf0] }
 0x1fe   :  { %v2069_v20 = vpop.f32.mrf.mxu0 }
 0x1ff   :  { %2481 = vst.msk [vmem:[%s5398_s3 + $0x30] sm:$0xff] %vm1451_vm0, %v2433_v12  ;;  %v2067_v19 = vadd.f32 %v2066_v38, %v1938_v9 }
 0x200   :  { %v2198_v32 = vpop.f32.mrf.mxu1 }
 0x201   :  { %v2196_v34 = vadd.f32 %v2195_v35, %v2067_v19  ;;  %1979 = vmatmul.bf16.gmra.mxu3 %v2878_v53  ;;  %2108 = vmatmul.bf16.gmra.mxu0 %v2882_v50 }
 0x202   :  { %3411 = vmatmul.msk.bf16.gmra.mxu2 %vm1451_vm0, %v2890_v30  ;;  %v2914_v30 = vor.u32 %v3516_v57, %v2911_v8 }
 0x203   :  { %2237 = vmatmul.bf16.gmra.mxu1 %v2886_v3  ;;  %v2325_v5 = vadd.f32 %v2324_v40, %v2196_v34  ;;  %v2906_v40 = vor.u32 %v3515_v10, %v2903_v2  ;;  %v3526_v10 = vld [vmem:[%s5397_s0 + $0x338] sm:$0xf0]  ;;  %v2945_v2 = vld [vmem:[%s5397_s0 + $0x328] sm:$0xf] }
 0x204   :  { %v1940_v27 = vpop.f32.mrf.mxu3 }
 0x205   :  { %v2434_v29 = vmax.f32 %v2325_v5, 0.0  ;;  %v1941_v24 = vadd.f32 %v1940_v27, %v4236_v16  ;;  %v2327_v39 = vpop.f32.mrf.mxu2  ;;  %v2909_v16 = vld [vmem:[%s5397_s0 + $0x2e8] sm:$0xf] }
 0x206   :  { %v2071_v49 = vpop.f32.mrf.mxu0  ;;  %v2910_v53 = vor.u32 %v3519_v46, %v2909_v16  ;;  %v3527_v46 = vld [vmem:[%s5397_s0 + $0x340] sm:$0xf0] }
 0x207   :  { %2482 = vst.msk [vmem:[%s5398_s3 + $0x38] sm:$0xff] %vm1451_vm0, %v2434_v29  ;;  %v2070_v38 = vadd.f32 %v2069_v20, %v1941_v24  ;;  %v2918_v20 = vor.u32 %v3520_v6, %v2917_v13  ;;  %v3523_v13 = vld [vmem:[%s5397_s0 + $0x324] sm:$0xf] }
 0x208   :  { %v2200_v22 = vpop.f32.mrf.mxu1 }
 0x209   :  { %v2199_v35 = vadd.f32 %v2198_v32, %v2070_v38 }
 0x20b   :  { %v2328_v14 = vadd.f32 %v2327_v39, %v2199_v35  ;;  %v2931_v35 = vld [vmem:[%s5397_s0 + $0x334] sm:$0xf0] }
 0x20c   :  { %v1942_v23 = vpop.f32.mrf.mxu3 }
 0x20d   :  { %v2435_v48 = vmax.f32 %v2328_v14, 0.0  ;;  %v1943_v12 = vadd.f32 %v1942_v23, %v4268_v42  ;;  %v2329_v9 = vpop.f32.mrf.mxu2  ;;  %v2939_v14 = vld [vmem:[%s5397_s0 + $0x33c] sm:$0xf0] }
 0x20e   :  { %v2074_v50 = vpop.f32.mrf.mxu0 }
 0x20f   :  { %2483 = vst.msk [vmem:[%s5398_s3 + $0x40] sm:$0xff] %vm1451_vm0, %v2435_v48  ;;  %v2072_v3 = vadd.f32 %v2071_v49, %v1943_v12 }
 0x210   :  { %v2203_v19 = vpop.f32.mrf.mxu1 }
 0x211   :  { %v2201_v32 = vadd.f32 %v2200_v22, %v2072_v3  ;;  %1984 = vmatmul.bf16.gmra.mxu3 %v2906_v40  ;;  %2113 = vmatmul.bf16.gmra.mxu0 %v2910_v53  ;;  %v3522_v22 = vld [vmem:[%s5397_s0 + $0x31c] sm:$0xf]  ;;  %v2946_v40 = vor.u32 %v3527_v46, %v2945_v2  ;;  %v2942_v53 = vor.u32 %v3523_v13, %v2939_v14 }
 0x212   :  { %3412 = vmatmul.msk.bf16.gmra.mxu2 %vm1451_vm0, %v2918_v20  ;;  %v2934_v48 = vor.u32 %v3522_v22, %v2931_v35  ;;  %v3534_v35 = vld [vmem:[%s5397_s0 + $0x378] sm:$0xf0] }
 0x213   :  { %2242 = vmatmul.bf16.gmra.mxu1 %v2914_v30  ;;  %v2330_v42 = vadd.f32 %v2329_v9, %v2201_v32 }
 0x214   :  { %v1945_v34 = vpop.f32.mrf.mxu3 }
 0x215   :  { %v2436_v5 = vmax.f32 %v2330_v42, 0.0  ;;  %v1946_v27 = vadd.f32 %v1945_v34, %v4276_v56  ;;  %v2332_v29 = vpop.f32.mrf.mxu2  ;;  %v2937_v56 = vld [vmem:[%s5397_s0 + $0x320] sm:$0xf] }
 0x216   :  { %v2076_v24 = vpop.f32.mrf.mxu0  ;;  %v2938_v12 = vor.u32 %v3526_v10, %v2937_v56  ;;  %v3530_v56 = vld [vmem:[%s5397_s0 + $0x35c] sm:$0xf]  ;;  %v2967_v10 = vld [vmem:[%s5397_s0 + $0x374] sm:$0xf0] }
 0x217   :  { %2484 = vst.msk [vmem:[%s5398_s3 + $0x48] sm:$0xff] %vm1451_vm0, %v2436_v5  ;;  %v2075_v39 = vadd.f32 %v2074_v50, %v1946_v27 }
 0x218   :  { %v2205_v49 = vpop.f32.mrf.mxu1 }
 0x219   :  { %v2204_v38 = vadd.f32 %v2203_v19, %v2075_v39  ;;  %v2959_v39 = vld [vmem:[%s5397_s0 + $0x36c] sm:$0xf0] }
 0x21b   :  { %v2333_v16 = vadd.f32 %v2332_v29, %v2204_v38  ;;  %v2973_v38 = vld [vmem:[%s5397_s0 + $0x360] sm:$0xf] }
 0x21c   :  { %v1947_v6 = vpop.f32.mrf.mxu3 }
 0x21d   :  { %v2437_v57 = vmax.f32 %v2333_v16, 0.0  ;;  %v1948_v8 = vadd.f32 %v1947_v6, %v4305_v18  ;;  %v2334_v23 = vpop.f32.mrf.mxu2 }
 0x21e   :  { %v2079_v9 = vpop.f32.mrf.mxu0 }
 0x21f   :  { %2485 = vst.msk [vmem:[%s5398_s3 + $0x50] sm:$0xff] %vm1451_vm0, %v2437_v57  ;;  %v2077_v50 = vadd.f32 %v2076_v24, %v1948_v8  ;;  %v3529_v24 = vld [vmem:[%s5397_s0 + $0x354] sm:$0xf]  ;;  %v2974_v8 = vor.u32 %v3534_v35, %v2973_v38 }
 0x220   :  { %v2208_v20 = vpop.f32.mrf.mxu1  ;;  %v2962_v14 = vor.u32 %v3529_v24, %v2959_v39  ;;  %v3537_v24 = vld [vmem:[%s5397_s0 + $0x394] sm:$0xf]  ;;  %v2995_v39 = vld [vmem:[%s5397_s0 + $0x3ac] sm:$0xf0] }
 0x221   :  { %v2206_v30 = vadd.f32 %v2205_v49, %v2077_v50  ;;  %1989 = vmatmul.bf16.gmra.mxu3 %v2934_v48  ;;  %2118 = vmatmul.bf16.gmra.mxu0 %v2938_v12  ;;  %v3533_v49 = vld [vmem:[%s5397_s0 + $0x370] sm:$0xf0] }
 0x222   :  { %3413 = vmatmul.msk.bf16.gmra.mxu2 %vm1451_vm0, %v2946_v40 }
 0x223   :  { %2247 = vmatmul.bf16.gmra.mxu1 %v2942_v53  ;;  %v2335_v18 = vadd.f32 %v2334_v23, %v2206_v30  ;;  %v2970_v23 = vor.u32 %v3530_v56, %v2967_v10 }
 0x224   :  { %v1950_v3 = vpop.f32.mrf.mxu3 }
 0x225   :  { %v2438_v19 = vmax.f32 %v2335_v18, 0.0  ;;  %v1951_v32 = vadd.f32 %v1950_v3, %v4315_v33  ;;  %v2337_v42 = vpop.f32.mrf.mxu2  ;;  %v2965_v33 = vld [vmem:[%s5397_s0 + $0x358] sm:$0xf] }
 0x226   :  { %v2081_v34 = vpop.f32.mrf.mxu0  ;;  %v2966_v6 = vor.u32 %v3533_v49, %v2965_v33 }
 0x227   :  { %2486 = vst.msk [vmem:[%s5398_s3 + $0x58] sm:$0xff] %vm1451_vm0, %v2438_v19  ;;  %v2080_v5 = vadd.f32 %v2079_v9, %v1951_v32  ;;  %v3536_v32 = vld [vmem:[%s5397_s0 + $0x38c] sm:$0xf] }
 0x228   :  { %v2210_v27 = vpop.f32.mrf.mxu1 }
 0x229   :  { %v2209_v29 = vadd.f32 %v2208_v20, %v2080_v5  ;;  %v3001_v5 = vld [vmem:[%s5397_s0 + $0x398] sm:$0xf] }
 0x22b   :  { %v2338_v22 = vadd.f32 %v2337_v42, %v2209_v29  ;;  %v2987_v42 = vld [vmem:[%s5397_s0 + $0x3a4] sm:$0xf0]  ;;  %v3541_v29 = vld [vmem:[%s5397_s0 + $0x3b0] sm:$0xf0] }
 0x22c   :  { %v1952_v2 = vpop.f32.mrf.mxu3  ;;  %v2990_v35 = vor.u32 %v3536_v32, %v2987_v42 }
 0x22d   :  { %v2439_v16 = vmax.f32 %v2338_v22, 0.0  ;;  %v1953_v46 = vadd.f32 %v1952_v2, %v4355_v36  ;;  %v2339_v13 = vpop.f32.mrf.mxu2  ;;  %v3002_v2 = vor.u32 %v3541_v29, %v3001_v5 }
 0x22e   :  { %v2084_v57 = vpop.f32.mrf.mxu0 }
 0x22f   :  { %2487 = vst.msk [vmem:[%s5398_s3 + $0x60] sm:$0xff] %vm1451_vm0, %v2439_v16  ;;  %v2082_v48 = vadd.f32 %v2081_v34, %v1953_v46  ;;  %v3540_v34 = vld [vmem:[%s5397_s0 + $0x3a8] sm:$0xf0]  ;;  %v2998_v16 = vor.u32 %v3537_v24, %v2995_v39 }
 0x230   :  { %v2213_v12 = vpop.f32.mrf.mxu1 }
 0x231   :  { %v2211_v9 = vadd.f32 %v2210_v27, %v2082_v48  ;;  %1994 = vmatmul.bf16.gmra.mxu3 %v2962_v14  ;;  %2123 = vmatmul.bf16.gmra.mxu0 %v2966_v6 }
 0x232   :  { %3414 = vmatmul.msk.bf16.gmra.mxu2 %vm1451_vm0, %v2974_v8 }
 0x233   :  { %2252 = vmatmul.bf16.gmra.mxu1 %v2970_v23  ;;  %v2340_v36 = vadd.f32 %v2339_v13, %v2211_v9 }
 0x234   :  { %v1955_v40 = vpop.f32.mrf.mxu3 }
 0x235   :  { %v2440_v53 = vmax.f32 %v2340_v36, 0.0  ;;  %v1956_v50 = vadd.f32 %v1955_v40, %v4362_v25  ;;  %v2342_v20 = vpop.f32.mrf.mxu2  ;;  %v2993_v25 = vld [vmem:[%s5397_s0 + $0x390] sm:$0xf]  ;;  %v3543_v40 = vld [vmem:[%s5397_s0 + $0x3c4] sm:$0xf] }
 0x236   :  { %v2086_v30 = vpop.f32.mrf.mxu0  ;;  %v2994_v56 = vor.u32 %v3540_v34, %v2993_v25 }
 0x237   :  { %2488 = vst.msk [vmem:[%s5398_s3 + $0x68] sm:$0xff] %vm1451_vm0, %v2440_v53  ;;  %v2085_v18 = vadd.f32 %v2084_v57, %v1956_v50  ;;  %v3015_v53 = vld [vmem:[%s5397_s0 + $0x3dc] sm:$0xf0]  ;;  %v3547_v50 = vld [vmem:[%s5397_s0 + $0x3e0] sm:$0xf0] }
 0x238   :  { %v2215_v3 = vpop.f32.mrf.mxu1  ;;  %v3018_v5 = vor.u32 %v3543_v40, %v3015_v53 }
 0x239   :  { %v2214_v19 = vadd.f32 %v2213_v12, %v2085_v18  ;;  %v3548_v18 = vld [vmem:[%s5397_s0 + $0x3e8] sm:$0xf0] }
 0x23b   :  { %v2343_v27 = vadd.f32 %v2342_v20, %v2214_v19  ;;  %v3029_v20 = vld [vmem:[%s5397_s0 + $0x3d0] sm:$0xf]  ;;  %v3023_v19 = vld [vmem:[%s5397_s0 + $0x3e4] sm:$0xf0] }
 0x23c   :  { %v1957_v33 = vpop.f32.mrf.mxu3  ;;  %v3030_v24 = vor.u32 %v3548_v18, %v3029_v20 }
 0x23d   :  { %v2441_v49 = vmax.f32 %v2343_v27, 0.0  ;;  %v1958_v38 = vadd.f32 %v1957_v33, %v4396_v55  ;;  %v2344_v22 = vpop.f32.mrf.mxu2 }
 0x23e   :  { %v2089_v10 = vpop.f32.mrf.mxu0 }
 0x23f   :  { %2489 = vst.msk [vmem:[%s5398_s3 + $0x70] sm:$0xff] %vm1451_vm0, %v2441_v49  ;;  %v2087_v46 = vadd.f32 %v2086_v30, %v1958_v38 }
 0x240   :  { %v2218_v13 = vpop.f32.mrf.mxu1 }
 0x241   :  { %v2216_v14 = vadd.f32 %v2215_v3, %v2087_v46  ;;  %1999 = vmatmul.bf16.gmra.mxu3 %v2990_v35  ;;  %2128 = vmatmul.bf16.gmra.mxu0 %v2994_v56  ;;  %v3544_v3 = vld [vmem:[%s5397_s0 + $0x3cc] sm:$0xf] }
 0x242   :  { %3415 = vmatmul.msk.bf16.gmra.mxu2 %vm1451_vm0, %v3002_v2  ;;  %v3026_v39 = vor.u32 %v3544_v3, %v3023_v19 }
 0x243   :  { %2257 = vmatmul.bf16.gmra.mxu1 %v2998_v16  ;;  %v2345_v55 = vadd.f32 %v2344_v22, %v2216_v14  ;;  %v3550_v14 = vld [vmem:[%s5397_s0 + $0x3fc] sm:$0xf] }
 0x244   :  { %v1960_v6 = vpop.f32.mrf.mxu3 }
 0x245   :  { %v2442_v57 = vmax.f32 %v2345_v55, 0.0  ;;  %v1961_v8 = vadd.f32 %v1960_v6, %v4403_v7  ;;  %v2347_v23 = vpop.f32.mrf.mxu2  ;;  %v3021_v7 = vld [vmem:[%s5397_s0 + $0x3c8] sm:$0xf]  ;;  %v3043_v55 = vld [vmem:[%s5397_s0 + $0x414] sm:$0xf0] }
 0x246   :  { %v2091_v48 = vpop.f32.mrf.mxu0  ;;  %v3022_v27 = vor.u32 %v3547_v50, %v3021_v7  ;;  %v3554_v6 = vld [vmem:[%s5397_s0 + $0x418] sm:$0xf0]  ;;  %v3046_v7 = vor.u32 %v3550_v14, %v3043_v55 }
 0x247   :  { %2490 = vst.msk [vmem:[%s5398_s3 + $0x78] sm:$0xff] %vm1451_vm0, %v2442_v57  ;;  %v2090_v12 = vadd.f32 %v2089_v10, %v1961_v8  ;;  %v3057_v57 = vld [vmem:[%s5397_s0 + $0x408] sm:$0xf] }
 0x248   :  { %v2220_v9 = vpop.f32.mrf.mxu1 }
 0x249   :  { %v2219_v36 = vadd.f32 %v2218_v13, %v2090_v12  ;;  %v3051_v12 = vld [vmem:[%s5397_s0 + $0x41c] sm:$0xf0] }
 0x24b   :  { %v2348_v30 = vadd.f32 %v2347_v23, %v2219_v36  ;;  %v3555_v23 = vld [vmem:[%s5397_s0 + $0x420] sm:$0xf0] }
 0x24c   :  { %v1962_v32 = vpop.f32.mrf.mxu3 }
 0x24d   :  { %v2443_v42 = vmax.f32 %v2348_v30, 0.0  ;;  %v1963_v25 = vadd.f32 %v1962_v32, %v4434_v43  ;;  %v2349_v34 = vpop.f32.mrf.mxu2  ;;  %v3058_v30 = vor.u32 %v3555_v23, %v3057_v57 }
 0x24e   :  { %v2094_v29 = vpop.f32.mrf.mxu0 }
 0x24f   :  { %2491 = vst.msk [vmem:[%s5398_s3 + $0x80] sm:$0xff] %vm1451_vm0, %v2443_v42  ;;  %v2092_v33 = vadd.f32 %v2091_v48, %v1963_v25  ;;  %v3551_v48 = vld [vmem:[%s5397_s0 + $0x404] sm:$0xf] }
 0x250   :  { %v2223_v49 = vpop.f32.mrf.mxu1  ;;  %v3054_v18 = vor.u32 %v3551_v48, %v3051_v12 }
 0x251   :  { %v2221_v38 = vadd.f32 %v2220_v9, %v2092_v33  ;;  %2004 = vmatmul.bf16.gmra.mxu3 %v3018_v5  ;;  %2133 = vmatmul.bf16.gmra.mxu0 %v3022_v27  ;;  %v3557_v33 = vld [vmem:[%s5397_s0 + $0x434] sm:$0xf] }
 0x252   :  { %3416 = vmatmul.msk.bf16.gmra.mxu2 %vm1451_vm0, %v3030_v24 }
 0x253   :  { %2262 = vmatmul.bf16.gmra.mxu1 %v3026_v39  ;;  %v2350_v43 = vadd.f32 %v2349_v34, %v2221_v38  ;;  %v3561_v38 = vld [vmem:[%s5397_s0 + $0x450] sm:$0xf0] }
 0x254   :  { %v1965_v22 = vpop.f32.mrf.mxu3 }
 0x255   :  { %v2444_v35 = vmax.f32 %v2350_v43, 0.0  ;;  %v1966_v56 = vadd.f32 %v1965_v22, %v4441_v59  ;;  %v2352_v10 = vpop.f32.mrf.mxu2  ;;  %v3049_v59 = vld [vmem:[%s5397_s0 + $0x400] sm:$0xf] }
 0x256   :  { %v2096_v2 = vpop.f32.mrf.mxu0  ;;  %v3050_v50 = vor.u32 %v3554_v6, %v3049_v59  ;;  %v3085_v43 = vld [vmem:[%s5397_s0 + $0x440] sm:$0xf] }
 0x257   :  { %2492 = vst.msk [vmem:[%s5398_s3 + $0x88] sm:$0xff] %vm1451_vm0, %v2444_v35  ;;  %v2095_v16 = vadd.f32 %v2094_v29, %v1966_v56  ;;  %v3562_v35 = vld [vmem:[%s5397_s0 + $0x458] sm:$0xf0] }
 0x258   :  { %v2225_v46 = vpop.f32.mrf.mxu1  ;;  %v3558_v56 = vld [vmem:[%s5397_s0 + $0x43c] sm:$0xf]  ;;  %v3086_v6 = vor.u32 %v3562_v35, %v3085_v43 }
 0x259   :  { %v2224_v13 = vadd.f32 %v2223_v49, %v2095_v16  ;;  %v3071_v49 = vld [vmem:[%s5397_s0 + $0x44c] sm:$0xf0] }
 0x25a   :  { %v3074_v14 = vor.u32 %v3557_v33, %v3071_v49 }
 0x25b   :  { %v2353_v8 = vadd.f32 %v2352_v10, %v2224_v13  ;;  %v3079_v10 = vld [vmem:[%s5397_s0 + $0x454] sm:$0xf0] }
 0x25c   :  { %v1967_v9 = vpop.f32.mrf.mxu3  ;;  %v3082_v57 = vor.u32 %v3558_v56, %v3079_v10 }
 0x25d   :  { %v2445_v36 = vmax.f32 %v2353_v8, 0.0  ;;  %v1968_v40 = vadd.f32 %v1967_v9, %v4472_v47  ;;  %v2354_v53 = vpop.f32.mrf.mxu2 }
 0x25e   :  { %v2099_v20 = vpop.f32.mrf.mxu0 }
 0x25f   :  { %2493 = vst.msk [vmem:[%s5398_s3 + $0x90] sm:$0xff] %vm1451_vm0, %v2445_v36  ;;  %v2097_v3 = vadd.f32 %v2096_v2, %v1968_v40 }
 0x260   :  { %v2228_v19 = vpop.f32.mrf.mxu1 }
 0x261   :  { %v2226_v32 = vadd.f32 %v2225_v46, %v2097_v3  ;;  %2009 = vmatmul.bf16.gmra.mxu3 %v3046_v7  ;;  %2138 = vmatmul.bf16.gmra.mxu0 %v3050_v50  ;;  %v3568_v3 = vld [vmem:[%s5397_s0 + $0x488] sm:$0xf0] }
 0x262   :  { %3417 = vmatmul.msk.bf16.gmra.mxu2 %vm1451_vm0, %v3058_v30  ;;  %v3564_v30 = vld [vmem:[%s5397_s0 + $0x46c] sm:$0xf] }
 0x263   :  { %2267 = vmatmul.bf16.gmra.mxu1 %v3054_v18  ;;  %v2355_v47 = vadd.f32 %v2354_v53, %v2226_v32  ;;  %v3099_v18 = vld [vmem:[%s5397_s0 + $0x484] sm:$0xf0] }
 0x264   :  { %v1970_v42 = vpop.f32.mrf.mxu3 }
 0x265   :  { %v2446_v25 = vmax.f32 %v2355_v47, 0.0  ;;  %v1971_v34 = vadd.f32 %v1970_v42, %v4480_v52  ;;  %v2357_v5 = vpop.f32.mrf.mxu2  ;;  %v3077_v52 = vld [vmem:[%s5397_s0 + $0x438] sm:$0xf]  ;;  %v3569_v47 = vld [vmem:[%s5397_s0 + $0x490] sm:$0xf0] }
 0x266   :  { %v2101_v27 = vpop.f32.mrf.mxu0  ;;  %v3078_v55 = vor.u32 %v3561_v38, %v3077_v52  ;;  %v3565_v42 = vld [vmem:[%s5397_s0 + $0x474] sm:$0xf] }
 0x267   :  { %2494 = vst.msk [vmem:[%s5398_s3 + $0x98] sm:$0xff] %vm1451_vm0, %v2446_v25  ;;  %v2100_v29 = vadd.f32 %v2099_v20, %v1971_v34  ;;  %v3107_v25 = vld [vmem:[%s5397_s0 + $0x48c] sm:$0xf0] }
 0x268   :  { %v2230_v24 = vpop.f32.mrf.mxu1  ;;  %v3110_v52 = vor.u32 %v3565_v42, %v3107_v25 }
 0x269   :  { %v2229_v39 = vadd.f32 %v2228_v19, %v2100_v29  ;;  %v3113_v19 = vld [vmem:[%s5397_s0 + $0x478] sm:$0xf] }
 0x26a   :  { %v3114_v49 = vor.u32 %v3569_v47, %v3113_v19 }
 0x26b   :  { %v2358_v22 = vadd.f32 %v2357_v5, %v2229_v39 }
 0x26c   :  { %v1972_v2 = vpop.f32.mrf.mxu3 }
 0x26d   :  { %v2447_v16 = vmax.f32 %v2358_v22, 0.0  ;;  %v1973_v46 = vadd.f32 %v1972_v2, %v4511_v28  ;;  %v2359_v13 = vpop.f32.mrf.mxu2 }
 0x26e   :  { %v2104_v59 = vpop.f32.mrf.mxu0 }
 0x26f   :  { %2495 = vst.msk [vmem:[%s5398_s3 + $0xa0] sm:$0xff] %vm1451_vm0, %v2447_v16  ;;  %v2102_v8 = vadd.f32 %v2101_v27, %v1973_v46 }
 0x270   :  { %v2233_v23 = vpop.f32.mrf.mxu1 }
 0x271   :  { %v2231_v48 = vadd.f32 %v2230_v24, %v2102_v8  ;;  %2014 = vmatmul.bf16.gmra.mxu3 %v3074_v14  ;;  %2143 = vmatmul.bf16.gmra.mxu0 %v3078_v55  ;;  %v3102_v24 = vor.u32 %v3564_v30, %v3099_v18  ;;  %v3571_v55 = vld [vmem:[%s5397_s0 + $0x4a4] sm:$0xf] }
 0x272   :  { %3418 = vmatmul.msk.bf16.gmra.mxu2 %vm1451_vm0, %v3086_v6  ;;  %v3575_v6 = vld [vmem:[%s5397_s0 + $0x4c0] sm:$0xf0] }
 0x273   :  { %2272 = vmatmul.bf16.gmra.mxu1 %v3082_v57  ;;  %v2360_v28 = vadd.f32 %v2359_v13, %v2231_v48  ;;  %v3141_v57 = vld [vmem:[%s5397_s0 + $0x4b0] sm:$0xf]  ;;  %v3572_v48 = vld [vmem:[%s5397_s0 + $0x4ac] sm:$0xf] }
 0x274   :  { %v1975_v12 = vpop.f32.mrf.mxu3 }
 0x275   :  { %v2448_v9 = vmax.f32 %v2360_v28, 0.0  ;;  %v1976_v36 = vadd.f32 %v1975_v12, %v4519_v45  ;;  %v2362_v40 = vpop.f32.mrf.mxu2  ;;  %v3105_v45 = vld [vmem:[%s5397_s0 + $0x470] sm:$0xf]  ;;  %v3135_v28 = vld [vmem:[%s5397_s0 + $0x4c4] sm:$0xf0] }
 0x276   :  { %v2106_v53 = vpop.f32.mrf.mxu0  ;;  %v3106_v39 = vor.u32 %v3568_v3, %v3105_v45  ;;  %v3138_v30 = vor.u32 %v3572_v48, %v3135_v28 }
 0x277   :  { %2496 = vst.msk [vmem:[%s5398_s3 + $0xa8] sm:$0xff] %vm1451_vm0, %v2448_v9  ;;  %v2105_v7 = vadd.f32 %v2104_v59, %v1976_v36  ;;  %v3127_v59 = vld [vmem:[%s5397_s0 + $0x4bc] sm:$0xf0] }
 0x278   :  { %v2235_v50 = vpop.f32.mrf.mxu1 }
 0x279   :  { %v2234_v20 = vadd.f32 %v2233_v23, %v2105_v7  ;;  %v3576_v23 = vld [vmem:[%s5397_s0 + $0x4c8] sm:$0xf0] }
 0x27b   :  { %v2363_v32 = vadd.f32 %v2362_v40, %v2234_v20  ;;  %v3142_v20 = vor.u32 %v3576_v23, %v3141_v57 }
 0x27c   :  { %v1977_v34 = vpop.f32.mrf.mxu3 }
 0x27d   :  { %v2449_v5 = vmax.f32 %v2363_v32, 0.0  ;;  %v1978_v27 = vadd.f32 %v1977_v34, %v4550_v26  ;;  %v2364_v29 = vpop.f32.mrf.mxu2 }
 0x27e   :  { %v2109_v33 = vpop.f32.mrf.mxu0 }
 0x27f   :  { %2497 = vst.msk [vmem:[%s5398_s3 + $0xb0] sm:$0xff] %vm1451_vm0, %v2449_v5  ;;  %v2107_v38 = vadd.f32 %v2106_v53, %v1978_v27  ;;  %v3130_v53 = vor.u32 %v3571_v55, %v3127_v59 }
 0x280   :  { %v2238_v43 = vpop.f32.mrf.mxu1 }
 0x281   :  { %v2236_v22 = vadd.f32 %v2235_v50, %v2107_v38  ;;  %2019 = vmatmul.bf16.gmra.mxu3 %v3102_v24  ;;  %2148 = vmatmul.bf16.gmra.mxu0 %v3106_v39  ;;  %v3155_v24 = vld [vmem:[%s5397_s0 + $0x4f4] sm:$0xf0]  ;;  %v3582_v39 = vld [vmem:[%s5397_s0 + $0x4f8] sm:$0xf0]  ;;  %v3579_v38 = vld [vmem:[%s5397_s0 + $0x4e4] sm:$0xf] }
 0x282   :  { %3419 = vmatmul.msk.bf16.gmra.mxu2 %vm1451_vm0, %v3114_v49 }
 0x283   :  { %2277 = vmatmul.bf16.gmra.mxu1 %v3110_v52  ;;  %v2365_v26 = vadd.f32 %v2364_v29, %v2236_v22  ;;  %v3578_v29 = vld [vmem:[%s5397_s0 + $0x4dc] sm:$0xf]  ;;  %v3583_v52 = vld [vmem:[%s5397_s0 + $0x500] sm:$0xf0] }
 0x284   :  { %v1980_v35 = vpop.f32.mrf.mxu3 }
 0x285   :  { %v2450_v56 = vmax.f32 %v2365_v26, 0.0  ;;  %v1981_v10 = vadd.f32 %v1980_v35, %v4557_v21  ;;  %v2367_v2 = vpop.f32.mrf.mxu2  ;;  %v3133_v21 = vld [vmem:[%s5397_s0 + $0x4a8] sm:$0xf] }
 0x286   :  { %v2111_v16 = vpop.f32.mrf.mxu0  ;;  %v3134_v7 = vor.u32 %v3575_v6, %v3133_v21 }
 0x287   :  { %2498 = vst.msk [vmem:[%s5398_s3 + $0xb8] sm:$0xff] %vm1451_vm0, %v2450_v56  ;;  %v2110_v46 = vadd.f32 %v2109_v33, %v1981_v10  ;;  %v3169_v33 = vld [vmem:[%s5397_s0 + $0x4e8] sm:$0xf]  ;;  %v3158_v10 = vor.u32 %v3578_v29, %v3155_v24 }
 0x288   :  { %v2240_v13 = vpop.f32.mrf.mxu1 }
 0x289   :  { %v2239_v14 = vadd.f32 %v2238_v43, %v2110_v46  ;;  %v3163_v43 = vld [vmem:[%s5397_s0 + $0x4fc] sm:$0xf0]  ;;  %v3170_v46 = vor.u32 %v3583_v52, %v3169_v33 }
 0x28b   :  { %v2368_v8 = vadd.f32 %v2367_v2, %v2239_v14 }
 0x28c   :  { %v1982_v12 = vpop.f32.mrf.mxu3 }
 0x28d   :  { %v2451_v9 = vmax.f32 %v2368_v8, 0.0  ;;  %v1983_v36 = vadd.f32 %v1982_v12, %v4587_v15  ;;  %v2369_v40 = vpop.f32.mrf.mxu2 }
 0x28e   :  { %v2114_v50 = vpop.f32.mrf.mxu0 }
 0x28f   :  { %2499 = vst.msk [vmem:[%s5398_s3 + $0xc0] sm:$0xff] %vm1451_vm0, %v2451_v9  ;;  %v2112_v18 = vadd.f32 %v2111_v16, %v1983_v36  ;;  %v3585_v9 = vld [vmem:[%s5397_s0 + $0x514] sm:$0xf]  ;;  %v3183_v36 = vld [vmem:[%s5397_s0 + $0x52c] sm:$0xf0] }
 0x290   :  { %v2243_v45 = vpop.f32.mrf.mxu1 }
 0x291   :  { %v2241_v3 = vadd.f32 %v2240_v13, %v2112_v18  ;;  %2024 = vmatmul.bf16.gmra.mxu3 %v3130_v53  ;;  %2153 = vmatmul.bf16.gmra.mxu0 %v3134_v7  ;;  %v3166_v13 = vor.u32 %v3579_v38, %v3163_v43  ;;  %v3197_v53 = vld [vmem:[%s5397_s0 + $0x520] sm:$0xf] }
 0x292   :  { %3420 = vmatmul.msk.bf16.gmra.mxu2 %vm1451_vm0, %v3142_v20  ;;  %v3586_v20 = vld [vmem:[%s5397_s0 + $0x51c] sm:$0xf] }
 0x293   :  { %2282 = vmatmul.bf16.gmra.mxu1 %v3138_v30  ;;  %v2370_v15 = vadd.f32 %v2369_v40, %v2241_v3  ;;  %v3589_v40 = vld [vmem:[%s5397_s0 + $0x530] sm:$0xf0]  ;;  %v3191_v30 = vld [vmem:[%s5397_s0 + $0x534] sm:$0xf0] }
 0x294   :  { %v1985_v19 = vpop.f32.mrf.mxu3 }
 0x295   :  { %v2452_v32 = vmax.f32 %v2370_v15, 0.0  ;;  %v1986_v47 = vadd.f32 %v1985_v19, %v4594_v51  ;;  %v2372_v42 = vpop.f32.mrf.mxu2  ;;  %v3161_v51 = vld [vmem:[%s5397_s0 + $0x4e0] sm:$0xf]  ;;  %v3186_v19 = vor.u32 %v3585_v9, %v3183_v36 }
 0x296   :  { %v2116_v25 = vpop.f32.mrf.mxu0  ;;  %v3162_v2 = vor.u32 %v3582_v39, %v3161_v51 }
 0x297   :  { %2500 = vst.msk [vmem:[%s5398_s3 + $0xc8] sm:$0xff] %vm1451_vm0, %v2452_v32  ;;  %v2115_v34 = vadd.f32 %v2114_v50, %v1986_v47  ;;  %v3590_v50 = vld [vmem:[%s5397_s0 + $0x538] sm:$0xf0] }
 0x298   :  { %v2245_v5 = vpop.f32.mrf.mxu1 }
 0x299   :  { %v2244_v27 = vadd.f32 %v2243_v45, %v2115_v34 }
 0x29b   :  { %v2373_v49 = vadd.f32 %v2372_v42, %v2244_v27  ;;  %v3198_v42 = vor.u32 %v3590_v50, %v3197_v53 }
 0x29c   :  { %v1987_v22 = vpop.f32.mrf.mxu3 }
 0x29d   :  { %v2453_v26 = vmax.f32 %v2373_v49, 0.0  ;;  %v1988_v35 = vadd.f32 %v1987_v22, %v4624_v37  ;;  %v2374_v56 = vpop.f32.mrf.mxu2 }
 0x29e   :  { %v2119_v16 = vpop.f32.mrf.mxu0 }
 0x29f   :  { %2501 = vst.msk [vmem:[%s5398_s3 + $0xd0] sm:$0xff] %vm1451_vm0, %v2453_v26  ;;  %v2117_v14 = vadd.f32 %v2116_v25, %v1988_v35  ;;  %v3194_v25 = vor.u32 %v3586_v20, %v3191_v30 }
 0x2a0   :  { %v2248_v55 = vpop.f32.mrf.mxu1 }
 0x2a1   :  { %v2246_v59 = vadd.f32 %v2245_v5, %v2117_v14  ;;  %2029 = vmatmul.bf16.gmra.mxu3 %v3158_v10  ;;  %2158 = vmatmul.bf16.gmra.mxu0 %v3162_v2 }
 0x2a2   :  { %3421 = vmatmul.msk.bf16.gmra.mxu2 %vm1451_vm0, %v3170_v46 }
 0x2a3   :  { %2287 = vmatmul.bf16.gmra.mxu1 %v3166_v13  ;;  %v2375_v37 = vadd.f32 %v2374_v56, %v2246_v59 }
 0x2a4   :  { %v1990_v21 = vpop.f32.mrf.mxu3 }
 0x2a5   :  { %v2454_v6 = vmax.f32 %v2375_v37, 0.0  ;;  %v1991_v57 = vadd.f32 %v1990_v21, %v4631_v58  ;;  %v2377_v8 = vpop.f32.mrf.mxu2  ;;  %v3189_v58 = vld [vmem:[%s5397_s0 + $0x518] sm:$0xf] }
 0x2a6   :  { %v2121_v23 = vpop.f32.mrf.mxu0  ;;  %v3190_v32 = vor.u32 %v3589_v40, %v3189_v58 }
 0x2a7   :  { %2502 = vst.msk [vmem:[%s5398_s3 + $0xd8] sm:$0xff] %vm1451_vm0, %v2454_v6  ;;  %v2120_v48 = vadd.f32 %v2119_v16, %v1991_v57 }
 0x2a8   :  { %v2250_v28 = vpop.f32.mrf.mxu1 }
 0x2a9   :  { %v2249_v12 = vadd.f32 %v2248_v55, %v2120_v48 }
 0x2ab   :  { %v2378_v7 = vadd.f32 %v2377_v8, %v2249_v12 }
 0x2ac   :  { %v1992_v18 = vpop.f32.mrf.mxu3 }
 0x2ad   :  { %v2455_v45 = vmax.f32 %v2378_v7, 0.0  ;;  %v1993_v3 = vadd.f32 %v1992_v18, %v4661_v63  ;;  %v2379_v15 = vpop.f32.mrf.mxu2 }
 0x2ae   :  { %v2124_v47 = vpop.f32.mrf.mxu0 }
 0x2af   :  { %2503 = vst.msk [vmem:[%s5398_s3 + $0xe0] sm:$0xff] %vm1451_vm0, %v2455_v45  ;;  %v2122_v34 = vadd.f32 %v2121_v23, %v1993_v3 }
 0x2b0   :  { %v2253_v5 = vpop.f32.mrf.mxu1 }
 0x2b1   :  { %v2251_v27 = vadd.f32 %v2250_v28, %v2122_v34  ;;  %2034 = vmatmul.bf16.gmra.mxu3 %v3186_v19  ;;  %2163 = vmatmul.bf16.gmra.mxu0 %v3190_v32 }
 0x2b2   :  { %3422 = vmatmul.msk.bf16.gmra.mxu2 %vm1451_vm0, %v3198_v42 }
 0x2b3   :  { %2292 = vmatmul.bf16.gmra.mxu1 %v3194_v25  ;;  %v2380_v63 = vadd.f32 %v2379_v15, %v2251_v27 }
 0x2b4   :  { %v1995_v29 = vpop.f32.mrf.mxu3 }
 0x2b5   :  { %v2456_v24 = vmax.f32 %v2380_v63, 0.0  ;;  %v1996_v51 = vadd.f32 %v1995_v29, %v4673_v54  ;;  %v2382_v39 = vpop.f32.mrf.mxu2 }
 0x2b6   :  { %v2126_v33 = vpop.f32.mrf.mxu0 }
 0x2b7   :  { %2504 = vst.msk [vmem:[%s5398_s3 + $0xe8] sm:$0xff] %vm1451_vm0, %v2456_v24  ;;  %v2125_v49 = vadd.f32 %v2124_v47, %v1996_v51 }
 0x2b8   :  { %v2255_v52 = vpop.f32.mrf.mxu1 }
 0x2b9   :  { %v2254_v38 = vadd.f32 %v2253_v5, %v2125_v49 }
 0x2bb   :  { %v2383_v43 = vadd.f32 %v2382_v39, %v2254_v38 }
 0x2bc   :  { %v1997_v22 = vpop.f32.mrf.mxu3 }
 0x2bd   :  { %v2457_v26 = vmax.f32 %v2383_v43, 0.0  ;;  %v1998_v35 = vadd.f32 %v1997_v22, %v4703_v0  ;;  %v2384_v56 = vpop.f32.mrf.mxu2 }
 0x2be   :  { %v2129_v10 = vpop.f32.mrf.mxu0 }
 0x2bf   :  { %2505 = vst.msk [vmem:[%s5398_s3 + $0xf0] sm:$0xff] %vm1451_vm0, %v2457_v26  ;;  %v2127_v54 = vadd.f32 %v2126_v33, %v1998_v35 }
 0x2c0   :  { %v2258_v2 = vpop.f32.mrf.mxu1 }
 0x2c1   :  { %v2256_v16 = vadd.f32 %v2255_v52, %v2127_v54 }
 0x2c3   :  { %v2385_v46 = vadd.f32 %v2384_v56, %v2256_v16 }
 0x2c4   :  { %v2000_v13 = vpop.f32.mrf.mxu3 }
 0x2c5   :  { %v2458_v14 = vmax.f32 %v2385_v46, 0.0  ;;  %v2001_v55 = vadd.f32 %v2000_v13, %v4710_v1  ;;  %v2387_v59 = vpop.f32.mrf.mxu2 }
 0x2c6   :  { %v2131_v37 = vpop.f32.mrf.mxu0 }
 0x2c7   :  { %2506 = vst.msk [vmem:[%s5398_s3 + $0xf8] sm:$0xff] %vm1451_vm0, %v2458_v14  ;;  %v2130_v0 = vadd.f32 %v2129_v10, %v2001_v55 }
 0x2c8   :  { %v2260_v21 = vpop.f32.mrf.mxu1 }
 0x2c9   :  { %v2259_v6 = vadd.f32 %v2258_v2, %v2130_v0 }
 0x2cb   :  { %v2388_v57 = vadd.f32 %v2387_v59, %v2259_v6 }
 0x2cc   :  { %v2002_v8 = vpop.f32.mrf.mxu3 }
 0x2cd   :  { %v2459_v23 = vmax.f32 %v2388_v57, 0.0  ;;  %v2003_v48 = vadd.f32 %v2002_v8, %v4740_v31  ;;  %v2389_v28 = vpop.f32.mrf.mxu2 }
 0x2ce   :  { %v2134_v12 = vpop.f32.mrf.mxu0 }
 0x2cf   :  { %2507 = vst.msk [vmem:[%s5398_s3 + $0x100] sm:$0xff] %vm1451_vm0, %v2459_v23  ;;  %v2132_v1 = vadd.f32 %v2131_v37, %v2003_v48 }
 0x2d0   :  { %v2263_v9 = vpop.f32.mrf.mxu1 }
 0x2d1   :  { %v2261_v36 = vadd.f32 %v2260_v21, %v2132_v1 }
 0x2d3   :  { %v2390_v58 = vadd.f32 %v2389_v28, %v2261_v36 }
 0x2d4   :  { %v2005_v40 = vpop.f32.mrf.mxu3 }
 0x2d5   :  { %v2460_v53 = vmax.f32 %v2390_v58, 0.0  ;;  %v2006_v7 = vadd.f32 %v2005_v40, %v4747_v44  ;;  %v2392_v50 = vpop.f32.mrf.mxu2 }
 0x2d6   :  { %v2136_v20 = vpop.f32.mrf.mxu0 }
 0x2d7   :  { %2508 = vst.msk [vmem:[%s5398_s3 + $0x108] sm:$0xff] %vm1451_vm0, %v2460_v53  ;;  %v2135_v31 = vadd.f32 %v2134_v12, %v2006_v7  ;;  %v5405_v12 = vld [vmem:[#allocation2_spill] sm:$0xff] }
 0x2d8   :  { %v2265_v30 = vpop.f32.mrf.mxu1 }
 0x2d9   :  { %v2264_v18 = vadd.f32 %v2263_v9, %v2135_v31 }
 0x2db   :  { %v2393_v45 = vadd.f32 %v2392_v50, %v2264_v18 }
 0x2dc   :  { %v2007_v3 = vpop.f32.mrf.mxu3 }
 0x2dd   :  { %v2461_v15 = vmax.f32 %v2393_v45, 0.0  ;;  %v2008_v19 = vadd.f32 %v2007_v3, %v4777_v4  ;;  %v2394_v32 = vpop.f32.mrf.mxu2 }
 0x2de   :  { %v2139_v47 = vpop.f32.mrf.mxu0 }
 0x2df   :  { %2509 = vst.msk [vmem:[%s5398_s3 + $0x110] sm:$0xff] %vm1451_vm0, %v2461_v15  ;;  %v2137_v44 = vadd.f32 %v2136_v20, %v2008_v19  ;;  %v5406_v20 = vld [vmem:[#allocation3_spill] sm:$0xff] }
 0x2e0   :  { %v2268_v42 = vpop.f32.mrf.mxu1 }
 0x2e1   :  { %v2266_v25 = vadd.f32 %v2265_v30, %v2137_v44  ;;  %v5407_v44 = vld [vmem:[#allocation4_spill] sm:$0xff] }
 0x2e3   :  { %v2395_v34 = vadd.f32 %v2394_v32, %v2266_v25 }
 0x2e4   :  { %v2010_v5 = vpop.f32.mrf.mxu3 }
 0x2e5   :  { %v2462_v27 = vmax.f32 %v2395_v34, 0.0  ;;  %v2011_v63 = vadd.f32 %v2010_v5, %v4555_v41  ;;  %v2397_v29 = vpop.f32.mrf.mxu2 }
 0x2e6   :  { %v2141_v24 = vpop.f32.mrf.mxu0 }
 0x2e7   :  { %2510 = vst.msk [vmem:[%s5398_s3 + $0x118] sm:$0xff] %vm1451_vm0, %v2462_v27  ;;  %v2140_v4 = vadd.f32 %v2139_v47, %v2011_v63 }
 0x2e8   :  { %v2270_v51 = vpop.f32.mrf.mxu1 }
 0x2e9   :  { %v2269_v39 = vadd.f32 %v2268_v42, %v2140_v4 }
 0x2eb   :  { %v2398_v33 = vadd.f32 %v2397_v29, %v2269_v39 }
 0x2ec   :  { %v2012_v49 = vpop.f32.mrf.mxu3 }
 0x2ed   :  { %v2463_v52 = vmax.f32 %v2398_v33, 0.0  ;;  %v2013_v38 = vadd.f32 %v2012_v49, %v4585_v11  ;;  %v2399_v43 = vpop.f32.mrf.mxu2 }
 0x2ee   :  { %v2144_v22 = vpop.f32.mrf.mxu0 }
 0x2ef   :  { %2511 = vst.msk [vmem:[%s5398_s3 + $0x120] sm:$0xff] %vm1451_vm0, %v2463_v52  ;;  %v2142_v41 = vadd.f32 %v2141_v24, %v2013_v38 }
 0x2f0   :  { %v2273_v26 = vpop.f32.mrf.mxu1 }
 0x2f1   :  { %v2271_v35 = vadd.f32 %v2270_v51, %v2142_v41  ;;  %v5408_v51 = vld [vmem:[#allocation5_spill] sm:$0xff] }
 0x2f3   :  { %v2400_v56 = vadd.f32 %v2399_v43, %v2271_v35  ;;  %v5409_v35 = vld [vmem:[#allocation6_spill] sm:$0xff] }
 0x2f4   :  { %v2015_v10 = vpop.f32.mrf.mxu3 }
 0x2f5   :  { %v2464_v54 = vmax.f32 %v2400_v56, 0.0  ;;  %v2016_v2 = vadd.f32 %v2015_v10, %v4592_v61  ;;  %v2402_v16 = vpop.f32.mrf.mxu2 }
 0x2f6   :  { %v2146_v46 = vpop.f32.mrf.mxu0 }
 0x2f7   :  { %2512 = vst.msk [vmem:[%s5398_s3 + $0x128] sm:$0xff] %vm1451_vm0, %v2464_v54  ;;  %v2145_v11 = vadd.f32 %v2144_v22, %v2016_v2 }
 0x2f8   :  { %v2275_v13 = vpop.f32.mrf.mxu1 }
 0x2f9   :  { %v2274_v14 = vadd.f32 %v2273_v26, %v2145_v11 }
 0x2fb   :  { %v2403_v55 = vadd.f32 %v2402_v16, %v2274_v14 }
 0x2fc   :  { %v2017_v59 = vpop.f32.mrf.mxu3 }
 0x2fd   :  { %v2465_v37 = vmax.f32 %v2403_v55, 0.0  ;;  %v2018_v0 = vadd.f32 %v2017_v59, %v4622_v17  ;;  %v2404_v21 = vpop.f32.mrf.mxu2 }
 0x2fe   :  { %v2149_v6 = vpop.f32.mrf.mxu0 }
 0x2ff   :  { %2513 = vst.msk [vmem:[%s5398_s3 + $0x130] sm:$0xff] %vm1451_vm0, %v2465_v37  ;;  %v2147_v61 = vadd.f32 %v2146_v46, %v2018_v0 }
 0x300   :  { %v2278_v57 = vpop.f32.mrf.mxu1 }
 0x301   :  { %v2276_v8 = vadd.f32 %v2275_v13, %v2147_v61 }
 0x303   :  { %v2405_v23 = vadd.f32 %v2404_v21, %v2276_v8  ;;  %v5410_v8 = vld [vmem:[#allocation7_spill] sm:$0xff] }
 0x304   :  { %v2020_v48 = vpop.f32.mrf.mxu3 }
 0x305   :  { %v2466_v28 = vmax.f32 %v2405_v23, 0.0  ;;  %v2021_v1 = vadd.f32 %v2020_v48, %v5405_v12  ;;  %v2407_v9 = vpop.f32.mrf.mxu2 }
 0x306   :  { %v2151_v36 = vpop.f32.mrf.mxu0 }
 0x307   :  { %2514 = vst.msk [vmem:[%s5398_s3 + $0x138] sm:$0xff] %vm1451_vm0, %v2466_v28  ;;  %v2150_v17 = vadd.f32 %v2149_v6, %v2021_v1 }
 0x308   :  { %v2280_v58 = vpop.f32.mrf.mxu1 }
 0x309   :  { %v2279_v40 = vadd.f32 %v2278_v57, %v2150_v17 }
 0x30b   :  { %v2408_v53 = vadd.f32 %v2407_v9, %v2279_v40 }
 0x30c   :  { %v2022_v7 = vpop.f32.mrf.mxu3 }
 0x30d   :  { %v2467_v50 = vmax.f32 %v2408_v53, 0.0  ;;  %v2023_v31 = vadd.f32 %v2022_v7, %v5406_v20  ;;  %v2409_v30 = vpop.f32.mrf.mxu2 }
 0x30e   :  { %v2154_v18 = vpop.f32.mrf.mxu0 }
 0x30f   :  { %2515 = vst.msk [vmem:[%s5398_s3 + $0x140] sm:$0xff] %vm1451_vm0, %v2467_v50  ;;  %v2152_v45 = vadd.f32 %v2151_v36, %v2023_v31 }
 0x310   :  { %v2283_v3 = vpop.f32.mrf.mxu1 }
 0x311   :  { %v2281_v15 = vadd.f32 %v2280_v58, %v2152_v45 }
 0x313   :  { %v2410_v19 = vadd.f32 %v2409_v30, %v2281_v15 }
 0x314   :  { %v2025_v32 = vpop.f32.mrf.mxu3 }
 0x315   :  { %v2468_v47 = vmax.f32 %v2410_v19, 0.0  ;;  %v2026_v42 = vadd.f32 %v2025_v32, %v5407_v44  ;;  %v2412_v25 = vpop.f32.mrf.mxu2 }
 0x316   :  { %v2156_v34 = vpop.f32.mrf.mxu0 }
 0x317   :  { %2516 = vst.msk [vmem:[%s5398_s3 + $0x148] sm:$0xff] %vm1451_vm0, %v2468_v47  ;;  %v2155_v5 = vadd.f32 %v2154_v18, %v2026_v42 }
 0x318   :  { %v2285_v27 = vpop.f32.mrf.mxu1 }
 0x319   :  { %v2284_v63 = vadd.f32 %v2283_v3, %v2155_v5 }
 0x31b   :  { %v2413_v29 = vadd.f32 %v2412_v25, %v2284_v63 }
 0x31c   :  { %v2027_v24 = vpop.f32.mrf.mxu3 }
 0x31d   :  { %v2469_v4 = vmax.f32 %v2413_v29, 0.0  ;;  %v2028_v39 = vadd.f32 %v2027_v24, %v5408_v51  ;;  %v2414_v33 = vpop.f32.mrf.mxu2 }
 0x31e   :  { %v2159_v52 = vpop.f32.mrf.mxu0 }
 0x31f   :  { %2517 = vst.msk [vmem:[%s5398_s3 + $0x150] sm:$0xff] %vm1451_vm0, %v2469_v4  ;;  %v2157_v49 = vadd.f32 %v2156_v34, %v2028_v39 }
 0x320   :  { %v2288_v43 = vpop.f32.mrf.mxu1 }
 0x321   :  { %v2286_v38 = vadd.f32 %v2285_v27, %v2157_v49 }
 0x323   :  { %v2415_v22 = vadd.f32 %v2414_v33, %v2286_v38 }
 0x324   :  { %v2030_v41 = vpop.f32.mrf.mxu3 }
 0x325   :  { %v2470_v26 = vmax.f32 %v2415_v22, 0.0  ;;  %v2031_v56 = vadd.f32 %v2030_v41, %v5409_v35  ;;  %v2417_v10 = vpop.f32.mrf.mxu2 }
 0x326   :  { %v2161_v16 = vpop.f32.mrf.mxu0 }
 0x327   :  { %2518 = vst.msk [vmem:[%s5398_s3 + $0x158] sm:$0xff] %vm1451_vm0, %v2470_v26  ;;  %v2160_v54 = vadd.f32 %v2159_v52, %v2031_v56 }
 0x328   :  { %v2290_v11 = vpop.f32.mrf.mxu1 }
 0x329   :  { %v2289_v2 = vadd.f32 %v2288_v43, %v2160_v54 }
 0x32b   :  { %v2418_v46 = vadd.f32 %v2417_v10, %v2289_v2 }
 0x32c   :  { %v2032_v13 = vpop.f32.mrf.mxu3 }
 0x32d   :  { %v2471_v14 = vmax.f32 %v2418_v46, 0.0  ;;  %v2033_v55 = vadd.f32 %v2032_v13, %v4738_v62  ;;  %v2419_v59 = vpop.f32.mrf.mxu2 }
 0x32e   :  { %v2164_v6 = vpop.f32.mrf.mxu0 }
 0x32f   :  { %2519 = vst.msk [vmem:[%s5398_s3 + $0x160] sm:$0xff] %vm1451_vm0, %v2471_v14  ;;  %v2162_v37 = vadd.f32 %v2161_v16, %v2033_v55 }
 0x330   :  { %v2293_v48 = vpop.f32.mrf.mxu1 }
 0x331   :  { %v2291_v0 = vadd.f32 %v2290_v11, %v2162_v37 }
 0x333   :  { %v2420_v21 = vadd.f32 %v2419_v59, %v2291_v0 }
 0x334   :  { %v2035_v61 = vpop.f32.mrf.mxu3 }
 0x335   :  { %v2472_v57 = vmax.f32 %v2420_v21, 0.0  ;;  %v2036_v23 = vadd.f32 %v2035_v61, %v5410_v8  ;;  %v2422_v28 = vpop.f32.mrf.mxu2 }
 0x336   :  { %v2166_v58 = vpop.f32.mrf.mxu0 }
 0x337   :  { %2520 = vst.msk [vmem:[%s5398_s3 + $0x168] sm:$0xff] %vm1451_vm0, %v2472_v57  ;;  %v2165_v62 = vadd.f32 %v2164_v6, %v2036_v23 }
 0x338   :  { %v2295_v53 = vpop.f32.mrf.mxu1 }
 0x339   :  { %v2294_v12 = vadd.f32 %v2293_v48, %v2165_v62 }
 0x33b   :  { %v2423_v1 = vadd.f32 %v2422_v28, %v2294_v12 }
 0x33c   :  { %v2037_v9 = vpop.f32.mrf.mxu3 }
 0x33d   :  { %v2473_v36 = vmax.f32 %v2423_v1, 0.0  ;;  %v2038_v17 = vadd.f32 %v2037_v9, %v4775_v60  ;;  %v2424_v50 = vpop.f32.mrf.mxu2 }
 0x33f   :  { %2521 = vst.msk [vmem:[%s5398_s3 + $0x170] sm:$0xff] %vm1451_vm0, %v2473_v36  ;;  %v2167_v40 = vadd.f32 %v2166_v58, %v2038_v17 }
 0x341   :  { %v2296_v7 = vadd.f32 %v2295_v53, %v2167_v40 }
 0x343   :  { %v2425_v20 = vadd.f32 %v2424_v50, %v2296_v7 }
 0x345   :  { %v2474_v31 = vmax.f32 %v2425_v20, 0.0 }
 0x347   :  { %2522 = vst.msk [vmem:[%s5398_s3 + $0x178] sm:$0xff] %vm1451_vm0, %v2474_v31 }

// kernel: tile.8
= control target key start
LH: loop header
LB: loop body
LE: loop exit
PB: predicated region body
PF: predicated region fallthrough
CT: control target
= control target key end

     0   :  { %s22_s0 = inlined_call_operand.vmem [shape: f32[8], index: 0, kind: input, shape index: {}]   ;;  %s23_s1 = inlined_call_operand.vmem [shape: f32[6,8], index: 1, kind: output, shape index: {}]  }
   0x1   :  { %v4_v0 = vld [vmem:[%s22_s0] ss:$0 sm:$0xff] }
   0x2   :  { %5 = vst [vmem:[%s23_s1] sm:$0xff] %v4_v0 }

// kernel: planner_forward.8
= control target key start
LH: loop header
LB: loop body
LE: loop exit
PB: predicated region body
PF: predicated region fallthrough
CT: control target
= control target key end

     0   :  { %vm677_vm0 = vcmask 261120   ;;  %s2049_s1 = inlined_call_operand.vmem [shape: bf16[800,32], index: 1, kind: input, shape index: {}]   ;;  %s2050_s2 = inlined_call_operand.vmem [shape: f32[1,32], index: 2, kind: input, shape index: {}]   ;;  %s2051_s0 = inlined_call_operand.vmem [shape: bf16[96,800], index: 0, kind: input, shape index: {}]   ;;  %s2052_s3 = inlined_call_operand.vmem [shape: f32[96,32], index: 3, kind: output, shape index: {}]  }
   0x1   :  { %v1420_v0 = vld [vmem:[%s2049_s1 + $0x38] sm:$0xff]  ;;  %v1419_v3 = vld [vmem:[%s2049_s1 + $0x30] sm:$0xff]  ;;  %v1418_v6 = vld [vmem:[%s2049_s1 + $0x28] sm:$0xff] }
   0x2   :  { %v1428_v1 = vld [vmem:[%s2049_s1 + $0x78] sm:$0xff]  ;;  %696 = vmatpush.bf16.msra.mxu0 %v1420_v0  ;;  %1463 = vmatpush.bf16.msra.mxu3 %v1420_v0  ;;  %v1427_v4 = vld [vmem:[%s2049_s1 + $0x70] sm:$0xff]  ;;  %v1426_v7 = vld [vmem:[%s2049_s1 + $0x68] sm:$0xff] }
   0x3   :  { %v1436_v2 = vld [vmem:[%s2049_s1 + $0xb8] sm:$0xff]  ;;  %735 = vmatpush.bf16.msra.mxu1 %v1428_v1  ;;  %v1435_v5 = vld [vmem:[%s2049_s1 + $0xb0] sm:$0xff]  ;;  %v1434_v8 = vld [vmem:[%s2049_s1 + $0xa8] sm:$0xff] }
   0x4   :  { %774 = vmatpush.bf16.msra.mxu2 %v1436_v2  ;;  %v1417_v9 = vld [vmem:[%s2049_s1 + $0x20] sm:$0xff]  ;;  %v1416_v12 = vld [vmem:[%s2049_s1 + $0x18] sm:$0xff]  ;;  %v1415_v15 = vld [vmem:[%s2049_s1 + $0x10] sm:$0xff] }
   0x5   :  { %v1425_v10 = vld [vmem:[%s2049_s1 + $0x60] sm:$0xff]  ;;  %v1424_v13 = vld [vmem:[%s2049_s1 + $0x58] sm:$0xff]  ;;  %v1423_v16 = vld [vmem:[%s2049_s1 + $0x50] sm:$0xff] }
   0x6   :  { %697 = vmatpush.bf16.msra.mxu0 %v1419_v3  ;;  %1464 = vmatpush.bf16.msra.mxu3 %v1419_v3  ;;  %v1433_v11 = vld [vmem:[%s2049_s1 + $0xa0] sm:$0xff]  ;;  %v1432_v14 = vld [vmem:[%s2049_s1 + $0x98] sm:$0xff]  ;;  %v1431_v17 = vld [vmem:[%s2049_s1 + $0x90] sm:$0xff] }
   0x7   :  { %736 = vmatpush.bf16.msra.mxu1 %v1427_v4  ;;  %v1414_v18 = vld [vmem:[%s2049_s1 + $0x8] sm:$0xff]  ;;  %v1413_v21 = vld [vmem:[%s2049_s1] sm:$0xff]  ;;  %v1374_v25 = vld [vmem:[%s2051_s0 + $0x18] sm:$0xf0] }
   0x8   :  { %775 = vmatpush.bf16.msra.mxu2 %v1435_v5  ;;  %v1422_v19 = vld [vmem:[%s2049_s1 + $0x48] sm:$0xff]  ;;  %v1421_v22 = vld [vmem:[%s2049_s1 + $0x40] sm:$0xff]  ;;  %v1055_v26 = vld [vmem:[%s2051_s0 + $0x70] sm:$0xf] }
   0x9   :  { %v1430_v20 = vld [vmem:[%s2049_s1 + $0x88] sm:$0xff]  ;;  %v1429_v23 = vld [vmem:[%s2049_s1 + $0x80] sm:$0xff]  ;;  %v1452_v33 = vld [vmem:[%s2049_s1 + $0x138] sm:$0xff] }
   0xa   :  { %698 = vmatpush.bf16.msra.mxu0 %v1418_v6  ;;  %1465 = vmatpush.bf16.msra.mxu3 %v1418_v6  ;;  %v999_v24 = vld [vmem:[%s2051_s0] sm:$0xf]  ;;  %v1388_v27 = vld [vmem:[%s2051_s0 + $0x88] sm:$0xf0]  ;;  %v1371_v28 = vld [vmem:[%s2051_s0 + $0x4] sm:$0xf] }
   0xb   :  { %737 = vmatpush.bf16.msra.mxu1 %v1426_v7  ;;  %v1001_v29 = vld [vmem:[%s2051_s0 + $0x1c] sm:$0xf0]  ;;  %v1007_v30 = vld [vmem:[%s2051_s0 + $0x8] sm:$0xf]  ;;  %v1375_v31 = vld [vmem:[%s2051_s0 + $0x20] sm:$0xf0]  ;;  %v1000_v34 = vor.u32 %v1374_v25, %v999_v24  ;;  %v1056_v35 = vor.u32 %v1388_v27, %v1055_v26 }
   0xc   :  { %776 = vmatpush.bf16.msra.mxu2 %v1434_v8  ;;  %v1601_v32 = vld [vmem:[%s2049_s1 + $0x188] sm:$0xff]  ;;  %v1004_v36 = vor.u32 %v1371_v28, %v1001_v29  ;;  %v1008_v37 = vor.u32 %v1375_v31, %v1007_v30  ;;  %v1609_v38 = vld [vmem:[%s2049_s1 + $0x178] sm:$0xff]  ;;  %v1451_v40 = vld [vmem:[%s2049_s1 + $0x130] sm:$0xff] }
   0xd   :  { %v1444_v39 = vld [vmem:[%s2049_s1 + $0xf8] sm:$0xff]  ;;  %v1622_v41 = vld [vmem:[%s2049_s1 + $0x170] sm:$0xff]  ;;  %v1450_v43 = vld [vmem:[%s2049_s1 + $0x128] sm:$0xff] }
   0xe   :  { %699 = vmatpush.bf16.msra.mxu0 %v1417_v9  ;;  %1466 = vmatpush.bf16.msra.mxu3 %v1417_v9  ;;  %v1443_v42 = vld [vmem:[%s2049_s1 + $0xf0] sm:$0xff]  ;;  %v1442_v44 = vld [vmem:[%s2049_s1 + $0xe8] sm:$0xff]  ;;  %v1449_v46 = vld [vmem:[%s2049_s1 + $0x120] sm:$0xff] }
   0xf   :  { %738 = vmatpush.bf16.msra.mxu1 %v1425_v10  ;;  %v1637_v45 = vld [vmem:[%s2049_s1 + $0x168] sm:$0xff]  ;;  %v1027_v47 = vld [vmem:[%s2051_s0 + $0x38] sm:$0xf]  ;;  %v1381_v48 = vld [vmem:[%s2051_s0 + $0x50] sm:$0xf0] }
  0x10   :  { %777 = vmatpush.bf16.msra.mxu2 %v1433_v11  ;;  %v1083_v49 = vld [vmem:[%s2051_s0 + $0xa8] sm:$0xf]  ;;  %v1395_v50 = vld [vmem:[%s2051_s0 + $0xc0] sm:$0xf0]  ;;  %v1378_v51 = vld [vmem:[%s2051_s0 + $0x3c] sm:$0xf]  ;;  %v1028_v58 = vor.u32 %v1381_v48, %v1027_v47 }
  0x11   :  { %v1029_v52 = vld [vmem:[%s2051_s0 + $0x54] sm:$0xf0]  ;;  %v1035_v53 = vld [vmem:[%s2051_s0 + $0x40] sm:$0xf]  ;;  %v1382_v54 = vld [vmem:[%s2051_s0 + $0x58] sm:$0xf0]  ;;  %v1084_v59 = vor.u32 %v1395_v50, %v1083_v49 }
  0x12   :  { %700 = vmatpush.bf16.msra.mxu0 %v1416_v12  ;;  %1467 = vmatpush.bf16.msra.mxu3 %v1416_v12  ;;  %v1441_v55 = vld [vmem:[%s2049_s1 + $0xe0] sm:$0xff]  ;;  %v1448_v57 = vld [vmem:[%s2049_s1 + $0x118] sm:$0xff]  ;;  %v1032_v60 = vor.u32 %v1378_v51, %v1029_v52  ;;  %v1036_v61 = vor.u32 %v1382_v54, %v1035_v53  ;;  %v1447_v63 = vld [vmem:[%s2049_s1 + $0x110] sm:$0xff] }
  0x13   :  { %739 = vmatpush.bf16.msra.mxu1 %v1424_v13  ;;  %v1457_v56 = vld [vmem:[%s2049_s1 + $0x160] sm:$0xff]  ;;  %v1440_v62 = vld [vmem:[%s2049_s1 + $0xd8] sm:$0xff]  ;;  %v1439_v2 = vld [vmem:[%s2049_s1 + $0xd0] sm:$0xff] }
  0x14   :  { %778 = vmatpush.bf16.msra.mxu2 %v1432_v14  ;;  %v1685_v0 = vld [vmem:[%s2049_s1 + $0x180] sm:$0xff]  ;;  %v1456_v1 = vld [vmem:[%s2049_s1 + $0x158] sm:$0xff]  ;;  %v1446_v3 = vld [vmem:[%s2049_s1 + $0x108] sm:$0xff] }
  0x15   :  { %v1438_v4 = vld [vmem:[%s2049_s1 + $0xc8] sm:$0xff]  ;;  %v1445_v5 = vld [vmem:[%s2049_s1 + $0x100] sm:$0xff]  ;;  %v1402_v7 = vld [vmem:[%s2051_s0 + $0xf8] sm:$0xf0] }
  0x16   :  { %701 = vmatpush.bf16.msra.mxu0 %v1415_v15  ;;  %1468 = vmatpush.bf16.msra.mxu3 %v1415_v15  ;;  %v1111_v6 = vld [vmem:[%s2051_s0 + $0xe0] sm:$0xf]  ;;  %v1385_v8 = vld [vmem:[%s2051_s0 + $0x74] sm:$0xf]  ;;  %v1057_v9 = vld [vmem:[%s2051_s0 + $0x8c] sm:$0xf0] }
  0x17   :  { %740 = vmatpush.bf16.msra.mxu1 %v1423_v16  ;;  %v1015_v10 = vld [vmem:[%s2051_s0 + $0x10] sm:$0xf]  ;;  %v1376_v11 = vld [vmem:[%s2051_s0 + $0x28] sm:$0xf0]  ;;  %v1063_v12 = vld [vmem:[%s2051_s0 + $0x78] sm:$0xf]  ;;  %v1112_v15 = vor.u32 %v1402_v7, %v1111_v6 }
  0x18   :  { %779 = vmatpush.bf16.msra.mxu2 %v1431_v17  ;;  %v1389_v13 = vld [vmem:[%s2051_s0 + $0x90] sm:$0xf0]  ;;  %v1437_v14 = vld [vmem:[%s2049_s1 + $0xc0] sm:$0xff]  ;;  %v1016_v16 = vor.u32 %v1376_v11, %v1015_v10  ;;  %v1060_v17 = vor.u32 %v1385_v8, %v1057_v9  ;;  %v1043_v24 = vld [vmem:[%s2051_s0 + $0x48] sm:$0xf] }
  0x19   :  { %v1383_v25 = vld [vmem:[%s2051_s0 + $0x60] sm:$0xf0]  ;;  %v1085_v26 = vld [vmem:[%s2051_s0 + $0xc4] sm:$0xf0]  ;;  %v1091_v27 = vld [vmem:[%s2051_s0 + $0xb0] sm:$0xf] }
  0x1a   :  { %702 = vmatpush.bf16.msra.mxu0 %v1414_v18  ;;  %1469 = vmatpush.bf16.msra.mxu3 %v1414_v18  ;;  %v1064_v18 = vor.u32 %v1389_v13, %v1063_v12  ;;  %v1396_v28 = vld [vmem:[%s2051_s0 + $0xc8] sm:$0xf0]  ;;  %v1044_v30 = vor.u32 %v1383_v25, %v1043_v24  ;;  %v1406_v47 = vld [vmem:[%s2051_s0 + $0x11c] sm:$0xf]  ;;  %v1379_v48 = vld [vmem:[%s2051_s0 + $0x44] sm:$0xf] }
  0x1b   :  { %741 = vmatpush.bf16.msra.mxu1 %v1422_v19  ;;  %v1455_v19 = vld [vmem:[%s2049_s1 + $0x150] sm:$0xff]  ;;  %v1099_v49 = vld [vmem:[%s2051_s0 + $0xb8] sm:$0xf]  ;;  %v1147_v52 = vld [vmem:[%s2051_s0 + $0x120] sm:$0xf] }
  0x1c   :  { %780 = vmatpush.bf16.msra.mxu2 %v1430_v20  ;;  %v1454_v20 = vld [vmem:[%s2049_s1 + $0x148] sm:$0xff]  ;;  %v1397_v50 = vld [vmem:[%s2051_s0 + $0xd0] sm:$0xf0]  ;;  %v1141_v51 = vld [vmem:[%s2051_s0 + $0x134] sm:$0xf0] }
  0x1d   :  { %v1410_v53 = vld [vmem:[%s2051_s0 + $0x138] sm:$0xf0]  ;;  %v1393_v6 = vld [vmem:[%s2051_s0 + $0xb4] sm:$0xf]  ;;  %v1093_v7 = vld [vmem:[%s2051_s0 + $0xcc] sm:$0xf0] }
  0x1e   :  { %703 = vmatpush.bf16.msra.mxu0 %v1413_v21  ;;  %1470 = vmatpush.bf16.msra.mxu3 %v1413_v21  ;;  %v1139_v21 = vld [vmem:[%s2051_s0 + $0x118] sm:$0xf]  ;;  %v1155_v8 = vld [vmem:[%s2051_s0 + $0x128] sm:$0xf]  ;;  %v1411_v9 = vld [vmem:[%s2051_s0 + $0x140] sm:$0xf0] }
  0x1f   :  { %742 = vmatpush.bf16.msra.mxu1 %v1421_v22  ;;  %v1409_v22 = vld [vmem:[%s2051_s0 + $0x130] sm:$0xf0]  ;;  %v1387_v10 = vld [vmem:[%s2051_s0 + $0x84] sm:$0xf]  ;;  %v1073_v11 = vld [vmem:[%s2051_s0 + $0x9c] sm:$0xf0] }
  0x20   :  { %781 = vmatpush.bf16.msra.mxu2 %v1429_v23  ;;  %v1392_v23 = vld [vmem:[%s2051_s0 + $0xac] sm:$0xf]  ;;  %v1140_v29 = vor.u32 %v1409_v22, %v1139_v21  ;;  %v1079_v12 = vld [vmem:[%s2051_s0 + $0x88] sm:$0xf]  ;;  %v1391_v13 = vld [vmem:[%s2051_s0 + $0xa0] sm:$0xf0] }
  0x21   :  { %704 = vmatmul.bf16.vlgmr.msra.gmra.mxu0 %v1000_v34  ;;  %714 = vmatmul.bf16.vlgmr.msra.gmra.mxu3 %v1056_v35  ;;  %v1088_v31 = vor.u32 %v1392_v23, %v1085_v26  ;;  %v1453_v34 = vld [vmem:[%s2049_s1 + $0x140] sm:$0xff]  ;;  %v1373_v21 = vld [vmem:[%s2051_s0 + $0x14] sm:$0xf]  ;;  %v1017_v22 = vld [vmem:[%s2051_s0 + $0x2c] sm:$0xf0] }
  0x22   :  { %852 = vmatpush.bf16.msrb.mxu0 %v1452_v33  ;;  %743 = vmatmul.bf16.vlgmr.msra.gmra.mxu1 %v1004_v36  ;;  %v1092_v33 = vor.u32 %v1396_v28, %v1091_v27  ;;  %v1399_v35 = vld [vmem:[%s2051_s0 + $0xe4] sm:$0xf]  ;;  %v1372_v36 = vld [vmem:[%s2051_s0 + $0xc] sm:$0xf]  ;;  %v1394_v23 = vld [vmem:[%s2051_s0 + $0xbc] sm:$0xf]  ;;  %v1020_v28 = vor.u32 %v1373_v21, %v1017_v22 }
  0x23   :  { %782 = vmatmul.bf16.vlgmr.msra.gmra.mxu2 %v1008_v37  ;;  %1471 = vmatpush.bf16.msrb.mxu1 %v1609_v38  ;;  %v1009_v37 = vld [vmem:[%s2051_s0 + $0x24] sm:$0xf0]  ;;  %v1101_v24 = vld [vmem:[%s2051_s0 + $0xd4] sm:$0xf0]  ;;  %v1107_v25 = vld [vmem:[%s2051_s0 + $0xc0] sm:$0xf] }
  0x24   :  { %1479 = vmatpush.bf16.msrb.mxu2 %v1601_v32  ;;  %813 = vmatpush.bf16.msrb.mxu3 %v1444_v39  ;;  %v1390_v39 = vld [vmem:[%s2051_s0 + $0x98] sm:$0xf0] }
  0x25   :  { %v1398_v26 = vld [vmem:[%s2051_s0 + $0xd8] sm:$0xf0] }
  0x26   :  { %853 = vmatpush.bf16.msrb.mxu0 %v1451_v40  ;;  %v1113_v40 = vld [vmem:[%s2051_s0 + $0xfc] sm:$0xf0] }
  0x27   :  { %1472 = vmatpush.bf16.msrb.mxu1 %v1622_v41 }
  0x28   :  { %814 = vmatpush.bf16.msrb.mxu3 %v1443_v42  ;;  %1480 = vmatpush.bf16.msrb.mxu2 %v1685_v0  ;;  %v1403_v42 = vld [vmem:[%s2051_s0 + $0x100] sm:$0xf0] }
  0x2a   :  { %854 = vmatpush.bf16.msrb.mxu0 %v1450_v43  ;;  %v1012_v43 = vor.u32 %v1372_v36, %v1009_v37 }
  0x2b   :  { %1473 = vmatpush.bf16.msrb.mxu1 %v1637_v45 }
  0x2c   :  { %815 = vmatpush.bf16.msrb.mxu3 %v1442_v44 }
  0x2e   :  { %855 = vmatpush.bf16.msrb.mxu0 %v1449_v46 }
  0x2f   :  { %1474 = vmatpush.bf16.msrb.mxu1 %v1457_v56 }
  0x30   :  { %816 = vmatpush.bf16.msrb.mxu3 %v1441_v55  ;;  %v1100_v55 = vor.u32 %v1397_v50, %v1099_v49  ;;  %v1405_v49 = vld [vmem:[%s2051_s0 + $0x110] sm:$0xf0] }
  0x31   :  { %709 = vmatmul.bf16.gmra.mxu0 %v1028_v58  ;;  %719 = vmatmul.bf16.gmra.mxu3 %v1084_v59  ;;  %v1386_v58 = vld [vmem:[%s2051_s0 + $0x7c] sm:$0xf]  ;;  %v1065_v59 = vld [vmem:[%s2051_s0 + $0x94] sm:$0xf0] }
  0x32   :  { %856 = vmatpush.bf16.msrb.mxu0 %v1448_v57  ;;  %748 = vmatmul.bf16.gmra.mxu1 %v1032_v60  ;;  %v1148_v57 = vor.u32 %v1410_v53, %v1147_v52  ;;  %v1127_v60 = vld [vmem:[%s2051_s0 + $0xf0] sm:$0xf] }
  0x33   :  { %787 = vmatmul.bf16.gmra.mxu2 %v1036_v61  ;;  %1475 = vmatpush.bf16.msrb.mxu1 %v1456_v1  ;;  %v1404_v61 = vld [vmem:[%s2051_s0 + $0x108] sm:$0xf0] }
  0x34   :  { %817 = vmatpush.bf16.msrb.mxu3 %v1440_v62  ;;  %v1380_v62 = vld [vmem:[%s2051_s0 + $0x4c] sm:$0xf] }
  0x36   :  { %857 = vmatpush.bf16.msrb.mxu0 %v1447_v63  ;;  %v1045_v63 = vld [vmem:[%s2051_s0 + $0x64] sm:$0xf0] }
  0x37   :  { %1476 = vmatpush.bf16.msrb.mxu1 %v1455_v19 }
  0x38   :  { %818 = vmatpush.bf16.msrb.mxu3 %v1439_v2  ;;  %v1068_v2 = vor.u32 %v1386_v58, %v1065_v59 }
  0x3a   :  { %858 = vmatpush.bf16.msrb.mxu0 %v1446_v3  ;;  %v1128_v3 = vor.u32 %v1404_v61, %v1127_v60 }
  0x3b   :  { %1477 = vmatpush.bf16.msrb.mxu1 %v1454_v20 }
  0x3c   :  { %819 = vmatpush.bf16.msrb.mxu3 %v1438_v4  ;;  %v1048_v4 = vor.u32 %v1380_v62, %v1045_v63 }
  0x3e   :  { %859 = vmatpush.bf16.msrb.mxu0 %v1445_v5 }
  0x3f   :  { %1478 = vmatpush.bf16.msrb.mxu1 %v1453_v34 }
  0x40   :  { %820 = vmatpush.bf16.msrb.mxu3 %v1437_v14  ;;  %v1096_v14 = vor.u32 %v1393_v6, %v1093_v7  ;;  %v1163_v6 = vld [vmem:[%s2051_s0 + $0x130] sm:$0xf]  ;;  %v1412_v7 = vld [vmem:[%s2051_s0 + $0x148] sm:$0xf0] }
  0x41   :  { %724 = vmatmul.bf16.gmra.mxu3 %v1112_v15  ;;  %860 = vmatmul.bf16.vlgmr.msrb.gmra.mxu0 %v1016_v16  ;;  %v1156_v15 = vor.u32 %v1411_v9, %v1155_v8  ;;  %v1076_v16 = vor.u32 %v1387_v10, %v1073_v11 }
  0x42   :  { %891 = vmatpush.bf16.msra.mxu0 %v1609_v38  ;;  %753 = vmatmul.bf16.gmra.mxu1 %v1060_v17  ;;  %v1071_v38 = vld [vmem:[%s2051_s0 + $0x80] sm:$0xf]  ;;  %v1080_v17 = vor.u32 %v1391_v13, %v1079_v12 }
  0x43   :  { %792 = vmatmul.bf16.gmra.mxu2 %v1064_v18  ;;  %v1072_v44 = vor.u32 %v1390_v39, %v1071_v38  ;;  %v1869_v18 = vld [vmem:[%s2050_s2] ss:$0 sm:$0xff] }
  0x46   :  { %892 = vmatpush.bf16.msra.mxu0 %v1622_v41  ;;  %v1119_v41 = vld [vmem:[%s2051_s0 + $0xe8] sm:$0xf] }
  0x47   :  { %v1120_v46 = vor.u32 %v1403_v42, %v1119_v41 }
  0x4a   :  { %893 = vmatpush.bf16.msra.mxu0 %v1637_v45  ;;  %v1116_v45 = vor.u32 %v1399_v35, %v1113_v40 }
  0x4e   :  { %894 = vmatpush.bf16.msra.mxu0 %v1457_v56  ;;  %v1144_v56 = vor.u32 %v1406_v47, %v1141_v51  ;;  %v1377_v47 = vld [vmem:[%s2051_s0 + $0x30] sm:$0xf0] }
  0x51   :  { %729 = vmatmul.bf16.gmra.mxu3 %v1140_v29  ;;  %865 = vmatmul.bf16.gmra.mxu0 %v1044_v30  ;;  %v1104_v30 = vor.u32 %v1394_v23, %v1101_v24 }
  0x52   :  { %895 = vmatpush.bf16.msra.mxu0 %v1456_v1  ;;  %758 = vmatmul.bf16.gmra.mxu1 %v1088_v31  ;;  %v1384_v1 = vld [vmem:[%s2051_s0 + $0x68] sm:$0xf0]  ;;  %v1108_v31 = vor.u32 %v1398_v26, %v1107_v25 }
  0x53   :  { %797 = vmatmul.bf16.gmra.mxu2 %v1092_v33 }
  0x56   :  { %896 = vmatpush.bf16.msra.mxu0 %v1455_v19  ;;  %v1400_v19 = vld [vmem:[%s2051_s0 + $0xec] sm:$0xf] }
  0x5a   :  { %897 = vmatpush.bf16.msra.mxu0 %v1454_v20  ;;  %v1121_v20 = vld [vmem:[%s2051_s0 + $0x104] sm:$0xf0] }
  0x5b   :  { %v1124_v27 = vor.u32 %v1400_v19, %v1121_v20 }
  0x5e   :  { %898 = vmatpush.bf16.msra.mxu0 %v1453_v34 }
  0x61   :  { %821 = vmatmul.bf16.vlgmr.msrb.gmra.mxu3 %v1012_v43  ;;  %870 = vmatmul.bf16.gmra.mxu0 %v1072_v44  ;;  %v1407_v43 = vld [vmem:[%s2051_s0 + $0x124] sm:$0xf]  ;;  %v1149_v44 = vld [vmem:[%s2051_s0 + $0x13c] sm:$0xf0] }
  0x62   :  { %936 = vmatpush.bf16.msrb.mxu0 %v1601_v32  ;;  %763 = vmatmul.bf16.gmra.mxu1 %v1116_v45  ;;  %v1037_v32 = vld [vmem:[%s2051_s0 + $0x5c] sm:$0xf0]  ;;  %v1401_v45 = vld [vmem:[%s2051_s0 + $0xf4] sm:$0xf]  ;;  %v1152_v52 = vor.u32 %v1407_v43, %v1149_v44 }
  0x63   :  { %802 = vmatmul.bf16.gmra.mxu2 %v1120_v46  ;;  %v1040_v54 = vor.u32 %v1379_v48, %v1037_v32  ;;  %v1023_v46 = vld [vmem:[%s2051_s0 + $0x18] sm:$0xf]  ;;  %v1129_v48 = vld [vmem:[%s2051_s0 + $0x10c] sm:$0xf0] }
  0x64   :  { %v1135_v32 = vld [vmem:[%s2051_s0 + $0xf8] sm:$0xf]  ;;  %v1024_v53 = vor.u32 %v1377_v47, %v1023_v46 }
  0x66   :  { %937 = vmatpush.bf16.msrb.mxu0 %v1685_v0  ;;  %v1051_v0 = vld [vmem:[%s2051_s0 + $0x50] sm:$0xf] }
  0x67   :  { %v1052_v5 = vor.u32 %v1384_v1, %v1051_v0 }
  0x71   :  { %826 = vmatmul.bf16.gmra.mxu3 %v1040_v54  ;;  %875 = vmatmul.bf16.gmra.mxu0 %v1100_v55 }
  0x72   :  { %768 = vmatmul.bf16.gmra.mxu1 %v1144_v56  ;;  %v1132_v56 = vor.u32 %v1401_v45, %v1129_v48 }
  0x73   :  { %807 = vmatmul.bf16.gmra.mxu2 %v1148_v57  ;;  %v1136_v57 = vor.u32 %v1405_v49, %v1135_v32 }
  0x81   :  { %831 = vmatmul.bf16.gmra.mxu3 %v1068_v2  ;;  %880 = vmatmul.bf16.gmra.mxu0 %v1128_v3 }
  0x82   :  { %904 = vmatmul.bf16.vlgmr.msrb.gmra.mxu1 %v1048_v4  ;;  %v1408_v4 = vld [vmem:[%s2051_s0 + $0x12c] sm:$0xf] }
  0x83   :  { %1366 = vmatmul.msk.bf16.vlgmr.msrb.gmra.mxu2 %vm677_vm0, %v1052_v5  ;;  %v1157_v5 = vld [vmem:[%s2051_s0 + $0x144] sm:$0xf0] }
  0x84   :  { %v1160_v13 = vor.u32 %v1408_v4, %v1157_v5 }
  0x91   :  { %836 = vmatmul.bf16.gmra.mxu3 %v1096_v14  ;;  %885 = vmatmul.bf16.gmra.mxu0 %v1156_v15  ;;  %v1164_v14 = vor.u32 %v1412_v7, %v1163_v6 }
  0x92   :  { %909 = vmatmul.bf16.gmra.mxu1 %v1076_v16 }
  0x93   :  { %1367 = vmatmul.msk.bf16.gmra.mxu2 %vm677_vm0, %v1080_v17 }
  0x9e   :  { %v705_v29 = vpop.f32.mrf.mxu0 }
  0x9f   :  { %v706_v33 = vadd.f32 %v1869_v18, %v705_v29  ;;  %v744_v34 = vpop.f32.mrf.mxu1 }
  0xa1   :  { %v745_v35 = vadd.f32 %v744_v34, %v706_v33  ;;  %841 = vmatmul.bf16.gmra.mxu3 %v1124_v27  ;;  %899 = vmatmul.bf16.vlgmr.msra.gmra.mxu0 %v1020_v28 }
  0xa2   :  { %914 = vmatmul.bf16.gmra.mxu1 %v1104_v30 }
  0xa3   :  { %1368 = vmatmul.msk.bf16.gmra.mxu2 %vm677_vm0, %v1108_v31 }
  0xa4   :  { %v715_v36 = vpop.f32.mrf.mxu3 }
  0xa5   :  { %v716_v10 = vadd.f32 %v1869_v18, %v715_v36 }
  0xa6   :  { %v783_v37 = vpop.f32.mrf.mxu2  ;;  %v707_v39 = vpop.f32.mrf.mxu0 }
  0xa7   :  { %v1897_v38 = vadd.f32 %v783_v37, %v745_v35  ;;  %v708_v40 = vadd.f32 %v1869_v18, %v707_v39  ;;  %v746_v41 = vpop.f32.mrf.mxu1 }
  0xa9   :  { %v747_v42 = vadd.f32 %v746_v41, %v708_v40 }
  0xac   :  { %v717_v50 = vpop.f32.mrf.mxu3 }
  0xad   :  { %v718_v20 = vadd.f32 %v1869_v18, %v717_v50 }
  0xae   :  { %v785_v51 = vpop.f32.mrf.mxu2  ;;  %v710_v55 = vpop.f32.mrf.mxu0 }
  0xaf   :  { %v1924_v54 = vadd.f32 %v785_v51, %v747_v42  ;;  %v711_v58 = vadd.f32 %v1869_v18, %v710_v55  ;;  %v749_v59 = vpop.f32.mrf.mxu1 }
  0xb1   :  { %v750_v60 = vadd.f32 %v749_v59, %v711_v58  ;;  %846 = vmatmul.bf16.gmra.mxu3 %v1152_v52  ;;  %1365 = vmatmul.msk.bf16.vlgmr.msrb.gmra.mxu0 %vm677_vm0, %v1024_v53 }
  0xb2   :  { %919 = vmatmul.bf16.gmra.mxu1 %v1132_v56 }
  0xb3   :  { %1369 = vmatmul.msk.bf16.gmra.mxu2 %vm677_vm0, %v1136_v57 }
  0xb4   :  { %v720_v61 = vpop.f32.mrf.mxu3 }
  0xb5   :  { %v721_v27 = vadd.f32 %v1869_v18, %v720_v61 }
  0xb6   :  { %v788_v62 = vpop.f32.mrf.mxu2  ;;  %v712_v0 = vpop.f32.mrf.mxu0 }
  0xb7   :  { %v1929_v63 = vadd.f32 %v788_v62, %v750_v60  ;;  %v713_v1 = vadd.f32 %v1869_v18, %v712_v0  ;;  %v751_v2 = vpop.f32.mrf.mxu1 }
  0xb9   :  { %v752_v3 = vadd.f32 %v751_v2, %v713_v1 }
  0xbc   :  { %v722_v8 = vpop.f32.mrf.mxu3 }
  0xbd   :  { %v723_v36 = vadd.f32 %v1869_v18, %v722_v8 }
  0xbe   :  { %v790_v9 = vpop.f32.mrf.mxu2  ;;  %v861_v12 = vpop.f32.mrf.mxu0 }
  0xbf   :  { %v1945_v11 = vadd.f32 %v790_v9, %v752_v3  ;;  %v754_v15 = vpop.f32.mrf.mxu1 }
  0xc0   :  { %v755_v16 = vadd.f32 %v754_v15, %v716_v10 }
  0xc2   :  { %924 = vmatmul.bf16.gmra.mxu1 %v1160_v13 }
  0xc3   :  { %1370 = vmatmul.msk.bf16.gmra.mxu2 %vm677_vm0, %v1164_v14 }
  0xc4   :  { %v725_v17 = vpop.f32.mrf.mxu3 }
  0xc5   :  { %v726_v45 = vadd.f32 %v1869_v18, %v725_v17 }
  0xc6   :  { %v793_v19 = vpop.f32.mrf.mxu2  ;;  %v863_v22 = vpop.f32.mrf.mxu0 }
  0xc7   :  { %v1949_v21 = vadd.f32 %v793_v19, %v755_v16  ;;  %v756_v23 = vpop.f32.mrf.mxu1 }
  0xc8   :  { %v757_v24 = vadd.f32 %v756_v23, %v718_v20 }
  0xcc   :  { %v727_v25 = vpop.f32.mrf.mxu3 }
  0xcd   :  { %v728_v52 = vadd.f32 %v1869_v18, %v727_v25 }
  0xce   :  { %v795_v26 = vpop.f32.mrf.mxu2  ;;  %v866_v29 = vpop.f32.mrf.mxu0 }
  0xcf   :  { %v1952_v28 = vadd.f32 %v795_v26, %v757_v24  ;;  %v759_v30 = vpop.f32.mrf.mxu1 }
  0xd0   :  { %v760_v31 = vadd.f32 %v759_v30, %v721_v27 }
  0xd4   :  { %v730_v33 = vpop.f32.mrf.mxu3 }
  0xd5   :  { %v731_v34 = vadd.f32 %v1869_v18, %v730_v33 }
  0xd6   :  { %v798_v35 = vpop.f32.mrf.mxu2  ;;  %v868_v39 = vpop.f32.mrf.mxu0 }
  0xd7   :  { %v1956_v37 = vadd.f32 %v798_v35, %v760_v31  ;;  %v761_v40 = vpop.f32.mrf.mxu1 }
  0xd8   :  { %v762_v41 = vadd.f32 %v761_v40, %v723_v36 }
  0xdc   :  { %v732_v42 = vpop.f32.mrf.mxu3 }
  0xdd   :  { %v733_v43 = vadd.f32 %v1869_v18, %v732_v42 }
  0xde   :  { %v800_v44 = vpop.f32.mrf.mxu2  ;;  %v871_v47 = vpop.f32.mrf.mxu0 }
  0xdf   :  { %v1960_v46 = vadd.f32 %v800_v44, %v762_v41  ;;  %v764_v48 = vpop.f32.mrf.mxu1 }
  0xe0   :  { %v765_v32 = vadd.f32 %v764_v48, %v726_v45 }
  0xe4   :  { %v822_v49 = vpop.f32.mrf.mxu3 }
  0xe5   :  { %v823_v51 = vadd.f32 %v822_v49, %v1897_v38 }
  0xe6   :  { %v803_v50 = vpop.f32.mrf.mxu2  ;;  %v873_v55 = vpop.f32.mrf.mxu0 }
  0xe7   :  { %v1964_v53 = vadd.f32 %v803_v50, %v765_v32  ;;  %v766_v56 = vpop.f32.mrf.mxu1  ;;  %v1966_v57 = vadd.f32 %v861_v12, %v823_v51 }
  0xe8   :  { %v767_v58 = vadd.f32 %v766_v56, %v728_v52 }
  0xec   :  { %v824_v59 = vpop.f32.mrf.mxu3 }
  0xed   :  { %v825_v61 = vadd.f32 %v824_v59, %v1924_v54 }
  0xee   :  { %v805_v60 = vpop.f32.mrf.mxu2  ;;  %v876_v0 = vpop.f32.mrf.mxu0 }
  0xef   :  { %v1969_v62 = vadd.f32 %v805_v60, %v767_v58  ;;  %v769_v1 = vpop.f32.mrf.mxu1  ;;  %v1971_v2 = vadd.f32 %v863_v22, %v825_v61 }
  0xf0   :  { %v770_v38 = vadd.f32 %v769_v1, %v731_v34 }
  0xf4   :  { %v827_v3 = vpop.f32.mrf.mxu3 }
  0xf5   :  { %v828_v10 = vadd.f32 %v827_v3, %v1929_v63 }
  0xf6   :  { %v808_v18 = vpop.f32.mrf.mxu2  ;;  %v878_v5 = vpop.f32.mrf.mxu0 }
  0xf7   :  { %v1973_v4 = vadd.f32 %v808_v18, %v770_v38  ;;  %v771_v6 = vpop.f32.mrf.mxu1  ;;  %v867_v14 = vadd.f32 %v866_v29, %v828_v10 }
  0xf8   :  { %v772_v7 = vadd.f32 %v771_v6, %v733_v43 }
  0xfc   :  { %v829_v8 = vpop.f32.mrf.mxu3 }
  0xfd   :  { %v830_v19 = vadd.f32 %v829_v8, %v1945_v11 }
  0xfe   :  { %v810_v9 = vpop.f32.mrf.mxu2  ;;  %v1978_v54 = vpop.f32.mrf.mxu0 }
  0xff   :  { %v1976_v12 = vadd.f32 %v810_v9, %v772_v7  ;;  %v905_v13 = vpop.f32.mrf.mxu1  ;;  %v869_v63 = vadd.f32 %v868_v39, %v830_v19 }
 0x100   :  { %v906_v15 = vadd.f32 %v905_v13, %v867_v14 }
 0x104   :  { %v832_v16 = vpop.f32.mrf.mxu3 }
 0x105   :  { %v833_v29 = vadd.f32 %v832_v16, %v1949_v21 }
 0x106   :  { %v944_v17 = vpop.f32.mrf.mxu2  ;;  %v1981_v22 = vpop.f32.mrf.mxu0 }
 0x107   :  { %v945_v20 = vadd.f32 %v944_v17, %v906_v15  ;;  %v907_v23 = vpop.f32.mrf.mxu1  ;;  %v872_v34 = vadd.f32 %v871_v47, %v833_v29 }
 0x108   :  { %v908_v25 = vadd.f32 %v907_v23, %v869_v63 }
 0x109   :  { %v971_v24 = vmax.f32 %v945_v20, 0.0 }
 0x10b   :  { %983 = vst.msk [vmem:[%s2052_s3 + $0x10] sm:$0xff] %vm677_vm0, %v971_v24 }
 0x10c   :  { %v834_v26 = vpop.f32.mrf.mxu3 }
 0x10d   :  { %v835_v39 = vadd.f32 %v834_v26, %v1952_v28 }
 0x10e   :  { %v946_v27 = vpop.f32.mrf.mxu2  ;;  %v1988_v31 = vpop.f32.mrf.mxu0 }
 0x10f   :  { %v947_v30 = vadd.f32 %v946_v27, %v908_v25  ;;  %v910_v11 = vpop.f32.mrf.mxu1  ;;  %v874_v44 = vadd.f32 %v873_v55, %v835_v39 }
 0x110   :  { %v911_v35 = vadd.f32 %v910_v11, %v872_v34 }
 0x111   :  { %v972_v33 = vmax.f32 %v947_v30, 0.0 }
 0x113   :  { %984 = vst.msk [vmem:[%s2052_s3 + $0x18] sm:$0xff] %vm677_vm0, %v972_v33 }
 0x114   :  { %v837_v36 = vpop.f32.mrf.mxu3 }
 0x115   :  { %v838_v47 = vadd.f32 %v837_v36, %v1956_v37 }
 0x116   :  { %v949_v40 = vpop.f32.mrf.mxu2  ;;  %v1995_v42 = vpop.f32.mrf.mxu0 }
 0x117   :  { %v950_v41 = vadd.f32 %v949_v40, %v911_v35  ;;  %v912_v21 = vpop.f32.mrf.mxu1  ;;  %v877_v52 = vadd.f32 %v876_v0, %v838_v47 }
 0x118   :  { %v913_v45 = vadd.f32 %v912_v21, %v874_v44 }
 0x119   :  { %v973_v43 = vmax.f32 %v950_v41, 0.0 }
 0x11b   :  { %985 = vst.msk [vmem:[%s2052_s3 + $0x20] sm:$0xff] %vm677_vm0, %v973_v43 }
 0x11c   :  { %v839_v48 = vpop.f32.mrf.mxu3 }
 0x11d   :  { %v840_v55 = vadd.f32 %v839_v48, %v1960_v46 }
 0x11e   :  { %v951_v32 = vpop.f32.mrf.mxu2  ;;  %v900_v50 = vpop.f32.mrf.mxu0 }
 0x11f   :  { %v952_v49 = vadd.f32 %v951_v32, %v913_v45  ;;  %v915_v51 = vpop.f32.mrf.mxu1  ;;  %v879_v37 = vadd.f32 %v878_v5, %v840_v55  ;;  %v901_v18 = vadd.f32 %v900_v50, %v1966_v57 }
 0x120   :  { %v916_v56 = vadd.f32 %v915_v51, %v877_v52 }
 0x121   :  { %v974_v28 = vmax.f32 %v952_v49, 0.0 }
 0x123   :  { %986 = vst.msk [vmem:[%s2052_s3 + $0x28] sm:$0xff] %vm677_vm0, %v974_v28 }
 0x124   :  { %v842_v58 = vpop.f32.mrf.mxu3 }
 0x125   :  { %v843_v0 = vadd.f32 %v842_v58, %v1964_v53 }
 0x126   :  { %v954_v59 = vpop.f32.mrf.mxu2  ;;  %v902_v61 = vpop.f32.mrf.mxu0 }
 0x127   :  { %v955_v60 = vadd.f32 %v954_v59, %v916_v56  ;;  %v917_v1 = vpop.f32.mrf.mxu1  ;;  %v882_v5 = vadd.f32 %v1978_v54, %v843_v0  ;;  %v903_v57 = vadd.f32 %v902_v61, %v1971_v2 }
 0x128   :  { %v918_v3 = vadd.f32 %v917_v1, %v879_v37 }
 0x129   :  { %v975_v38 = vmax.f32 %v955_v60, 0.0 }
 0x12b   :  { %987 = vst.msk [vmem:[%s2052_s3 + $0x30] sm:$0xff] %vm677_vm0, %v975_v38 }
 0x12c   :  { %v844_v9 = vpop.f32.mrf.mxu3 }
 0x12d   :  { %v845_v16 = vadd.f32 %v844_v9, %v1969_v62 }
 0x12e   :  { %v956_v6 = vpop.f32.mrf.mxu2  ;;  %v939_v8 = vpop.f32.mrf.mxu0 }
 0x12f   :  { %v957_v7 = vadd.f32 %v956_v6, %v918_v3  ;;  %v920_v46 = vpop.f32.mrf.mxu1  ;;  %v940_v10 = vadd.f32 %v939_v8, %v901_v18  ;;  %v884_v54 = vadd.f32 %v1981_v22, %v845_v16 }
 0x130   :  { %v921_v53 = vadd.f32 %v920_v46, %v882_v5 }
 0x131   :  { %v976_v13 = vmax.f32 %v957_v7, 0.0  ;;  %v969_v14 = vmax.f32 %v940_v10, 0.0 }
 0x133   :  { %988 = vst.msk [vmem:[%s2052_s3 + $0x38] sm:$0xff] %vm677_vm0, %v976_v13 }
 0x134   :  { %981 = vst.msk [vmem:[%s2052_s3] sm:$0xff] %vm677_vm0, %v969_v14  ;;  %v847_v63 = vpop.f32.mrf.mxu3 }
 0x135   :  { %v848_v26 = vadd.f32 %v847_v63, %v1973_v4 }
 0x136   :  { %v959_v15 = vpop.f32.mrf.mxu2  ;;  %v941_v19 = vpop.f32.mrf.mxu0 }
 0x137   :  { %v960_v17 = vadd.f32 %v959_v15, %v921_v53  ;;  %v922_v20 = vpop.f32.mrf.mxu1  ;;  %v942_v23 = vadd.f32 %v941_v19, %v903_v57  ;;  %v887_v11 = vadd.f32 %v1988_v31, %v848_v26 }
 0x138   :  { %v923_v62 = vadd.f32 %v922_v20, %v884_v54 }
 0x139   :  { %v977_v24 = vmax.f32 %v960_v17, 0.0  ;;  %v970_v25 = vmax.f32 %v942_v23, 0.0 }
 0x13b   :  { %989 = vst.msk [vmem:[%s2052_s3 + $0x40] sm:$0xff] %vm677_vm0, %v977_v24 }
 0x13c   :  { %982 = vst.msk [vmem:[%s2052_s3 + $0x8] sm:$0xff] %vm677_vm0, %v970_v25  ;;  %v849_v22 = vpop.f32.mrf.mxu3 }
 0x13d   :  { %v850_v35 = vadd.f32 %v849_v22, %v1976_v12 }
 0x13e   :  { %v961_v2 = vpop.f32.mrf.mxu2 }
 0x13f   :  { %v962_v27 = vadd.f32 %v961_v2, %v923_v62  ;;  %v925_v29 = vpop.f32.mrf.mxu1  ;;  %v889_v4 = vadd.f32 %v1995_v42, %v850_v35 }
 0x140   :  { %v926_v33 = vadd.f32 %v925_v29, %v887_v11 }
 0x141   :  { %v978_v30 = vmax.f32 %v962_v27, 0.0 }
 0x143   :  { %990 = vst.msk [vmem:[%s2052_s3 + $0x48] sm:$0xff] %vm677_vm0, %v978_v30 }
 0x146   :  { %v964_v34 = vpop.f32.mrf.mxu2 }
 0x147   :  { %v965_v36 = vadd.f32 %v964_v34, %v926_v33  ;;  %v927_v39 = vpop.f32.mrf.mxu1 }
 0x148   :  { %v928_v41 = vadd.f32 %v927_v39, %v889_v4 }
 0x149   :  { %v979_v40 = vmax.f32 %v965_v36, 0.0 }
 0x14b   :  { %991 = vst.msk [vmem:[%s2052_s3 + $0x50] sm:$0xff] %vm677_vm0, %v979_v40 }
 0x14e   :  { %v966_v21 = vpop.f32.mrf.mxu2 }
 0x14f   :  { %v967_v43 = vadd.f32 %v966_v21, %v928_v41 }
 0x151   :  { %v980_v44 = vmax.f32 %v967_v43, 0.0 }
 0x153   :  { %992 = vst.msk [vmem:[%s2052_s3 + $0x58] sm:$0xff] %vm677_vm0, %v980_v44 }

// kernel: planner_forward.9
= control target key start
LH: loop header
LB: loop body
LE: loop exit
PB: predicated region body
PF: predicated region fallthrough
CT: control target
= control target key end

     0   :  { %s346_s0 = inlined_call_operand.vmem [shape: f32[2,32,48], index: 0, kind: input, shape index: {}]   ;;  %s347_s1 = inlined_call_operand.vmem [shape: f32[32,1], index: 1, kind: input, shape index: {}]   ;;  %s348_s2 = inlined_call_operand.<no memory space> [shape: f32[1,1], index: 2, kind: input, shape index: {}]   ;;  %s349_s3 = inlined_call_operand.vmem [shape: f32[1,48], index: 3, kind: input, shape index: {}]   ;;  %s350_s4 = inlined_call_operand.vmem [shape: f32[1,48], index: 4, kind: input, shape index: {}]   ;;  %s351_s5 = inlined_call_operand.hbm [shape: f32[2,2], index: 5, kind: output, shape index: {}]  }
   0x1   :  { %v10_v0 = vstv %s348_s2 }
   0x2   :  { %11 = vst [vmem:[#allocation2] sm:$0x1] %v10_v0 }
   0x3   :  { %v33_v1 = vld [vmem:[%s347_s1 + $0x10] sm:$0xff]  ;;  %v31_v2 = vld [vmem:[%s347_s1] sm:$0xff]  ;;  %v250_v3 = vmov 0  }
   0x4   :  { %211 = vset.pattern.permute.xlu1 %v250_v3  ;;  %210 = vset.pattern.permute.xlu0 %v250_v3 }
   0x5   :  { %47 = vperm.xlu1 %211, %v33_v1   ;;  %37 = vperm.xlu0 %210, %v31_v2  }
   0x9   :  { %v213_v4 = vld [vmem:[#allocation2] ss:$0 sm:$0xff] }
   0xa   :  { %12 = vsyncpa [#allocation4], 0  ;;  %212 = vset.pattern.permute.xlu2 %v250_v3  ;;  %v34_v5 = vld [vmem:[%s347_s1 + $0x18] sm:$0xff]  ;;  %v32_v6 = vld [vmem:[%s347_s1 + $0x8] sm:$0xff]  ;;  %vm63_vm0 = vcmask 392192   ;;  %vm101_vm1 = vcmask 1041409  }
   0xb   :  { %94 = vperm.xlu2 %212, %v213_v4   ;;  %v23_v9 = vld [vmem:[%s346_s0] sm:$0xff]  ;;  %v25_v11 = vld [vmem:[%s346_s0 + $0x10] sm:$0xff]  ;;  %v24_v15 = vld [vmem:[%s346_s0 + $0x8] sm:$0xff]  ;;  %vm104_vm2 = vcmask 386048   ;;  %s199_s22 = sshll.u32 %s351_s5, 4  ;;  %vm188_vm11 = vcmask 7168   ;;  %s200_s22 = int_to_ptr.hbm [resolvable:$true] %s199_s22 }
   0xc   :  { %v27_v10 = vld [vmem:[%s346_s0 + $0x20] sm:$0xff]  ;;  %v29_v12 = vld [vmem:[%s346_s0 + $0x30] sm:$0xff]  ;;  %v28_v16 = vld [vmem:[%s346_s0 + $0x28] sm:$0xff]  ;;  %vm190_vm12 = vcmask 9216  }
   0xd   :  { %52 = vperm.xlu1 %211, %v34_v5   ;;  %42 = vperm.xlu0 %210, %v32_v6   ;;  %v26_v18 = vld [vmem:[%s346_s0 + $0x18] sm:$0xff] }
   0xe   :  { %v30_v19 = vld [vmem:[%s346_s0 + $0x38] sm:$0xff] }
  0x65   :  { %v95_v51 = vpop.permute.xlu2 %94 }
  0x77   :  { %v48_v7 = vpop.permute.xlu1 %47  ;;  %v38_v8 = vpop.permute.xlu0 %37 }
  0x78   :  { %v55_v13 = vmul.f32 %v38_v8, %v23_v9  ;;  %v59_v14 = vmul.f32 %v38_v8, %v27_v10  ;;  %v57_v21 = vmul.f32 %v48_v7, %v25_v11  ;;  %v61_v22 = vmul.f32 %v48_v7, %v29_v12 }
  0x7a   :  { %v64_v25 = vsel %vm63_vm0, %v55_v13, 0.0  ;;  %v77_v26 = vsel %vm63_vm0, %v59_v14, 0.0  ;;  %v67_v33 = vsel %vm63_vm0, %v57_v21, 0.0  ;;  %v80_v34 = vsel %vm63_vm0, %v61_v22, 0.0 }
  0x7f   :  { %v53_v17 = vpop.permute.xlu1 %52  ;;  %v43_v20 = vpop.permute.xlu0 %42 }
  0x80   :  { %v56_v23 = vmul.f32 %v43_v20, %v24_v15  ;;  %v60_v24 = vmul.f32 %v43_v20, %v28_v16  ;;  %v58_v27 = vmul.f32 %v53_v17, %v26_v18  ;;  %v62_v28 = vmul.f32 %v53_v17, %v30_v19 }
  0x82   :  { %v65_v29 = vsel %vm63_vm0, %v56_v23, 0.0  ;;  %v78_v30 = vsel %vm63_vm0, %v60_v24, 0.0  ;;  %v69_v37 = vsel %vm63_vm0, %v58_v27, 0.0  ;;  %v82_v38 = vsel %vm63_vm0, %v62_v28, 0.0 }
  0x83   :  { %v66_v31 = vadd.f32 %v65_v29, %v64_v25  ;;  %v79_v32 = vadd.f32 %v78_v30, %v77_v26  ;;  %v214_v29 = vld [vmem:[%s350_s4] ss:$0 sm:$0xff]  ;;  %s251_s4 = smov [#allocation3]  }
  0x84   :  { %v215_v30 = vld [vmem:[%s349_s3] ss:$0 sm:$0xff]  ;;  %s197_s20 = sshll.u32 %s251_s4, 4  ;;  %s198_s20 = int_to_ptr.vmem [resolvable:$true] %s197_s20 }
  0x85   :  { %v68_v35 = vadd.f32 %v67_v33, %v66_v31  ;;  %v81_v36 = vadd.f32 %v80_v34, %v79_v32 }
  0x87   :  { %v70_v39 = vadd.f32 %v69_v37, %v68_v35  ;;  %v83_v40 = vadd.f32 %v82_v38, %v81_v36 }
  0x89   :  { %v71_v41 = vrot.slane %v70_v39, 4  ;;  %v84_v42 = vrot.slane %v83_v40, 4 }
  0x8b   :  { %v72_v43 = vadd.f32 %v71_v41, %v70_v39  ;;  %v85_v44 = vadd.f32 %v84_v42, %v83_v40 }
  0x8d   :  { %v73_v45 = vrot.slane %v72_v43, 2  ;;  %v86_v46 = vrot.slane %v85_v44, 2 }
  0x8f   :  { %v74_v47 = vadd.f32 %v73_v45, %v72_v43  ;;  %v87_v48 = vadd.f32 %v86_v46, %v85_v44 }
  0x91   :  { %v75_v49 = vrot.slane %v74_v47, 1  ;;  %v88_v50 = vrot.slane %v87_v48, 1 }
  0x93   :  { %v76_v52 = vadd.f32 %v75_v49, %v74_v47  ;;  %v89_v53 = vadd.f32 %v88_v50, %v87_v48 }
  0x95   :  { %v97_v54 = vadd.f32 %v95_v51, %v76_v52  ;;  %v98_v55 = vadd.f32 %v95_v51, %v89_v53 }
  0x97   :  { %v102_v56 = vsel %vm101_vm1, %v98_v55, %v97_v54 }
  0x98   :  { %v105_v57 = vsel %vm104_vm2, %v102_v56, -inf }
  0x99   :  { %106 = vmax.xlane.f32.xlu2 %v105_v57 }
 0x10c   :  { %v107_v58 = vpop.xlane.xlu2 %106 }
 0x10d   :  { %v109_v59 = vrot.slane %v107_v58, 1  ;;  %v112_v60 = vsub.f32 %v97_v54, %v107_v58 }
 0x10f   :  { %v113_v61 = vsub.f32 %v98_v55, %v109_v59  ;;  %v114_v62 = vmul.f32 1.442695, %v112_v60 }
 0x111   :  { %v116_v63 = vmul.f32 1.442695, %v113_v61 }
 0x113   :  { %216 = vpow2.f32 %v116_v63 }
 0x114   :  { %218 = vpow2.f32 %v114_v62 }
 0x119   :  { %v217_v0 = vpop.eup %216 }
 0x11a   :  { %v120_v1 = vrot.slane %v217_v0, 7  ;;  %v219_v2 = vpop.eup %218 }
 0x11c   :  { %v121_v3 = vsel %vm101_vm1, %v120_v1, %v219_v2 }
 0x11d   :  { %v123_v4 = vsel %vm104_vm2, %v121_v3, 0.0 }
 0x11e   :  { %124 = vadd.xlane.f32.xlu0 %v123_v4 }
 0x191   :  { %v125_v5 = vpop.xlane.xlu0 %124 }
 0x192   :  { %v127_v6 = vrot.slane %v125_v5, 1  ;;  %220 = vrcp.f32 %v125_v5  ;;  %v141_v12 = vand.u32 2147483648, %v125_v5  ;;  %v139_v14 = vand.u32 2147483647, %v125_v5 }
 0x193   :  { %vm135_vm4 = vweird.f32 %v125_v5 }
 0x194   :  { %222 = vrcp.f32 %v127_v6  ;;  %v156_v16 = vand.u32 2147483648, %v127_v6  ;;  %v154_v19 = vand.u32 2147483647, %v127_v6  ;;  %v142_v20 = vor.u32 1.1754944e-38, %v141_v12 }
 0x195   :  { %vm140_vm7 = vcmp.eq.f32.partialorder %v139_v14, 8.507059e+37  ;;  %vm150_vm8 = vweird.f32 %v127_v6 }
 0x196   :  { %v157_v24 = vor.u32 1.1754944e-38, %v156_v16  ;;  %vm155_vm10 = vcmp.eq.f32.partialorder %v154_v19, 8.507059e+37 }
 0x198   :  { %v221_v7 = vpop.eup %220 }
 0x199   :  { %v131_v8 = vmul.f32 %v221_v7, %v125_v5  ;;  %vm136_vm3 = vweird.f32 %v221_v7 }
 0x19a   :  { %v223_v9 = vpop.eup %222  ;;  %vm137_vm6 = vmor %vm135_vm4, %vm136_vm3 }
 0x19b   :  { %v132_v10 = vsub.f32 1.0, %v131_v8  ;;  %v146_v11 = vmul.f32 %v223_v9, %v127_v6  ;;  %vm151_vm5 = vweird.f32 %v223_v9 }
 0x19c   :  { %vm152_vm9 = vmor %vm150_vm8, %vm151_vm5 }
 0x19d   :  { %v133_v13 = vmul.f32 %v221_v7, %v132_v10  ;;  %v147_v15 = vsub.f32 1.0, %v146_v11 }
 0x19f   :  { %v134_v17 = vadd.f32 %v221_v7, %v133_v13  ;;  %v148_v18 = vmul.f32 %v223_v9, %v147_v15 }
 0x1a1   :  { %v138_v21 = vsel %vm137_vm6, %v221_v7, %v134_v17  ;;  %v149_v22 = vadd.f32 %v223_v9, %v148_v18 }
 0x1a2   :  { %v143_v23 = vsel %vm140_vm7, %v142_v20, %v138_v21 }
 0x1a3   :  { %v153_v25 = vsel %vm152_vm9, %v223_v9, %v149_v22  ;;  %v144_v27 = vmul.f32 %v219_v2, %v143_v23 }
 0x1a4   :  { %v158_v26 = vsel %vm155_vm10, %v157_v24, %v153_v25 }
 0x1a5   :  { %v159_v28 = vmul.f32 %v217_v0, %v158_v26  ;;  %v178_v33 = vmul.f32 %v214_v29, %v144_v27  ;;  %v164_v35 = vmul.f32 %v215_v30, %v144_v27 }
 0x1a7   :  { %v179_v31 = vmul.f32 %v214_v29, %v159_v28  ;;  %v165_v32 = vmul.f32 %v215_v30, %v159_v28 }
 0x1a9   :  { %v182_v34 = vrot.slane %v179_v31, 7  ;;  %v168_v36 = vrot.slane %v165_v32, 7 }
 0x1ab   :  { %v183_v37 = vsel %vm101_vm1, %v182_v34, %v178_v33  ;;  %v169_v38 = vsel %vm101_vm1, %v168_v36, %v164_v35 }
 0x1ac   :  { %v185_v39 = vsel %vm104_vm2, %v183_v37, 0.0  ;;  %v171_v40 = vsel %vm104_vm2, %v169_v38, 0.0 }
 0x1ad   :  { %186 = vadd.xlane.f32.xlu2 %v185_v39  ;;  %172 = vadd.xlane.f32.xlu1 %v171_v40 }
 0x220   :  { %v187_v41 = vpop.xlane.xlu2 %186  ;;  %v173_v42 = vpop.xlane.xlu1 %172 }
 0x221   :  { %v189_v43 = vsel %vm188_vm11, %v173_v42, %v187_v41 }
 0x222   :  { %191 = vst.msk [vmem:[#allocation3] sm:$0x3] %vm190_vm12, %v189_v43 }
 0x223   :  { %202 = dma.vmem_to_hbm [thread:$0]  %s198_s20, 32, %s200_s22, [#allocation4]  }
 0x224   :  { %248 = dma.done.wait [#allocation4], 32  }
 0x225   :  { %249 = vsyncadd [#allocation4], 4294967264 }
 0x226   :  { %207 = vsyncpa [#allocation4], 1 }

</bundles_post_ra>
